<compile_context>
chip_gen: v7x
topology: tpu7x:2x2x1
jax: 0.10.0
libtpu: 0.0.40
codegen_flags: <defaults>
</compile_context>

<pallas_src>
import jax
import jax.numpy as jnp
from jax.experimental import pallas as pl
from jax.experimental.pallas import tpu as pltpu

EPS = 1e-5


def conv_bn_kernel(x_ref, w_ref, gamma_ref, beta_ref, o_ref):
    # x_ref:     [Cin, M]   f32  (full M, constant block index -> resident)
    # w_ref:     [TC, Cin]  bf16 (Cout tile, native Conv2d weight layout)
    # gamma_ref: [TC, 1]    f32
    # beta_ref:  [TC, 1]    f32
    # o_ref:     [TC, M]    (== NCHW layout for N=1)
    x_bf = x_ref[...].astype(jnp.bfloat16)
    # bf16 x bf16 on the MXU with f32 accumulation; no operand transposes needed.
    y = jnp.dot(w_ref[...], x_bf, preferred_element_type=jnp.float32)  # [TC, M]
    inv_m = jnp.float32(1.0 / y.shape[1])
    # Per-output-channel batch stats over M (= N*H*W), two-pass for accuracy.
    mean = jnp.sum(y, axis=1, keepdims=True) * inv_m                   # [TC, 1]
    d = y - mean
    var = jnp.sum(d * d, axis=1, keepdims=True) * inv_m                # biased
    scale = jax.lax.rsqrt(var + EPS) * gamma_ref[...]                  # [TC, 1]
    o_ref[...] = (d * scale + beta_ref[...]).astype(o_ref.dtype)
    # TODO(synk): BatchNorm2d (track_running_stats=True) also updates
    # running_mean/running_var with momentum; emit mean/var as extra [TC,1]
    # outputs if that module state is needed.


def _num_tensorcores():
    # v7x has 2 TensorCores per chip; v5e/v6e have 1.
    kind = jax.devices()[0].device_kind.lower()
    return 2 if "v7" in kind else 1


def conv2d_1x1_batchnorm(x_nchw, w_oi_bf16, gamma, beta, *, tile_c=None,
                         out_dtype=jnp.float32):
    """x_nchw: [1, Cin, H, W] f32; w_oi_bf16: [Cout, Cin] bf16 (pre-cast once);
    gamma/beta: [Cout] f32.  Returns NCHW [1, Cout, H, W] in out_dtype."""
    n, cin, h, w = x_nchw.shape
    assert n == 1  # TODO(synk): N>1 needs a batch grid dim / [M, Cout] layout.
    cout = w_oi_bf16.shape[0]
    m = h * w

    if tile_c is None:
        tile_c = cout // _num_tensorcores()   # 1536 on v5e/v6e, 768 on v7x
    assert cout % tile_c == 0

    x_mat = x_nchw.reshape(cin, m)                       # free view (contiguous)
    gamma2 = gamma.reshape(cout, 1).astype(jnp.float32)
    beta2 = beta.reshape(cout, 1).astype(jnp.float32)

    grid = (cout // tile_c,)
    out_itemsize = jnp.dtype(out_dtype).itemsize
    cost = pl.CostEstimate(
        flops=2 * m * cin * cout + 8 * m * cout,
        transcendentals=cout,                            # rsqrt per channel
        bytes_accessed=(x_mat.size * 4 + w_oi_bf16.size * 2
                        + gamma2.size * 4 + beta2.size * 4
                        + m * cout * out_itemsize),
    )

    out_mat = pl.pallas_call(
        conv_bn_kernel,
        out_shape=jax.ShapeDtypeStruct((cout, m), out_dtype),
        grid_spec=pltpu.PrefetchScalarGridSpec(
            num_scalar_prefetch=0,
            grid=grid,
            in_specs=[
                # x: constant block index -> stays resident across grid steps.
                pl.BlockSpec((cin, m), lambda j: (0, 0)),
                pl.BlockSpec((tile_c, cin), lambda j: (j, 0)),  # weight tile
                pl.BlockSpec((tile_c, 1), lambda j: (j, 0)),    # gamma tile
                pl.BlockSpec((tile_c, 1), lambda j: (j, 0)),    # beta tile
            ],
            out_specs=pl.BlockSpec((tile_c, m), lambda j: (j, 0)),
        ),
        compiler_params=pltpu.CompilerParams(
            dimension_semantics=("parallel",)),
        cost_estimate=cost,
    )(x_mat, w_oi_bf16, gamma2, beta2)

    # [Cout, M] is already NCHW for N=1 -> free reshape, no transpose kernel.
    return out_mat.reshape(n, cout, h, w)


if __name__ == "__main__":
    key = jax.random.PRNGKey(0)
    k_x, k_w, k_g, k_b = jax.random.split(key, 4)

    N, CIN, H, W = 1, 384, 7, 7
    COUT = 1536

    x = jax.random.normal(k_x, (N, CIN, H, W), dtype=jnp.float32)
    # Conv2d(384, 1536, 1x1, bias=False) weight: [Cout, Cin, 1, 1] -> [Cout, Cin]
    conv_w = jax.random.normal(k_w, (COUT, CIN), dtype=jnp.float32) * 0.05
    # BatchNorm2d affine params (deterministic synthetic init)
    gamma = 1.0 + 0.1 * jax.random.normal(k_g, (COUT,), dtype=jnp.float32)
    beta = 0.1 * jax.random.normal(k_b, (COUT,), dtype=jnp.float32)

    # Static parameter: cast to bf16 once, outside the hot path (no transpose).
    conv_w_bf16 = conv_w.astype(jnp.bfloat16)

    out = conv2d_1x1_batchnorm(x, conv_w_bf16, gamma, beta)
    out = jax.block_until_ready(out)
    assert out.shape == (N, COUT, H, W), out.shape

    # Reference mirroring the kernel's precision (bf16-rounded matmul operands,
    # f32 accumulation, f32 BN) -> tight tolerance.
    xb = x.astype(jnp.bfloat16).astype(jnp.float32)
    wb = conv_w.astype(jnp.bfloat16).astype(jnp.float32)
    y_ref = jnp.einsum("nchw,oc->nohw", xb, wb,
                       precision=jax.lax.Precision.HIGHEST)
    mu = jnp.mean(y_ref, axis=(0, 2, 3), keepdims=True)
    var = jnp.mean((y_ref - mu) ** 2, axis=(0, 2, 3), keepdims=True)
    ref = (y_ref - mu) * jax.lax.rsqrt(var + EPS) * gamma[None, :, None, None] \
        + beta[None, :, None, None]
    err = jnp.max(jnp.abs(out - ref))
    assert err < 2e-3, err

    # Loose sanity check against full-f32 math (only bf16 operand rounding differs).
    y_f32 = jnp.einsum("nchw,oc->nohw", x, conv_w,
                       precision=jax.lax.Precision.HIGHEST)
    mu_f = jnp.mean(y_f32, axis=(0, 2, 3), keepdims=True)
    var_f = jnp.mean((y_f32 - mu_f) ** 2, axis=(0, 2, 3), keepdims=True)
    ref_f32 = (y_f32 - mu_f) * jax.lax.rsqrt(var_f + EPS) \
        * gamma[None, :, None, None] + beta[None, :, None, None]
    assert jnp.max(jnp.abs(out - ref_f32)) < 1e-1

    print("KERNEL_OK")
</pallas_src>

<mosaic_0001>
module attributes {stable_mosaic.version = 11 : i64} {
  func.func @conv_bn_kernel(%arg0: i32, %arg1: memref<384x49xf32, #tpu.memory_space<vmem>>, %arg2: memref<1536x384xbf16, #tpu.memory_space<vmem>>, %arg3: memref<1536x1xf32, #tpu.memory_space<vmem>>, %arg4: memref<1536x1xf32, #tpu.memory_space<vmem>>, %arg5: memref<1536x49xf32, #tpu.memory_space<vmem>>) attributes {dimension_semantics = [#tpu.dimension_semantics<parallel>], iteration_bounds = array<i64: 1>, scalar_prefetch = 0 : i64, scratch_operands = 0 : i64, tpu.core_type = #tpu.core_type<tc>, window_params = [{pipeline_mode = #tpu.pipeline_mode<synchronous>, transform_indices = @transform_0, window_bounds = array<i64: 384, 49>}, {transform_indices = @transform_1, window_bounds = array<i64: 1536, 384>}, {transform_indices = @transform_2, window_bounds = array<i64: 1536, 1>}, {transform_indices = @transform_3, window_bounds = array<i64: 1536, 1>}, {transform_indices = @transform_4, window_bounds = array<i64: 1536, 49>}]} {
    %c0 = arith.constant 0 : index
    %c0_0 = arith.constant 0 : index
    %0 = vector.load %arg1[%c0, %c0_0] : memref<384x49xf32, #tpu.memory_space<vmem>>, vector<384x49xf32>
    %1 = arith.truncf %0 : vector<384x49xf32> to vector<384x49xbf16>
    %c0_1 = arith.constant 0 : index
    %c0_2 = arith.constant 0 : index
    %2 = vector.load %arg2[%c0_1, %c0_2] : memref<1536x384xbf16, #tpu.memory_space<vmem>>, vector<1536x384xbf16>
    %cst = arith.constant dense<0.000000e+00> : vector<1536x49xf32>
    %3 = tpu.matmul %2, %1, %cst {dimension_numbers = #tpu.dot_dimension_numbers<[1], [0], [0], [1], [0, 0, 1, 1], [], []>} : vector<1536x384xbf16>, vector<384x49xbf16>, vector<1536x49xf32> -> vector<1536x49xf32>
    %cst_3 = arith.constant dense<0.000000e+00> : vector<1536xf32>
    %4 = vector.multi_reduction <add>, %3, %cst_3 [1] : vector<1536x49xf32> to vector<1536xf32>
    %5 = vector.shape_cast %4 : vector<1536xf32> to vector<1536x1xf32>
    %cst_4 = arith.constant 0.0204081628 : f32
    %6 = vector.broadcast %cst_4 : f32 to vector<1536x1xf32>
    %7 = arith.mulf %5, %6 : vector<1536x1xf32>
    %8 = vector.broadcast %7 : vector<1536x1xf32> to vector<1536x49xf32>
    %9 = arith.subf %3, %8 : vector<1536x49xf32>
    %10 = arith.mulf %9, %9 : vector<1536x49xf32>
    %cst_5 = arith.constant dense<0.000000e+00> : vector<1536xf32>
    %11 = vector.multi_reduction <add>, %10, %cst_5 [1] : vector<1536x49xf32> to vector<1536xf32>
    %12 = vector.shape_cast %11 : vector<1536xf32> to vector<1536x1xf32>
    %cst_6 = arith.constant 0.0204081628 : f32
    %13 = vector.broadcast %cst_6 : f32 to vector<1536x1xf32>
    %14 = arith.mulf %12, %13 : vector<1536x1xf32>
    %cst_7 = arith.constant 9.99999974E-6 : f32
    %15 = vector.broadcast %cst_7 : f32 to vector<1536x1xf32>
    %16 = arith.addf %14, %15 : vector<1536x1xf32>
    %17 = math.rsqrt %16 : vector<1536x1xf32>
    %c0_8 = arith.constant 0 : index
    %c0_9 = arith.constant 0 : index
    %18 = vector.load %arg3[%c0_8, %c0_9] : memref<1536x1xf32, #tpu.memory_space<vmem>>, vector<1536x1xf32>
    %19 = arith.mulf %17, %18 : vector<1536x1xf32>
    %20 = vector.broadcast %19 : vector<1536x1xf32> to vector<1536x49xf32>
    %21 = arith.mulf %9, %20 : vector<1536x49xf32>
    %c0_10 = arith.constant 0 : index
    %c0_11 = arith.constant 0 : index
    %22 = vector.load %arg4[%c0_10, %c0_11] : memref<1536x1xf32, #tpu.memory_space<vmem>>, vector<1536x1xf32>
    %23 = vector.broadcast %22 : vector<1536x1xf32> to vector<1536x49xf32>
    %24 = arith.addf %21, %23 : vector<1536x49xf32>
    %c0_12 = arith.constant 0 : index
    %c0_13 = arith.constant 0 : index
    %25 = vector.load %arg5[%c0_12, %c0_13] : memref<1536x49xf32, #tpu.memory_space<vmem>>, vector<1536x49xf32>
    tpu.vector_store %arg5[%c0_12, %c0_13], %24 {strides = array<i32>} : memref<1536x49xf32, #tpu.memory_space<vmem>>, vector<1536x49xf32>,
    return
  }
  func.func @transform_0(%arg0: i32) -> (i32, i32) {
    %c0_i32 = arith.constant 0 : i32
    %c0_i32_0 = arith.constant 0 : i32
    %c0_i32_1 = arith.constant 0 : i32
    return %c0_i32, %c0_i32_0 : i32, i32
  }
  func.func @transform_1(%arg0: i32) -> (i32, i32) {
    %c0_i32 = arith.constant 0 : i32
    %c0_i32_0 = arith.constant 0 : i32
    return %arg0, %c0_i32 : i32, i32
  }
  func.func @transform_2(%arg0: i32) -> (i32, i32) {
    %c0_i32 = arith.constant 0 : i32
    %c0_i32_0 = arith.constant 0 : i32
    return %arg0, %c0_i32 : i32, i32
  }
  func.func @transform_3(%arg0: i32) -> (i32, i32) {
    %c0_i32 = arith.constant 0 : i32
    %c0_i32_0 = arith.constant 0 : i32
    return %arg0, %c0_i32 : i32, i32
  }
  func.func @transform_4(%arg0: i32) -> (i32, i32) {
    %c0_i32 = arith.constant 0 : i32
    %c0_i32_0 = arith.constant 0 : i32
    return %arg0, %c0_i32 : i32, i32
  }
}

</mosaic_0001>

<bundles_post_ra>
// kernel: tpu_custom_call.1
= control target key start
LH: loop header
LB: loop body
LE: loop exit
PB: predicated region body
PF: predicated region fallthrough
CT: control target
= control target key end

     0   :  { %v10396_v0 = vmov 0   ;;  %vm3612_vm0 = vcmask 400384   ;;  %s17671_s0 = inlined_call_operand.vmem [shape: f32[384,49], index: 0, kind: input, shape index: {}]   ;;  %s17672_s1 = inlined_call_operand.vmem [shape: bf16[1536,384], index: 1, kind: input, shape index: {}]   ;;  %s17673_s2 = inlined_call_operand.vmem [shape: f32[1536,1], index: 2, kind: input, shape index: {}]   ;;  %s17674_s3 = inlined_call_operand.vmem [shape: f32[1536,1], index: 3, kind: input, shape index: {}]   ;;  %s17675_s4 = inlined_call_operand.vmem [shape: f32[1536,49], index: 4, kind: output, shape index: {}]  }
   0x1   :  { %9593 = vmatprep.subr.bf16.mxu1 %v10396_v0  ;;  %v18_v1 = vld [vmem:[%s17671_s0] sm:$0xff]  ;;  %v19_v2 = vld [vmem:[%s17671_s0 + $0x8] sm:$0xff]  ;;  %2010 = vmatprep.subr.bf16.mxu0 %v10396_v0  ;;  %v20_v3 = vld [vmem:[%s17671_s0 + $0x10] sm:$0xff] }
   0x2   :  { %v66_v4 = vpack.c.bf16 %v19_v2, %v18_v1  ;;  %v21_v5 = vld [vmem:[%s17671_s0 + $0x18] sm:$0xff]  ;;  %9626 = vset.pattern.permute.xlu1 %v10396_v0  ;;  %9627 = vset.pattern.permute.xlu0 %v10396_v0  ;;  %v22_v7 = vld [vmem:[%s17671_s0 + $0x20] sm:$0xff]  ;;  %v23_v8 = vld [vmem:[%s17671_s0 + $0x28] sm:$0xff] }
   0x3   :  { %v67_v6 = vpack.c.bf16 %v21_v5, %v20_v3  ;;  %v68_v9 = vpack.c.bf16 %v23_v8, %v22_v7  ;;  %v24_v10 = vld [vmem:[%s17671_s0 + $0x30] sm:$0xff]  ;;  %v25_v11 = vld [vmem:[%s17671_s0 + $0x38] sm:$0xff]  ;;  %v26_v14 = vld [vmem:[%s17671_s0 + $0x40] sm:$0xff] }
   0x4   :  { %9609 = vmatpush1.bf16.msra.mxu1 %v66_v4  ;;  %2011 = vmatpush1.bf16.msra.mxu0 %v66_v4  ;;  %v69_v12 = vpack.c.bf16 %v25_v11, %v24_v10  ;;  %v9630_v13 = vld [vmem:[%s17672_s1 + $0x6c4] ss:$12 sps:$4 sm:$0xff]   ;;  %v27_v15 = vld [vmem:[%s17671_s0 + $0x48] sm:$0xff]  ;;  %v29_v19 = vld [vmem:[%s17671_s0 + $0x58] sm:$0xff] }
   0x5   :  { %9594 = vmatprep.subr.bf16.mxu1 %v10396_v0  ;;  %2012 = vmatprep.subr.bf16.mxu0 %v10396_v0  ;;  %v9633_v16 = vld [vmem:[%s17672_s1 + $0x4] ss:$12 sps:$4 sm:$0xff]   ;;  %v70_v17 = vpack.c.bf16 %v27_v15, %v26_v14  ;;  %v31_v22 = vld [vmem:[%s17671_s0 + $0x68] sm:$0xff]  ;;  %v33_v25 = vld [vmem:[%s17671_s0 + $0x78] sm:$0xff] }
   0x6   :  { %2618 = vmatprep.mubr.bf16.mxu1 %v9630_v13  ;;  %v28_v18 = vld [vmem:[%s17671_s0 + $0x50] sm:$0xff]  ;;  %2042 = vmatprep.mubr.bf16.mxu0 %v9633_v16  ;;  %v30_v21 = vld [vmem:[%s17671_s0 + $0x60] sm:$0xff]  ;;  %v35_v28 = vld [vmem:[%s17671_s0 + $0x88] sm:$0xff] }
   0x7   :  { %v71_v20 = vpack.c.bf16 %v29_v19, %v28_v18  ;;  %v72_v23 = vpack.c.bf16 %v31_v22, %v30_v21  ;;  %v32_v24 = vld [vmem:[%s17671_s0 + $0x70] sm:$0xff]  ;;  %v34_v27 = vld [vmem:[%s17671_s0 + $0x80] sm:$0xff]  ;;  %v37_v31 = vld [vmem:[%s17671_s0 + $0x98] sm:$0xff] }
   0x8   :  { %9610 = vmatpush1.bf16.msra.mxu1 %v67_v6  ;;  %2013 = vmatpush1.bf16.msra.mxu0 %v67_v6  ;;  %v73_v26 = vpack.c.bf16 %v33_v25, %v32_v24  ;;  %v74_v29 = vpack.c.bf16 %v35_v28, %v34_v27  ;;  %v36_v30 = vld [vmem:[%s17671_s0 + $0x90] sm:$0xff]  ;;  %v38_v33 = vld [vmem:[%s17671_s0 + $0xa0] sm:$0xff]  ;;  %v39_v34 = vld [vmem:[%s17671_s0 + $0xa8] sm:$0xff] }
   0x9   :  { %9595 = vmatprep.subr.bf16.mxu1 %v10396_v0  ;;  %2014 = vmatprep.subr.bf16.mxu0 %v10396_v0  ;;  %v75_v32 = vpack.c.bf16 %v37_v31, %v36_v30  ;;  %v76_v35 = vpack.c.bf16 %v39_v34, %v38_v33  ;;  %v40_v36 = vld [vmem:[%s17671_s0 + $0xb0] sm:$0xff]  ;;  %v41_v37 = vld [vmem:[%s17671_s0 + $0xb8] sm:$0xff]  ;;  %v42_v39 = vld [vmem:[%s17671_s0 + $0xc0] sm:$0xff] }
   0xa   :  { %v77_v38 = vpack.c.bf16 %v41_v37, %v40_v36  ;;  %v43_v40 = vld [vmem:[%s17671_s0 + $0xc8] sm:$0xff]  ;;  %v44_v42 = vld [vmem:[%s17671_s0 + $0xd0] sm:$0xff]  ;;  %v45_v43 = vld [vmem:[%s17671_s0 + $0xd8] sm:$0xff] }
   0xb   :  { %v78_v41 = vpack.c.bf16 %v43_v40, %v42_v39  ;;  %v79_v44 = vpack.c.bf16 %v45_v43, %v44_v42  ;;  %v46_v45 = vld [vmem:[%s17671_s0 + $0xe0] sm:$0xff]  ;;  %v47_v46 = vld [vmem:[%s17671_s0 + $0xe8] sm:$0xff]  ;;  %v48_v47 = vld [vmem:[%s17671_s0 + $0xf0] sm:$0xff] }
   0xc   :  { %9611 = vmatpush1.bf16.msra.mxu1 %v68_v9  ;;  %2015 = vmatpush1.bf16.msra.mxu0 %v68_v9  ;;  %v49_v48 = vld [vmem:[%s17671_s0 + $0xf8] sm:$0xff]  ;;  %v80_v49 = vpack.c.bf16 %v47_v46, %v46_v45  ;;  %v50_v50 = vld [vmem:[%s17671_s0 + $0x100] sm:$0xff]  ;;  %v51_v51 = vld [vmem:[%s17671_s0 + $0x108] sm:$0xff] }
   0xd   :  { %9596 = vmatprep.subr.bf16.mxu1 %v10396_v0  ;;  %2016 = vmatprep.subr.bf16.mxu0 %v10396_v0  ;;  %v81_v52 = vpack.c.bf16 %v49_v48, %v48_v47  ;;  %v52_v53 = vld [vmem:[%s17671_s0 + $0x110] sm:$0xff]  ;;  %v53_v54 = vld [vmem:[%s17671_s0 + $0x118] sm:$0xff]  ;;  %v9628_v55 = vld [vmem:[%s17672_s1 + $0x6c0] ss:$12 sps:$4 sm:$0xff]   ;;  %v82_v56 = vpack.c.bf16 %v51_v51, %v50_v50 }
   0xe   :  { %v9631_v57 = vld [vmem:[%s17672_s1] ss:$12 sps:$4 sm:$0xff]   ;;  %v9634_v58 = vld [vmem:[%s17672_s1 + $0x6dc] ss:$12 sps:$4 sm:$0xff]   ;;  %v83_v61 = vpack.c.bf16 %v53_v54, %v52_v53  ;;  %v9636_v63 = vld [vmem:[%s17672_s1 + $0x6d8] ss:$12 sps:$4 sm:$0xff]  }
   0xf   :  { %v9637_v59 = vld [vmem:[%s17672_s1 + $0x1c] ss:$12 sps:$4 sm:$0xff]   ;;  %v54_v60 = vld [vmem:[%s17671_s0 + $0x120] sm:$0xff]  ;;  %v56_v2 = vld [vmem:[%s17671_s0 + $0x130] sm:$0xff] }
  0x10   :  { %9612 = vmatpush1.bf16.msra.mxu1 %v69_v12  ;;  %2017 = vmatpush1.bf16.msra.mxu0 %v69_v12  ;;  %v55_v62 = vld [vmem:[%s17671_s0 + $0x128] sm:$0xff]  ;;  %v57_v3 = vld [vmem:[%s17671_s0 + $0x138] sm:$0xff]  ;;  %v9640_v4 = vld [vmem:[%s17672_s1 + $0x6f4] ss:$12 sps:$4 sm:$0xff]  }
  0x11   :  { %9597 = vmatprep.subr.bf16.mxu1 %v10396_v0  ;;  %2018 = vmatprep.subr.bf16.mxu0 %v10396_v0  ;;  %v84_v1 = vpack.c.bf16 %v55_v62, %v54_v60  ;;  %v9643_v5 = vld [vmem:[%s17672_s1 + $0x34] ss:$12 sps:$4 sm:$0xff]   ;;  %v85_v6 = vpack.c.bf16 %v57_v3, %v56_v2  ;;  %v59_v8 = vld [vmem:[%s17671_s0 + $0x148] sm:$0xff]  ;;  %v9642_v9 = vld [vmem:[%s17672_s1 + $0x6f0] ss:$12 sps:$4 sm:$0xff]  }
  0x12   :  { %v58_v7 = vld [vmem:[%s17671_s0 + $0x140] sm:$0xff]  ;;  %v9645_v10 = vld [vmem:[%s17672_s1 + $0x30] ss:$12 sps:$4 sm:$0xff]   ;;  %v9646_v13 = vld [vmem:[%s17672_s1 + $0x70c] ss:$12 sps:$4 sm:$0xff]  }
  0x13   :  { %v60_v11 = vld [vmem:[%s17671_s0 + $0x150] sm:$0xff]  ;;  %v61_v12 = vld [vmem:[%s17671_s0 + $0x158] sm:$0xff]  ;;  %v86_v15 = vpack.c.bf16 %v59_v8, %v58_v7  ;;  %v63_v18 = vld [vmem:[%s17671_s0 + $0x168] sm:$0xff] }
  0x14   :  { %9613 = vmatpush1.bf16.msra.mxu1 %v70_v17  ;;  %2019 = vmatpush1.bf16.msra.mxu0 %v70_v17  ;;  %v9649_v14 = vld [vmem:[%s17672_s1 + $0x4c] ss:$12 sps:$4 sm:$0xff]   ;;  %v87_v16 = vpack.c.bf16 %v61_v12, %v60_v11  ;;  %v62_v17 = vld [vmem:[%s17671_s0 + $0x160] sm:$0xff]  ;;  %v9648_v19 = vld [vmem:[%s17672_s1 + $0x708] ss:$12 sps:$4 sm:$0xff]  }
  0x15   :  { %9598 = vmatprep.subr.bf16.mxu1 %v10396_v0  ;;  %2020 = vmatprep.subr.bf16.mxu0 %v10396_v0  ;;  %v9652_v21 = vld [vmem:[%s17672_s1 + $0x724] ss:$12 sps:$4 sm:$0xff]   ;;  %v9654_v24 = vld [vmem:[%s17672_s1 + $0x720] ss:$12 sps:$4 sm:$0xff]   ;;  %v9661_v27 = vld [vmem:[%s17672_s1 + $0x7c] ss:$12 sps:$4 sm:$0xff]  }
  0x16   :  { %v9655_v22 = vld [vmem:[%s17672_s1 + $0x64] ss:$12 sps:$4 sm:$0xff]   ;;  %v9657_v25 = vld [vmem:[%s17672_s1 + $0x60] ss:$12 sps:$4 sm:$0xff]   ;;  %v65_v33 = vld [vmem:[%s17671_s0 + $0x178] sm:$0xff] }
  0x17   :  { %v9660_v28 = vld [vmem:[%s17672_s1 + $0x738] ss:$12 sps:$4 sm:$0xff]   ;;  %v9664_v30 = vld [vmem:[%s17672_s1 + $0x754] ss:$12 sps:$4 sm:$0xff]   ;;  %v9669_v36 = vld [vmem:[%s17672_s1 + $0x90] ss:$12 sps:$4 sm:$0xff]  }
  0x18   :  { %9614 = vmatpush1.bf16.msra.mxu1 %v71_v20  ;;  %2021 = vmatpush1.bf16.msra.mxu0 %v71_v20  ;;  %v9651_v20 = vld [vmem:[%s17672_s1 + $0x48] ss:$12 sps:$4 sm:$0xff]   ;;  %v9670_v37 = vld [vmem:[%s17672_s1 + $0x76c] ss:$12 sps:$4 sm:$0xff]   ;;  %v9679_v42 = vld [vmem:[%s17672_s1 + $0xc4] ss:$12 sps:$4 sm:$0xff]  }
  0x19   :  { %9599 = vmatprep.subr.bf16.mxu1 %v10396_v0  ;;  %2022 = vmatprep.subr.bf16.mxu0 %v10396_v0  ;;  %v9667_v31 = vld [vmem:[%s17672_s1 + $0x94] ss:$12 sps:$4 sm:$0xff]   ;;  %v9682_v45 = vld [vmem:[%s17672_s1 + $0x79c] ss:$12 sps:$4 sm:$0xff]   ;;  %v9684_v47 = vld [vmem:[%s17672_s1 + $0x798] ss:$12 sps:$4 sm:$0xff]  }
  0x1a   :  { %v9672_v39 = vld [vmem:[%s17672_s1 + $0x768] ss:$12 sps:$4 sm:$0xff]   ;;  %v9678_v43 = vld [vmem:[%s17672_s1 + $0x780] ss:$12 sps:$4 sm:$0xff]   ;;  %v9687_v48 = vld [vmem:[%s17672_s1 + $0xd8] ss:$12 sps:$4 sm:$0xff]  }
  0x1b   :  { %v9675_v40 = vld [vmem:[%s17672_s1 + $0xa8] ss:$12 sps:$4 sm:$0xff]   ;;  %v9690_v51 = vld [vmem:[%s17672_s1 + $0x7b0] ss:$12 sps:$4 sm:$0xff]   ;;  %v9694_v53 = vld [vmem:[%s17672_s1 + $0x7cc] ss:$12 sps:$4 sm:$0xff]  }
  0x1c   :  { %9615 = vmatpush1.bf16.msra.mxu1 %v72_v23  ;;  %2023 = vmatpush1.bf16.msra.mxu0 %v72_v23  ;;  %v88_v23 = vpack.c.bf16 %v63_v18, %v62_v17  ;;  %v9685_v46 = vld [vmem:[%s17672_s1 + $0xdc] ss:$12 sps:$4 sm:$0xff]   ;;  %v9691_v50 = vld [vmem:[%s17672_s1 + $0xf4] ss:$12 sps:$4 sm:$0xff]   ;;  %v9697_v54 = vld [vmem:[%s17672_s1 + $0x10c] ss:$12 sps:$4 sm:$0xff]  }
  0x1d   :  { %9600 = vmatprep.subr.bf16.mxu1 %v10396_v0  ;;  %2024 = vmatprep.subr.bf16.mxu0 %v10396_v0  ;;  %v9705_v60 = vld [vmem:[%s17672_s1 + $0x120] ss:$12 sps:$4 sm:$0xff]   ;;  %v9709_v62 = vld [vmem:[%s17672_s1 + $0x13c] ss:$12 sps:$4 sm:$0xff]  }
  0x1e   :  { %v9715_v2 = vld [vmem:[%s17672_s1 + $0x154] ss:$12 sps:$4 sm:$0xff]   ;;  %v9714_v3 = vld [vmem:[%s17672_s1 + $0x810] ss:$12 sps:$4 sm:$0xff]  }
  0x1f   :  { %v9720_v7 = vld [vmem:[%s17672_s1 + $0x828] ss:$12 sps:$4 sm:$0xff]   ;;  %v9726_v11 = vld [vmem:[%s17672_s1 + $0x840] ss:$12 sps:$4 sm:$0xff]  }
  0x20   :  { %9616 = vmatpush1.bf16.msra.mxu1 %v73_v26  ;;  %2025 = vmatpush1.bf16.msra.mxu0 %v73_v26  ;;  %v9658_v26 = vld [vmem:[%s17672_s1 + $0x73c] ss:$12 sps:$4 sm:$0xff]   ;;  %v9729_v12 = vld [vmem:[%s17672_s1 + $0x180] ss:$12 sps:$4 sm:$0xff]  }
  0x21   :  { %9601 = vmatprep.subr.bf16.mxu1 %v10396_v0  ;;  %2026 = vmatprep.subr.bf16.mxu0 %v10396_v0  ;;  %v9723_v8 = vld [vmem:[%s17672_s1 + $0x168] ss:$12 sps:$4 sm:$0xff]  }
  0x22   :  { %v9736_v17 = vld [vmem:[%s17672_s1 + $0x874] ss:$12 sps:$4 sm:$0xff]  }
  0x23   :  { %v9739_v18 = vld [vmem:[%s17672_s1 + $0x1b4] ss:$12 sps:$4 sm:$0xff]  }
  0x24   :  { %9617 = vmatpush1.bf16.msra.mxu1 %v74_v29  ;;  %2027 = vmatpush1.bf16.msra.mxu0 %v74_v29  ;;  %v9663_v29 = vld [vmem:[%s17672_s1 + $0x78] ss:$12 sps:$4 sm:$0xff]  }
  0x25   :  { %9602 = vmatprep.subr.bf16.mxu1 %v10396_v0  ;;  %2028 = vmatprep.subr.bf16.mxu0 %v10396_v0 }
  0x28   :  { %9618 = vmatpush1.bf16.msra.mxu1 %v75_v32  ;;  %2029 = vmatpush1.bf16.msra.mxu0 %v75_v32  ;;  %v64_v32 = vld [vmem:[%s17671_s0 + $0x170] sm:$0xff] }
  0x29   :  { %9603 = vmatprep.subr.bf16.mxu1 %v10396_v0  ;;  %2030 = vmatprep.subr.bf16.mxu0 %v10396_v0  ;;  %v89_v34 = vpack.c.bf16 %v65_v33, %v64_v32  ;;  %v9759_v32 = vld [vmem:[%s17672_s1 + $0x1f8] ss:$12 sps:$4 sm:$0xff]   ;;  %v9760_v33 = vld [vmem:[%s17672_s1 + $0x8d4] ss:$12 sps:$4 sm:$0xff]  }
  0x2c   :  { %9619 = vmatpush1.bf16.msra.mxu1 %v76_v35  ;;  %2031 = vmatpush1.bf16.msra.mxu0 %v76_v35  ;;  %v9666_v35 = vld [vmem:[%s17672_s1 + $0x750] ss:$12 sps:$4 sm:$0xff]  }
  0x2d   :  { %9604 = vmatprep.subr.bf16.mxu1 %v10396_v0  ;;  %2032 = vmatprep.subr.bf16.mxu0 %v10396_v0 }
  0x30   :  { %9620 = vmatpush1.bf16.msra.mxu1 %v77_v38  ;;  %2033 = vmatpush1.bf16.msra.mxu0 %v77_v38  ;;  %v9673_v38 = vld [vmem:[%s17672_s1 + $0xac] ss:$12 sps:$4 sm:$0xff]  }
  0x31   :  { %9605 = vmatprep.subr.bf16.mxu1 %v10396_v0  ;;  %2034 = vmatprep.subr.bf16.mxu0 %v10396_v0 }
  0x34   :  { %9621 = vmatpush1.bf16.msra.mxu1 %v78_v41  ;;  %2035 = vmatpush1.bf16.msra.mxu0 %v78_v41  ;;  %v9676_v41 = vld [vmem:[%s17672_s1 + $0x784] ss:$12 sps:$4 sm:$0xff]  }
  0x35   :  { %9606 = vmatprep.subr.bf16.mxu1 %v10396_v0  ;;  %2036 = vmatprep.subr.bf16.mxu0 %v10396_v0 }
  0x38   :  { %9622 = vmatpush1.bf16.msra.mxu1 %v79_v44  ;;  %2037 = vmatpush1.bf16.msra.mxu0 %v79_v44  ;;  %v9681_v44 = vld [vmem:[%s17672_s1 + $0xc0] ss:$12 sps:$4 sm:$0xff]  }
  0x39   :  { %9607 = vmatprep.subr.bf16.mxu1 %v10396_v0  ;;  %2038 = vmatprep.subr.bf16.mxu0 %v10396_v0 }
  0x3c   :  { %9623 = vmatpush1.bf16.msra.mxu1 %v80_v49  ;;  %2039 = vmatpush1.bf16.msra.mxu0 %v80_v49  ;;  %v9688_v49 = vld [vmem:[%s17672_s1 + $0x7b4] ss:$12 sps:$4 sm:$0xff]  }
  0x3d   :  { %9608 = vmatprep.subr.bf16.mxu1 %v10396_v0  ;;  %2040 = vmatprep.subr.bf16.mxu0 %v10396_v0  ;;  %v9639_v0 = vld [vmem:[%s17672_s1 + $0x18] ss:$12 sps:$4 sm:$0xff]  }
  0x40   :  { %9624 = vmatpush1.bf16.msra.mxu1 %v81_v52  ;;  %2041 = vmatpush1.bf16.msra.mxu0 %v81_v52  ;;  %v9693_v52 = vld [vmem:[%s17672_s1 + $0xf0] ss:$12 sps:$4 sm:$0xff]  }
  0x41   :  { %9385 = vmatprep.subr.bf16.mxu1 %v82_v56 }
  0x43   :  { %2619 = vmatmul.mubr.bf16.vlgmr.msra.gmra.mrb[0].mxu1 %v9628_v55  ;;  %2043 = vmatmul.mubr.bf16.vlgmr.msra.gmra.mrb[0].mxu0 %v9631_v57  ;;  %v9696_v55 = vld [vmem:[%s17672_s1 + $0x7c8] ss:$12 sps:$4 sm:$0xff]   ;;  %v9700_v57 = vld [vmem:[%s17672_s1 + $0x7e4] ss:$12 sps:$4 sm:$0xff]  }
  0x44   :  { %9386 = vmatpush3.bf16.msra.mxu1 %v82_v56  ;;  %2626 = vmatprep.mubr.bf16.mxu1 %v9634_v58  ;;  %v9699_v56 = vld [vmem:[%s17672_s1 + $0x108] ss:$12 sps:$4 sm:$0xff]   ;;  %v9703_v58 = vld [vmem:[%s17672_s1 + $0x124] ss:$12 sps:$4 sm:$0xff]  }
  0x45   :  { %2050 = vmatprep.mubr.bf16.mxu0 %v9637_v59  ;;  %9387 = vmatprep.subr.bf16.mxu1 %v83_v61  ;;  %v9702_v59 = vld [vmem:[%s17672_s1 + $0x7e0] ss:$12 sps:$4 sm:$0xff]  }
  0x48   :  { %9388 = vmatpush3.bf16.msra.mxu1 %v83_v61  ;;  %v9706_v61 = vld [vmem:[%s17672_s1 + $0x7fc] ss:$12 sps:$4 sm:$0xff]  }
  0x49   :  { %9389 = vmatprep.subr.bf16.mxu1 %v84_v1 }
  0x4b   :  { %2627 = vmatmul.mubr.bf16.gmra.mrb[4].mxu1 %v9636_v63  ;;  %2051 = vmatmul.mubr.bf16.gmra.mrb[4].mxu0 %v9639_v0  ;;  %v9708_v63 = vld [vmem:[%s17672_s1 + $0x7f8] ss:$12 sps:$4 sm:$0xff]  }
  0x4c   :  { %2634 = vmatprep.mubr.bf16.mxu1 %v9640_v4  ;;  %2058 = vmatprep.mubr.bf16.mxu0 %v9643_v5  ;;  %v9711_v0 = vld [vmem:[%s17672_s1 + $0x138] ss:$12 sps:$4 sm:$0xff]   ;;  %v9717_v4 = vld [vmem:[%s17672_s1 + $0x150] ss:$12 sps:$4 sm:$0xff]  }
  0x4d   :  { %9390 = vmatpush3.bf16.msra.mxu1 %v84_v1  ;;  %v9712_v1 = vld [vmem:[%s17672_s1 + $0x814] ss:$12 sps:$4 sm:$0xff]   ;;  %v9718_v5 = vld [vmem:[%s17672_s1 + $0x82c] ss:$12 sps:$4 sm:$0xff]  }
  0x4e   :  { %9391 = vmatprep.subr.bf16.mxu1 %v85_v6 }
  0x51   :  { %9392 = vmatpush3.bf16.msra.mxu1 %v85_v6  ;;  %v9721_v6 = vld [vmem:[%s17672_s1 + $0x16c] ss:$12 sps:$4 sm:$0xff]  }
  0x52   :  { %9393 = vmatprep.subr.bf16.mxu1 %v86_v15 }
  0x53   :  { %2635 = vmatmul.mubr.bf16.gmra.mrb[8].mxu1 %v9642_v9  ;;  %2059 = vmatmul.mubr.bf16.gmra.mrb[8].mxu0 %v9645_v10  ;;  %v9724_v9 = vld [vmem:[%s17672_s1 + $0x844] ss:$12 sps:$4 sm:$0xff]  }
  0x54   :  { %2642 = vmatprep.mubr.bf16.mxu1 %v9646_v13  ;;  %2066 = vmatprep.mubr.bf16.mxu0 %v9649_v14  ;;  %v9727_v10 = vld [vmem:[%s17672_s1 + $0x184] ss:$12 sps:$4 sm:$0xff]   ;;  %v9730_v13 = vld [vmem:[%s17672_s1 + $0x85c] ss:$12 sps:$4 sm:$0xff]  }
  0x55   :  { %9394 = vmatpush3.bf16.msra.mxu1 %v86_v15  ;;  %v9733_v14 = vld [vmem:[%s17672_s1 + $0x19c] ss:$12 sps:$4 sm:$0xff]   ;;  %v9732_v15 = vld [vmem:[%s17672_s1 + $0x858] ss:$12 sps:$4 sm:$0xff]  }
  0x56   :  { %9395 = vmatprep.subr.bf16.mxu1 %v87_v16 }
  0x59   :  { %9396 = vmatpush3.bf16.msra.mxu1 %v87_v16  ;;  %v9735_v16 = vld [vmem:[%s17672_s1 + $0x198] ss:$12 sps:$4 sm:$0xff]  }
  0x5a   :  { %9397 = vmatprep.subr.bf16.mxu1 %v88_v23 }
  0x5b   :  { %2643 = vmatmul.mubr.bf16.gmra.mrb[12].mxu1 %v9648_v19  ;;  %2067 = vmatmul.mubr.bf16.gmra.mrb[12].mxu0 %v9651_v20  ;;  %v9738_v19 = vld [vmem:[%s17672_s1 + $0x870] ss:$12 sps:$4 sm:$0xff]  }
  0x5c   :  { %2650 = vmatprep.mubr.bf16.mxu1 %v9652_v21  ;;  %2074 = vmatprep.mubr.bf16.mxu0 %v9655_v22  ;;  %v9741_v20 = vld [vmem:[%s17672_s1 + $0x1b0] ss:$12 sps:$4 sm:$0xff]   ;;  %v9742_v21 = vld [vmem:[%s17672_s1 + $0x88c] ss:$12 sps:$4 sm:$0xff]  }
  0x5d   :  { %9398 = vmatpush3.bf16.msra.mxu1 %v88_v23  ;;  %v9745_v22 = vld [vmem:[%s17672_s1 + $0x1cc] ss:$12 sps:$4 sm:$0xff]   ;;  %v9744_v23 = vld [vmem:[%s17672_s1 + $0x888] ss:$12 sps:$4 sm:$0xff]  }
  0x5e   :  { %9399 = vmatprep.subr.bf16.mxu1 %v89_v34 }
  0x61   :  { %9400 = vmatpush3.bf16.msra.mxu1 %v89_v34  ;;  %v9763_v34 = vld [vmem:[%s17672_s1 + $0x214] ss:$12 sps:$4 sm:$0xff]  }
  0x63   :  { %2651 = vmatmul.mubr.bf16.gmra.mrb[16].mxu1 %v9654_v24  ;;  %2075 = vmatmul.mubr.bf16.gmra.mrb[16].mxu0 %v9657_v25  ;;  %v9747_v24 = vld [vmem:[%s17672_s1 + $0x1c8] ss:$12 sps:$4 sm:$0xff]   ;;  %v9748_v25 = vld [vmem:[%s17672_s1 + $0x8a4] ss:$12 sps:$4 sm:$0xff]  }
  0x64   :  { %2658 = vmatprep.mubr.bf16.mxu1 %v9658_v26  ;;  %2082 = vmatprep.mubr.bf16.mxu0 %v9661_v27  ;;  %v9751_v26 = vld [vmem:[%s17672_s1 + $0x1e4] ss:$12 sps:$4 sm:$0xff]   ;;  %v9750_v27 = vld [vmem:[%s17672_s1 + $0x8a0] ss:$12 sps:$4 sm:$0xff]  }
  0x6b   :  { %2659 = vmatmul.mubr.bf16.gmra.mrb[20].mxu1 %v9660_v28  ;;  %2083 = vmatmul.mubr.bf16.gmra.mrb[20].mxu0 %v9663_v29  ;;  %v9753_v28 = vld [vmem:[%s17672_s1 + $0x1e0] ss:$12 sps:$4 sm:$0xff]   ;;  %v9754_v29 = vld [vmem:[%s17672_s1 + $0x8bc] ss:$12 sps:$4 sm:$0xff]  }
  0x6c   :  { %2666 = vmatprep.mubr.bf16.mxu1 %v9664_v30  ;;  %2090 = vmatprep.mubr.bf16.mxu0 %v9667_v31  ;;  %v9757_v30 = vld [vmem:[%s17672_s1 + $0x1fc] ss:$12 sps:$4 sm:$0xff]   ;;  %v9756_v31 = vld [vmem:[%s17672_s1 + $0x8b8] ss:$12 sps:$4 sm:$0xff]  }
  0x73   :  { %2667 = vmatmul.mubr.bf16.gmra.mrb[24].mxu1 %v9666_v35  ;;  %2091 = vmatmul.mubr.bf16.gmra.mrb[24].mxu0 %v9669_v36  ;;  %v9762_v35 = vld [vmem:[%s17672_s1 + $0x8d0] ss:$12 sps:$4 sm:$0xff]  }
  0x74   :  { %2674 = vmatprep.mubr.bf16.mxu1 %v9670_v37  ;;  %2098 = vmatprep.mubr.bf16.mxu0 %v9673_v38  ;;  %v9765_v36 = vld [vmem:[%s17672_s1 + $0x210] ss:$12 sps:$4 sm:$0xff]   ;;  %v9766_v37 = vld [vmem:[%s17672_s1 + $0x8ec] ss:$12 sps:$4 sm:$0xff]  }
  0x75   :  { %v9769_v38 = vld [vmem:[%s17672_s1 + $0x22c] ss:$12 sps:$4 sm:$0xff]  }
  0x7b   :  { %2675 = vmatmul.mubr.bf16.gmra.mrb[28].mxu1 %v9672_v39  ;;  %2099 = vmatmul.mubr.bf16.gmra.mrb[28].mxu0 %v9675_v40  ;;  %v9768_v39 = vld [vmem:[%s17672_s1 + $0x8e8] ss:$12 sps:$4 sm:$0xff]  }
  0x7c   :  { %2682 = vmatprep.mubr.bf16.mxu1 %v9676_v41  ;;  %2106 = vmatprep.mubr.bf16.mxu0 %v9679_v42  ;;  %v9771_v40 = vld [vmem:[%s17672_s1 + $0x228] ss:$12 sps:$4 sm:$0xff]   ;;  %v9774_v42 = vld [vmem:[%s17672_s1 + $0x244] ss:$12 sps:$4 sm:$0xff]  }
  0x7d   :  { %v9772_v41 = vld [vmem:[%s17672_s1 + $0x8] ss:$12 sps:$4 sm:$0xff]  }
  0x83   :  { %2683 = vmatmul.mubr.bf16.gmra.mrb[32].mxu1 %v9678_v43  ;;  %2107 = vmatmul.mubr.bf16.gmra.mrb[32].mxu0 %v9681_v44  ;;  %v9773_v43 = vld [vmem:[%s17672_s1 + $0x20] ss:$12 sps:$4 sm:$0xff]  }
  0x84   :  { %2690 = vmatprep.mubr.bf16.mxu1 %v9682_v45  ;;  %2114 = vmatprep.mubr.bf16.mxu0 %v9685_v46  ;;  %v9776_v44 = vld [vmem:[%s17672_s1 + $0x240] ss:$12 sps:$4 sm:$0xff]   ;;  %v9777_v45 = vld [vmem:[%s17672_s1 + $0x38] ss:$12 sps:$4 sm:$0xff]   ;;  %v9779_v46 = vld [vmem:[%s17672_s1 + $0x25c] ss:$12 sps:$4 sm:$0xff]  }
  0x8b   :  { %2691 = vmatmul.mubr.bf16.gmra.mrb[36].mxu1 %v9684_v47  ;;  %2115 = vmatmul.mubr.bf16.gmra.mrb[36].mxu0 %v9687_v48  ;;  %v9778_v47 = vld [vmem:[%s17672_s1 + $0x50] ss:$12 sps:$4 sm:$0xff]   ;;  %v9781_v48 = vld [vmem:[%s17672_s1 + $0x258] ss:$12 sps:$4 sm:$0xff]  }
  0x8c   :  { %2698 = vmatprep.mubr.bf16.mxu1 %v9688_v49  ;;  %2122 = vmatprep.mubr.bf16.mxu0 %v9691_v50  ;;  %v9782_v49 = vld [vmem:[%s17672_s1 + $0x68] ss:$12 sps:$4 sm:$0xff]  }
  0x8d   :  { %v9784_v50 = vld [vmem:[%s17672_s1 + $0x274] ss:$12 sps:$4 sm:$0xff]  }
  0x93   :  { %2699 = vmatmul.mubr.bf16.gmra.mrb[40].mxu1 %v9690_v51  ;;  %2123 = vmatmul.mubr.bf16.gmra.mrb[40].mxu0 %v9693_v52  ;;  %v9783_v51 = vld [vmem:[%s17672_s1 + $0x80] ss:$12 sps:$4 sm:$0xff]   ;;  %v9786_v52 = vld [vmem:[%s17672_s1 + $0x270] ss:$12 sps:$4 sm:$0xff]  }
  0x94   :  { %2706 = vmatprep.mubr.bf16.mxu1 %v9694_v53  ;;  %2130 = vmatprep.mubr.bf16.mxu0 %v9697_v54  ;;  %v9787_v53 = vld [vmem:[%s17672_s1 + $0x98] ss:$12 sps:$4 sm:$0xff]  }
  0x95   :  { %v9789_v54 = vld [vmem:[%s17672_s1 + $0x28c] ss:$12 sps:$4 sm:$0xff]  }
  0x9b   :  { %2707 = vmatmul.mubr.bf16.gmra.mrb[44].mxu1 %v9696_v55  ;;  %2131 = vmatmul.mubr.bf16.gmra.mrb[44].mxu0 %v9699_v56 }
  0x9c   :  { %2714 = vmatprep.mubr.bf16.mxu1 %v9700_v57  ;;  %2138 = vmatprep.mubr.bf16.mxu0 %v9703_v58  ;;  %v9788_v58 = vld [vmem:[%s17672_s1 + $0xb0] ss:$12 sps:$4 sm:$0xff]  }
  0xa3   :  { %2715 = vmatmul.mubr.bf16.gmra.mrb[48].mxu1 %v9702_v59  ;;  %2139 = vmatmul.mubr.bf16.gmra.mrb[48].mxu0 %v9705_v60  ;;  %v9791_v59 = vld [vmem:[%s17672_s1 + $0x288] ss:$12 sps:$4 sm:$0xff]  }
  0xa4   :  { %2722 = vmatprep.mubr.bf16.mxu1 %v9706_v61  ;;  %2146 = vmatprep.mubr.bf16.mxu0 %v9709_v62  ;;  %v9792_v62 = vld [vmem:[%s17672_s1 + $0xc8] ss:$12 sps:$4 sm:$0xff]  }
  0xab   :  { %2723 = vmatmul.mubr.bf16.gmra.mrb[52].mxu1 %v9708_v63  ;;  %2147 = vmatmul.mubr.bf16.gmra.mrb[52].mxu0 %v9711_v0  ;;  %v9794_v63 = vld [vmem:[%s17672_s1 + $0x2a4] ss:$12 sps:$4 sm:$0xff]  }
  0xac   :  { %2730 = vmatprep.mubr.bf16.mxu1 %v9712_v1  ;;  %2154 = vmatprep.mubr.bf16.mxu0 %v9715_v2 }
  0xb3   :  { %2731 = vmatmul.mubr.bf16.gmra.mrb[56].mxu1 %v9714_v3  ;;  %2155 = vmatmul.mubr.bf16.gmra.mrb[56].mxu0 %v9717_v4 }
  0xb4   :  { %2738 = vmatprep.mubr.bf16.mxu1 %v9718_v5  ;;  %2162 = vmatprep.mubr.bf16.mxu0 %v9721_v6  ;;  %v9793_v6 = vld [vmem:[%s17672_s1 + $0xe0] ss:$12 sps:$4 sm:$0xff]  }
  0xbb   :  { %2739 = vmatmul.mubr.bf16.gmra.mrb[60].mxu1 %v9720_v7  ;;  %2163 = vmatmul.mubr.bf16.gmra.mrb[60].mxu0 %v9723_v8  ;;  %v9796_v7 = vld [vmem:[%s17672_s1 + $0x2a0] ss:$12 sps:$4 sm:$0xff]  }
  0xbc   :  { %2746 = vmatprep.mubr.bf16.mxu1 %v9724_v9  ;;  %2170 = vmatprep.mubr.bf16.mxu0 %v9727_v10  ;;  %v9797_v10 = vld [vmem:[%s17672_s1 + $0xf8] ss:$12 sps:$4 sm:$0xff]  }
  0xc3   :  { %2747 = vmatmul.mubr.bf16.gmra.mrb[64].mxu1 %v9726_v11  ;;  %2171 = vmatmul.mubr.bf16.gmra.mrb[64].mxu0 %v9729_v12  ;;  %v9799_v11 = vld [vmem:[%s17672_s1 + $0x2bc] ss:$12 sps:$4 sm:$0xff]  }
  0xc4   :  { %2754 = vmatprep.mubr.bf16.mxu1 %v9730_v13  ;;  %2178 = vmatprep.mubr.bf16.mxu0 %v9733_v14 }
  0xcb   :  { %2755 = vmatmul.mubr.bf16.gmra.mrb[68].mxu1 %v9732_v15  ;;  %2179 = vmatmul.mubr.bf16.gmra.mrb[68].mxu0 %v9735_v16 }
  0xcc   :  { %2762 = vmatprep.mubr.bf16.mxu1 %v9736_v17  ;;  %2186 = vmatprep.mubr.bf16.mxu0 %v9739_v18  ;;  %v9798_v18 = vld [vmem:[%s17672_s1 + $0x110] ss:$12 sps:$4 sm:$0xff]  }
  0xd3   :  { %2763 = vmatmul.mubr.bf16.gmra.mrb[72].mxu1 %v9738_v19  ;;  %2187 = vmatmul.mubr.bf16.gmra.mrb[72].mxu0 %v9741_v20  ;;  %v9801_v19 = vld [vmem:[%s17672_s1 + $0x2b8] ss:$12 sps:$4 sm:$0xff]  }
  0xd4   :  { %2770 = vmatprep.mubr.bf16.mxu1 %v9742_v21  ;;  %2194 = vmatprep.mubr.bf16.mxu0 %v9745_v22  ;;  %v9802_v22 = vld [vmem:[%s17672_s1 + $0x128] ss:$12 sps:$4 sm:$0xff]  }
  0xdb   :  { %2771 = vmatmul.mubr.bf16.gmra.mrb[76].mxu1 %v9744_v23  ;;  %2195 = vmatmul.mubr.bf16.gmra.mrb[76].mxu0 %v9747_v24  ;;  %v9804_v23 = vld [vmem:[%s17672_s1 + $0x2d4] ss:$12 sps:$4 sm:$0xff]  }
  0xdc   :  { %2778 = vmatprep.mubr.bf16.mxu1 %v9748_v25  ;;  %2202 = vmatprep.mubr.bf16.mxu0 %v9751_v26 }
  0xe3   :  { %2779 = vmatmul.mubr.bf16.gmra.mrb[80].mxu1 %v9750_v27  ;;  %2203 = vmatmul.mubr.bf16.gmra.mrb[80].mxu0 %v9753_v28 }
  0xe4   :  { %2786 = vmatprep.mubr.bf16.mxu1 %v9754_v29  ;;  %2210 = vmatprep.mubr.bf16.mxu0 %v9757_v30  ;;  %v9803_v30 = vld [vmem:[%s17672_s1 + $0x140] ss:$12 sps:$4 sm:$0xff]  }
  0xeb   :  { %2787 = vmatmul.mubr.bf16.gmra.mrb[84].mxu1 %v9756_v31  ;;  %2211 = vmatmul.mubr.bf16.gmra.mrb[84].mxu0 %v9759_v32  ;;  %v9806_v31 = vld [vmem:[%s17672_s1 + $0x2d0] ss:$12 sps:$4 sm:$0xff]  }
  0xec   :  { %2794 = vmatprep.mubr.bf16.mxu1 %v9760_v33  ;;  %2218 = vmatprep.mubr.bf16.mxu0 %v9763_v34  ;;  %v9807_v34 = vld [vmem:[%s17672_s1 + $0x158] ss:$12 sps:$4 sm:$0xff]  }
  0xf3   :  { %2795 = vmatmul.mubr.bf16.gmra.mrb[88].mxu1 %v9762_v35  ;;  %2219 = vmatmul.mubr.bf16.gmra.mrb[88].mxu0 %v9765_v36  ;;  %v9809_v35 = vld [vmem:[%s17672_s1 + $0x2ec] ss:$12 sps:$4 sm:$0xff]  }
  0xf4   :  { %2802 = vmatprep.mubr.bf16.mxu1 %v9766_v37  ;;  %2226 = vmatprep.mubr.bf16.mxu0 %v9769_v38 }
  0xfb   :  { %2803 = vmatmul.mubr.bf16.gmra.mrb[92].mxu1 %v9768_v39  ;;  %2227 = vmatmul.mubr.bf16.gmra.mrb[92].mxu0 %v9771_v40 }
  0xfc   :  { %9401 = vmatprep.mubr.bf16.mxu1 %v9772_v41  ;;  %2234 = vmatprep.mubr.bf16.mxu0 %v9774_v42  ;;  %v9808_v42 = vld [vmem:[%s17672_s1 + $0x170] ss:$12 sps:$4 sm:$0xff]  }
 0x103   :  { %9402 = vmatmul.mubr.bf16.vlgmr.msra.gmra.mrb[96].mxu1 %v9773_v43  ;;  %2235 = vmatmul.mubr.bf16.gmra.mrb[96].mxu0 %v9776_v44  ;;  %v9811_v43 = vld [vmem:[%s17672_s1 + $0x2e8] ss:$12 sps:$4 sm:$0xff]  }
 0x104   :  { %9405 = vmatprep.mubr.bf16.mxu1 %v9777_v45  ;;  %2242 = vmatprep.mubr.bf16.mxu0 %v9779_v46  ;;  %v9812_v46 = vld [vmem:[%s17672_s1 + $0x188] ss:$12 sps:$4 sm:$0xff]  }
 0x10b   :  { %9406 = vmatmul.mubr.bf16.gmra.mrb[100].mxu1 %v9778_v47  ;;  %2243 = vmatmul.mubr.bf16.gmra.mrb[100].mxu0 %v9781_v48  ;;  %v9814_v47 = vld [vmem:[%s17672_s1 + $0x304] ss:$12 sps:$4 sm:$0xff]  }
 0x10c   :  { %9409 = vmatprep.mubr.bf16.mxu1 %v9782_v49  ;;  %2250 = vmatprep.mubr.bf16.mxu0 %v9784_v50 }
 0x113   :  { %9410 = vmatmul.mubr.bf16.gmra.mrb[104].mxu1 %v9783_v51  ;;  %2251 = vmatmul.mubr.bf16.gmra.mrb[104].mxu0 %v9786_v52 }
 0x114   :  { %9413 = vmatprep.mubr.bf16.mxu1 %v9787_v53  ;;  %2258 = vmatprep.mubr.bf16.mxu0 %v9789_v54  ;;  %v9813_v54 = vld [vmem:[%s17672_s1 + $0x1a0] ss:$12 sps:$4 sm:$0xff]  }
 0x116   :  { %v10930_v55 = vpop.f32.mrb[0].mxu1  ;;  %v10932_v56 = vpop.f32.mrb[0].mxu0 }
 0x117   :  { %18037 = vst [vmem:[#allocation2_spill] sm:$0xff] %v10930_v55  ;;  %v2622_v57 = vpop.f32.mrb[1].mxu1  ;;  %v2046_v60 = vpop.f32.mrb[1].mxu0 }
 0x118   :  { %v10940_v61 = vpop.f32.mrb[2].mxu1  ;;  %v10948_v0 = vpop.f32.mrb[2].mxu0  ;;  %v9816_v57 = vld [vmem:[%s17672_s1 + $0x300] ss:$12 sps:$4 sm:$0xff]   ;;  %v9817_v60 = vld [vmem:[%s17672_s1 + $0x1b8] ss:$12 sps:$4 sm:$0xff]  }
 0x119   :  { %18038 = vst [vmem:[#allocation3_spill] sm:$0xff] %v10940_v61  ;;  %v2625_v1 = vpop.f32.mrb[3].mxu1  ;;  %v2049_v2 = vpop.f32.mrb[3].mxu0 }
 0x11b   :  { %9414 = vmatmul.mubr.bf16.gmra.mrb[108].mxu1 %v9788_v58  ;;  %2259 = vmatmul.mubr.bf16.gmra.mrb[108].mxu0 %v9791_v59 }
 0x11c   :  { %9417 = vmatprep.mubr.bf16.mxu1 %v9792_v62  ;;  %2266 = vmatprep.mubr.bf16.mxu0 %v9794_v63  ;;  %v9819_v62 = vld [vmem:[%s17672_s1 + $0x31c] ss:$12 sps:$4 sm:$0xff]  }
 0x11e   :  { %v10950_v3 = vpop.f32.mrb[4].mxu1  ;;  %v10952_v4 = vpop.f32.mrb[4].mxu0 }
 0x11f   :  { %18039 = vst [vmem:[#allocation4_spill] sm:$0xff] %v10950_v3  ;;  %v2630_v5 = vpop.f32.mrb[5].mxu1  ;;  %v2054_v8 = vpop.f32.mrb[5].mxu0 }
 0x120   :  { %v10960_v9 = vpop.f32.mrb[6].mxu1  ;;  %v10968_v12 = vpop.f32.mrb[6].mxu0  ;;  %v9818_v8 = vld [vmem:[%s17672_s1 + $0x1d0] ss:$12 sps:$4 sm:$0xff]  }
 0x121   :  { %18040 = vst [vmem:[#allocation5_spill] sm:$0xff] %v10960_v9  ;;  %v2633_v13 = vpop.f32.mrb[7].mxu1  ;;  %v2057_v14 = vpop.f32.mrb[7].mxu0 }
 0x122   :  { %v9822_v14 = vld [vmem:[%s17672_s1 + $0x1e8] ss:$12 sps:$4 sm:$0xff]  }
 0x123   :  { %9418 = vmatmul.mubr.bf16.gmra.mrb[112].mxu1 %v9793_v6  ;;  %2267 = vmatmul.mubr.bf16.gmra.mrb[112].mxu0 %v9796_v7 }
 0x124   :  { %9421 = vmatprep.mubr.bf16.mxu1 %v9797_v10  ;;  %2274 = vmatprep.mubr.bf16.mxu0 %v9799_v11  ;;  %v9821_v10 = vld [vmem:[%s17672_s1 + $0x318] ss:$12 sps:$4 sm:$0xff]  }
 0x126   :  { %v10970_v15 = vpop.f32.mrb[8].mxu1  ;;  %v10972_v16 = vpop.f32.mrb[8].mxu0 }
 0x127   :  { %18041 = vst [vmem:[#allocation6_spill] sm:$0xff] %v10970_v15  ;;  %v2638_v17 = vpop.f32.mrb[9].mxu1  ;;  %v2062_v20 = vpop.f32.mrb[9].mxu0  ;;  %v9908_v15 = vld [vmem:[%s17672_s1 + $0x530] ss:$12 sps:$4 sm:$0xff]  }
 0x128   :  { %v10980_v21 = vpop.f32.mrb[10].mxu1  ;;  %v10988_v24 = vpop.f32.mrb[10].mxu0  ;;  %v9824_v17 = vld [vmem:[%s17672_s1 + $0x334] ss:$12 sps:$4 sm:$0xff]  }
 0x129   :  { %18042 = vst [vmem:[#allocation7_spill] sm:$0xff] %v10980_v21  ;;  %v2641_v25 = vpop.f32.mrb[11].mxu1  ;;  %v2065_v26 = vpop.f32.mrb[11].mxu0  ;;  %v9906_v21 = vld [vmem:[%s17672_s1 + $0x4b0] ss:$12 sps:$4 sm:$0xff]  }
 0x12a   :  { %v9823_v26 = vld [vmem:[%s17672_s1 + $0x200] ss:$12 sps:$4 sm:$0xff]  }
 0x12b   :  { %9422 = vmatmul.mubr.bf16.gmra.mrb[116].mxu1 %v9798_v18  ;;  %2275 = vmatmul.mubr.bf16.gmra.mrb[116].mxu0 %v9801_v19 }
 0x12c   :  { %9425 = vmatprep.mubr.bf16.mxu1 %v9802_v22  ;;  %2282 = vmatprep.mubr.bf16.mxu0 %v9804_v23 }
 0x12e   :  { %v10990_v27 = vpop.f32.mrb[12].mxu1  ;;  %v10992_v28 = vpop.f32.mrb[12].mxu0 }
 0x12f   :  { %18043 = vst [vmem:[#allocation8_spill] sm:$0xff] %v10990_v27  ;;  %v2646_v29 = vpop.f32.mrb[13].mxu1  ;;  %v2070_v32 = vpop.f32.mrb[13].mxu0 }
 0x130   :  { %v11000_v33 = vpop.f32.mrb[14].mxu1  ;;  %v11008_v36 = vpop.f32.mrb[14].mxu0  ;;  %v9826_v29 = vld [vmem:[%s17672_s1 + $0x330] ss:$12 sps:$4 sm:$0xff]   ;;  %v9827_v32 = vld [vmem:[%s17672_s1 + $0x218] ss:$12 sps:$4 sm:$0xff]  }
 0x131   :  { %18044 = vst [vmem:[#allocation9_spill] sm:$0xff] %v11000_v33  ;;  %v2649_v37 = vpop.f32.mrb[15].mxu1  ;;  %v2073_v38 = vpop.f32.mrb[15].mxu0 }
 0x133   :  { %9426 = vmatmul.mubr.bf16.gmra.mrb[120].mxu1 %v9803_v30  ;;  %2283 = vmatmul.mubr.bf16.gmra.mrb[120].mxu0 %v9806_v31 }
 0x134   :  { %9429 = vmatprep.mubr.bf16.mxu1 %v9807_v34  ;;  %2290 = vmatprep.mubr.bf16.mxu0 %v9809_v35  ;;  %v9829_v34 = vld [vmem:[%s17672_s1 + $0x34c] ss:$12 sps:$4 sm:$0xff]  }
 0x136   :  { %v11010_v39 = vpop.f32.mrb[16].mxu1  ;;  %v11012_v40 = vpop.f32.mrb[16].mxu0 }
 0x137   :  { %18045 = vst [vmem:[#allocation10_spill] sm:$0xff] %v11010_v39  ;;  %v2654_v41 = vpop.f32.mrb[17].mxu1  ;;  %v2078_v44 = vpop.f32.mrb[17].mxu0  ;;  %v9901_v39 = vld [vmem:[%s17672_s1 + $0x498] ss:$12 sps:$4 sm:$0xff]  }
 0x138   :  { %v11020_v45 = vpop.f32.mrb[18].mxu1  ;;  %v11028_v48 = vpop.f32.mrb[18].mxu0  ;;  %v9828_v44 = vld [vmem:[%s17672_s1 + $0x230] ss:$12 sps:$4 sm:$0xff]  }
 0x139   :  { %18046 = vst [vmem:[#allocation11_spill] sm:$0xff] %v11020_v45  ;;  %v2657_v49 = vpop.f32.mrb[19].mxu1  ;;  %v2081_v50 = vpop.f32.mrb[19].mxu0  ;;  %v9896_v45 = vld [vmem:[%s17672_s1 + $0x480] ss:$12 sps:$4 sm:$0xff]  }
 0x13a   :  { %v9832_v50 = vld [vmem:[%s17672_s1 + $0x248] ss:$12 sps:$4 sm:$0xff]  }
 0x13b   :  { %9430 = vmatmul.mubr.bf16.gmra.mrb[124].mxu1 %v9808_v42  ;;  %2291 = vmatmul.mubr.bf16.gmra.mrb[124].mxu0 %v9811_v43 }
 0x13c   :  { %9433 = vmatprep.mubr.bf16.mxu1 %v9812_v46  ;;  %2298 = vmatprep.mubr.bf16.mxu0 %v9814_v47  ;;  %v9831_v46 = vld [vmem:[%s17672_s1 + $0x348] ss:$12 sps:$4 sm:$0xff]  }
 0x13e   :  { %v11030_v51 = vpop.f32.mrb[20].mxu1  ;;  %v11032_v52 = vpop.f32.mrb[20].mxu0 }
 0x13f   :  { %18047 = vst [vmem:[#allocation12_spill] sm:$0xff] %v11030_v51  ;;  %v2662_v53 = vpop.f32.mrb[21].mxu1  ;;  %v2086_v58 = vpop.f32.mrb[21].mxu0 }
 0x140   :  { %v11040_v59 = vpop.f32.mrb[22].mxu1  ;;  %v11048_v63 = vpop.f32.mrb[22].mxu0  ;;  %v9834_v53 = vld [vmem:[%s17672_s1 + $0x364] ss:$12 sps:$4 sm:$0xff]  }
 0x141   :  { %18048 = vst [vmem:[#allocation13_spill] sm:$0xff] %v11040_v59  ;;  %v2665_v1 = vpop.f32.mrb[23].mxu1  ;;  %v2089_v2 = vpop.f32.mrb[23].mxu0 }
 0x142   :  { %v9833_v2 = vld [vmem:[%s17672_s1 + $0x260] ss:$12 sps:$4 sm:$0xff]  }
 0x143   :  { %9434 = vmatmul.mubr.bf16.gmra.mrb[128].mxu1 %v9813_v54  ;;  %2299 = vmatmul.mubr.bf16.gmra.mrb[128].mxu0 %v9816_v57 }
 0x144   :  { %9437 = vmatprep.mubr.bf16.mxu1 %v9817_v60  ;;  %2306 = vmatprep.mubr.bf16.mxu0 %v9819_v62 }
 0x146   :  { %v11050_v5 = vpop.f32.mrb[24].mxu1  ;;  %v11052_v6 = vpop.f32.mrb[24].mxu0 }
 0x147   :  { %18049 = vst [vmem:[#allocation14_spill] sm:$0xff] %v11050_v5  ;;  %v2670_v7 = vpop.f32.mrb[25].mxu1  ;;  %v2094_v11 = vpop.f32.mrb[25].mxu0  ;;  %v9891_v5 = vld [vmem:[%s17672_s1 + $0x468] ss:$12 sps:$4 sm:$0xff]  }
 0x148   :  { %v11060_v13 = vpop.f32.mrb[26].mxu1  ;;  %v11068_v18 = vpop.f32.mrb[26].mxu0  ;;  %v9836_v7 = vld [vmem:[%s17672_s1 + $0x360] ss:$12 sps:$4 sm:$0xff]   ;;  %v9837_v11 = vld [vmem:[%s17672_s1 + $0x278] ss:$12 sps:$4 sm:$0xff]  }
 0x149   :  { %18050 = vst [vmem:[#allocation15_spill] sm:$0xff] %v11060_v13  ;;  %v2673_v19 = vpop.f32.mrb[27].mxu1  ;;  %v2097_v20 = vpop.f32.mrb[27].mxu0  ;;  %v9886_v13 = vld [vmem:[%s17672_s1 + $0x450] ss:$12 sps:$4 sm:$0xff]  }
 0x14b   :  { %9438 = vmatmul.mubr.bf16.gmra.mrb[132].mxu1 %v9818_v8  ;;  %2307 = vmatmul.mubr.bf16.gmra.mrb[132].mxu0 %v9821_v10 }
 0x14c   :  { %9441 = vmatprep.mubr.bf16.mxu1 %v9822_v14  ;;  %2314 = vmatprep.mubr.bf16.mxu0 %v9824_v17  ;;  %v9839_v14 = vld [vmem:[%s17672_s1 + $0x37c] ss:$12 sps:$4 sm:$0xff]  }
 0x14e   :  { %v11070_v22 = vpop.f32.mrb[28].mxu1  ;;  %v11072_v23 = vpop.f32.mrb[28].mxu0 }
 0x14f   :  { %18051 = vst [vmem:[#allocation16_spill] sm:$0xff] %v11070_v22  ;;  %v2678_v25 = vpop.f32.mrb[29].mxu1  ;;  %v2102_v30 = vpop.f32.mrb[29].mxu0 }
 0x150   :  { %v11080_v31 = vpop.f32.mrb[30].mxu1  ;;  %v11088_v35 = vpop.f32.mrb[30].mxu0  ;;  %v9838_v30 = vld [vmem:[%s17672_s1 + $0x290] ss:$12 sps:$4 sm:$0xff]  }
 0x151   :  { %18052 = vst [vmem:[#allocation17_spill] sm:$0xff] %v11080_v31  ;;  %v2681_v37 = vpop.f32.mrb[31].mxu1  ;;  %v2105_v38 = vpop.f32.mrb[31].mxu0 }
 0x152   :  { %v9842_v38 = vld [vmem:[%s17672_s1 + $0x2a8] ss:$12 sps:$4 sm:$0xff]  }
 0x153   :  { %9442 = vmatmul.mubr.bf16.gmra.mrb[136].mxu1 %v9823_v26  ;;  %2315 = vmatmul.mubr.bf16.gmra.mrb[136].mxu0 %v9826_v29 }
 0x154   :  { %9445 = vmatprep.mubr.bf16.mxu1 %v9827_v32  ;;  %2322 = vmatprep.mubr.bf16.mxu0 %v9829_v34  ;;  %v9841_v32 = vld [vmem:[%s17672_s1 + $0x378] ss:$12 sps:$4 sm:$0xff]  }
 0x156   :  { %v11090_v41 = vpop.f32.mrb[32].mxu1  ;;  %v11092_v42 = vpop.f32.mrb[32].mxu0 }
 0x157   :  { %18053 = vst [vmem:[#allocation18_spill] sm:$0xff] %v11090_v41  ;;  %v2686_v43 = vpop.f32.mrb[33].mxu1  ;;  %v2110_v47 = vpop.f32.mrb[33].mxu0  ;;  %v9881_v41 = vld [vmem:[%s17672_s1 + $0x438] ss:$12 sps:$4 sm:$0xff]  }
 0x158   :  { %v11100_v49 = vpop.f32.mrb[34].mxu1  ;;  %v11108_v54 = vpop.f32.mrb[34].mxu0  ;;  %v9844_v43 = vld [vmem:[%s17672_s1 + $0x394] ss:$12 sps:$4 sm:$0xff]  }
 0x159   :  { %18054 = vst [vmem:[#allocation19_spill] sm:$0xff] %v11100_v49  ;;  %v2689_v57 = vpop.f32.mrb[35].mxu1  ;;  %v2113_v58 = vpop.f32.mrb[35].mxu0  ;;  %v9876_v49 = vld [vmem:[%s17672_s1 + $0x420] ss:$12 sps:$4 sm:$0xff]  }
 0x15a   :  { %v9843_v58 = vld [vmem:[%s17672_s1 + $0x2c0] ss:$12 sps:$4 sm:$0xff]  }
 0x15b   :  { %9446 = vmatmul.mubr.bf16.gmra.mrb[140].mxu1 %v9828_v44  ;;  %2323 = vmatmul.mubr.bf16.gmra.mrb[140].mxu0 %v9831_v46 }
 0x15c   :  { %9449 = vmatprep.mubr.bf16.mxu1 %v9832_v50  ;;  %2330 = vmatprep.mubr.bf16.mxu0 %v9834_v53 }
 0x15e   :  { %v11110_v60 = vpop.f32.mrb[36].mxu1  ;;  %v11112_v62 = vpop.f32.mrb[36].mxu0 }
 0x15f   :  { %18055 = vst [vmem:[#allocation20_spill] sm:$0xff] %v11110_v60  ;;  %v2694_v1 = vpop.f32.mrb[37].mxu1  ;;  %v2118_v8 = vpop.f32.mrb[37].mxu0 }
 0x160   :  { %v11120_v10 = vpop.f32.mrb[38].mxu1  ;;  %v11128_v17 = vpop.f32.mrb[38].mxu0  ;;  %v9846_v1 = vld [vmem:[%s17672_s1 + $0x390] ss:$12 sps:$4 sm:$0xff]   ;;  %v9847_v8 = vld [vmem:[%s17672_s1 + $0x2d8] ss:$12 sps:$4 sm:$0xff]  }
 0x161   :  { %18056 = vst [vmem:[#allocation21_spill] sm:$0xff] %v11120_v10  ;;  %v2697_v19 = vpop.f32.mrb[39].mxu1  ;;  %v2121_v20 = vpop.f32.mrb[39].mxu0 }
 0x163   :  { %9450 = vmatmul.mubr.bf16.gmra.mrb[144].mxu1 %v9833_v2  ;;  %2331 = vmatmul.mubr.bf16.gmra.mrb[144].mxu0 %v9836_v7 }
 0x164   :  { %9453 = vmatprep.mubr.bf16.mxu1 %v9837_v11  ;;  %2338 = vmatprep.mubr.bf16.mxu0 %v9839_v14  ;;  %v9849_v11 = vld [vmem:[%s17672_s1 + $0x3ac] ss:$12 sps:$4 sm:$0xff]  }
 0x166   :  { %v11130_v25 = vpop.f32.mrb[40].mxu1  ;;  %v11132_v26 = vpop.f32.mrb[40].mxu0 }
 0x167   :  { %18057 = vst [vmem:[#allocation22_spill] sm:$0xff] %v11130_v25  ;;  %v2702_v29 = vpop.f32.mrb[41].mxu1  ;;  %v2126_v34 = vpop.f32.mrb[41].mxu0  ;;  %v9871_v25 = vld [vmem:[%s17672_s1 + $0x408] ss:$12 sps:$4 sm:$0xff]  }
 0x168   :  { %v11140_v37 = vpop.f32.mrb[42].mxu1  ;;  %v11148_v44 = vpop.f32.mrb[42].mxu0  ;;  %v9848_v34 = vld [vmem:[%s17672_s1 + $0x2f0] ss:$12 sps:$4 sm:$0xff]  }
 0x169   :  { %18058 = vst [vmem:[#allocation23_spill] sm:$0xff] %v11140_v37  ;;  %v2705_v46 = vpop.f32.mrb[43].mxu1  ;;  %v2129_v47 = vpop.f32.mrb[43].mxu0  ;;  %v9866_v37 = vld [vmem:[%s17672_s1 + $0x3f0] ss:$12 sps:$4 sm:$0xff]  }
 0x16a   :  { %v9852_v47 = vld [vmem:[%s17672_s1 + $0x308] ss:$12 sps:$4 sm:$0xff]  }
 0x16b   :  { %9454 = vmatmul.mubr.bf16.gmra.mrb[148].mxu1 %v9838_v30  ;;  %2339 = vmatmul.mubr.bf16.gmra.mrb[148].mxu0 %v9841_v32 }
 0x16c   :  { %9457 = vmatprep.mubr.bf16.mxu1 %v9842_v38  ;;  %2346 = vmatprep.mubr.bf16.mxu0 %v9844_v43  ;;  %v9851_v38 = vld [vmem:[%s17672_s1 + $0x3a8] ss:$12 sps:$4 sm:$0xff]  }
 0x16e   :  { %v11150_v50 = vpop.f32.mrb[44].mxu1  ;;  %v11152_v53 = vpop.f32.mrb[44].mxu0 }
 0x16f   :  { %18059 = vst [vmem:[#allocation24_spill] sm:$0xff] %v11150_v50  ;;  %v2710_v57 = vpop.f32.mrb[45].mxu1  ;;  %v2134_v2 = vpop.f32.mrb[45].mxu0 }
 0x170   :  { %v11160_v7 = vpop.f32.mrb[46].mxu1  ;;  %v11168_v14 = vpop.f32.mrb[46].mxu0  ;;  %v9854_v57 = vld [vmem:[%s17672_s1 + $0x3c4] ss:$12 sps:$4 sm:$0xff]  }
 0x171   :  { %18060 = vst [vmem:[#allocation25_spill] sm:$0xff] %v11160_v7  ;;  %v2713_v19 = vpop.f32.mrb[47].mxu1  ;;  %v2137_v20 = vpop.f32.mrb[47].mxu0 }
 0x172   :  { %v9853_v20 = vld [vmem:[%s17672_s1 + $0x320] ss:$12 sps:$4 sm:$0xff]  }
 0x173   :  { %9458 = vmatmul.mubr.bf16.gmra.mrb[152].mxu1 %v9843_v58  ;;  %2347 = vmatmul.mubr.bf16.gmra.mrb[152].mxu0 %v9846_v1 }
 0x174   :  { %9461 = vmatprep.mubr.bf16.mxu1 %v9847_v8  ;;  %2354 = vmatprep.mubr.bf16.mxu0 %v9849_v11 }
 0x176   :  { %v11170_v29 = vpop.f32.mrb[48].mxu1  ;;  %v11172_v30 = vpop.f32.mrb[48].mxu0 }
 0x177   :  { %18061 = vst [vmem:[#allocation26_spill] sm:$0xff] %v11170_v29  ;;  %v2718_v32 = vpop.f32.mrb[49].mxu1  ;;  %v2142_v43 = vpop.f32.mrb[49].mxu0  ;;  %v9861_v29 = vld [vmem:[%s17672_s1 + $0x3d8] ss:$12 sps:$4 sm:$0xff]  }
 0x178   :  { %v11180_v46 = vpop.f32.mrb[50].mxu1  ;;  %v11188_v58 = vpop.f32.mrb[50].mxu0  ;;  %v9856_v32 = vld [vmem:[%s17672_s1 + $0x3c0] ss:$12 sps:$4 sm:$0xff]  }
 0x179   :  { %18062 = vst [vmem:[#allocation27_spill] sm:$0xff] %v11180_v46  ;;  %v2721_v1 = vpop.f32.mrb[51].mxu1  ;;  %v2145_v2 = vpop.f32.mrb[51].mxu0 }
 0x17b   :  { %9462 = vmatmul.mubr.bf16.gmra.mrb[156].mxu1 %v9848_v34  ;;  %2355 = vmatmul.mubr.bf16.gmra.mrb[156].mxu0 %v9851_v38  ;;  %v9857_v34 = vld [vmem:[%s17672_s1 + $0x338] ss:$12 sps:$4 sm:$0xff]   ;;  %v9859_v38 = vld [vmem:[%s17672_s1 + $0x3dc] ss:$12 sps:$4 sm:$0xff]  }
 0x17c   :  { %9465 = vmatprep.mubr.bf16.mxu1 %v9852_v47  ;;  %2362 = vmatprep.mubr.bf16.mxu0 %v9854_v57 }
 0x17e   :  { %v11190_v8 = vpop.f32.mrb[52].mxu1  ;;  %v11192_v11 = vpop.f32.mrb[52].mxu0 }
 0x17f   :  { %18063 = vst [vmem:[#allocation28_spill] sm:$0xff] %v11190_v8  ;;  %v2726_v19 = vpop.f32.mrb[53].mxu1  ;;  %v2150_v43 = vpop.f32.mrb[53].mxu0 }
 0x180   :  { %v11200_v1 = vpop.f32.mrb[54].mxu1  ;;  %v11208_v47 = vpop.f32.mrb[54].mxu0 }
 0x181   :  { %18064 = vst [vmem:[#allocation29_spill] sm:$0xff] %v11200_v1  ;;  %v2729_v57 = vpop.f32.mrb[55].mxu1  ;;  %v2153_v2 = vpop.f32.mrb[55].mxu0  ;;  %v9858_v1 = vld [vmem:[%s17672_s1 + $0x350] ss:$12 sps:$4 sm:$0xff]  }
 0x183   :  { %9466 = vmatmul.mubr.bf16.gmra.mrb[160].mxu1 %v9853_v20  ;;  %2363 = vmatmul.mubr.bf16.gmra.mrb[160].mxu0 %v9856_v32  ;;  %v9862_v20 = vld [vmem:[%s17672_s1 + $0x368] ss:$12 sps:$4 sm:$0xff]  }
 0x184   :  { %9469 = vmatprep.mubr.bf16.mxu1 %v9857_v34  ;;  %2370 = vmatprep.mubr.bf16.mxu0 %v9859_v38  ;;  %v9864_v32 = vld [vmem:[%s17672_s1 + $0x3f4] ss:$12 sps:$4 sm:$0xff]  }
 0x186   :  { %v11210_v19 = vpop.f32.mrb[56].mxu1  ;;  %v11212_v43 = vpop.f32.mrb[56].mxu0 }
 0x187   :  { %18065 = vst [vmem:[#allocation30_spill] sm:$0xff] %v11210_v19  ;;  %v2734_v46 = vpop.f32.mrb[57].mxu1  ;;  %v2158_v8 = vpop.f32.mrb[57].mxu0  ;;  %v9863_v19 = vld [vmem:[%s17672_s1 + $0x380] ss:$12 sps:$4 sm:$0xff]  }
 0x188   :  { %v11220_v57 = vpop.f32.mrb[58].mxu1  ;;  %v11228_v46 = vpop.f32.mrb[58].mxu0 }
 0x189   :  { %18066 = vst [vmem:[#allocation31_spill] sm:$0xff] %v11220_v57  ;;  %v2737_v34 = vpop.f32.mrb[59].mxu1  ;;  %v2161_v38 = vpop.f32.mrb[59].mxu0 }
 0x18b   :  { %9470 = vmatmul.mubr.bf16.gmra.mrb[164].mxu1 %v9858_v1  ;;  %2371 = vmatmul.mubr.bf16.gmra.mrb[164].mxu0 %v9861_v29  ;;  %v9867_v29 = vld [vmem:[%s17672_s1 + $0x398] ss:$12 sps:$4 sm:$0xff]  }
 0x18c   :  { %9473 = vmatprep.mubr.bf16.mxu1 %v9862_v20  ;;  %2378 = vmatprep.mubr.bf16.mxu0 %v9864_v32  ;;  %v9869_v1 = vld [vmem:[%s17672_s1 + $0x40c] ss:$12 sps:$4 sm:$0xff]  }
 0x18e   :  { %v11230_v2 = vpop.f32.mrb[60].mxu1  ;;  %v11232_v8 = vpop.f32.mrb[60].mxu0 }
 0x18f   :  { %18067 = vst [vmem:[#allocation32_spill] sm:$0xff] %v11230_v2  ;;  %v2742_v57 = vpop.f32.mrb[61].mxu1  ;;  %v2166_v7 = vpop.f32.mrb[61].mxu0  ;;  %v9868_v2 = vld [vmem:[%s17672_s1 + $0x3b0] ss:$12 sps:$4 sm:$0xff]  }
 0x190   :  { %v11240_v34 = vpop.f32.mrb[62].mxu1  ;;  %v11248_v57 = vpop.f32.mrb[62].mxu0 }
 0x191   :  { %18068 = vst [vmem:[#allocation33_spill] sm:$0xff] %v11240_v34  ;;  %v2745_v20 = vpop.f32.mrb[63].mxu1  ;;  %v2169_v32 = vpop.f32.mrb[63].mxu0 }
 0x193   :  { %9474 = vmatmul.mubr.bf16.gmra.mrb[168].mxu1 %v9863_v19  ;;  %2379 = vmatmul.mubr.bf16.gmra.mrb[168].mxu0 %v9866_v37  ;;  %v9872_v37 = vld [vmem:[%s17672_s1 + $0x3c8] ss:$12 sps:$4 sm:$0xff]   ;;  %v9874_v19 = vld [vmem:[%s17672_s1 + $0x424] ss:$12 sps:$4 sm:$0xff]  }
 0x194   :  { %9477 = vmatprep.mubr.bf16.mxu1 %v9867_v29  ;;  %2386 = vmatprep.mubr.bf16.mxu0 %v9869_v1 }
 0x196   :  { %v11250_v38 = vpop.f32.mrb[64].mxu1  ;;  %v11252_v7 = vpop.f32.mrb[64].mxu0 }
 0x197   :  { %18069 = vst [vmem:[#allocation34_spill] sm:$0xff] %v11250_v38  ;;  %v2750_v34 = vpop.f32.mrb[65].mxu1  ;;  %v2174_v50 = vpop.f32.mrb[65].mxu0  ;;  %v9873_v38 = vld [vmem:[%s17672_s1 + $0x3e0] ss:$12 sps:$4 sm:$0xff]  }
 0x198   :  { %v11260_v20 = vpop.f32.mrb[66].mxu1  ;;  %v11268_v34 = vpop.f32.mrb[66].mxu0 }
 0x199   :  { %18070 = vst [vmem:[#allocation35_spill] sm:$0xff] %v11260_v20  ;;  %v2753_v29 = vpop.f32.mrb[67].mxu1  ;;  %v2177_v1 = vpop.f32.mrb[67].mxu0 }
 0x19b   :  { %9478 = vmatmul.mubr.bf16.gmra.mrb[172].mxu1 %v9868_v2  ;;  %2387 = vmatmul.mubr.bf16.gmra.mrb[172].mxu0 %v9871_v25  ;;  %v9877_v25 = vld [vmem:[%s17672_s1 + $0x3f8] ss:$12 sps:$4 sm:$0xff]   ;;  %v9879_v2 = vld [vmem:[%s17672_s1 + $0x43c] ss:$12 sps:$4 sm:$0xff]  }
 0x19c   :  { %9481 = vmatprep.mubr.bf16.mxu1 %v9872_v37  ;;  %2394 = vmatprep.mubr.bf16.mxu0 %v9874_v19 }
 0x19e   :  { %v11270_v32 = vpop.f32.mrb[68].mxu1  ;;  %v11272_v50 = vpop.f32.mrb[68].mxu0 }
 0x19f   :  { %18071 = vst [vmem:[#allocation36_spill] sm:$0xff] %v11270_v32  ;;  %v2758_v20 = vpop.f32.mrb[69].mxu1  ;;  %v2182_v10 = vpop.f32.mrb[69].mxu0  ;;  %v9878_v32 = vld [vmem:[%s17672_s1 + $0x410] ss:$12 sps:$4 sm:$0xff]  }
 0x1a0   :  { %v11280_v29 = vpop.f32.mrb[70].mxu1  ;;  %v11288_v20 = vpop.f32.mrb[70].mxu0 }
 0x1a1   :  { %18072 = vst [vmem:[#allocation37_spill] sm:$0xff] %v11280_v29  ;;  %v2761_v37 = vpop.f32.mrb[71].mxu1  ;;  %v2185_v19 = vpop.f32.mrb[71].mxu0 }
 0x1a3   :  { %9482 = vmatmul.mubr.bf16.gmra.mrb[176].mxu1 %v9873_v38  ;;  %2395 = vmatmul.mubr.bf16.gmra.mrb[176].mxu0 %v9876_v49  ;;  %v9882_v49 = vld [vmem:[%s17672_s1 + $0x428] ss:$12 sps:$4 sm:$0xff]  }
 0x1a4   :  { %9485 = vmatprep.mubr.bf16.mxu1 %v9877_v25  ;;  %2402 = vmatprep.mubr.bf16.mxu0 %v9879_v2  ;;  %v9884_v38 = vld [vmem:[%s17672_s1 + $0x454] ss:$12 sps:$4 sm:$0xff]  }
 0x1a6   :  { %v11290_v1 = vpop.f32.mrb[72].mxu1  ;;  %v11292_v10 = vpop.f32.mrb[72].mxu0 }
 0x1a7   :  { %18073 = vst [vmem:[#allocation38_spill] sm:$0xff] %v11290_v1  ;;  %v2766_v29 = vpop.f32.mrb[73].mxu1  ;;  %v2190_v60 = vpop.f32.mrb[73].mxu0  ;;  %v9883_v1 = vld [vmem:[%s17672_s1 + $0x440] ss:$12 sps:$4 sm:$0xff]  }
 0x1a8   :  { %v11300_v37 = vpop.f32.mrb[74].mxu1  ;;  %v11308_v29 = vpop.f32.mrb[74].mxu0 }
 0x1a9   :  { %18074 = vst [vmem:[#allocation39_spill] sm:$0xff] %v11300_v37  ;;  %v2769_v25 = vpop.f32.mrb[75].mxu1  ;;  %v2193_v2 = vpop.f32.mrb[75].mxu0 }
 0x1ab   :  { %9486 = vmatmul.mubr.bf16.gmra.mrb[180].mxu1 %v9878_v32  ;;  %2403 = vmatmul.mubr.bf16.gmra.mrb[180].mxu0 %v9881_v41  ;;  %v9887_v41 = vld [vmem:[%s17672_s1 + $0x458] ss:$12 sps:$4 sm:$0xff]  }
 0x1ac   :  { %9489 = vmatprep.mubr.bf16.mxu1 %v9882_v49  ;;  %2410 = vmatprep.mubr.bf16.mxu0 %v9884_v38  ;;  %v9889_v32 = vld [vmem:[%s17672_s1 + $0x46c] ss:$12 sps:$4 sm:$0xff]  }
 0x1ae   :  { %v11310_v19 = vpop.f32.mrb[76].mxu1  ;;  %v11312_v60 = vpop.f32.mrb[76].mxu0 }
 0x1af   :  { %18075 = vst [vmem:[#allocation40_spill] sm:$0xff] %v11310_v19  ;;  %v2774_v37 = vpop.f32.mrb[77].mxu1  ;;  %v2198_v31 = vpop.f32.mrb[77].mxu0  ;;  %v9888_v19 = vld [vmem:[%s17672_s1 + $0x470] ss:$12 sps:$4 sm:$0xff]  }
 0x1b0   :  { %v11320_v25 = vpop.f32.mrb[78].mxu1  ;;  %v11328_v37 = vpop.f32.mrb[78].mxu0 }
 0x1b1   :  { %18076 = vst [vmem:[#allocation41_spill] sm:$0xff] %v11320_v25  ;;  %v2777_v49 = vpop.f32.mrb[79].mxu1  ;;  %v2201_v38 = vpop.f32.mrb[79].mxu0 }
 0x1b3   :  { %9490 = vmatmul.mubr.bf16.gmra.mrb[184].mxu1 %v9883_v1  ;;  %2411 = vmatmul.mubr.bf16.gmra.mrb[184].mxu0 %v9886_v13  ;;  %v9892_v13 = vld [vmem:[%s17672_s1 + $0x488] ss:$12 sps:$4 sm:$0xff]   ;;  %v9894_v1 = vld [vmem:[%s17672_s1 + $0x484] ss:$12 sps:$4 sm:$0xff]  }
 0x1b4   :  { %9493 = vmatprep.mubr.bf16.mxu1 %v9887_v41  ;;  %2418 = vmatprep.mubr.bf16.mxu0 %v9889_v32 }
 0x1b6   :  { %v11330_v2 = vpop.f32.mrb[80].mxu1  ;;  %v11332_v31 = vpop.f32.mrb[80].mxu0 }
 0x1b7   :  { %18077 = vst [vmem:[#allocation42_spill] sm:$0xff] %v11330_v2  ;;  %v2782_v25 = vpop.f32.mrb[81].mxu1  ;;  %v2206_v22 = vpop.f32.mrb[81].mxu0  ;;  %v9893_v2 = vld [vmem:[%s17672_s1 + $0x4a0] ss:$12 sps:$4 sm:$0xff]  }
 0x1b8   :  { %v11340_v49 = vpop.f32.mrb[82].mxu1  ;;  %v11348_v25 = vpop.f32.mrb[82].mxu0 }
 0x1b9   :  { %18078 = vst [vmem:[#allocation43_spill] sm:$0xff] %v11340_v49  ;;  %v2785_v41 = vpop.f32.mrb[83].mxu1  ;;  %v2209_v32 = vpop.f32.mrb[83].mxu0 }
 0x1bb   :  { %9494 = vmatmul.mubr.bf16.gmra.mrb[188].mxu1 %v9888_v19  ;;  %2419 = vmatmul.mubr.bf16.gmra.mrb[188].mxu0 %v9891_v5  ;;  %v9897_v5 = vld [vmem:[%s17672_s1 + $0x4b8] ss:$12 sps:$4 sm:$0xff]   ;;  %v9899_v19 = vld [vmem:[%s17672_s1 + $0x49c] ss:$12 sps:$4 sm:$0xff]  }
 0x1bc   :  { %9497 = vmatprep.mubr.bf16.mxu1 %v9892_v13  ;;  %2426 = vmatprep.mubr.bf16.mxu0 %v9894_v1 }
 0x1be   :  { %v11350_v38 = vpop.f32.mrb[84].mxu1  ;;  %v11352_v22 = vpop.f32.mrb[84].mxu0 }
 0x1bf   :  { %18079 = vst [vmem:[#allocation44_spill] sm:$0xff] %v11350_v38  ;;  %v2790_v49 = vpop.f32.mrb[85].mxu1  ;;  %v2214_v59 = vpop.f32.mrb[85].mxu0  ;;  %v9898_v38 = vld [vmem:[%s17672_s1 + $0x4d0] ss:$12 sps:$4 sm:$0xff]  }
 0x1c0   :  { %v11360_v41 = vpop.f32.mrb[86].mxu1  ;;  %v11368_v49 = vpop.f32.mrb[86].mxu0 }
 0x1c1   :  { %18080 = vst [vmem:[#allocation45_spill] sm:$0xff] %v11360_v41  ;;  %v2793_v13 = vpop.f32.mrb[87].mxu1  ;;  %v2217_v1 = vpop.f32.mrb[87].mxu0 }
 0x1c3   :  { %9498 = vmatmul.mubr.bf16.gmra.mrb[192].mxu1 %v9893_v2  ;;  %2427 = vmatmul.mubr.bf16.gmra.mrb[192].mxu0 %v9896_v45  ;;  %v9902_v45 = vld [vmem:[%s17672_s1 + $0x4e8] ss:$12 sps:$4 sm:$0xff]  }
 0x1c4   :  { %9501 = vmatprep.mubr.bf16.mxu1 %v9897_v5  ;;  %2434 = vmatprep.mubr.bf16.mxu0 %v9899_v19  ;;  %v9904_v2 = vld [vmem:[%s17672_s1 + $0x4b4] ss:$12 sps:$4 sm:$0xff]  }
 0x1c6   :  { %v11370_v32 = vpop.f32.mrb[88].mxu1  ;;  %v11372_v59 = vpop.f32.mrb[88].mxu0 }
 0x1c7   :  { %18081 = vst [vmem:[#allocation46_spill] sm:$0xff] %v11370_v32  ;;  %v2798_v41 = vpop.f32.mrb[89].mxu1  ;;  %v2222_v51 = vpop.f32.mrb[89].mxu0  ;;  %v9903_v32 = vld [vmem:[%s17672_s1 + $0x500] ss:$12 sps:$4 sm:$0xff]  }
 0x1c8   :  { %v11380_v13 = vpop.f32.mrb[90].mxu1  ;;  %v11388_v41 = vpop.f32.mrb[90].mxu0 }
 0x1c9   :  { %18082 = vst [vmem:[#allocation47_spill] sm:$0xff] %v11380_v13  ;;  %v2801_v5 = vpop.f32.mrb[91].mxu1  ;;  %v2225_v19 = vpop.f32.mrb[91].mxu0 }
 0x1cb   :  { %9502 = vmatmul.mubr.bf16.gmra.mrb[196].mxu1 %v9898_v38  ;;  %2435 = vmatmul.mubr.bf16.gmra.mrb[196].mxu0 %v9901_v39  ;;  %v9907_v39 = vld [vmem:[%s17672_s1 + $0x518] ss:$12 sps:$4 sm:$0xff]  }
 0x1cc   :  { %9505 = vmatprep.mubr.bf16.mxu1 %v9902_v45  ;;  %2442 = vmatprep.mubr.bf16.mxu0 %v9904_v2  ;;  %v9909_v38 = vld [vmem:[%s17672_s1 + $0x4cc] ss:$12 sps:$4 sm:$0xff]  }
 0x1ce   :  { %v11390_v1 = vpop.f32.mrb[92].mxu1  ;;  %v11392_v51 = vpop.f32.mrb[92].mxu0 }
 0x1cf   :  { %18083 = vst [vmem:[#allocation48_spill] sm:$0xff] %v11390_v1  ;;  %v2806_v13 = vpop.f32.mrb[93].mxu1  ;;  %v2230_v33 = vpop.f32.mrb[93].mxu0 }
 0x1d0   :  { %v11400_v5 = vpop.f32.mrb[94].mxu1  ;;  %v11408_v13 = vpop.f32.mrb[94].mxu0 }
 0x1d1   :  { %18084 = vst [vmem:[#allocation49_spill] sm:$0xff] %v11400_v5  ;;  %v2809_v45 = vpop.f32.mrb[95].mxu1  ;;  %v2233_v2 = vpop.f32.mrb[95].mxu0 }
 0x1d3   :  { %9506 = vmatmul.mubr.bf16.gmra.mrb[200].mxu1 %v9903_v32  ;;  %2443 = vmatmul.mubr.bf16.gmra.mrb[200].mxu0 %v9906_v21  ;;  %v9911_v21 = vld [vmem:[%s17672_s1 + $0x4c8] ss:$12 sps:$4 sm:$0xff]  }
 0x1d4   :  { %9509 = vmatprep.mubr.bf16.mxu1 %v9907_v39  ;;  %2450 = vmatprep.mubr.bf16.mxu0 %v9909_v38  ;;  %v9912_v39 = vld [vmem:[%s17672_s1 + $0x548] ss:$12 sps:$4 sm:$0xff]  }
 0x1d6   :  { %v9403_v19 = vpop.f32.mrb[96].mxu1  ;;  %v11410_v33 = vpop.f32.mrb[96].mxu0 }
 0x1d7   :  { %v11413_v5 = vadd.f32 %v9403_v19, %v10952_v4  ;;  %v2845_v1 = vpop.f32.mrb[97].mxu1  ;;  %v2238_v27 = vpop.f32.mrb[97].mxu0 }
 0x1d8   :  { %v11419_v45 = vadd.f32 %v2845_v1, %v10932_v56  ;;  %v9404_v32 = vpop.f32.mrb[98].mxu1  ;;  %v11427_v4 = vpop.f32.mrb[98].mxu0  ;;  %v9914_v56 = vld [vmem:[%s17672_s1 + $0x4e4] ss:$12 sps:$4 sm:$0xff]  }
 0x1d9   :  { %v11430_v38 = vadd.f32 %v9404_v32, %v10968_v12  ;;  %v2848_v2 = vpop.f32.mrb[99].mxu1  ;;  %v3619_v27 = vsel %vm3612_vm0, %v11413_v5, 0.0  ;;  %v2241_v1 = vpop.f32.mrb[99].mxu0 }
 0x1da   :  { %v11438_v19 = vadd.f32 %v2848_v2, %v10948_v0  ;;  %3620 = vadd.xlane.f32.xlu1 %v3619_v27  ;;  %v3613_v61 = vsel %vm3612_vm0, %v11419_v45, 0.0  ;;  %v9916_v27 = vld [vmem:[%s17672_s1 + $0x4e0] ss:$12 sps:$4 sm:$0xff]  }
 0x1db   :  { %9510 = vmatmul.mubr.bf16.gmra.mrb[204].mxu1 %v9908_v15  ;;  %3614 = vadd.xlane.f32.xlu0 %v3613_v61  ;;  %v3622_v12 = vsel %vm3612_vm0, %v11430_v38, 0.0  ;;  %v9913_v61 = vld [vmem:[%s17672_s1 + $0x560] ss:$12 sps:$4 sm:$0xff]  }
 0x1dc   :  { %2451 = vmatmul.mubr.bf16.gmra.mrb[204].mxu0 %v9911_v21  ;;  %9513 = vmatprep.mubr.bf16.mxu1 %v9912_v39  ;;  %v3616_v1 = vsel %vm3612_vm0, %v11438_v19, 0.0 }
 0x1dd   :  { %2458 = vmatprep.mubr.bf16.mxu0 %v9914_v56 }
 0x1de   :  { %v9407_v32 = vpop.f32.mrb[100].mxu1  ;;  %3623 = vadd.xlane.f32.xlu1 %v3622_v12  ;;  %v11446_v9 = vpop.f32.mrb[100].mxu0 }
 0x1df   :  { %v11449_v0 = vadd.f32 %v9407_v32, %v10992_v28  ;;  %v2861_v2 = vpop.f32.mrb[101].mxu1  ;;  %3617 = vadd.xlane.f32.xlu0 %v3616_v1  ;;  %v2246_v15 = vpop.f32.mrb[101].mxu0  ;;  %v9917_v28 = vld [vmem:[%s17672_s1 + $0x578] ss:$12 sps:$4 sm:$0xff]  }
 0x1e0   :  { %v11455_v21 = vadd.f32 %v2861_v2, %v10972_v16  ;;  %v9408_v39 = vpop.f32.mrb[102].mxu1  ;;  %v11463_v56 = vpop.f32.mrb[102].mxu0  ;;  %v9919_v16 = vld [vmem:[%s17672_s1 + $0x4fc] ss:$12 sps:$4 sm:$0xff]  }
 0x1e1   :  { %v11466_v12 = vadd.f32 %v9408_v39, %v11008_v36  ;;  %v2864_v32 = vpop.f32.mrb[103].mxu1  ;;  %v3631_v1 = vsel %vm3612_vm0, %v11449_v0, 0.0  ;;  %v2249_v2 = vpop.f32.mrb[103].mxu0 }
 0x1e2   :  { %v11474_v15 = vadd.f32 %v2864_v32, %v10988_v24  ;;  %v3625_v39 = vsel %vm3612_vm0, %v11455_v21, 0.0 }
 0x1e3   :  { %9514 = vmatmul.mubr.bf16.gmra.mrb[208].mxu1 %v9913_v61  ;;  %3632 = vadd.xlane.f32.xlu0 %v3631_v1  ;;  %v3634_v55 = vsel %vm3612_vm0, %v11466_v12, 0.0  ;;  %v9922_v1 = vld [vmem:[%s17672_s1 + $0x5a8] ss:$12 sps:$4 sm:$0xff]  }
 0x1e4   :  { %18085 = vst [vmem:[#allocation50_spill] sm:$0xff] %v11474_v15  ;;  %3635 = vadd.xlane.f32.xlu1 %v3634_v55  ;;  %2459 = vmatmul.mubr.bf16.gmra.mrb[208].mxu0 %v9916_v27  ;;  %v3628_v61 = vsel %vm3612_vm0, %v11474_v15, 0.0  ;;  %v9918_v55 = vld [vmem:[%s17672_s1 + $0x590] ss:$12 sps:$4 sm:$0xff]  }
 0x1e5   :  { %9517 = vmatprep.mubr.bf16.mxu1 %v9917_v28  ;;  %2466 = vmatprep.mubr.bf16.mxu0 %v9919_v16 }
 0x1e6   :  { %v9411_v36 = vpop.f32.mrb[104].mxu1  ;;  %v11480_v3 = vpop.f32.mrb[104].mxu0 }
 0x1e7   :  { %v11483_v2 = vadd.f32 %v9411_v36, %v11032_v52  ;;  %v2877_v24 = vpop.f32.mrb[105].mxu1  ;;  %3626 = vadd.xlane.f32.xlu0 %v3625_v39  ;;  %v2254_v27 = vpop.f32.mrb[105].mxu0  ;;  %v9921_v52 = vld [vmem:[%s17672_s1 + $0x4f8] ss:$12 sps:$4 sm:$0xff]  }
 0x1e8   :  { %v11491_v28 = vadd.f32 %v2877_v24, %v11012_v40  ;;  %v9412_v32 = vpop.f32.mrb[106].mxu1  ;;  %3629 = vadd.xlane.f32.xlu1 %v3628_v61  ;;  %v11499_v16 = vpop.f32.mrb[106].mxu0  ;;  %v9924_v24 = vld [vmem:[%s17672_s1 + $0x514] ss:$12 sps:$4 sm:$0xff]  }
 0x1e9   :  { %18086 = vst [vmem:[#allocation51_spill] sm:$0xff] %v11483_v2  ;;  %v11502_v36 = vadd.f32 %v9412_v32, %v11048_v63  ;;  %v2880_v39 = vpop.f32.mrb[107].mxu1  ;;  %v3643_v40 = vsel %vm3612_vm0, %v11483_v2, 0.0  ;;  %v2257_v61 = vpop.f32.mrb[107].mxu0 }
 0x1ea   :  { %v11510_v27 = vadd.f32 %v2880_v39, %v11028_v48  ;;  %v3637_v32 = vsel %vm3612_vm0, %v11491_v28, 0.0 }
 0x1eb   :  { %9518 = vmatmul.mubr.bf16.gmra.mrb[212].mxu1 %v9918_v55  ;;  %3644 = vadd.xlane.f32.xlu0 %v3643_v40  ;;  %v3646_v15 = vsel %vm3612_vm0, %v11502_v36, 0.0  ;;  %v9927_v40 = vld [vmem:[%s17672_s1 + $0x5d8] ss:$12 sps:$4 sm:$0xff]  }
 0x1ec   :  { %18087 = vst [vmem:[#allocation52_spill] sm:$0xff] %v11510_v27  ;;  %3647 = vadd.xlane.f32.xlu1 %v3646_v15  ;;  %2467 = vmatmul.mubr.bf16.gmra.mrb[212].mxu0 %v9921_v52  ;;  %v3640_v55 = vsel %vm3612_vm0, %v11510_v27, 0.0  ;;  %v9923_v15 = vld [vmem:[%s17672_s1 + $0x5c0] ss:$12 sps:$4 sm:$0xff]  }
 0x1ed   :  { %9521 = vmatprep.mubr.bf16.mxu1 %v9922_v1  ;;  %2474 = vmatprep.mubr.bf16.mxu0 %v9924_v24 }
 0x1ee   :  { %v9415_v63 = vpop.f32.mrb[108].mxu1  ;;  %v11516_v2 = vpop.f32.mrb[108].mxu0 }
 0x1ef   :  { %v11519_v61 = vadd.f32 %v9415_v63, %v11072_v23  ;;  %v2893_v48 = vpop.f32.mrb[109].mxu1  ;;  %3638 = vadd.xlane.f32.xlu0 %v3637_v32  ;;  %v2262_v52 = vpop.f32.mrb[109].mxu0  ;;  %v9926_v23 = vld [vmem:[%s17672_s1 + $0x510] ss:$12 sps:$4 sm:$0xff]  }
 0x1f0   :  { %v11527_v1 = vadd.f32 %v2893_v48, %v11052_v6  ;;  %v9416_v39 = vpop.f32.mrb[110].mxu1  ;;  %3641 = vadd.xlane.f32.xlu1 %v3640_v55  ;;  %v11535_v24 = vpop.f32.mrb[110].mxu0  ;;  %v9929_v48 = vld [vmem:[%s17672_s1 + $0x52c] ss:$12 sps:$4 sm:$0xff]  }
 0x1f1   :  { %18088 = vst [vmem:[#allocation53_spill] sm:$0xff] %v11519_v61  ;;  %v11538_v63 = vadd.f32 %v9416_v39, %v11088_v35  ;;  %v2896_v32 = vpop.f32.mrb[111].mxu1  ;;  %v3655_v6 = vsel %vm3612_vm0, %v11519_v61, 0.0  ;;  %v2265_v55 = vpop.f32.mrb[111].mxu0 }
 0x1f2   :  { %v11546_v52 = vadd.f32 %v2896_v32, %v11068_v18  ;;  %v3649_v39 = vsel %vm3612_vm0, %v11527_v1, 0.0 }
 0x1f3   :  { %9522 = vmatmul.mubr.bf16.gmra.mrb[216].mxu1 %v9923_v15  ;;  %3656 = vadd.xlane.f32.xlu0 %v3655_v6  ;;  %v3658_v27 = vsel %vm3612_vm0, %v11538_v63, 0.0  ;;  %v9932_v6 = vld [vmem:[%s17672_s1 + $0x608] ss:$12 sps:$4 sm:$0xff]  }
 0x1f4   :  { %18089 = vst [vmem:[#allocation54_spill] sm:$0xff] %v11546_v52  ;;  %3659 = vadd.xlane.f32.xlu1 %v3658_v27  ;;  %2475 = vmatmul.mubr.bf16.gmra.mrb[216].mxu0 %v9926_v23  ;;  %v3652_v15 = vsel %vm3612_vm0, %v11546_v52, 0.0  ;;  %v9928_v27 = vld [vmem:[%s17672_s1 + $0x5f0] ss:$12 sps:$4 sm:$0xff]  }
 0x1f5   :  { %9525 = vmatprep.mubr.bf16.mxu1 %v9927_v40  ;;  %2482 = vmatprep.mubr.bf16.mxu0 %v9929_v48 }
 0x1f6   :  { %v9419_v35 = vpop.f32.mrb[112].mxu1  ;;  %v11552_v61 = vpop.f32.mrb[112].mxu0 }
 0x1f7   :  { %v11555_v55 = vadd.f32 %v9419_v35, %v11112_v62  ;;  %v2909_v18 = vpop.f32.mrb[113].mxu1  ;;  %3650 = vadd.xlane.f32.xlu0 %v3649_v39  ;;  %v2270_v23 = vpop.f32.mrb[113].mxu0  ;;  %v9931_v62 = vld [vmem:[%s17672_s1 + $0x528] ss:$12 sps:$4 sm:$0xff]  }
 0x1f8   :  { %v11563_v40 = vadd.f32 %v2909_v18, %v11092_v42  ;;  %v9420_v32 = vpop.f32.mrb[114].mxu1  ;;  %3653 = vadd.xlane.f32.xlu1 %v3652_v15  ;;  %v11571_v48 = vpop.f32.mrb[114].mxu0  ;;  %v9934_v18 = vld [vmem:[%s17672_s1 + $0x544] ss:$12 sps:$4 sm:$0xff]  }
 0x1f9   :  { %18090 = vst [vmem:[#allocation55_spill] sm:$0xff] %v11555_v55  ;;  %v11574_v35 = vadd.f32 %v9420_v32, %v11128_v17  ;;  %v2912_v39 = vpop.f32.mrb[115].mxu1  ;;  %v3667_v42 = vsel %vm3612_vm0, %v11555_v55, 0.0  ;;  %v2273_v15 = vpop.f32.mrb[115].mxu0 }
 0x1fa   :  { %v11582_v23 = vadd.f32 %v2912_v39, %v11108_v54  ;;  %v3661_v32 = vsel %vm3612_vm0, %v11563_v40, 0.0 }
 0x1fb   :  { %9526 = vmatmul.mubr.bf16.gmra.mrb[220].mxu1 %v9928_v27  ;;  %3668 = vadd.xlane.f32.xlu0 %v3667_v42  ;;  %v3670_v52 = vsel %vm3612_vm0, %v11574_v35, 0.0  ;;  %v9937_v42 = vld [vmem:[%s17672_s1 + $0x638] ss:$12 sps:$4 sm:$0xff]  }
 0x1fc   :  { %18091 = vst [vmem:[#allocation56_spill] sm:$0xff] %v11582_v23  ;;  %3671 = vadd.xlane.f32.xlu1 %v3670_v52  ;;  %2483 = vmatmul.mubr.bf16.gmra.mrb[220].mxu0 %v9931_v62  ;;  %v3664_v27 = vsel %vm3612_vm0, %v11582_v23, 0.0  ;;  %v9933_v52 = vld [vmem:[%s17672_s1 + $0x620] ss:$12 sps:$4 sm:$0xff]  }
 0x1fd   :  { %9529 = vmatprep.mubr.bf16.mxu1 %v9932_v6  ;;  %2490 = vmatprep.mubr.bf16.mxu0 %v9934_v18 }
 0x1fe   :  { %v9423_v17 = vpop.f32.mrb[116].mxu1  ;;  %v11588_v55 = vpop.f32.mrb[116].mxu0 }
 0x1ff   :  { %v11591_v15 = vadd.f32 %v9423_v17, %v11152_v53  ;;  %v2925_v54 = vpop.f32.mrb[117].mxu1  ;;  %3662 = vadd.xlane.f32.xlu0 %v3661_v32  ;;  %v2278_v62 = vpop.f32.mrb[117].mxu0  ;;  %v9936_v53 = vld [vmem:[%s17672_s1 + $0x540] ss:$12 sps:$4 sm:$0xff]  }
 0x200   :  { %v11599_v6 = vadd.f32 %v2925_v54, %v11132_v26  ;;  %v9424_v39 = vpop.f32.mrb[118].mxu1  ;;  %3665 = vadd.xlane.f32.xlu1 %v3664_v27  ;;  %v11607_v18 = vpop.f32.mrb[118].mxu0  ;;  %v9939_v54 = vld [vmem:[%s17672_s1 + $0x55c] ss:$12 sps:$4 sm:$0xff]  }
 0x201   :  { %18092 = vst [vmem:[#allocation57_spill] sm:$0xff] %v11591_v15  ;;  %v11610_v17 = vadd.f32 %v9424_v39, %v11168_v14  ;;  %v2928_v32 = vpop.f32.mrb[119].mxu1  ;;  %v3679_v26 = vsel %vm3612_vm0, %v11591_v15, 0.0  ;;  %v2281_v27 = vpop.f32.mrb[119].mxu0 }
 0x202   :  { %v11618_v62 = vadd.f32 %v2928_v32, %v11148_v44  ;;  %v3673_v39 = vsel %vm3612_vm0, %v11599_v6, 0.0 }
 0x203   :  { %9530 = vmatmul.mubr.bf16.gmra.mrb[224].mxu1 %v9933_v52  ;;  %3680 = vadd.xlane.f32.xlu0 %v3679_v26  ;;  %v3682_v23 = vsel %vm3612_vm0, %v11610_v17, 0.0  ;;  %v9942_v26 = vld [vmem:[%s17672_s1 + $0x668] ss:$12 sps:$4 sm:$0xff]  }
 0x204   :  { %18093 = vst [vmem:[#allocation58_spill] sm:$0xff] %v11618_v62  ;;  %3683 = vadd.xlane.f32.xlu1 %v3682_v23  ;;  %2491 = vmatmul.mubr.bf16.gmra.mrb[224].mxu0 %v9936_v53  ;;  %v3676_v52 = vsel %vm3612_vm0, %v11618_v62, 0.0  ;;  %v9938_v23 = vld [vmem:[%s17672_s1 + $0x650] ss:$12 sps:$4 sm:$0xff]  }
 0x205   :  { %9533 = vmatprep.mubr.bf16.mxu1 %v9937_v42  ;;  %2498 = vmatprep.mubr.bf16.mxu0 %v9939_v54 }
 0x206   :  { %v9427_v14 = vpop.f32.mrb[120].mxu1  ;;  %v11624_v15 = vpop.f32.mrb[120].mxu0 }
 0x207   :  { %v11627_v27 = vadd.f32 %v9427_v14, %v11192_v11  ;;  %v2941_v44 = vpop.f32.mrb[121].mxu1  ;;  %3674 = vadd.xlane.f32.xlu0 %v3673_v39  ;;  %v2286_v53 = vpop.f32.mrb[121].mxu0  ;;  %v9941_v11 = vld [vmem:[%s17672_s1 + $0x558] ss:$12 sps:$4 sm:$0xff]  }
 0x208   :  { %v11635_v42 = vadd.f32 %v2941_v44, %v11172_v30  ;;  %v9428_v32 = vpop.f32.mrb[122].mxu1  ;;  %3677 = vadd.xlane.f32.xlu1 %v3676_v52  ;;  %v11643_v54 = vpop.f32.mrb[122].mxu0  ;;  %v9944_v44 = vld [vmem:[%s17672_s1 + $0x574] ss:$12 sps:$4 sm:$0xff]  }
 0x209   :  { %18094 = vst [vmem:[#allocation59_spill] sm:$0xff] %v11627_v27  ;;  %v11646_v14 = vadd.f32 %v9428_v32, %v11208_v47  ;;  %v2944_v39 = vpop.f32.mrb[123].mxu1  ;;  %v3691_v30 = vsel %vm3612_vm0, %v11627_v27, 0.0  ;;  %v2289_v52 = vpop.f32.mrb[123].mxu0 }
 0x20a   :  { %v11654_v53 = vadd.f32 %v2944_v39, %v11188_v58  ;;  %v3685_v32 = vsel %vm3612_vm0, %v11635_v42, 0.0 }
 0x20b   :  { %9534 = vmatmul.mubr.bf16.gmra.mrb[228].mxu1 %v9938_v23  ;;  %3692 = vadd.xlane.f32.xlu0 %v3691_v30  ;;  %v3694_v62 = vsel %vm3612_vm0, %v11646_v14, 0.0  ;;  %v9947_v30 = vld [vmem:[%s17672_s1 + $0x698] ss:$12 sps:$4 sm:$0xff]  }
 0x20c   :  { %18095 = vst [vmem:[#allocation60_spill] sm:$0xff] %v11654_v53  ;;  %3695 = vadd.xlane.f32.xlu1 %v3694_v62  ;;  %2499 = vmatmul.mubr.bf16.gmra.mrb[228].mxu0 %v9941_v11  ;;  %v3688_v23 = vsel %vm3612_vm0, %v11654_v53, 0.0  ;;  %v9943_v62 = vld [vmem:[%s17672_s1 + $0x680] ss:$12 sps:$4 sm:$0xff]  }
 0x20d   :  { %9537 = vmatprep.mubr.bf16.mxu1 %v9942_v26  ;;  %2506 = vmatprep.mubr.bf16.mxu0 %v9944_v44 }
 0x20e   :  { %v9431_v47 = vpop.f32.mrb[124].mxu1  ;;  %v11660_v27 = vpop.f32.mrb[124].mxu0 }
 0x20f   :  { %v11663_v52 = vadd.f32 %v9431_v47, %v11232_v8  ;;  %v2957_v58 = vpop.f32.mrb[125].mxu1  ;;  %3686 = vadd.xlane.f32.xlu0 %v3685_v32  ;;  %v2294_v11 = vpop.f32.mrb[125].mxu0  ;;  %v9946_v8 = vld [vmem:[%s17672_s1 + $0x570] ss:$12 sps:$4 sm:$0xff]  }
 0x210   :  { %v11671_v26 = vadd.f32 %v2957_v58, %v11212_v43  ;;  %v9432_v39 = vpop.f32.mrb[126].mxu1  ;;  %3689 = vadd.xlane.f32.xlu1 %v3688_v23  ;;  %v11679_v44 = vpop.f32.mrb[126].mxu0  ;;  %v9949_v58 = vld [vmem:[%s17672_s1 + $0x58c] ss:$12 sps:$4 sm:$0xff]  }
 0x211   :  { %18096 = vst [vmem:[#allocation61_spill] sm:$0xff] %v11663_v52  ;;  %v11682_v47 = vadd.f32 %v9432_v39, %v11248_v57  ;;  %v2960_v32 = vpop.f32.mrb[127].mxu1  ;;  %v3703_v43 = vsel %vm3612_vm0, %v11663_v52, 0.0  ;;  %v2297_v23 = vpop.f32.mrb[127].mxu0 }
 0x212   :  { %v11690_v11 = vadd.f32 %v2960_v32, %v11228_v46  ;;  %v3697_v39 = vsel %vm3612_vm0, %v11671_v26, 0.0 }
 0x213   :  { %9538 = vmatmul.mubr.bf16.gmra.mrb[232].mxu1 %v9943_v62  ;;  %3704 = vadd.xlane.f32.xlu0 %v3703_v43  ;;  %v3706_v53 = vsel %vm3612_vm0, %v11682_v47, 0.0  ;;  %v9952_v43 = vld [vmem:[%s17672_s1 + $0x6c8] ss:$12 sps:$4 sm:$0xff]  }
 0x214   :  { %18097 = vst [vmem:[#allocation62_spill] sm:$0xff] %v11690_v11  ;;  %3707 = vadd.xlane.f32.xlu1 %v3706_v53  ;;  %2507 = vmatmul.mubr.bf16.gmra.mrb[232].mxu0 %v9946_v8  ;;  %v3700_v62 = vsel %vm3612_vm0, %v11690_v11, 0.0  ;;  %v9948_v53 = vld [vmem:[%s17672_s1 + $0x6b0] ss:$12 sps:$4 sm:$0xff]  }
 0x215   :  { %9541 = vmatprep.mubr.bf16.mxu1 %v9947_v30  ;;  %2514 = vmatprep.mubr.bf16.mxu0 %v9949_v58 }
 0x216   :  { %v9435_v57 = vpop.f32.mrb[128].mxu1  ;;  %v11696_v52 = vpop.f32.mrb[128].mxu0 }
 0x217   :  { %v11699_v23 = vadd.f32 %v9435_v57, %v11272_v50  ;;  %v2973_v46 = vpop.f32.mrb[129].mxu1  ;;  %3698 = vadd.xlane.f32.xlu0 %v3697_v39  ;;  %v2302_v8 = vpop.f32.mrb[129].mxu0  ;;  %v9951_v50 = vld [vmem:[%s17672_s1 + $0x588] ss:$12 sps:$4 sm:$0xff]  }
 0x218   :  { %v11707_v30 = vadd.f32 %v2973_v46, %v11252_v7  ;;  %v9436_v32 = vpop.f32.mrb[130].mxu1  ;;  %3701 = vadd.xlane.f32.xlu1 %v3700_v62  ;;  %v11715_v58 = vpop.f32.mrb[130].mxu0  ;;  %v9954_v46 = vld [vmem:[%s17672_s1 + $0x5a4] ss:$12 sps:$4 sm:$0xff]  }
 0x219   :  { %18098 = vst [vmem:[#allocation63_spill] sm:$0xff] %v11699_v23  ;;  %v11718_v57 = vadd.f32 %v9436_v32, %v11288_v20  ;;  %v2976_v39 = vpop.f32.mrb[131].mxu1  ;;  %v3715_v7 = vsel %vm3612_vm0, %v11699_v23, 0.0  ;;  %v2305_v62 = vpop.f32.mrb[131].mxu0 }
 0x21a   :  { %v11726_v8 = vadd.f32 %v2976_v39, %v11268_v34  ;;  %v3709_v32 = vsel %vm3612_vm0, %v11707_v30, 0.0 }
 0x21b   :  { %9542 = vmatmul.mubr.bf16.gmra.mrb[236].mxu1 %v9948_v53  ;;  %3716 = vadd.xlane.f32.xlu0 %v3715_v7  ;;  %v3718_v11 = vsel %vm3612_vm0, %v11718_v57, 0.0  ;;  %v9957_v7 = vld [vmem:[%s17672_s1 + $0x6f8] ss:$12 sps:$4 sm:$0xff]  }
 0x21c   :  { %18099 = vst [vmem:[#allocation64_spill] sm:$0xff] %v11726_v8  ;;  %3719 = vadd.xlane.f32.xlu1 %v3718_v11  ;;  %2515 = vmatmul.mubr.bf16.gmra.mrb[236].mxu0 %v9951_v50  ;;  %v3712_v53 = vsel %vm3612_vm0, %v11726_v8, 0.0  ;;  %v9953_v11 = vld [vmem:[%s17672_s1 + $0x6e0] ss:$12 sps:$4 sm:$0xff]  }
 0x21d   :  { %9545 = vmatprep.mubr.bf16.mxu1 %v9952_v43  ;;  %2522 = vmatprep.mubr.bf16.mxu0 %v9954_v46 }
 0x21e   :  { %v9439_v20 = vpop.f32.mrb[132].mxu1  ;;  %v11732_v23 = vpop.f32.mrb[132].mxu0 }
 0x21f   :  { %v11735_v62 = vadd.f32 %v9439_v20, %v11312_v60  ;;  %v2989_v34 = vpop.f32.mrb[133].mxu1  ;;  %3710 = vadd.xlane.f32.xlu0 %v3709_v32  ;;  %v2310_v50 = vpop.f32.mrb[133].mxu0  ;;  %v9956_v60 = vld [vmem:[%s17672_s1 + $0x5a0] ss:$12 sps:$4 sm:$0xff]  }
 0x220   :  { %v11743_v43 = vadd.f32 %v2989_v34, %v11292_v10  ;;  %v9440_v39 = vpop.f32.mrb[134].mxu1  ;;  %3713 = vadd.xlane.f32.xlu1 %v3712_v53  ;;  %v11751_v46 = vpop.f32.mrb[134].mxu0  ;;  %v9959_v34 = vld [vmem:[%s17672_s1 + $0x5bc] ss:$12 sps:$4 sm:$0xff]  }
 0x221   :  { %18100 = vst [vmem:[#allocation65_spill] sm:$0xff] %v11735_v62  ;;  %v11754_v20 = vadd.f32 %v9440_v39, %v11328_v37  ;;  %v2992_v32 = vpop.f32.mrb[135].mxu1  ;;  %v3727_v10 = vsel %vm3612_vm0, %v11735_v62, 0.0  ;;  %v2313_v53 = vpop.f32.mrb[135].mxu0 }
 0x222   :  { %v11762_v50 = vadd.f32 %v2992_v32, %v11308_v29  ;;  %v3721_v39 = vsel %vm3612_vm0, %v11743_v43, 0.0 }
 0x223   :  { %9546 = vmatmul.mubr.bf16.gmra.mrb[240].mxu1 %v9953_v11  ;;  %3728 = vadd.xlane.f32.xlu0 %v3727_v10  ;;  %v3730_v8 = vsel %vm3612_vm0, %v11754_v20, 0.0  ;;  %v9962_v10 = vld [vmem:[%s17672_s1 + $0x728] ss:$12 sps:$4 sm:$0xff]  }
 0x224   :  { %18101 = vst [vmem:[#allocation66_spill] sm:$0xff] %v11762_v50  ;;  %3731 = vadd.xlane.f32.xlu1 %v3730_v8  ;;  %2523 = vmatmul.mubr.bf16.gmra.mrb[240].mxu0 %v9956_v60  ;;  %v3724_v11 = vsel %vm3612_vm0, %v11762_v50, 0.0  ;;  %v9958_v8 = vld [vmem:[%s17672_s1 + $0x710] ss:$12 sps:$4 sm:$0xff]  }
 0x225   :  { %9549 = vmatprep.mubr.bf16.mxu1 %v9957_v7  ;;  %2530 = vmatprep.mubr.bf16.mxu0 %v9959_v34 }
 0x226   :  { %v9443_v37 = vpop.f32.mrb[136].mxu1  ;;  %v11768_v62 = vpop.f32.mrb[136].mxu0 }
 0x227   :  { %v11771_v53 = vadd.f32 %v9443_v37, %v11352_v22  ;;  %v3005_v29 = vpop.f32.mrb[137].mxu1  ;;  %3722 = vadd.xlane.f32.xlu0 %v3721_v39  ;;  %v2318_v60 = vpop.f32.mrb[137].mxu0  ;;  %v9961_v22 = vld [vmem:[%s17672_s1 + $0x5b8] ss:$12 sps:$4 sm:$0xff]  }
 0x228   :  { %v11779_v7 = vadd.f32 %v3005_v29, %v11332_v31  ;;  %v9444_v32 = vpop.f32.mrb[138].mxu1  ;;  %3725 = vadd.xlane.f32.xlu1 %v3724_v11  ;;  %v11787_v34 = vpop.f32.mrb[138].mxu0  ;;  %v9964_v29 = vld [vmem:[%s17672_s1 + $0x5d4] ss:$12 sps:$4 sm:$0xff]  }
 0x229   :  { %18102 = vst [vmem:[#allocation67_spill] sm:$0xff] %v11771_v53  ;;  %v11790_v37 = vadd.f32 %v9444_v32, %v11368_v49  ;;  %v3008_v39 = vpop.f32.mrb[139].mxu1  ;;  %v3739_v31 = vsel %vm3612_vm0, %v11771_v53, 0.0  ;;  %v2321_v11 = vpop.f32.mrb[139].mxu0 }
 0x22a   :  { %18103 = vst [vmem:[#allocation68_spill] sm:$0xff] %v11779_v7  ;;  %v11798_v60 = vadd.f32 %v3008_v39, %v11348_v25  ;;  %v3733_v32 = vsel %vm3612_vm0, %v11779_v7, 0.0 }
 0x22b   :  { %18104 = vst [vmem:[#allocation69_spill] sm:$0xff] %v11790_v37  ;;  %9550 = vmatmul.mubr.bf16.gmra.mrb[244].mxu1 %v9958_v8  ;;  %3740 = vadd.xlane.f32.xlu0 %v3739_v31  ;;  %v3742_v50 = vsel %vm3612_vm0, %v11790_v37, 0.0  ;;  %v9967_v31 = vld [vmem:[%s17672_s1 + $0x758] ss:$12 sps:$4 sm:$0xff]  }
 0x22c   :  { %18105 = vst [vmem:[#allocation70_spill] sm:$0xff] %v11798_v60  ;;  %3743 = vadd.xlane.f32.xlu1 %v3742_v50  ;;  %2531 = vmatmul.mubr.bf16.gmra.mrb[244].mxu0 %v9961_v22  ;;  %v3736_v8 = vsel %vm3612_vm0, %v11798_v60, 0.0  ;;  %v9963_v50 = vld [vmem:[%s17672_s1 + $0x740] ss:$12 sps:$4 sm:$0xff]  }
 0x22d   :  { %9553 = vmatprep.mubr.bf16.mxu1 %v9962_v10  ;;  %2538 = vmatprep.mubr.bf16.mxu0 %v9964_v29 }
 0x22e   :  { %v9447_v49 = vpop.f32.mrb[140].mxu1  ;;  %v11804_v53 = vpop.f32.mrb[140].mxu0 }
 0x22f   :  { %v11807_v11 = vadd.f32 %v9447_v49, %v11392_v51  ;;  %v3021_v25 = vpop.f32.mrb[141].mxu1  ;;  %3734 = vadd.xlane.f32.xlu0 %v3733_v32  ;;  %v2326_v22 = vpop.f32.mrb[141].mxu0  ;;  %v9966_v51 = vld [vmem:[%s17672_s1 + $0x5d0] ss:$12 sps:$4 sm:$0xff]  }
 0x230   :  { %v11815_v10 = vadd.f32 %v3021_v25, %v11372_v59  ;;  %v9448_v39 = vpop.f32.mrb[142].mxu1  ;;  %3737 = vadd.xlane.f32.xlu1 %v3736_v8  ;;  %v11823_v29 = vpop.f32.mrb[142].mxu0  ;;  %v9969_v25 = vld [vmem:[%s17672_s1 + $0x5ec] ss:$12 sps:$4 sm:$0xff]  }
 0x231   :  { %18106 = vst [vmem:[#allocation71_spill] sm:$0xff] %v11807_v11  ;;  %v11826_v49 = vadd.f32 %v9448_v39, %v11408_v13  ;;  %v3024_v32 = vpop.f32.mrb[143].mxu1  ;;  %v3751_v59 = vsel %vm3612_vm0, %v11807_v11, 0.0  ;;  %v2329_v8 = vpop.f32.mrb[143].mxu0 }
 0x232   :  { %18107 = vst [vmem:[#allocation72_spill] sm:$0xff] %v11815_v10  ;;  %v11834_v22 = vadd.f32 %v3024_v32, %v11388_v41  ;;  %v3745_v39 = vsel %vm3612_vm0, %v11815_v10, 0.0 }
 0x233   :  { %18108 = vst [vmem:[#allocation73_spill] sm:$0xff] %v11826_v49  ;;  %9554 = vmatmul.mubr.bf16.gmra.mrb[248].mxu1 %v9963_v50  ;;  %3752 = vadd.xlane.f32.xlu0 %v3751_v59  ;;  %v3754_v60 = vsel %vm3612_vm0, %v11826_v49, 0.0  ;;  %v9972_v59 = vld [vmem:[%s17672_s1 + $0x788] ss:$12 sps:$4 sm:$0xff]  }
 0x234   :  { %18109 = vst [vmem:[#allocation74_spill] sm:$0xff] %v11834_v22  ;;  %3755 = vadd.xlane.f32.xlu1 %v3754_v60  ;;  %2539 = vmatmul.mubr.bf16.gmra.mrb[248].mxu0 %v9966_v51  ;;  %v3748_v50 = vsel %vm3612_vm0, %v11834_v22, 0.0  ;;  %v9968_v60 = vld [vmem:[%s17672_s1 + $0x770] ss:$12 sps:$4 sm:$0xff]  }
 0x235   :  { %9557 = vmatprep.mubr.bf16.mxu1 %v9967_v31  ;;  %2546 = vmatprep.mubr.bf16.mxu0 %v9969_v25 }
 0x236   :  { %v9451_v13 = vpop.f32.mrb[144].mxu1  ;;  %v11840_v11 = vpop.f32.mrb[144].mxu0 }
 0x237   :  { %v11843_v8 = vadd.f32 %v9451_v13, %v11446_v9  ;;  %v3037_v41 = vpop.f32.mrb[145].mxu1  ;;  %3746 = vadd.xlane.f32.xlu0 %v3745_v39  ;;  %v2334_v51 = vpop.f32.mrb[145].mxu0  ;;  %v9971_v9 = vld [vmem:[%s17672_s1 + $0x5e8] ss:$12 sps:$4 sm:$0xff]  }
 0x238   :  { %v11851_v31 = vadd.f32 %v3037_v41, %v11410_v33  ;;  %v9452_v32 = vpop.f32.mrb[146].mxu1  ;;  %3749 = vadd.xlane.f32.xlu1 %v3748_v50  ;;  %v11859_v25 = vpop.f32.mrb[146].mxu0  ;;  %v9976_v41 = vld [vmem:[%s17672_s1 + $0x604] ss:$12 sps:$4 sm:$0xff]  }
 0x239   :  { %18110 = vst [vmem:[#allocation75_spill] sm:$0xff] %v11843_v8  ;;  %v11862_v13 = vadd.f32 %v9452_v32, %v11463_v56  ;;  %v3040_v39 = vpop.f32.mrb[147].mxu1  ;;  %v3763_v33 = vsel %vm3612_vm0, %v11843_v8, 0.0  ;;  %v2337_v50 = vpop.f32.mrb[147].mxu0 }
 0x23a   :  { %18111 = vst [vmem:[#allocation76_spill] sm:$0xff] %v11851_v31  ;;  %v11870_v51 = vadd.f32 %v3040_v39, %v11427_v4  ;;  %v3757_v32 = vsel %vm3612_vm0, %v11851_v31, 0.0 }
 0x23b   :  { %18112 = vst [vmem:[#allocation77_spill] sm:$0xff] %v11862_v13  ;;  %9558 = vmatmul.mubr.bf16.gmra.mrb[252].mxu1 %v9968_v60  ;;  %3764 = vadd.xlane.f32.xlu0 %v3763_v33  ;;  %v3766_v22 = vsel %vm3612_vm0, %v11862_v13, 0.0  ;;  %v9977_v33 = vld [vmem:[%s17672_s1 + $0x7b8] ss:$12 sps:$4 sm:$0xff]  }
 0x23c   :  { %18113 = vst [vmem:[#allocation78_spill] sm:$0xff] %v11870_v51  ;;  %3767 = vadd.xlane.f32.xlu1 %v3766_v22  ;;  %2547 = vmatmul.mubr.bf16.gmra.mrb[252].mxu0 %v9971_v9  ;;  %v3760_v60 = vsel %vm3612_vm0, %v11870_v51, 0.0  ;;  %v9973_v22 = vld [vmem:[%s17672_s1 + $0x7a0] ss:$12 sps:$4 sm:$0xff]  }
 0x23d   :  { %9561 = vmatprep.mubr.bf16.mxu1 %v9972_v59  ;;  %2554 = vmatprep.mubr.bf16.mxu0 %v9976_v41 }
 0x23e   :  { %v9455_v56 = vpop.f32.mrb[148].mxu1  ;;  %v11876_v8 = vpop.f32.mrb[148].mxu0 }
 0x23f   :  { %v11879_v50 = vadd.f32 %v9455_v56, %v11516_v2  ;;  %v3053_v4 = vpop.f32.mrb[149].mxu1  ;;  %3758 = vadd.xlane.f32.xlu0 %v3757_v32  ;;  %v2342_v9 = vpop.f32.mrb[149].mxu0  ;;  %v9974_v2 = vld [vmem:[%s17672_s1 + $0x600] ss:$12 sps:$4 sm:$0xff]  }
 0x240   :  { %v11887_v59 = vadd.f32 %v3053_v4, %v11480_v3  ;;  %v9456_v39 = vpop.f32.mrb[150].mxu1  ;;  %3761 = vadd.xlane.f32.xlu1 %v3760_v60  ;;  %v11895_v41 = vpop.f32.mrb[150].mxu0  ;;  %v9981_v4 = vld [vmem:[%s17672_s1 + $0x61c] ss:$12 sps:$4 sm:$0xff]  }
 0x241   :  { %18114 = vst [vmem:[#allocation79_spill] sm:$0xff] %v11879_v50  ;;  %v11898_v56 = vadd.f32 %v9456_v39, %v11535_v24  ;;  %v3056_v32 = vpop.f32.mrb[151].mxu1  ;;  %v3775_v3 = vsel %vm3612_vm0, %v11879_v50, 0.0  ;;  %v2345_v60 = vpop.f32.mrb[151].mxu0 }
 0x242   :  { %18115 = vst [vmem:[#allocation80_spill] sm:$0xff] %v11887_v59  ;;  %v11906_v9 = vadd.f32 %v3056_v32, %v11499_v16  ;;  %v3769_v39 = vsel %vm3612_vm0, %v11887_v59, 0.0 }
 0x243   :  { %18116 = vst [vmem:[#allocation81_spill] sm:$0xff] %v11898_v56  ;;  %9562 = vmatmul.mubr.bf16.gmra.mrb[0].mxu1 %v9973_v22  ;;  %3776 = vadd.xlane.f32.xlu0 %v3775_v3  ;;  %v3778_v51 = vsel %vm3612_vm0, %v11898_v56, 0.0  ;;  %v9982_v3 = vld [vmem:[%s17672_s1 + $0x7e8] ss:$12 sps:$4 sm:$0xff]  }
 0x244   :  { %18117 = vst [vmem:[#allocation82_spill] sm:$0xff] %v11906_v9  ;;  %3779 = vadd.xlane.f32.xlu1 %v3778_v51  ;;  %2555 = vmatmul.mubr.bf16.gmra.mrb[0].mxu0 %v9974_v2  ;;  %v3772_v22 = vsel %vm3612_vm0, %v11906_v9, 0.0  ;;  %v9978_v51 = vld [vmem:[%s17672_s1 + $0x7d0] ss:$12 sps:$4 sm:$0xff]  }
 0x245   :  { %9565 = vmatprep.mubr.bf16.mxu1 %v9977_v33  ;;  %2562 = vmatprep.mubr.bf16.mxu0 %v9981_v4 }
 0x246   :  { %v9459_v24 = vpop.f32.mrb[152].mxu1  ;;  %v11912_v50 = vpop.f32.mrb[152].mxu0 }
 0x247   :  { %v11915_v60 = vadd.f32 %v9459_v24, %v11588_v55  ;;  %v3069_v16 = vpop.f32.mrb[153].mxu1  ;;  %3770 = vadd.xlane.f32.xlu0 %v3769_v39  ;;  %v2350_v2 = vpop.f32.mrb[153].mxu0  ;;  %v9979_v55 = vld [vmem:[%s17672_s1 + $0x618] ss:$12 sps:$4 sm:$0xff]  }
 0x248   :  { %v11923_v33 = vadd.f32 %v3069_v16, %v11552_v61  ;;  %v9460_v32 = vpop.f32.mrb[154].mxu1  ;;  %3773 = vadd.xlane.f32.xlu1 %v3772_v22  ;;  %v11931_v4 = vpop.f32.mrb[154].mxu0  ;;  %v9986_v16 = vld [vmem:[%s17672_s1 + $0x634] ss:$12 sps:$4 sm:$0xff]  }
 0x249   :  { %18118 = vst [vmem:[#allocation83_spill] sm:$0xff] %v11915_v60  ;;  %v11934_v24 = vadd.f32 %v9460_v32, %v11607_v18  ;;  %v3072_v39 = vpop.f32.mrb[155].mxu1  ;;  %v3787_v61 = vsel %vm3612_vm0, %v11915_v60, 0.0  ;;  %v2353_v22 = vpop.f32.mrb[155].mxu0 }
 0x24a   :  { %18119 = vst [vmem:[#allocation84_spill] sm:$0xff] %v11923_v33  ;;  %v11942_v2 = vadd.f32 %v3072_v39, %v11571_v48  ;;  %v3781_v32 = vsel %vm3612_vm0, %v11923_v33, 0.0 }
 0x24b   :  { %18120 = vst [vmem:[#allocation85_spill] sm:$0xff] %v11934_v24  ;;  %9566 = vmatmul.mubr.bf16.gmra.mrb[4].mxu1 %v9978_v51  ;;  %3788 = vadd.xlane.f32.xlu0 %v3787_v61  ;;  %v3790_v9 = vsel %vm3612_vm0, %v11934_v24, 0.0  ;;  %v9987_v61 = vld [vmem:[%s17672_s1 + $0x818] ss:$12 sps:$4 sm:$0xff]  }
 0x24c   :  { %18121 = vst [vmem:[#allocation86_spill] sm:$0xff] %v11942_v2  ;;  %3791 = vadd.xlane.f32.xlu1 %v3790_v9  ;;  %2563 = vmatmul.mubr.bf16.gmra.mrb[4].mxu0 %v9979_v55  ;;  %v3784_v51 = vsel %vm3612_vm0, %v11942_v2, 0.0  ;;  %v9983_v9 = vld [vmem:[%s17672_s1 + $0x800] ss:$12 sps:$4 sm:$0xff]  }
 0x24d   :  { %9569 = vmatprep.mubr.bf16.mxu1 %v9982_v3  ;;  %2570 = vmatprep.mubr.bf16.mxu0 %v9986_v16 }
 0x24e   :  { %v9463_v18 = vpop.f32.mrb[156].mxu1  ;;  %v11948_v60 = vpop.f32.mrb[156].mxu0 }
 0x24f   :  { %v11951_v22 = vadd.f32 %v9463_v18, %v11660_v27  ;;  %v3085_v48 = vpop.f32.mrb[157].mxu1  ;;  %3782 = vadd.xlane.f32.xlu0 %v3781_v32  ;;  %v2358_v55 = vpop.f32.mrb[157].mxu0  ;;  %v9984_v27 = vld [vmem:[%s17672_s1 + $0x630] ss:$12 sps:$4 sm:$0xff]  }
 0x250   :  { %v11959_v3 = vadd.f32 %v3085_v48, %v11624_v15  ;;  %v9464_v39 = vpop.f32.mrb[158].mxu1  ;;  %3785 = vadd.xlane.f32.xlu1 %v3784_v51  ;;  %v11967_v16 = vpop.f32.mrb[158].mxu0  ;;  %v9991_v48 = vld [vmem:[%s17672_s1 + $0x64c] ss:$12 sps:$4 sm:$0xff]  }
 0x251   :  { %18122 = vst [vmem:[#allocation87_spill] sm:$0xff] %v11951_v22  ;;  %v11970_v18 = vadd.f32 %v9464_v39, %v11679_v44  ;;  %v3088_v32 = vpop.f32.mrb[159].mxu1  ;;  %v3799_v15 = vsel %vm3612_vm0, %v11951_v22, 0.0  ;;  %v2361_v51 = vpop.f32.mrb[159].mxu0 }
 0x252   :  { %18123 = vst [vmem:[#allocation88_spill] sm:$0xff] %v11959_v3  ;;  %v11978_v55 = vadd.f32 %v3088_v32, %v11643_v54  ;;  %v3793_v39 = vsel %vm3612_vm0, %v11959_v3, 0.0 }
 0x253   :  { %18124 = vst [vmem:[#allocation89_spill] sm:$0xff] %v11970_v18  ;;  %9570 = vmatmul.mubr.bf16.gmra.mrb[8].mxu1 %v9983_v9  ;;  %3800 = vadd.xlane.f32.xlu0 %v3799_v15  ;;  %v3802_v2 = vsel %vm3612_vm0, %v11970_v18, 0.0  ;;  %v9992_v15 = vld [vmem:[%s17672_s1 + $0x848] ss:$12 sps:$4 sm:$0xff]  }
 0x254   :  { %18125 = vst [vmem:[#allocation90_spill] sm:$0xff] %v11978_v55  ;;  %3803 = vadd.xlane.f32.xlu1 %v3802_v2  ;;  %2571 = vmatmul.mubr.bf16.gmra.mrb[8].mxu0 %v9984_v27  ;;  %v3796_v9 = vsel %vm3612_vm0, %v11978_v55, 0.0  ;;  %v9988_v2 = vld [vmem:[%s17672_s1 + $0x830] ss:$12 sps:$4 sm:$0xff]  }
 0x255   :  { %9573 = vmatprep.mubr.bf16.mxu1 %v9987_v61  ;;  %2578 = vmatprep.mubr.bf16.mxu0 %v9991_v48 }
 0x256   :  { %v9467_v44 = vpop.f32.mrb[160].mxu1  ;;  %v11984_v22 = vpop.f32.mrb[160].mxu0 }
 0x257   :  { %v11987_v51 = vadd.f32 %v9467_v44, %v11732_v23  ;;  %v3101_v54 = vpop.f32.mrb[161].mxu1  ;;  %3794 = vadd.xlane.f32.xlu0 %v3793_v39  ;;  %v2366_v27 = vpop.f32.mrb[161].mxu0  ;;  %v9989_v23 = vld [vmem:[%s17672_s1 + $0x648] ss:$12 sps:$4 sm:$0xff]  }
 0x258   :  { %v11995_v61 = vadd.f32 %v3101_v54, %v11696_v52  ;;  %v9468_v32 = vpop.f32.mrb[162].mxu1  ;;  %3797 = vadd.xlane.f32.xlu1 %v3796_v9  ;;  %v12003_v48 = vpop.f32.mrb[162].mxu0  ;;  %v9996_v54 = vld [vmem:[%s17672_s1 + $0x664] ss:$12 sps:$4 sm:$0xff]  }
 0x259   :  { %18126 = vst [vmem:[#allocation91_spill] sm:$0xff] %v11987_v51  ;;  %v12006_v44 = vadd.f32 %v9468_v32, %v11751_v46  ;;  %v3104_v39 = vpop.f32.mrb[163].mxu1  ;;  %v3811_v52 = vsel %vm3612_vm0, %v11987_v51, 0.0  ;;  %v2369_v9 = vpop.f32.mrb[163].mxu0 }
 0x25a   :  { %18127 = vst [vmem:[#allocation92_spill] sm:$0xff] %v11995_v61  ;;  %v12014_v27 = vadd.f32 %v3104_v39, %v11715_v58  ;;  %v3805_v32 = vsel %vm3612_vm0, %v11995_v61, 0.0 }
 0x25b   :  { %18128 = vst [vmem:[#allocation93_spill] sm:$0xff] %v12006_v44  ;;  %9574 = vmatmul.mubr.bf16.gmra.mrb[12].mxu1 %v9988_v2  ;;  %3812 = vadd.xlane.f32.xlu0 %v3811_v52  ;;  %v3814_v55 = vsel %vm3612_vm0, %v12006_v44, 0.0  ;;  %v9997_v52 = vld [vmem:[%s17672_s1 + $0x878] ss:$12 sps:$4 sm:$0xff]  }
 0x25c   :  { %18129 = vst [vmem:[#allocation94_spill] sm:$0xff] %v12014_v27  ;;  %3815 = vadd.xlane.f32.xlu1 %v3814_v55  ;;  %2579 = vmatmul.mubr.bf16.gmra.mrb[12].mxu0 %v9989_v23  ;;  %v3808_v2 = vsel %vm3612_vm0, %v12014_v27, 0.0  ;;  %v9993_v55 = vld [vmem:[%s17672_s1 + $0x860] ss:$12 sps:$4 sm:$0xff]  }
 0x25d   :  { %9577 = vmatprep.mubr.bf16.mxu1 %v9992_v15  ;;  %2586 = vmatprep.mubr.bf16.mxu0 %v9996_v54 }
 0x25e   :  { %v9471_v46 = vpop.f32.mrb[164].mxu1  ;;  %v12020_v51 = vpop.f32.mrb[164].mxu0 }
 0x25f   :  { %v12023_v9 = vadd.f32 %v9471_v46, %v11804_v53  ;;  %v3117_v58 = vpop.f32.mrb[165].mxu1  ;;  %3806 = vadd.xlane.f32.xlu0 %v3805_v32  ;;  %v2374_v23 = vpop.f32.mrb[165].mxu0  ;;  %v9994_v53 = vld [vmem:[%s17672_s1 + $0x660] ss:$12 sps:$4 sm:$0xff]  }
 0x260   :  { %v12031_v15 = vadd.f32 %v3117_v58, %v11768_v62  ;;  %v9472_v39 = vpop.f32.mrb[166].mxu1  ;;  %3809 = vadd.xlane.f32.xlu1 %v3808_v2  ;;  %v12039_v54 = vpop.f32.mrb[166].mxu0  ;;  %v10001_v58 = vld [vmem:[%s17672_s1 + $0x67c] ss:$12 sps:$4 sm:$0xff]  }
 0x261   :  { %18130 = vst [vmem:[#allocation95_spill] sm:$0xff] %v12023_v9  ;;  %v12042_v46 = vadd.f32 %v9472_v39, %v11823_v29  ;;  %v3120_v32 = vpop.f32.mrb[167].mxu1  ;;  %v3823_v62 = vsel %vm3612_vm0, %v12023_v9, 0.0  ;;  %v2377_v2 = vpop.f32.mrb[167].mxu0 }
 0x262   :  { %18131 = vst [vmem:[#allocation96_spill] sm:$0xff] %v12031_v15  ;;  %v12050_v23 = vadd.f32 %v3120_v32, %v11787_v34  ;;  %v3817_v39 = vsel %vm3612_vm0, %v12031_v15, 0.0 }
 0x263   :  { %18132 = vst [vmem:[#allocation97_spill] sm:$0xff] %v12042_v46  ;;  %9578 = vmatmul.mubr.bf16.gmra.mrb[16].mxu1 %v9993_v55  ;;  %3824 = vadd.xlane.f32.xlu0 %v3823_v62  ;;  %v3826_v27 = vsel %vm3612_vm0, %v12042_v46, 0.0 }
 0x264   :  { %18133 = vst [vmem:[#allocation98_spill] sm:$0xff] %v12050_v23  ;;  %3827 = vadd.xlane.f32.xlu1 %v3826_v27  ;;  %2587 = vmatmul.mubr.bf16.gmra.mrb[16].mxu0 %v9994_v53  ;;  %v3820_v55 = vsel %vm3612_vm0, %v12050_v23, 0.0  ;;  %v9998_v27 = vld [vmem:[%s17672_s1 + $0x890] ss:$12 sps:$4 sm:$0xff]   ;;  %v9999_v53 = vld [vmem:[%s17672_s1 + $0x678] ss:$12 sps:$4 sm:$0xff]  }
 0x265   :  { %9581 = vmatprep.mubr.bf16.mxu1 %v9997_v52  ;;  %2594 = vmatprep.mubr.bf16.mxu0 %v10001_v58 }
 0x266   :  { %v9475_v29 = vpop.f32.mrb[168].mxu1  ;;  %v12056_v9 = vpop.f32.mrb[168].mxu0 }
 0x267   :  { %v12059_v2 = vadd.f32 %v9475_v29, %v11876_v8  ;;  %v3133_v34 = vpop.f32.mrb[169].mxu1  ;;  %v3621_v32 = vpop.xlane.xlu1 %3620  ;;  %3818 = vadd.xlane.f32.xlu0 %v3817_v39  ;;  %v10002_v29 = vld [vmem:[%s17672_s1 + $0x8a8] ss:$12 sps:$4 sm:$0xff]  }
 0x268   :  { %v12070_v52 = vadd.f32 %v3133_v34, %v11840_v11  ;;  %v4191_v62 = vmul.f32 0.020408163, %v3621_v32  ;;  %v9476_v8 = vpop.f32.mrb[170].mxu1  ;;  %v3615_v58 = vpop.xlane.xlu0 %3614  ;;  %3821 = vadd.xlane.f32.xlu1 %v3820_v55  ;;  %v10006_v11 = vld [vmem:[%s17672_s1 + $0x694] ss:$12 sps:$4 sm:$0xff]  }
 0x269   :  { %18134 = vst [vmem:[#allocation99_spill] sm:$0xff] %v12059_v2  ;;  %v12076_v39 = vadd.f32 %v9476_v8, %v11895_v41  ;;  %v3136_v23 = vpop.f32.mrb[171].mxu1  ;;  %v3835_v15 = vsel %vm3612_vm0, %v12059_v2, 0.0  ;;  %v2382_v34 = vpop.f32.mrb[169].mxu0  ;;  %v4189_v55 = vmul.f32 0.020408163, %v3615_v58 }
 0x26a   :  { %18135 = vst [vmem:[#allocation100_spill] sm:$0xff] %v12070_v52  ;;  %v12084_v32 = vsub.f32 %v11413_v5, %v4191_v62  ;;  %v12087_v46 = vadd.f32 %v3136_v23, %v11859_v25  ;;  %v12089_v61 = vpop.f32.mrb[170].mxu0 }
 0x26b   :  { %18136 = vst [vmem:[#allocation101_spill] sm:$0xff] %v12076_v39  ;;  %9582 = vmatmul.mubr.bf16.gmra.mrb[20].mxu1 %v9998_v27  ;;  %v3624_v41 = vpop.xlane.xlu1 %3623  ;;  %3836 = vadd.xlane.f32.xlu0 %v3835_v15  ;;  %v3838_v8 = vsel %vm3612_vm0, %v12076_v39, 0.0  ;;  %v2385_v2 = vpop.f32.mrb[171].mxu0  ;;  %v12094_v5 = vsub.f32 %v11419_v45, %v4189_v55  ;;  %v3829_v15 = vsel %vm3612_vm0, %v12070_v52, 0.0  ;;  %v10004_v55 = vld [vmem:[%s17672_s1 + $0x690] ss:$12 sps:$4 sm:$0xff]  }
 0x26c   :  { %18137 = vst [vmem:[#allocation102_spill] sm:$0xff] %v12084_v32  ;;  %18138 = vst [vmem:[#allocation103_spill] sm:$0xff] %v12087_v46  ;;  %v4192_v44 = vmul.f32 0.020408163, %v3624_v41  ;;  %v3618_v3 = vpop.xlane.xlu0 %3617  ;;  %3839 = vadd.xlane.f32.xlu1 %v3838_v8  ;;  %2595 = vmatmul.mubr.bf16.gmra.mrb[20].mxu0 %v9999_v53  ;;  %v4575_v2 = vmul.f32 %v12084_v32, %v12084_v32  ;;  %v3832_v45 = vsel %vm3612_vm0, %v12087_v46, 0.0  ;;  %v18174_v39 = vld [vmem:[#allocation53_spill] sm:$0xff] }
 0x26d   :  { %v4190_v34 = vmul.f32 0.020408163, %v3618_v3  ;;  %9585 = vmatprep.mubr.bf16.mxu1 %v10002_v29  ;;  %2602 = vmatprep.mubr.bf16.mxu0 %v10006_v11  ;;  %18139 = vst [vmem:[#allocation104_spill] sm:$0xff] %v12094_v5 }
 0x26e   :  { %v12097_v25 = vsub.f32 %v11430_v38, %v4192_v44  ;;  %v9479_v23 = vpop.f32.mrb[172].mxu1  ;;  %v12103_v27 = vpop.f32.mrb[172].mxu0  ;;  %v10003_v38 = vld [vmem:[%s17672_s1 + $0x8c0] ss:$12 sps:$4 sm:$0xff]  }
 0x26f   :  { %v12106_v53 = vsub.f32 %v11438_v19, %v4190_v34  ;;  %v3149_v3 = vpop.f32.mrb[173].mxu1  ;;  %3830 = vadd.xlane.f32.xlu0 %v3829_v15  ;;  %v12114_v44 = vadd.f32 %v9479_v23, %v11948_v60  ;;  %v2390_v62 = vpop.f32.mrb[173].mxu0  ;;  %v10011_v60 = vld [vmem:[%s17672_s1 + $0x6ac] ss:$12 sps:$4 sm:$0xff]   ;;  %v4771_v15 = vsel %vm3612_vm0, %v4575_v2, 0.0 }
 0x270   :  { %18140 = vst [vmem:[#allocation105_spill] sm:$0xff] %v12097_v25  ;;  %v12117_v58 = vadd.f32 %v3149_v3, %v11912_v50  ;;  %v9480_v29 = vpop.f32.mrb[174].mxu1  ;;  %v3633_v11 = vpop.xlane.xlu0 %3632  ;;  %3833 = vadd.xlane.f32.xlu1 %v3832_v45  ;;  %v4576_v19 = vmul.f32 %v12097_v25, %v12097_v25  ;;  %v10007_v50 = vld [vmem:[%s17672_s1 + $0x8d8] ss:$12 sps:$4 sm:$0xff]   ;;  %v4573_v45 = vmul.f32 %v12094_v5, %v12094_v5  ;;  %v10008_v2 = vld [vmem:[%s17672_s1 + $0x8f0] ss:$12 sps:$4 sm:$0xff]  }
 0x271   :  { %18141 = vst [vmem:[#allocation106_spill] sm:$0xff] %v12106_v53  ;;  %18142 = vst [vmem:[#allocation107_spill] sm:$0xff] %v12114_v44  ;;  %v3152_v41 = vpop.f32.mrb[175].mxu1  ;;  %v3636_v8 = vpop.xlane.xlu1 %3635  ;;  %v12125_v34 = vadd.f32 %v9480_v29, %v11967_v16  ;;  %v4574_v62 = vmul.f32 %v12106_v53, %v12106_v53 }
 0x272   :  { %18143 = vst [vmem:[#allocation108_spill] sm:$0xff] %v12117_v58  ;;  %v12134_v23 = vadd.f32 %v3152_v41, %v11931_v4  ;;  %v4774_v3 = vsel %vm3612_vm0, %v4576_v19, 0.0  ;;  %v12140_v16 = vpop.f32.mrb[174].mxu0  ;;  %v4195_v19 = vmul.f32 0.020408163, %v3633_v11  ;;  %v4765_v41 = vsel %vm3612_vm0, %v4573_v45, 0.0 }
 0x273   :  { %18144 = vst [vmem:[#allocation109_spill] sm:$0xff] %v12125_v34  ;;  %9586 = vmatmul.mubr.bf16.gmra.mrb[24].mxu1 %v10003_v38  ;;  %4772 = vadd.xlane.f32.xlu0 %v4771_v15  ;;  %v2393_v29 = vpop.f32.mrb[175].mxu0  ;;  %v4196_v15 = vmul.f32 0.020408163, %v3636_v8  ;;  %v10009_v8 = vld [vmem:[%s17672_s1 + $0x6a8] ss:$12 sps:$4 sm:$0xff]  }
 0x274   :  { %18145 = vst [vmem:[#allocation110_spill] sm:$0xff] %v12134_v23  ;;  %v3627_v32 = vpop.xlane.xlu0 %3626  ;;  %4775 = vadd.xlane.f32.xlu1 %v4774_v3  ;;  %2603 = vmatmul.mubr.bf16.gmra.mrb[24].mxu0 %v10004_v55  ;;  %v4768_v29 = vsel %vm3612_vm0, %v4574_v62, 0.0 }
 0x275   :  { %v3630_v4 = vpop.xlane.xlu1 %3629  ;;  %9589 = vmatprep.mubr.bf16.mxu1 %v10007_v50  ;;  %2610 = vmatprep.mubr.bf16.mxu0 %v10011_v60  ;;  %v3847_v60 = vsel %vm3612_vm0, %v12114_v44, 0.0  ;;  %v3850_v44 = vsel %vm3612_vm0, %v12125_v34, 0.0 }
 0x276   :  { %v9483_v5 = vpop.f32.mrb[176].mxu1  ;;  %v12148_v38 = vpop.f32.mrb[176].mxu0 }
 0x277   :  { %4766 = vadd.xlane.f32.xlu0 %v4765_v41  ;;  %v3165_v25 = vpop.f32.mrb[177].mxu1  ;;  %v12152_v55 = vadd.f32 %v9483_v5, %v12020_v51  ;;  %v2398_v50 = vpop.f32.mrb[177].mxu0  ;;  %v12166_v51 = vsub.f32 %v11449_v0, %v4195_v19  ;;  %v4193_v5 = vmul.f32 0.020408163, %v3627_v32  ;;  %v18153_v19 = vld [vmem:[#allocation50_spill] sm:$0xff] }
 0x278   :  { %v3645_v3 = vpop.xlane.xlu0 %3644  ;;  %4769 = vadd.xlane.f32.xlu1 %v4768_v29  ;;  %v12157_v11 = vadd.f32 %v3165_v25, %v11984_v22  ;;  %v9484_v45 = vpop.f32.mrb[178].mxu1  ;;  %v12172_v22 = vsub.f32 %v11466_v12, %v4196_v15  ;;  %v4194_v25 = vmul.f32 0.020408163, %v3630_v4 }
 0x279   :  { %18146 = vst [vmem:[#allocation111_spill] sm:$0xff] %v12152_v55  ;;  %v3648_v41 = vpop.xlane.xlu1 %3647  ;;  %v3168_v62 = vpop.f32.mrb[179].mxu1  ;;  %v12163_v53 = vadd.f32 %v9484_v45, %v12039_v54  ;;  %18149 = vst [vmem:[#allocation114_spill] sm:$0xff] %v12166_v51  ;;  %v12177_v32 = vsub.f32 %v11455_v21, %v4193_v5  ;;  %v4579_v12 = vmul.f32 %v12166_v51, %v12166_v51 }
 0x27a   :  { %18147 = vst [vmem:[#allocation112_spill] sm:$0xff] %v12157_v11  ;;  %v12169_v29 = vadd.f32 %v3168_v62, %v12003_v48  ;;  %v2399_v50 = vpop.f32.mrb[178].mxu0  ;;  %18151 = vst [vmem:[#allocation116_spill] sm:$0xff] %v12172_v22  ;;  %v3841_v48 = vsel %vm3612_vm0, %v12117_v58, 0.0  ;;  %v12184_v15 = vsub.f32 %v18153_v19, %v4194_v25 }
 0x27b   :  { %18148 = vst [vmem:[#allocation113_spill] sm:$0xff] %v12163_v53  ;;  %9590 = vmatmul.mubr.bf16.gmra.mrb[28].mxu1 %v10008_v2  ;;  %3848 = vadd.xlane.f32.xlu0 %v3847_v60  ;;  %v2401_v46 = vpop.f32.mrb[179].mxu0  ;;  %18152 = vst [vmem:[#allocation117_spill] sm:$0xff] %v12177_v32  ;;  %v4783_v51 = vsel %vm3612_vm0, %v4579_v12, 0.0  ;;  %v4199_v12 = vmul.f32 0.020408163, %v3645_v3 }
 0x27c   :  { %18150 = vst [vmem:[#allocation115_spill] sm:$0xff] %v12169_v29  ;;  %v3639_v54 = vpop.xlane.xlu0 %3638  ;;  %3851 = vadd.xlane.f32.xlu1 %v3850_v44  ;;  %2611 = vmatmul.mubr.bf16.gmra.mrb[28].mxu0 %v10009_v8  ;;  %18154 = vst [vmem:[#allocation50_spill] sm:$0xff] %v12184_v15  ;;  %v3844_v46 = vsel %vm3612_vm0, %v12134_v23, 0.0  ;;  %v4580_v44 = vmul.f32 %v12172_v22, %v12172_v22 }
 0x27d   :  { %v3642_v0 = vpop.xlane.xlu1 %3641 }
 0x27e   :  { %v9487_v4 = vpop.f32.mrb[180].mxu1  ;;  %v2404_v2 = vpop.f32.mrb[180].mxu0 }
 0x27f   :  { %3842 = vadd.xlane.f32.xlu0 %v3841_v48  ;;  %v3181_v21 = vpop.f32.mrb[181].mxu1  ;;  %v12191_v60 = vadd.f32 %v9487_v4, %v12103_v27  ;;  %v2406_v8 = vpop.f32.mrb[181].mxu0  ;;  %v4577_v27 = vmul.f32 %v12177_v32, %v12177_v32 }
 0x280   :  { %v12193_v45 = vpop.xlane.xlu0 %3656  ;;  %3845 = vadd.xlane.f32.xlu1 %v3844_v46  ;;  %v12196_v62 = vadd.f32 %v3181_v21, %v12056_v9  ;;  %v9488_v5 = vpop.f32.mrb[182].mxu1  ;;  %v4786_v9 = vsel %vm3612_vm0, %v4580_v44, 0.0  ;;  %v4578_v46 = vmul.f32 %v12184_v15, %v12184_v15 }
 0x281   :  { %18155 = vst [vmem:[#allocation118_spill] sm:$0xff] %v12191_v60  ;;  %v12198_v25 = vpop.xlane.xlu1 %3659  ;;  %v3184_v48 = vpop.f32.mrb[183].mxu1  ;;  %v12201_v19 = vadd.f32 %v9488_v5, %v12140_v16  ;;  %v4777_v5 = vsel %vm3612_vm0, %v4577_v27, 0.0 }
 0x282   :  { %18156 = vst [vmem:[#allocation119_spill] sm:$0xff] %v12196_v62  ;;  %v12207_v4 = vadd.f32 %v3184_v48, %v12089_v61  ;;  %v2407_v8 = vpop.f32.mrb[182].mxu0  ;;  %v4200_v61 = vmul.f32 0.020408163, %v3648_v41 }
 0x283   :  { %18157 = vst [vmem:[#allocation120_spill] sm:$0xff] %v12201_v19  ;;  %4784 = vadd.xlane.f32.xlu0 %v4783_v51  ;;  %v2409_v21 = vpop.f32.mrb[183].mxu0  ;;  %v4780_v51 = vsel %vm3612_vm0, %v4578_v46, 0.0  ;;  %v18162_v46 = vld [vmem:[#allocation51_spill] sm:$0xff] }
 0x284   :  { %18158 = vst [vmem:[#allocation121_spill] sm:$0xff] %v12207_v4  ;;  %v12212_v22 = vpop.xlane.xlu0 %3650  ;;  %4787 = vadd.xlane.f32.xlu1 %v4786_v9  ;;  %v3859_v9 = vsel %vm3612_vm0, %v12152_v55, 0.0  ;;  %v12232_v34 = vsub.f32 %v18162_v46, %v4199_v12  ;;  %v4198_v55 = vmul.f32 0.020408163, %v3642_v0 }
 0x285   :  { %v12214_v16 = vpop.xlane.xlu1 %3653 }
 0x286   :  { %v9491_v32 = vpop.f32.mrb[184].mxu1  ;;  %v2412_v23 = vpop.f32.mrb[184].mxu0  ;;  %18163 = vst [vmem:[#allocation51_spill] sm:$0xff] %v12232_v34 }
 0x287   :  { %4778 = vadd.xlane.f32.xlu0 %v4777_v5  ;;  %v3197_v48 = vpop.f32.mrb[185].mxu1  ;;  %v12218_v44 = vadd.f32 %v9491_v32, %v2404_v2  ;;  %v2414_v58 = vpop.f32.mrb[185].mxu0  ;;  %v4197_v32 = vmul.f32 0.020408163, %v3639_v54 }
 0x288   :  { %v12220_v15 = vpop.xlane.xlu0 %3668  ;;  %4781 = vadd.xlane.f32.xlu1 %v4780_v51  ;;  %v12225_v3 = vadd.f32 %v3197_v48, %v12148_v38  ;;  %v9492_v27 = vpop.f32.mrb[186].mxu1  ;;  %v12237_v51 = vsub.f32 %v11502_v36, %v4200_v61  ;;  %v3862_v38 = vsel %vm3612_vm0, %v12163_v53, 0.0  ;;  %v4583_v36 = vmul.f32 %v12232_v34, %v12232_v34  ;;  %v18167_v61 = vld [vmem:[#allocation52_spill] sm:$0xff] }
 0x289   :  { %18159 = vst [vmem:[#allocation122_spill] sm:$0xff] %v12218_v44  ;;  %v12227_v21 = vpop.xlane.xlu1 %3671  ;;  %v3200_v41 = vpop.f32.mrb[187].mxu1  ;;  %v12229_v5 = vadd.f32 %v9492_v27, %v2407_v8  ;;  %v12246_v12 = vsub.f32 %v11491_v28, %v4197_v32  ;;  %v3856_v27 = vsel %vm3612_vm0, %v12169_v29, 0.0 }
 0x28a   :  { %18160 = vst [vmem:[#allocation123_spill] sm:$0xff] %v12225_v3  ;;  %v12234_v58 = vadd.f32 %v3200_v41, %v2399_v50  ;;  %v2415_v2 = vpop.f32.mrb[186].mxu0  ;;  %18165 = vst [vmem:[#allocation126_spill] sm:$0xff] %v12237_v51  ;;  %v3853_v50 = vsel %vm3612_vm0, %v12157_v11, 0.0  ;;  %v4584_v41 = vmul.f32 %v12237_v51, %v12237_v51 }
 0x28b   :  { %18161 = vst [vmem:[#allocation124_spill] sm:$0xff] %v12229_v5  ;;  %3860 = vadd.xlane.f32.xlu0 %v3859_v9  ;;  %v2417_v48 = vpop.f32.mrb[187].mxu0  ;;  %18166 = vst [vmem:[#allocation127_spill] sm:$0xff] %v12246_v12  ;;  %v12253_v9 = vsub.f32 %v18167_v61, %v4198_v55  ;;  %v4581_v61 = vmul.f32 %v12246_v12, %v12246_v12 }
 0x28c   :  { %18164 = vst [vmem:[#allocation125_spill] sm:$0xff] %v12234_v58  ;;  %v12241_v52 = vpop.xlane.xlu0 %3662  ;;  %3863 = vadd.xlane.f32.xlu1 %v3862_v38 }
 0x28d   :  { %v12243_v8 = vpop.xlane.xlu1 %3665  ;;  %18168 = vst [vmem:[#allocation52_spill] sm:$0xff] %v12253_v9 }
 0x28e   :  { %v9495_v54 = vpop.f32.mrb[188].mxu1  ;;  %v2420_v0 = vpop.f32.mrb[188].mxu0 }
 0x28f   :  { %3854 = vadd.xlane.f32.xlu0 %v3853_v50  ;;  %v3213_v28 = vpop.f32.mrb[189].mxu1  ;;  %v12259_v46 = vadd.f32 %v9495_v54, %v2420_v0  ;;  %v2422_v32 = vpop.f32.mrb[189].mxu0  ;;  %v4795_v50 = vsel %vm3612_vm0, %v4583_v36, 0.0  ;;  %v4798_v54 = vsel %vm3612_vm0, %v4584_v41, 0.0  ;;  %v4582_v0 = vmul.f32 %v12253_v9, %v12253_v9 }
 0x290   :  { %v12261_v38 = vpop.xlane.xlu0 %3680  ;;  %3857 = vadd.xlane.f32.xlu1 %v3856_v27  ;;  %v12263_v48 = vadd.f32 %v3213_v28, %v2412_v23  ;;  %v9496_v34 = vpop.f32.mrb[190].mxu1  ;;  %v4203_v36 = vmul.f32 0.020408163, %v12193_v45 }
 0x291   :  { %18169 = vst [vmem:[#allocation128_spill] sm:$0xff] %v12259_v46  ;;  %v12265_v53 = vpop.xlane.xlu1 %3683  ;;  %v3216_v55 = vpop.f32.mrb[191].mxu1  ;;  %v4792_v41 = vsel %vm3612_vm0, %v4582_v0, 0.0 }
 0x292   :  { %18170 = vst [vmem:[#allocation129_spill] sm:$0xff] %v12263_v48  ;;  %v12270_v29 = vadd.f32 %v3216_v55, %v2415_v2  ;;  %v2423_v51 = vpop.f32.mrb[190].mxu0  ;;  %v4789_v2 = vsel %vm3612_vm0, %v4581_v61, 0.0  ;;  %v12294_v18 = vsub.f32 %v18174_v39, %v4203_v36 }
 0x293   :  { %4796 = vadd.xlane.f32.xlu0 %v4795_v50  ;;  %v12275_v23 = vadd.f32 %v9496_v34, %v2423_v51  ;;  %v2425_v27 = vpop.f32.mrb[191].mxu0  ;;  %v4204_v50 = vmul.f32 0.020408163, %v12198_v25  ;;  %v4201_v25 = vmul.f32 0.020408163, %v12212_v22 }
 0x294   :  { %18171 = vst [vmem:[#allocation130_spill] sm:$0xff] %v12270_v29  ;;  %v12277_v28 = vpop.xlane.xlu0 %3674  ;;  %4799 = vadd.xlane.f32.xlu1 %v4798_v54  ;;  %v3871_v54 = vsel %vm3612_vm0, %v12191_v60, 0.0  ;;  %18175 = vst [vmem:[#allocation53_spill] sm:$0xff] %v12294_v18 }
 0x295   :  { %18172 = vst [vmem:[#allocation131_spill] sm:$0xff] %v12275_v23  ;;  %v12279_v32 = vpop.xlane.xlu1 %3677  ;;  %v12310_v22 = vsub.f32 %v11527_v1, %v4201_v25 }
 0x296   :  { %v2428_v55 = vpop.f32.mrb[192].mxu0  ;;  %v9499_v12 = vpop.f32.mrb[192].mxu1 }
 0x297   :  { %4790 = vadd.xlane.f32.xlu0 %v4789_v2  ;;  %v2430_v9 = vpop.f32.mrb[193].mxu0  ;;  %v3229_v34 = vpop.f32.mrb[193].mxu1  ;;  %v4202_v2 = vmul.f32 0.020408163, %v12214_v16  ;;  %18178 = vst [vmem:[#allocation135_spill] sm:$0xff] %v12310_v22  ;;  %v4587_v16 = vmul.f32 %v12294_v18, %v12294_v18 }
 0x298   :  { %v12285_v51 = vpop.xlane.xlu0 %3692  ;;  %4793 = vadd.xlane.f32.xlu1 %v4792_v41  ;;  %v2431_v27 = vpop.f32.mrb[194].mxu0  ;;  %v12289_v11 = vadd.f32 %v3229_v34, %v2428_v55  ;;  %v12298_v9 = vsub.f32 %v11538_v63, %v4204_v50  ;;  %v3874_v41 = vsel %vm3612_vm0, %v12201_v19, 0.0  ;;  %v3865_v63 = vsel %vm3612_vm0, %v12196_v62, 0.0 }
 0x299   :  { %v12291_v45 = vpop.xlane.xlu1 %3695  ;;  %v2433_v61 = vpop.f32.mrb[195].mxu0 }
 0x29a   :  { %18173 = vst [vmem:[#allocation132_spill] sm:$0xff] %v12289_v11  ;;  %v9500_v0 = vpop.f32.mrb[194].mxu1  ;;  %18176 = vst [vmem:[#allocation133_spill] sm:$0xff] %v12298_v9  ;;  %v4588_v1 = vmul.f32 %v12298_v9, %v12298_v9 }
 0x29b   :  { %3872 = vadd.xlane.f32.xlu0 %v3871_v54  ;;  %v3232_v55 = vpop.f32.mrb[195].mxu1  ;;  %v18179_v54 = vld [vmem:[#allocation54_spill] sm:$0xff] }
 0x29c   :  { %v12303_v34 = vpop.xlane.xlu0 %3686  ;;  %3875 = vadd.xlane.f32.xlu1 %v3874_v41  ;;  %v12305_v61 = vadd.f32 %v3232_v55, %v2431_v27  ;;  %v12319_v19 = vsub.f32 %v18179_v54, %v4202_v2  ;;  %v3868_v27 = vsel %vm3612_vm0, %v12207_v4, 0.0  ;;  %v4585_v54 = vmul.f32 %v12310_v22, %v12310_v22 }
 0x29d   :  { %v12307_v39 = vpop.xlane.xlu1 %3689 }
 0x29e   :  { %18177 = vst [vmem:[#allocation134_spill] sm:$0xff] %v12305_v61  ;;  %v2436_v36 = vpop.f32.mrb[196].mxu0  ;;  %v12316_v50 = vpop.f32.mrb[196].mxu1  ;;  %18180 = vst [vmem:[#allocation54_spill] sm:$0xff] %v12319_v19 }
 0x29f   :  { %3866 = vadd.xlane.f32.xlu0 %v3865_v63  ;;  %v12325_v25 = vadd.f32 %v9499_v12, %v2436_v36  ;;  %v2438_v41 = vpop.f32.mrb[197].mxu0  ;;  %v3245_v55 = vpop.f32.mrb[197].mxu1  ;;  %v4807_v63 = vsel %vm3612_vm0, %v4587_v16, 0.0  ;;  %v4810_v36 = vsel %vm3612_vm0, %v4588_v1, 0.0  ;;  %v4801_v16 = vsel %vm3612_vm0, %v4585_v54, 0.0 }
 0x2a0   :  { %v12327_v62 = vpop.xlane.xlu0 %3704  ;;  %3869 = vadd.xlane.f32.xlu1 %v3868_v27  ;;  %v2439_v18 = vpop.f32.mrb[198].mxu0  ;;  %v4586_v27 = vmul.f32 %v12319_v19, %v12319_v19 }
 0x2a1   :  { %18181 = vst [vmem:[#allocation136_spill] sm:$0xff] %v12325_v25  ;;  %v12329_v60 = vpop.xlane.xlu1 %3707  ;;  %v12331_v33 = vadd.f32 %v9500_v0, %v2439_v18  ;;  %v12333_v2 = vpop.f32.mrb[198].mxu1  ;;  %v4207_v0 = vmul.f32 0.020408163, %v12220_v15  ;;  %v3883_v15 = vsel %vm3612_vm0, %v12218_v44, 0.0 }
 0x2a2   :  { %v3248_v9 = vpop.f32.mrb[199].mxu1  ;;  %v2441_v12 = vpop.f32.mrb[199].mxu0  ;;  %v4804_v1 = vsel %vm3612_vm0, %v4586_v27, 0.0  ;;  %v4205_v27 = vmul.f32 0.020408163, %v12241_v52 }
 0x2a3   :  { %18182 = vst [vmem:[#allocation137_spill] sm:$0xff] %v12331_v33  ;;  %4808 = vadd.xlane.f32.xlu0 %v4807_v63  ;;  %v4208_v12 = vmul.f32 0.020408163, %v12227_v21  ;;  %v18184_v21 = vld [vmem:[#allocation55_spill] sm:$0xff] }
 0x2a4   :  { %v12341_v41 = vpop.xlane.xlu0 %3698  ;;  %4811 = vadd.xlane.f32.xlu1 %v4810_v36  ;;  %v12380_v52 = vsub.f32 %v11563_v40, %v4205_v27 }
 0x2a5   :  { %v12343_v18 = vpop.xlane.xlu1 %3701 }
 0x2a6   :  { %v12347_v4 = vpop.f32.mrb[200].mxu1  ;;  %v2444_v22 = vpop.f32.mrb[200].mxu0  ;;  %18188 = vst [vmem:[#allocation141_spill] sm:$0xff] %v12380_v52 }
 0x2a7   :  { %4802 = vadd.xlane.f32.xlu0 %v4801_v16  ;;  %v3261_v63 = vpop.f32.mrb[201].mxu1  ;;  %v12351_v24 = vadd.f32 %v3245_v55, %v2444_v22  ;;  %v2446_v19 = vpop.f32.mrb[201].mxu0  ;;  %v12364_v16 = vsub.f32 %v18184_v21, %v4207_v0  ;;  %v4206_v55 = vmul.f32 0.020408163, %v12243_v8 }
 0x2a8   :  { %v12353_v59 = vpop.xlane.xlu0 %3716  ;;  %4805 = vadd.xlane.f32.xlu1 %v4804_v1  ;;  %v12357_v36 = vpop.f32.mrb[202].mxu1  ;;  %v12368_v19 = vsub.f32 %v11574_v35, %v4208_v12  ;;  %v3886_v1 = vsel %vm3612_vm0, %v12229_v5, 0.0  ;;  %v3877_v35 = vsel %vm3612_vm0, %v12225_v3, 0.0 }
 0x2a9   :  { %18183 = vst [vmem:[#allocation138_spill] sm:$0xff] %v12351_v24  ;;  %v12359_v54 = vpop.xlane.xlu1 %3719  ;;  %v12361_v56 = vpop.f32.mrb[203].mxu1  ;;  %18185 = vst [vmem:[#allocation55_spill] sm:$0xff] %v12364_v16  ;;  %v4591_v8 = vmul.f32 %v12364_v16, %v12364_v16 }
 0x2aa   :  { %v2447_v22 = vpop.f32.mrb[202].mxu0  ;;  %18186 = vst [vmem:[#allocation139_spill] sm:$0xff] %v12368_v19  ;;  %v4592_v21 = vmul.f32 %v12368_v19, %v12368_v19  ;;  %v4589_v19 = vmul.f32 %v12380_v52, %v12380_v52 }
 0x2ab   :  { %3884 = vadd.xlane.f32.xlu0 %v3883_v15  ;;  %v12373_v44 = vadd.f32 %v3248_v9, %v2447_v22  ;;  %v2449_v31 = vpop.f32.mrb[203].mxu0  ;;  %v18189_v15 = vld [vmem:[#allocation56_spill] sm:$0xff] }
 0x2ac   :  { %v12375_v13 = vpop.xlane.xlu0 %3710  ;;  %3887 = vadd.xlane.f32.xlu1 %v3886_v1  ;;  %v12389_v9 = vsub.f32 %v18189_v15, %v4206_v55  ;;  %v3880_v31 = vsel %vm3612_vm0, %v12234_v58, 0.0  ;;  %v4819_v15 = vsel %vm3612_vm0, %v4591_v8, 0.0  ;;  %v4822_v5 = vsel %vm3612_vm0, %v4592_v21, 0.0 }
 0x2ad   :  { %18187 = vst [vmem:[#allocation140_spill] sm:$0xff] %v12373_v44  ;;  %v12377_v0 = vpop.xlane.xlu1 %3713  ;;  %v4211_v8 = vmul.f32 0.020408163, %v12261_v38  ;;  %v4212_v21 = vmul.f32 0.020408163, %v12265_v53  ;;  %v18195_v53 = vld [vmem:[#allocation57_spill] sm:$0xff] }
 0x2ae   :  { %v12386_v12 = vpop.f32.mrb[204].mxu1  ;;  %18190 = vst [vmem:[#allocation56_spill] sm:$0xff] %v12389_v9 }
 0x2af   :  { %3878 = vadd.xlane.f32.xlu0 %v3877_v35  ;;  %v12395_v40 = vpop.f32.mrb[205].mxu1  ;;  %v2452_v27 = vpop.f32.mrb[204].mxu0 }
 0x2b0   :  { %v12397_v22 = vpop.xlane.xlu0 %3728  ;;  %3881 = vadd.xlane.f32.xlu1 %v3880_v31  ;;  %v12399_v1 = vpop.f32.mrb[206].mxu1  ;;  %v12402_v16 = vadd.f32 %v12316_v50, %v2452_v27  ;;  %v4590_v31 = vmul.f32 %v12389_v9, %v12389_v9 }
 0x2b1   :  { %v12404_v55 = vpop.xlane.xlu1 %3731  ;;  %v12406_v35 = vpop.f32.mrb[207].mxu1 }
 0x2b2   :  { %18191 = vst [vmem:[#allocation142_spill] sm:$0xff] %v12402_v16  ;;  %v2454_v58 = vpop.f32.mrb[205].mxu0  ;;  %v4816_v52 = vsel %vm3612_vm0, %v4590_v31, 0.0  ;;  %v4209_v31 = vmul.f32 0.020408163, %v12277_v28 }
 0x2b3   :  { %4820 = vadd.xlane.f32.xlu0 %v4819_v15  ;;  %v2455_v3 = vpop.f32.mrb[206].mxu0  ;;  %v4813_v58 = vsel %vm3612_vm0, %v4589_v19, 0.0 }
 0x2b4   :  { %v12414_v10 = vpop.xlane.xlu0 %3722  ;;  %4823 = vadd.xlane.f32.xlu1 %v4822_v5  ;;  %v12417_v50 = vadd.f32 %v12333_v2, %v2455_v3  ;;  %v2457_v27 = vpop.f32.mrb[207].mxu0  ;;  %v3895_v3 = vsel %vm3612_vm0, %v12259_v46, 0.0 }
 0x2b5   :  { %v12419_v49 = vpop.xlane.xlu1 %3725 }
 0x2b6   :  { %18192 = vst [vmem:[#allocation143_spill] sm:$0xff] %v12417_v50  ;;  %v12423_v15 = vpop.f32.mrb[208].mxu1 }
 0x2b7   :  { %4814 = vadd.xlane.f32.xlu0 %v4813_v58  ;;  %v12427_v9 = vpop.f32.mrb[209].mxu1  ;;  %v2460_v5 = vpop.f32.mrb[208].mxu0  ;;  %v12442_v58 = vsub.f32 %v18195_v53, %v4211_v8 }
 0x2b8   :  { %v12429_v7 = vpop.xlane.xlu0 %3740  ;;  %4817 = vadd.xlane.f32.xlu1 %v4816_v52  ;;  %v12433_v2 = vpop.f32.mrb[210].mxu1  ;;  %v12435_v38 = vadd.f32 %v3261_v63, %v2460_v5  ;;  %v4210_v52 = vmul.f32 0.020408163, %v12279_v32  ;;  %v3898_v63 = vsel %vm3612_vm0, %v12275_v23, 0.0 }
 0x2b9   :  { %18193 = vst [vmem:[#allocation144_spill] sm:$0xff] %v12429_v7  ;;  %v12437_v19 = vpop.xlane.xlu1 %3743  ;;  %v12439_v27 = vpop.f32.mrb[211].mxu1  ;;  %18196 = vst [vmem:[#allocation57_spill] sm:$0xff] %v12442_v58  ;;  %v12446_v7 = vsub.f32 %v11610_v17, %v4212_v21  ;;  %v3889_v17 = vsel %vm3612_vm0, %v12263_v48, 0.0  ;;  %v4595_v28 = vmul.f32 %v12442_v58, %v12442_v58  ;;  %v18200_v21 = vld [vmem:[#allocation58_spill] sm:$0xff] }
 0x2ba   :  { %18194 = vst [vmem:[#allocation145_spill] sm:$0xff] %v12435_v38  ;;  %v2462_v37 = vpop.f32.mrb[209].mxu0  ;;  %v4216_v48 = vmul.f32 0.020408163, %v12291_v45 }
 0x2bb   :  { %18197 = vst [vmem:[#allocation146_spill] sm:$0xff] %v12446_v7  ;;  %3896 = vadd.xlane.f32.xlu0 %v3895_v3  ;;  %v2463_v5 = vpop.f32.mrb[210].mxu0  ;;  %v12459_v37 = vsub.f32 %v11599_v6, %v4209_v31  ;;  %v12468_v3 = vsub.f32 %v18200_v21, %v4210_v52  ;;  %v4215_v21 = vmul.f32 0.020408163, %v12285_v51 }
 0x2bc   :  { %v12451_v46 = vpop.xlane.xlu0 %3734  ;;  %3899 = vadd.xlane.f32.xlu1 %v3898_v63  ;;  %v12454_v38 = vadd.f32 %v12361_v56, %v2463_v5  ;;  %v2465_v8 = vpop.f32.mrb[211].mxu0  ;;  %v3892_v56 = vsel %vm3612_vm0, %v12270_v29, 0.0  ;;  %v4596_v63 = vmul.f32 %v12446_v7, %v12446_v7  ;;  %v4831_v29 = vsel %vm3612_vm0, %v4595_v28, 0.0 }
 0x2bd   :  { %v12456_v53 = vpop.xlane.xlu1 %3737  ;;  %18199 = vst [vmem:[#allocation148_spill] sm:$0xff] %v12459_v37  ;;  %18201 = vst [vmem:[#allocation58_spill] sm:$0xff] %v12468_v3  ;;  %v4593_v7 = vmul.f32 %v12459_v37, %v12459_v37  ;;  %v18205_v37 = vld [vmem:[#allocation59_spill] sm:$0xff] }
 0x2be   :  { %18198 = vst [vmem:[#allocation147_spill] sm:$0xff] %v12454_v38  ;;  %v12465_v32 = vpop.f32.mrb[212].mxu1 }
 0x2bf   :  { %3890 = vadd.xlane.f32.xlu0 %v3889_v17  ;;  %v12474_v6 = vpop.f32.mrb[213].mxu1  ;;  %v2468_v31 = vpop.f32.mrb[212].mxu0  ;;  %v4825_v45 = vsel %vm3612_vm0, %v4593_v7, 0.0 }
 0x2c0   :  { %v12476_v5 = vpop.xlane.xlu0 %3752  ;;  %3893 = vadd.xlane.f32.xlu1 %v3892_v56  ;;  %v12478_v8 = vpop.f32.mrb[214].mxu1  ;;  %v12481_v58 = vadd.f32 %v12347_v4, %v2468_v31  ;;  %v4834_v56 = vsel %vm3612_vm0, %v4596_v63, 0.0  ;;  %v4594_v4 = vmul.f32 %v12468_v3, %v12468_v3  ;;  %v12510_v3 = vsub.f32 %v11646_v14, %v4216_v48 }
 0x2c1   :  { %v12483_v52 = vpop.xlane.xlu1 %3755  ;;  %v12485_v17 = vpop.f32.mrb[215].mxu1 }
 0x2c2   :  { %18202 = vst [vmem:[#allocation149_spill] sm:$0xff] %v12481_v58  ;;  %18203 = vst [vmem:[#allocation150_spill] sm:$0xff] %v12483_v52  ;;  %v2470_v23 = vpop.f32.mrb[213].mxu0 }
 0x2c3   :  { %4832 = vadd.xlane.f32.xlu0 %v4831_v29  ;;  %v2471_v31 = vpop.f32.mrb[214].mxu0  ;;  %v12503_v23 = vsub.f32 %v18205_v37, %v4215_v21  ;;  %v4213_v29 = vmul.f32 0.020408163, %v12303_v34  ;;  %18207 = vst [vmem:[#allocation152_spill] sm:$0xff] %v12510_v3 }
 0x2c4   :  { %v12495_v58 = vpop.xlane.xlu0 %3746  ;;  %4835 = vadd.xlane.f32.xlu1 %v4834_v56  ;;  %v12498_v51 = vadd.f32 %v12357_v36, %v2471_v31  ;;  %v2473_v28 = vpop.f32.mrb[215].mxu0  ;;  %v4214_v56 = vmul.f32 0.020408163, %v12307_v39  ;;  %v4828_v36 = vsel %vm3612_vm0, %v4594_v4, 0.0  ;;  %v3901_v39 = vsel %vm3612_vm0, %v12289_v11, 0.0 }
 0x2c5   :  { %v12500_v52 = vpop.xlane.xlu1 %3749  ;;  %18206 = vst [vmem:[#allocation59_spill] sm:$0xff] %v12503_v23  ;;  %v12528_v48 = vsub.f32 %v11635_v42, %v4213_v29  ;;  %v4599_v21 = vmul.f32 %v12503_v23, %v12503_v23 }
 0x2c6   :  { %18204 = vst [vmem:[#allocation151_spill] sm:$0xff] %v12498_v51  ;;  %v12507_v63 = vpop.f32.mrb[216].mxu1 }
 0x2c7   :  { %4826 = vadd.xlane.f32.xlu0 %v4825_v45  ;;  %v12514_v31 = vpop.f32.mrb[217].mxu1  ;;  %v2476_v28 = vpop.f32.mrb[216].mxu0  ;;  %18209 = vst [vmem:[#allocation154_spill] sm:$0xff] %v12528_v48  ;;  %v18210_v45 = vld [vmem:[#allocation60_spill] sm:$0xff] }
 0x2c8   :  { %v12516_v51 = vpop.xlane.xlu0 %3764  ;;  %4829 = vadd.xlane.f32.xlu1 %v4828_v36  ;;  %v12518_v37 = vpop.f32.mrb[218].mxu1  ;;  %v12521_v7 = vadd.f32 %v12395_v40, %v2476_v28  ;;  %v12535_v36 = vsub.f32 %v18210_v45, %v4214_v56  ;;  %v3904_v40 = vsel %vm3612_vm0, %v12305_v61, 0.0  ;;  %v4600_v28 = vmul.f32 %v12510_v3, %v12510_v3 }
 0x2c9   :  { %v12523_v34 = vpop.xlane.xlu1 %3767  ;;  %v12525_v14 = vpop.f32.mrb[219].mxu1  ;;  %v4219_v56 = vmul.f32 0.020408163, %v12327_v62  ;;  %v4220_v3 = vmul.f32 0.020408163, %v12329_v60 }
 0x2ca   :  { %18208 = vst [vmem:[#allocation153_spill] sm:$0xff] %v12521_v7  ;;  %v2478_v4 = vpop.f32.mrb[217].mxu0  ;;  %18211 = vst [vmem:[#allocation60_spill] sm:$0xff] %v12535_v36 }
 0x2cb   :  { %3902 = vadd.xlane.f32.xlu0 %v3901_v39  ;;  %v2479_v7 = vpop.f32.mrb[218].mxu0  ;;  %v4843_v39 = vsel %vm3612_vm0, %v4599_v21, 0.0  ;;  %v4597_v4 = vmul.f32 %v12528_v48, %v12528_v48 }
 0x2cc   :  { %v12541_v42 = vpop.xlane.xlu0 %3758  ;;  %3905 = vadd.xlane.f32.xlu1 %v3904_v40  ;;  %v12544_v29 = vadd.f32 %v12406_v35, %v2479_v7  ;;  %v2481_v11 = vpop.f32.mrb[219].mxu0  ;;  %v4846_v40 = vsel %vm3612_vm0, %v4600_v28, 0.0  ;;  %v4598_v35 = vmul.f32 %v12535_v36, %v12535_v36  ;;  %v4217_v36 = vmul.f32 0.020408163, %v12341_v41 }
 0x2cd   :  { %v12546_v23 = vpop.xlane.xlu1 %3761 }
 0x2ce   :  { %18212 = vst [vmem:[#allocation155_spill] sm:$0xff] %v12544_v29  ;;  %v12552_v45 = vpop.f32.mrb[220].mxu1  ;;  %v4837_v29 = vsel %vm3612_vm0, %v4597_v4, 0.0  ;;  %v12589_v4 = vsub.f32 %v11671_v26, %v4217_v36 }
 0x2cf   :  { %18213 = vst [vmem:[#allocation156_spill] sm:$0xff] %v12552_v45  ;;  %4844 = vadd.xlane.f32.xlu0 %v4843_v39  ;;  %v12558_v11 = vpop.f32.mrb[221].mxu1  ;;  %v2484_v7 = vpop.f32.mrb[220].mxu0  ;;  %v18216_v39 = vld [vmem:[#allocation61_spill] sm:$0xff] }
 0x2d0   :  { %v12560_v61 = vpop.xlane.xlu0 %3776  ;;  %4847 = vadd.xlane.f32.xlu1 %v4846_v40  ;;  %v12562_v62 = vpop.f32.mrb[222].mxu1  ;;  %v12565_v21 = vadd.f32 %v12386_v12, %v2484_v7  ;;  %v12572_v28 = vsub.f32 %v18216_v39, %v4219_v56  ;;  %v4218_v40 = vmul.f32 0.020408163, %v12343_v18  ;;  %v4840_v12 = vsel %vm3612_vm0, %v4598_v35, 0.0  ;;  %18220 = vst [vmem:[#allocation161_spill] sm:$0xff] %v12589_v4 }
 0x2d1   :  { %18214 = vst [vmem:[#allocation157_spill] sm:$0xff] %v12560_v61  ;;  %v12567_v48 = vpop.xlane.xlu1 %3779  ;;  %v12569_v60 = vpop.f32.mrb[223].mxu1  ;;  %v12577_v61 = vsub.f32 %v11682_v47, %v4220_v3  ;;  %v3907_v47 = vsel %vm3612_vm0, %v12325_v25, 0.0  ;;  %v4224_v25 = vmul.f32 0.020408163, %v12359_v54 }
 0x2d2   :  { %18215 = vst [vmem:[#allocation158_spill] sm:$0xff] %v12565_v21  ;;  %18217 = vst [vmem:[#allocation61_spill] sm:$0xff] %v12572_v28  ;;  %v2486_v45 = vpop.f32.mrb[221].mxu0  ;;  %v4603_v18 = vmul.f32 %v12572_v28, %v12572_v28  ;;  %v4221_v54 = vmul.f32 0.020408163, %v12375_v13 }
 0x2d3   :  { %18218 = vst [vmem:[#allocation159_spill] sm:$0xff] %v12577_v61  ;;  %4838 = vadd.xlane.f32.xlu0 %v4837_v29  ;;  %v2487_v7 = vpop.f32.mrb[222].mxu0  ;;  %v18221_v29 = vld [vmem:[#allocation62_spill] sm:$0xff]  ;;  %v4604_v35 = vmul.f32 %v12577_v61, %v12577_v61  ;;  %v4601_v61 = vmul.f32 %v12589_v4, %v12589_v4  ;;  %v18226_v4 = vld [vmem:[#allocation63_spill] sm:$0xff] }
 0x2d4   :  { %v12581_v21 = vpop.xlane.xlu0 %3770  ;;  %4841 = vadd.xlane.f32.xlu1 %v4840_v12  ;;  %v12584_v56 = vadd.f32 %v12399_v1, %v2487_v7  ;;  %v2489_v39 = vpop.f32.mrb[223].mxu0  ;;  %v12598_v45 = vsub.f32 %v18221_v29, %v4218_v40  ;;  %v3910_v1 = vsel %vm3612_vm0, %v12331_v33, 0.0  ;;  %v4223_v29 = vmul.f32 0.020408163, %v12353_v59 }
 0x2d5   :  { %v12586_v41 = vpop.xlane.xlu1 %3773  ;;  %v4855_v28 = vsel %vm3612_vm0, %v4603_v18, 0.0 }
 0x2d6   :  { %18219 = vst [vmem:[#allocation160_spill] sm:$0xff] %v12584_v56  ;;  %v12595_v3 = vpop.f32.mrb[224].mxu1  ;;  %18222 = vst [vmem:[#allocation62_spill] sm:$0xff] %v12598_v45 }
 0x2d7   :  { %3908 = vadd.xlane.f32.xlu0 %v3907_v47  ;;  %v12604_v26 = vpop.f32.mrb[225].mxu1  ;;  %v2492_v36 = vpop.f32.mrb[224].mxu0 }
 0x2d8   :  { %v12606_v12 = vpop.xlane.xlu0 %3788  ;;  %3911 = vadd.xlane.f32.xlu1 %v3910_v1  ;;  %v12608_v7 = vpop.f32.mrb[226].mxu1  ;;  %v12611_v39 = vadd.f32 %v12427_v9, %v2492_v36  ;;  %v4858_v1 = vsel %vm3612_vm0, %v4604_v35, 0.0  ;;  %v4602_v9 = vmul.f32 %v12598_v45, %v12598_v45  ;;  %v12640_v45 = vsub.f32 %v11718_v57, %v4224_v25 }
 0x2d9   :  { %18223 = vst [vmem:[#allocation162_spill] sm:$0xff] %v12608_v7  ;;  %v12613_v40 = vpop.xlane.xlu1 %3791  ;;  %v12615_v47 = vpop.f32.mrb[227].mxu1  ;;  %v12658_v25 = vsub.f32 %v11707_v30, %v4221_v54 }
 0x2da   :  { %18224 = vst [vmem:[#allocation163_spill] sm:$0xff] %v12611_v39  ;;  %v2494_v33 = vpop.f32.mrb[225].mxu0  ;;  %18228 = vst [vmem:[#allocation165_spill] sm:$0xff] %v12640_v45 }
 0x2db   :  { %4856 = vadd.xlane.f32.xlu0 %v4855_v28  ;;  %v2495_v36 = vpop.f32.mrb[226].mxu0  ;;  %v12633_v33 = vsub.f32 %v18226_v4, %v4223_v29  ;;  %v4849_v28 = vsel %vm3612_vm0, %v4601_v61, 0.0  ;;  %18230 = vst [vmem:[#allocation167_spill] sm:$0xff] %v12658_v25 }
 0x2dc   :  { %v12625_v39 = vpop.xlane.xlu0 %3782  ;;  %4859 = vadd.xlane.f32.xlu1 %v4858_v1  ;;  %v12628_v59 = vadd.f32 %v12439_v27, %v2495_v36  ;;  %v2497_v18 = vpop.f32.mrb[227].mxu0  ;;  %v4222_v1 = vmul.f32 0.020408163, %v12377_v0  ;;  %v4852_v27 = vsel %vm3612_vm0, %v4602_v9, 0.0  ;;  %v3913_v0 = vsel %vm3612_vm0, %v12351_v24, 0.0 }
 0x2dd   :  { %v12630_v7 = vpop.xlane.xlu1 %3785  ;;  %18227 = vst [vmem:[#allocation63_spill] sm:$0xff] %v12633_v33  ;;  %v4607_v29 = vmul.f32 %v12633_v33, %v12633_v33 }
 0x2de   :  { %18225 = vst [vmem:[#allocation164_spill] sm:$0xff] %v12628_v59  ;;  %v12637_v35 = vpop.f32.mrb[228].mxu1 }
 0x2df   :  { %4850 = vadd.xlane.f32.xlu0 %v4849_v28  ;;  %v12644_v36 = vpop.f32.mrb[229].mxu1  ;;  %v2500_v18 = vpop.f32.mrb[228].mxu0  ;;  %v18231_v28 = vld [vmem:[#allocation64_spill] sm:$0xff] }
 0x2e0   :  { %v12646_v59 = vpop.xlane.xlu0 %3800  ;;  %4853 = vadd.xlane.f32.xlu1 %v4852_v27  ;;  %v12648_v4 = vpop.f32.mrb[230].mxu1  ;;  %v12651_v13 = vadd.f32 %v12423_v15, %v2500_v18  ;;  %v12665_v27 = vsub.f32 %v18231_v28, %v4222_v1  ;;  %v3916_v15 = vsel %vm3612_vm0, %v12373_v44, 0.0  ;;  %v4608_v18 = vmul.f32 %v12640_v45, %v12640_v45 }
 0x2e1   :  { %v12653_v61 = vpop.xlane.xlu1 %3803  ;;  %v12655_v57 = vpop.f32.mrb[231].mxu1  ;;  %v4227_v1 = vmul.f32 0.020408163, %v12397_v22  ;;  %v4228_v45 = vmul.f32 0.020408163, %v12404_v55  ;;  %v18239_v55 = vld [vmem:[#allocation65_spill] sm:$0xff] }
 0x2e2   :  { %18229 = vst [vmem:[#allocation166_spill] sm:$0xff] %v12651_v13  ;;  %v2502_v9 = vpop.f32.mrb[229].mxu0  ;;  %18232 = vst [vmem:[#allocation64_spill] sm:$0xff] %v12665_v27 }
 0x2e3   :  { %3914 = vadd.xlane.f32.xlu0 %v3913_v0  ;;  %v2503_v13 = vpop.f32.mrb[230].mxu0  ;;  %v4867_v0 = vsel %vm3612_vm0, %v4607_v29, 0.0  ;;  %v4605_v9 = vmul.f32 %v12658_v25, %v12658_v25 }
 0x2e4   :  { %v12671_v30 = vpop.xlane.xlu0 %3794  ;;  %3917 = vadd.xlane.f32.xlu1 %v3916_v15  ;;  %v12674_v54 = vadd.f32 %v12433_v2, %v2503_v13  ;;  %v2505_v24 = vpop.f32.mrb[231].mxu0  ;;  %v4870_v15 = vsel %vm3612_vm0, %v4608_v18, 0.0  ;;  %v4606_v2 = vmul.f32 %v12665_v27, %v12665_v27  ;;  %v4225_v18 = vmul.f32 0.020408163, %v12414_v10 }
 0x2e5   :  { %v12676_v33 = vpop.xlane.xlu1 %3797  ;;  %v4861_v27 = vsel %vm3612_vm0, %v4605_v9, 0.0 }
 0x2e6   :  { %18233 = vst [vmem:[#allocation168_spill] sm:$0xff] %v12674_v54  ;;  %v12682_v28 = vpop.f32.mrb[232].mxu1 }
 0x2e7   :  { %18234 = vst [vmem:[#allocation169_spill] sm:$0xff] %v12682_v28  ;;  %4868 = vadd.xlane.f32.xlu0 %v4867_v0  ;;  %v12688_v24 = vpop.f32.mrb[233].mxu1  ;;  %v2508_v13 = vpop.f32.mrb[232].mxu0  ;;  %v12700_v0 = vsub.f32 %v18239_v55, %v4227_v1  ;;  %v12717_v55 = vsub.f32 %v11743_v43, %v4225_v18 }
 0x2e8   :  { %18235 = vst [vmem:[#allocation170_spill] sm:$0xff] %v12688_v24  ;;  %v12690_v44 = vpop.xlane.xlu0 %3812  ;;  %4871 = vadd.xlane.f32.xlu1 %v4870_v15  ;;  %v12692_v22 = vpop.f32.mrb[234].mxu1  ;;  %v12695_v29 = vadd.f32 %v12474_v6, %v2508_v13  ;;  %v4226_v15 = vmul.f32 0.020408163, %v12419_v49  ;;  %v4864_v6 = vsel %vm3612_vm0, %v4606_v2, 0.0 }
 0x2e9   :  { %18236 = vst [vmem:[#allocation171_spill] sm:$0xff] %v12690_v44  ;;  %18237 = vst [vmem:[#allocation172_spill] sm:$0xff] %v12692_v22  ;;  %v12697_v25 = vpop.f32.mrb[235].mxu1  ;;  %v12703_v28 = vpop.xlane.xlu1 %3815  ;;  %v12707_v44 = vsub.f32 %v11754_v20, %v4228_v45  ;;  %v3919_v20 = vsel %vm3612_vm0, %v12402_v16, 0.0  ;;  %v4611_v49 = vmul.f32 %v12700_v0, %v12700_v0  ;;  %v4232_v16 = vmul.f32 0.020408163, %v12437_v19 }
 0x2ea   :  { %18238 = vst [vmem:[#allocation173_spill] sm:$0xff] %v12695_v29  ;;  %18240 = vst [vmem:[#allocation65_spill] sm:$0xff] %v12700_v0  ;;  %v2510_v24 = vpop.f32.mrb[233].mxu0 }
 0x2eb   :  { %18241 = vst [vmem:[#allocation174_spill] sm:$0xff] %v12707_v44  ;;  %4862 = vadd.xlane.f32.xlu0 %v4861_v27  ;;  %v2511_v13 = vpop.f32.mrb[234].mxu0  ;;  %18243 = vst [vmem:[#allocation176_spill] sm:$0xff] %v12717_v55  ;;  %v18245_v27 = vld [vmem:[#allocation66_spill] sm:$0xff]  ;;  %v4612_v43 = vmul.f32 %v12707_v44, %v12707_v44  ;;  %v4879_v0 = vsel %vm3612_vm0, %v4611_v49, 0.0  ;;  %v4609_v44 = vmul.f32 %v12717_v55, %v12717_v55 }
 0x2ec   :  { %v12711_v22 = vpop.xlane.xlu0 %3806  ;;  %4865 = vadd.xlane.f32.xlu1 %v4864_v6  ;;  %v12714_v1 = vadd.f32 %v12485_v17, %v2511_v13  ;;  %v2513_v10 = vpop.f32.mrb[235].mxu0  ;;  %v12726_v9 = vsub.f32 %v18245_v27, %v4226_v15  ;;  %v3922_v17 = vsel %vm3612_vm0, %v12417_v50, 0.0  ;;  %v4229_v55 = vmul.f32 0.020408163, %v12451_v46  ;;  %v18259_v46 = vld [vmem:[#allocation2_spill] sm:$0xff] }
 0x2ed   :  { %v12734_v18 = vpop.xlane.xlu1 %3809  ;;  %v18250_v10 = vld [vmem:[#allocation144_spill] sm:$0xff] }
 0x2ee   :  { %18242 = vst [vmem:[#allocation175_spill] sm:$0xff] %v12714_v1  ;;  %v12721_v45 = vpop.f32.mrb[236].mxu1  ;;  %18246 = vst [vmem:[#allocation66_spill] sm:$0xff] %v12726_v9 }
 0x2ef   :  { %18244 = vst [vmem:[#allocation177_spill] sm:$0xff] %v12721_v45  ;;  %3920 = vadd.xlane.f32.xlu0 %v3919_v20  ;;  %v12730_v2 = vpop.f32.mrb[237].mxu1  ;;  %v2516_v24 = vpop.f32.mrb[236].mxu0  ;;  %v4231_v20 = vmul.f32 0.020408163, %v18250_v10  ;;  %v18252_v45 = vld [vmem:[#allocation67_spill] sm:$0xff] }
 0x2f0   :  { %3923 = vadd.xlane.f32.xlu1 %v3922_v17  ;;  %v12736_v6 = vpop.f32.mrb[238].mxu1  ;;  %v12739_v13 = vadd.f32 %v12465_v32, %v2516_v24  ;;  %v12744_v27 = vpop.xlane.xlu0 %3824  ;;  %v4882_v17 = vsel %vm3612_vm0, %v4612_v43, 0.0  ;;  %v4610_v32 = vmul.f32 %v12726_v9, %v12726_v9  ;;  %v18254_v43 = vld [vmem:[#allocation69_spill] sm:$0xff]  ;;  %v4230_v9 = vmul.f32 0.020408163, %v12456_v53 }
 0x2f1   :  { %18247 = vst [vmem:[#allocation178_spill] sm:$0xff] %v12736_v6  ;;  %v12741_v15 = vpop.f32.mrb[239].mxu1  ;;  %v2518_v50 = vpop.f32.mrb[237].mxu0  ;;  %v12757_v49 = vsub.f32 %v18252_v45, %v4231_v20 }
 0x2f2   :  { %18248 = vst [vmem:[#allocation179_spill] sm:$0xff] %v12739_v13  ;;  %18249 = vst [vmem:[#allocation180_spill] sm:$0xff] %v12741_v15  ;;  %v2519_v24 = vpop.f32.mrb[238].mxu0  ;;  %v12760_v50 = vpop.xlane.xlu1 %3827  ;;  %v12764_v13 = vsub.f32 %v18254_v43, %v4232_v16  ;;  %v4876_v45 = vsel %vm3612_vm0, %v4610_v32, 0.0  ;;  %v18262_v16 = vld [vmem:[#allocation5_spill] sm:$0xff]  ;;  %v18264_v43 = vld [vmem:[#allocation68_spill] sm:$0xff] }
 0x2f3   :  { %4880 = vadd.xlane.f32.xlu0 %v4879_v0  ;;  %v12754_v10 = vadd.f32 %v12478_v8, %v2519_v24  ;;  %v2521_v6 = vpop.f32.mrb[239].mxu0  ;;  %18253 = vst [vmem:[#allocation67_spill] sm:$0xff] %v12757_v49  ;;  %v4873_v0 = vsel %vm3612_vm0, %v4609_v44, 0.0 }
 0x2f4   :  { %4883 = vadd.xlane.f32.xlu1 %v4882_v17  ;;  %18255 = vst [vmem:[#allocation69_spill] sm:$0xff] %v12764_v13  ;;  %v18256_v17 = vld [vmem:[#allocation4_spill] sm:$0xff]  ;;  %v12771_v20 = vpop.xlane.xlu0 %3818 }
 0x2f5   :  { %18251 = vst [vmem:[#allocation144_spill] sm:$0xff] %v12754_v10  ;;  %18258 = vst [vmem:[#allocation181_spill] sm:$0xff] %v12771_v20 }
 0x2f6   :  { %v9547_v19 = vpop.f32.mrb[240].mxu1 }
 0x2f7   :  { %v12768_v15 = vadd.f32 %v9547_v19, %v18256_v17  ;;  %v3421_v8 = vpop.f32.mrb[241].mxu1  ;;  %4874 = vadd.xlane.f32.xlu0 %v4873_v0  ;;  %v2524_v6 = vpop.f32.mrb[240].mxu0  ;;  %v12783_v17 = vsub.f32 %v18264_v43, %v4229_v55  ;;  %v18266_v0 = vld [vmem:[#allocation3_spill] sm:$0xff]  ;;  %v4616_v55 = vmul.f32 %v12764_v13, %v12764_v13 }
 0x2f8   :  { %v12774_v24 = vadd.f32 %v3421_v8, %v18259_v46  ;;  %v9548_v10 = vpop.f32.mrb[242].mxu1  ;;  %4877 = vadd.xlane.f32.xlu1 %v4876_v45  ;;  %v12777_v44 = vadd.f32 %v12514_v31, %v2524_v6  ;;  %v4615_v8 = vmul.f32 %v12757_v49, %v12757_v49  ;;  %v2526_v45 = vpop.f32.mrb[241].mxu0  ;;  %v18269_v46 = vld [vmem:[#allocation70_spill] sm:$0xff] }
 0x2f9   :  { %18257 = vst [vmem:[#allocation4_spill] sm:$0xff] %v12768_v15  ;;  %v12780_v53 = vadd.f32 %v9548_v10, %v18262_v16  ;;  %v3424_v19 = vpop.f32.mrb[243].mxu1  ;;  %18265 = vst [vmem:[#allocation68_spill] sm:$0xff] %v12783_v17  ;;  %v18268_v15 = vld [vmem:[#allocation145_spill] sm:$0xff]  ;;  %v12793_v31 = vsub.f32 %v18269_v46, %v4230_v9  ;;  %v3928_v10 = vsel %vm3612_vm0, %v12454_v38, 0.0  ;;  %v2527_v6 = vpop.f32.mrb[242].mxu0  ;;  %v4613_v46 = vmul.f32 %v12783_v17, %v12783_v17 }
 0x2fa   :  { %18260 = vst [vmem:[#allocation2_spill] sm:$0xff] %v12774_v24  ;;  %18261 = vst [vmem:[#allocation182_spill] sm:$0xff] %v12777_v44  ;;  %v12786_v32 = vadd.f32 %v3424_v19, %v18266_v0  ;;  %v3925_v20 = vsel %vm3612_vm0, %v18268_v15, 0.0  ;;  %v12799_v16 = vpop.xlane.xlu1 %3821  ;;  %v12802_v19 = vadd.f32 %v12525_v14, %v2527_v6  ;;  %v2529_v43 = vpop.f32.mrb[243].mxu0  ;;  %v4235_v0 = vmul.f32 0.020408163, %v12476_v5 }
 0x2fb   :  { %18263 = vst [vmem:[#allocation5_spill] sm:$0xff] %v12780_v53  ;;  %18270 = vst [vmem:[#allocation70_spill] sm:$0xff] %v12793_v31  ;;  %3926 = vadd.xlane.f32.xlu0 %v3925_v20  ;;  %v12805_v45 = vpop.xlane.xlu0 %3836  ;;  %v4891_v20 = vsel %vm3612_vm0, %v4615_v8, 0.0  ;;  %v18272_v49 = vld [vmem:[#allocation150_spill] sm:$0xff]  ;;  %v18273_v38 = vld [vmem:[#allocation8_spill] sm:$0xff]  ;;  %v4894_v14 = vsel %vm3612_vm0, %v4616_v55, 0.0  ;;  %v4614_v5 = vmul.f32 %v12793_v31, %v12793_v31 }
 0x2fc   :  { %18267 = vst [vmem:[#allocation3_spill] sm:$0xff] %v12786_v32  ;;  %3929 = vadd.xlane.f32.xlu1 %v3928_v10  ;;  %18271 = vst [vmem:[#allocation183_spill] sm:$0xff] %v12802_v19  ;;  %v4236_v13 = vmul.f32 0.020408163, %v18272_v49  ;;  %v18275_v43 = vld [vmem:[#allocation6_spill] sm:$0xff]  ;;  %v18278_v49 = vld [vmem:[#allocation9_spill] sm:$0xff] }
 0x2fd   :  { %v4233_v55 = vmul.f32 0.020408163, %v12495_v58  ;;  %v18282_v31 = vld [vmem:[#allocation7_spill] sm:$0xff] }
 0x2fe   :  { %v9551_v9 = vpop.f32.mrb[244].mxu1 }
 0x2ff   :  { %v12812_v15 = vadd.f32 %v9551_v9, %v18273_v38  ;;  %v3437_v10 = vpop.f32.mrb[245].mxu1  ;;  %4892 = vadd.xlane.f32.xlu0 %v4891_v20  ;;  %v2532_v6 = vpop.f32.mrb[244].mxu0  ;;  %v18280_v9 = vld [vmem:[#allocation71_spill] sm:$0xff] }
 0x300   :  { %v12818_v32 = vadd.f32 %v3437_v10, %v18275_v43  ;;  %v9552_v8 = vpop.f32.mrb[246].mxu1  ;;  %4895 = vadd.xlane.f32.xlu1 %v4894_v14  ;;  %v12821_v17 = vadd.f32 %v12507_v63, %v2532_v6  ;;  %v12827_v20 = vsub.f32 %v18280_v9, %v4235_v0  ;;  %v4885_v10 = vsel %vm3612_vm0, %v4613_v46, 0.0  ;;  %v2534_v14 = vpop.f32.mrb[245].mxu0  ;;  %v18284_v43 = vld [vmem:[#allocation73_spill] sm:$0xff] }
 0x301   :  { %18274 = vst [vmem:[#allocation150_spill] sm:$0xff] %v12812_v15  ;;  %v12824_v24 = vadd.f32 %v9552_v8, %v18278_v49  ;;  %v3440_v38 = vpop.f32.mrb[247].mxu1  ;;  %v12830_v15 = vpop.xlane.xlu1 %3839  ;;  %v12837_v63 = vsub.f32 %v18284_v43, %v4236_v13  ;;  %v4234_v6 = vmul.f32 0.020408163, %v12500_v52  ;;  %v4888_v8 = vsel %vm3612_vm0, %v4614_v5, 0.0  ;;  %v18289_v14 = vld [vmem:[#allocation149_spill] sm:$0xff] }
 0x302   :  { %18276 = vst [vmem:[#allocation8_spill] sm:$0xff] %v12818_v32  ;;  %18277 = vst [vmem:[#allocation6_spill] sm:$0xff] %v12821_v17  ;;  %v12833_v53 = vadd.f32 %v3440_v38, %v18282_v31  ;;  %v2535_v0 = vpop.f32.mrb[246].mxu0  ;;  %v12841_v49 = vpop.xlane.xlu0 %3830  ;;  %v18287_v38 = vld [vmem:[#allocation72_spill] sm:$0xff]  ;;  %v3931_v13 = vsel %vm3612_vm0, %v18289_v14, 0.0  ;;  %v4619_v52 = vmul.f32 %v12827_v20, %v12827_v20  ;;  %v18295_v14 = vld [vmem:[#allocation10_spill] sm:$0xff] }
 0x303   :  { %18279 = vst [vmem:[#allocation9_spill] sm:$0xff] %v12824_v24  ;;  %18281 = vst [vmem:[#allocation71_spill] sm:$0xff] %v12827_v20  ;;  %4886 = vadd.xlane.f32.xlu0 %v4885_v10  ;;  %v12844_v58 = vadd.f32 %v12518_v37, %v2535_v0  ;;  %v2537_v31 = vpop.f32.mrb[247].mxu0  ;;  %v12847_v9 = vsub.f32 %v18287_v38, %v4233_v55  ;;  %v18290_v10 = vld [vmem:[#allocation74_spill] sm:$0xff]  ;;  %v18292_v43 = vld [vmem:[#allocation12_spill] sm:$0xff]  ;;  %v4620_v55 = vmul.f32 %v12837_v63, %v12837_v63 }
 0x304   :  { %18283 = vst [vmem:[#allocation7_spill] sm:$0xff] %v12833_v53  ;;  %18285 = vst [vmem:[#allocation73_spill] sm:$0xff] %v12837_v63  ;;  %4889 = vadd.xlane.f32.xlu1 %v4888_v8  ;;  %v12854_v5 = vsub.f32 %v18290_v10, %v4234_v6  ;;  %v18294_v37 = vld [vmem:[#allocation151_spill] sm:$0xff]  ;;  %v4903_v24 = vsel %vm3612_vm0, %v4619_v52, 0.0 }
 0x305   :  { %18286 = vst [vmem:[#allocation184_spill] sm:$0xff] %v12844_v58  ;;  %18288 = vst [vmem:[#allocation72_spill] sm:$0xff] %v12847_v9  ;;  %v3934_v0 = vsel %vm3612_vm0, %v18294_v37, 0.0  ;;  %v12863_v38 = vpop.xlane.xlu1 %3833  ;;  %v18300_v63 = vld [vmem:[#allocation11_spill] sm:$0xff] }
 0x306   :  { %v9555_v46 = vpop.f32.mrb[248].mxu1  ;;  %18291 = vst [vmem:[#allocation74_spill] sm:$0xff] %v12854_v5  ;;  %v12875_v37 = vpop.xlane.xlu0 %4772 }
 0x307   :  { %v12857_v53 = vadd.f32 %v9555_v46, %v18292_v43  ;;  %v3453_v8 = vpop.f32.mrb[249].mxu1  ;;  %3932 = vadd.xlane.f32.xlu0 %v3931_v13  ;;  %v2540_v31 = vpop.f32.mrb[248].mxu0  ;;  %v18298_v46 = vld [vmem:[#allocation13_spill] sm:$0xff]  ;;  %v4239_v43 = vmul.f32 0.020408163, %v12516_v51 }
 0x308   :  { %v12866_v32 = vadd.f32 %v3453_v8, %v18295_v14  ;;  %v9556_v20 = vpop.f32.mrb[250].mxu1  ;;  %3935 = vadd.xlane.f32.xlu1 %v3934_v0  ;;  %v12869_v6 = vadd.f32 %v12558_v11, %v2540_v31  ;;  %v4617_v14 = vmul.f32 %v12847_v9, %v12847_v9  ;;  %v2542_v8 = vpop.f32.mrb[249].mxu0  ;;  %v4240_v11 = vmul.f32 0.020408163, %v12523_v34 }
 0x309   :  { %18293 = vst [vmem:[#allocation12_spill] sm:$0xff] %v12857_v53  ;;  %v12872_v10 = vadd.f32 %v9556_v20, %v18298_v46  ;;  %v3456_v13 = vpop.f32.mrb[251].mxu1  ;;  %v4906_v20 = vsel %vm3612_vm0, %v4620_v55, 0.0  ;;  %v4618_v0 = vmul.f32 %v12854_v5, %v12854_v5  ;;  %v2543_v51 = vpop.f32.mrb[250].mxu0  ;;  %v18303_v46 = vld [vmem:[#allocation75_spill] sm:$0xff]  ;;  %v18306_v55 = vld [vmem:[#allocation77_spill] sm:$0xff] }
 0x30a   :  { %18296 = vst [vmem:[#allocation10_spill] sm:$0xff] %v12866_v32  ;;  %18297 = vst [vmem:[#allocation185_spill] sm:$0xff] %v12869_v6  ;;  %v12878_v53 = vadd.f32 %v3456_v13, %v18300_v63  ;;  %v12888_v31 = vadd.f32 %v12569_v60, %v2543_v51  ;;  %v2545_v63 = vpop.f32.mrb[251].mxu0  ;;  %v12891_v52 = vsub.f32 %v18303_v46, %v4239_v43  ;;  %v4237_v13 = vmul.f32 0.020408163, %v12541_v42  ;;  %v12894_v8 = vpop.xlane.xlu1 %4775  ;;  %v18311_v42 = vld [vmem:[#allocation14_spill] sm:$0xff] }
 0x30b   :  { %18299 = vst [vmem:[#allocation13_spill] sm:$0xff] %v12872_v10  ;;  %4904 = vadd.xlane.f32.xlu0 %v4903_v24  ;;  %18305 = vst [vmem:[#allocation187_spill] sm:$0xff] %v12894_v8  ;;  %v4897_v24 = vsel %vm3612_vm0, %v4617_v14, 0.0  ;;  %v12898_v9 = vsub.f32 %v18306_v55, %v4240_v11  ;;  %v4238_v5 = vmul.f32 0.020408163, %v12546_v23  ;;  %v4900_v43 = vsel %vm3612_vm0, %v4618_v0, 0.0  ;;  %v12905_v63 = vpop.xlane.xlu0 %4766 }
 0x30c   :  { %18301 = vst [vmem:[#allocation11_spill] sm:$0xff] %v12878_v53  ;;  %4907 = vadd.xlane.f32.xlu1 %v4906_v20  ;;  %18302 = vst [vmem:[#allocation186_spill] sm:$0xff] %v12888_v31  ;;  %v18308_v20 = vld [vmem:[#allocation16_spill] sm:$0xff]  ;;  %v18315_v55 = vld [vmem:[#allocation17_spill] sm:$0xff] }
 0x30d   :  { %18304 = vst [vmem:[#allocation75_spill] sm:$0xff] %v12891_v52  ;;  %18307 = vst [vmem:[#allocation77_spill] sm:$0xff] %v12898_v9  ;;  %v18313_v14 = vld [vmem:[#allocation156_spill] sm:$0xff]  ;;  %v18321_v8 = vld [vmem:[#allocation153_spill] sm:$0xff] }
 0x30e   :  { %v9559_v34 = vpop.f32.mrb[252].mxu1  ;;  %18310 = vst [vmem:[#allocation188_spill] sm:$0xff] %v12905_v63  ;;  %v3937_v63 = vsel %vm3612_vm0, %v18321_v8, 0.0 }
 0x30f   :  { %v12902_v53 = vadd.f32 %v9559_v34, %v18308_v20  ;;  %v3469_v60 = vpop.f32.mrb[253].mxu1  ;;  %4898 = vadd.xlane.f32.xlu0 %v4897_v24  ;;  %v2548_v51 = vpop.f32.mrb[252].mxu0  ;;  %v18317_v20 = vld [vmem:[#allocation76_spill] sm:$0xff]  ;;  %v18319_v24 = vld [vmem:[#allocation15_spill] sm:$0xff] }
 0x310   :  { %v12908_v46 = vadd.f32 %v3469_v60, %v18311_v42  ;;  %v9560_v32 = vpop.f32.mrb[254].mxu1  ;;  %4901 = vadd.xlane.f32.xlu1 %v4900_v43  ;;  %v12911_v11 = vadd.f32 %v18313_v14, %v2548_v51  ;;  %v4623_v60 = vmul.f32 %v12891_v52, %v12891_v52  ;;  %v2550_v43 = vpop.f32.mrb[253].mxu0  ;;  %v18322_v42 = vld [vmem:[#allocation78_spill] sm:$0xff]  ;;  %v18326_v52 = vld [vmem:[#allocation157_spill] sm:$0xff] }
 0x311   :  { %18309 = vst [vmem:[#allocation16_spill] sm:$0xff] %v12902_v53  ;;  %v12914_v23 = vadd.f32 %v9560_v32, %v18315_v55  ;;  %v3472_v34 = vpop.f32.mrb[255].mxu1  ;;  %v12917_v53 = vsub.f32 %v18317_v20, %v4237_v13  ;;  %v12927_v51 = vsub.f32 %v18322_v42, %v4238_v5  ;;  %v18324_v32 = vld [vmem:[#allocation155_spill] sm:$0xff]  ;;  %v4624_v13 = vmul.f32 %v12898_v9, %v12898_v9  ;;  %v2551_v55 = vpop.f32.mrb[254].mxu0 }
 0x312   :  { %18312 = vst [vmem:[#allocation14_spill] sm:$0xff] %v12908_v46  ;;  %18314 = vst [vmem:[#allocation156_spill] sm:$0xff] %v12911_v11  ;;  %v12920_v0 = vadd.f32 %v3472_v34, %v18319_v24  ;;  %v3940_v14 = vsel %vm3612_vm0, %v18324_v32, 0.0  ;;  %v12933_v34 = vpop.xlane.xlu1 %4769  ;;  %v12936_v20 = vadd.f32 %v12562_v62, %v2551_v55  ;;  %v2553_v24 = vpop.f32.mrb[255].mxu0  ;;  %v4243_v43 = vmul.f32 0.020408163, %v18326_v52 }
 0x313   :  { %18316 = vst [vmem:[#allocation17_spill] sm:$0xff] %v12914_v23  ;;  %18318 = vst [vmem:[#allocation76_spill] sm:$0xff] %v12917_v53  ;;  %3938 = vadd.xlane.f32.xlu0 %v3937_v63  ;;  %v12939_v8 = vpop.xlane.xlu0 %3848  ;;  %v4915_v63 = vsel %vm3612_vm0, %v4623_v60, 0.0  ;;  %v4621_v42 = vmul.f32 %v12917_v53, %v12917_v53  ;;  %v4244_v9 = vmul.f32 0.020408163, %v12567_v48  ;;  %v18327_v32 = vld [vmem:[#allocation20_spill] sm:$0xff]  ;;  %v4622_v52 = vmul.f32 %v12927_v51, %v12927_v51 }
 0x314   :  { %18320 = vst [vmem:[#allocation15_spill] sm:$0xff] %v12920_v0  ;;  %18323 = vst [vmem:[#allocation78_spill] sm:$0xff] %v12927_v51  ;;  %3941 = vadd.xlane.f32.xlu1 %v3940_v14  ;;  %v4918_v62 = vsel %vm3612_vm0, %v4624_v13, 0.0  ;;  %v18329_v24 = vld [vmem:[#allocation18_spill] sm:$0xff]  ;;  %v18332_v48 = vld [vmem:[#allocation21_spill] sm:$0xff] }
 0x315   :  { %18325 = vst [vmem:[#allocation189_spill] sm:$0xff] %v12936_v20  ;;  %v4241_v13 = vmul.f32 0.020408163, %v12581_v21  ;;  %v18336_v51 = vld [vmem:[#allocation19_spill] sm:$0xff] }
 0x316   :  { %v9563_v5 = vpop.f32.mrb[0].mxu1 }
 0x317   :  { %v12946_v0 = vadd.f32 %v9563_v5, %v18327_v32  ;;  %v3485_v14 = vpop.f32.mrb[1].mxu1  ;;  %4916 = vadd.xlane.f32.xlu0 %v4915_v63  ;;  %v2556_v55 = vpop.f32.mrb[0].mxu0  ;;  %v18334_v5 = vld [vmem:[#allocation79_spill] sm:$0xff] }
 0x318   :  { %v12952_v23 = vadd.f32 %v3485_v14, %v18329_v24  ;;  %v9564_v60 = vpop.f32.mrb[2].mxu1  ;;  %4919 = vadd.xlane.f32.xlu1 %v4918_v62  ;;  %v12955_v53 = vadd.f32 %v12604_v26, %v2556_v55  ;;  %v12961_v63 = vsub.f32 %v18334_v5, %v4243_v43  ;;  %v4909_v14 = vsel %vm3612_vm0, %v4621_v42, 0.0  ;;  %v2558_v62 = vpop.f32.mrb[1].mxu0  ;;  %v18338_v24 = vld [vmem:[#allocation81_spill] sm:$0xff] }
 0x319   :  { %18328 = vst [vmem:[#allocation157_spill] sm:$0xff] %v12946_v0  ;;  %v12958_v20 = vadd.f32 %v9564_v60, %v18332_v48  ;;  %v3488_v32 = vpop.f32.mrb[3].mxu1  ;;  %v12964_v0 = vpop.xlane.xlu1 %3851  ;;  %v12971_v26 = vsub.f32 %v18338_v24, %v4244_v9  ;;  %v4242_v55 = vmul.f32 0.020408163, %v12586_v41  ;;  %v4912_v60 = vsel %vm3612_vm0, %v4622_v52, 0.0  ;;  %v18343_v62 = vld [vmem:[#allocation158_spill] sm:$0xff] }
 0x31a   :  { %18330 = vst [vmem:[#allocation20_spill] sm:$0xff] %v12952_v23  ;;  %18331 = vst [vmem:[#allocation18_spill] sm:$0xff] %v12955_v53  ;;  %v12967_v46 = vadd.f32 %v3488_v32, %v18336_v51  ;;  %v2559_v43 = vpop.f32.mrb[2].mxu0  ;;  %v12975_v48 = vpop.xlane.xlu0 %3842  ;;  %v18341_v32 = vld [vmem:[#allocation80_spill] sm:$0xff]  ;;  %v3943_v9 = vsel %vm3612_vm0, %v18343_v62, 0.0  ;;  %v4627_v41 = vmul.f32 %v12961_v63, %v12961_v63 }
 0x31b   :  { %18333 = vst [vmem:[#allocation21_spill] sm:$0xff] %v12958_v20  ;;  %18335 = vst [vmem:[#allocation79_spill] sm:$0xff] %v12961_v63  ;;  %4910 = vadd.xlane.f32.xlu0 %v4909_v14  ;;  %v12978_v21 = vadd.f32 %v12615_v47, %v2559_v43  ;;  %v2561_v51 = vpop.f32.mrb[3].mxu0  ;;  %v12981_v5 = vsub.f32 %v18341_v32, %v4241_v13  ;;  %v18344_v14 = vld [vmem:[#allocation82_spill] sm:$0xff]  ;;  %v18346_v24 = vld [vmem:[#allocation24_spill] sm:$0xff]  ;;  %v3946_v47 = vsel %vm3612_vm0, %v12584_v56, 0.0 }
 0x31c   :  { %18337 = vst [vmem:[#allocation19_spill] sm:$0xff] %v12967_v46  ;;  %18339 = vst [vmem:[#allocation81_spill] sm:$0xff] %v12971_v26  ;;  %4913 = vadd.xlane.f32.xlu1 %v4912_v60  ;;  %v12988_v52 = vsub.f32 %v18344_v14, %v4242_v55  ;;  %v4628_v13 = vmul.f32 %v12971_v26, %v12971_v26  ;;  %v18348_v32 = vld [vmem:[#allocation22_spill] sm:$0xff]  ;;  %v18353_v26 = vld [vmem:[#allocation23_spill] sm:$0xff] }
 0x31d   :  { %18340 = vst [vmem:[#allocation190_spill] sm:$0xff] %v12978_v21  ;;  %18342 = vst [vmem:[#allocation80_spill] sm:$0xff] %v12981_v5  ;;  %v12997_v51 = vpop.xlane.xlu1 %3845  ;;  %v4927_v21 = vsel %vm3612_vm0, %v4627_v41, 0.0 }
 0x31e   :  { %v9567_v42 = vpop.f32.mrb[4].mxu1  ;;  %18345 = vst [vmem:[#allocation82_spill] sm:$0xff] %v12988_v52  ;;  %v13009_v56 = vpop.xlane.xlu0 %4784 }
 0x31f   :  { %v12991_v46 = vadd.f32 %v9567_v42, %v18346_v24  ;;  %v3501_v60 = vpop.f32.mrb[5].mxu1  ;;  %3944 = vadd.xlane.f32.xlu0 %v3943_v9  ;;  %v2564_v43 = vpop.f32.mrb[4].mxu0  ;;  %v18351_v42 = vld [vmem:[#allocation25_spill] sm:$0xff]  ;;  %v4247_v24 = vmul.f32 0.020408163, %v12606_v12 }
 0x320   :  { %v13000_v62 = vadd.f32 %v3501_v60, %v18348_v32  ;;  %v9568_v63 = vpop.f32.mrb[6].mxu1  ;;  %3947 = vadd.xlane.f32.xlu1 %v3946_v47  ;;  %v13003_v55 = vadd.f32 %v12595_v3, %v2564_v43  ;;  %v4625_v60 = vmul.f32 %v12981_v5, %v12981_v5  ;;  %v2566_v47 = vpop.f32.mrb[5].mxu0  ;;  %v4248_v3 = vmul.f32 0.020408163, %v12613_v40  ;;  %v18355_v32 = vld [vmem:[#allocation162_spill] sm:$0xff] }
 0x321   :  { %18347 = vst [vmem:[#allocation24_spill] sm:$0xff] %v12991_v46  ;;  %v13006_v14 = vadd.f32 %v9568_v63, %v18351_v42  ;;  %v3504_v9 = vpop.f32.mrb[7].mxu1  ;;  %v4930_v63 = vsel %vm3612_vm0, %v4628_v13, 0.0  ;;  %v4626_v43 = vmul.f32 %v12988_v52, %v12988_v52  ;;  %v2567_v12 = vpop.f32.mrb[6].mxu0  ;;  %v4245_v5 = vmul.f32 0.020408163, %v12625_v39 }
 0x322   :  { %18349 = vst [vmem:[#allocation22_spill] sm:$0xff] %v13000_v62  ;;  %18350 = vst [vmem:[#allocation191_spill] sm:$0xff] %v13003_v55  ;;  %v13012_v20 = vadd.f32 %v3504_v9, %v18353_v26  ;;  %v13022_v42 = vadd.f32 %v18355_v32, %v2567_v12  ;;  %v2569_v26 = vpop.f32.mrb[7].mxu0  ;;  %v18357_v9 = vld [vmem:[#allocation83_spill] sm:$0xff]  ;;  %v13028_v47 = vpop.xlane.xlu1 %4787  ;;  %v18359_v13 = vld [vmem:[#allocation85_spill] sm:$0xff] }
 0x323   :  { %18352 = vst [vmem:[#allocation25_spill] sm:$0xff] %v13006_v14  ;;  %4928 = vadd.xlane.f32.xlu0 %v4927_v21  ;;  %v13025_v41 = vsub.f32 %v18357_v9, %v4247_v24  ;;  %v4921_v21 = vsel %vm3612_vm0, %v4625_v60, 0.0  ;;  %v4246_v52 = vmul.f32 0.020408163, %v12630_v7  ;;  %v4924_v24 = vsel %vm3612_vm0, %v4626_v43, 0.0  ;;  %v13039_v26 = vpop.xlane.xlu0 %4778  ;;  %v18363_v39 = vld [vmem:[#allocation26_spill] sm:$0xff] }
 0x324   :  { %18354 = vst [vmem:[#allocation23_spill] sm:$0xff] %v13012_v20  ;;  %4931 = vadd.xlane.f32.xlu1 %v4930_v63  ;;  %18356 = vst [vmem:[#allocation162_spill] sm:$0xff] %v13022_v42  ;;  %v13032_v20 = vsub.f32 %v18359_v13, %v4248_v3  ;;  %v18361_v63 = vld [vmem:[#allocation28_spill] sm:$0xff]  ;;  %v18366_v3 = vld [vmem:[#allocation29_spill] sm:$0xff] }
 0x325   :  { %18358 = vst [vmem:[#allocation83_spill] sm:$0xff] %v13025_v41  ;;  %v18368_v13 = vld [vmem:[#allocation84_spill] sm:$0xff] }
 0x326   :  { %v9571_v40 = vpop.f32.mrb[8].mxu1  ;;  %18360 = vst [vmem:[#allocation85_spill] sm:$0xff] %v13032_v20 }
 0x327   :  { %v13036_v14 = vadd.f32 %v9571_v40, %v18361_v63  ;;  %v3517_v12 = vpop.f32.mrb[9].mxu1  ;;  %4922 = vadd.xlane.f32.xlu0 %v4921_v21  ;;  %v2572_v32 = vpop.f32.mrb[8].mxu0  ;;  %v13051_v63 = vsub.f32 %v18368_v13, %v4245_v5  ;;  %v18370_v21 = vld [vmem:[#allocation27_spill] sm:$0xff]  ;;  %v4632_v5 = vmul.f32 %v13032_v20, %v13032_v20  ;;  %v4252_v20 = vmul.f32 0.020408163, %v12653_v61  ;;  %v18382_v61 = vld [vmem:[#allocation33_spill] sm:$0xff] }
 0x328   :  { %v13042_v9 = vadd.f32 %v3517_v12, %v18363_v39  ;;  %v9572_v42 = vpop.f32.mrb[10].mxu1  ;;  %4925 = vadd.xlane.f32.xlu1 %v4924_v24  ;;  %v13045_v60 = vadd.f32 %v12644_v36, %v2572_v32  ;;  %v4631_v12 = vmul.f32 %v13025_v41, %v13025_v41  ;;  %v2574_v24 = vpop.f32.mrb[9].mxu0  ;;  %v18373_v39 = vld [vmem:[#allocation86_spill] sm:$0xff] }
 0x329   :  { %18362 = vst [vmem:[#allocation28_spill] sm:$0xff] %v13036_v14  ;;  %v13048_v7 = vadd.f32 %v9572_v42, %v18366_v3  ;;  %v3520_v40 = vpop.f32.mrb[11].mxu1  ;;  %18369 = vst [vmem:[#allocation84_spill] sm:$0xff] %v13051_v63  ;;  %v18372_v14 = vld [vmem:[#allocation163_spill] sm:$0xff]  ;;  %v13061_v36 = vsub.f32 %v18373_v39, %v4246_v52  ;;  %v18375_v42 = vld [vmem:[#allocation164_spill] sm:$0xff]  ;;  %v2575_v3 = vpop.f32.mrb[10].mxu0  ;;  %v4629_v39 = vmul.f32 %v13051_v63, %v13051_v63 }
 0x32a   :  { %18364 = vst [vmem:[#allocation26_spill] sm:$0xff] %v13042_v9  ;;  %18365 = vst [vmem:[#allocation192_spill] sm:$0xff] %v13045_v60  ;;  %v13054_v43 = vadd.f32 %v3520_v40, %v18370_v21  ;;  %v3949_v62 = vsel %vm3612_vm0, %v18372_v14, 0.0  ;;  %v3952_v32 = vsel %vm3612_vm0, %v18375_v42, 0.0  ;;  %v13067_v40 = vpop.xlane.xlu1 %4781  ;;  %v13070_v13 = vadd.f32 %v12655_v57, %v2575_v3  ;;  %v2577_v21 = vpop.f32.mrb[11].mxu0  ;;  %v18377_v42 = vld [vmem:[#allocation32_spill] sm:$0xff] }
 0x32b   :  { %18367 = vst [vmem:[#allocation29_spill] sm:$0xff] %v13048_v7  ;;  %18374 = vst [vmem:[#allocation86_spill] sm:$0xff] %v13061_v36  ;;  %3950 = vadd.xlane.f32.xlu0 %v3949_v62  ;;  %v4251_v24 = vmul.f32 0.020408163, %v12646_v59  ;;  %v13073_v41 = vpop.xlane.xlu0 %3860  ;;  %v4939_v62 = vsel %vm3612_vm0, %v4631_v12, 0.0  ;;  %v4942_v57 = vsel %vm3612_vm0, %v4632_v5, 0.0  ;;  %v4630_v59 = vmul.f32 %v13061_v36, %v13061_v36 }
 0x32c   :  { %18371 = vst [vmem:[#allocation27_spill] sm:$0xff] %v13054_v43  ;;  %3953 = vadd.xlane.f32.xlu1 %v3952_v32  ;;  %18376 = vst [vmem:[#allocation193_spill] sm:$0xff] %v13070_v13  ;;  %v18379_v21 = vld [vmem:[#allocation30_spill] sm:$0xff]  ;;  %v4249_v5 = vmul.f32 0.020408163, %v12671_v30  ;;  %v18386_v36 = vld [vmem:[#allocation31_spill] sm:$0xff] }
 0x32e   :  { %v9575_v52 = vpop.f32.mrb[12].mxu1  ;;  %v13098_v13 = vpop.xlane.xlu1 %3863 }
 0x32f   :  { %v13080_v14 = vadd.f32 %v9575_v52, %v18377_v42  ;;  %v3533_v32 = vpop.f32.mrb[13].mxu1  ;;  %4940 = vadd.xlane.f32.xlu0 %v4939_v62  ;;  %v2580_v3 = vpop.f32.mrb[12].mxu0  ;;  %v18384_v52 = vld [vmem:[#allocation87_spill] sm:$0xff] }
 0x330   :  { %v13086_v43 = vadd.f32 %v3533_v32, %v18379_v21  ;;  %v9576_v12 = vpop.f32.mrb[14].mxu1  ;;  %4943 = vadd.xlane.f32.xlu1 %v4942_v57  ;;  %v13089_v63 = vadd.f32 %v12637_v35, %v2580_v3  ;;  %v13095_v62 = vsub.f32 %v18384_v52, %v4251_v24  ;;  %v4933_v32 = vsel %vm3612_vm0, %v4629_v39, 0.0  ;;  %v2582_v57 = vpop.f32.mrb[13].mxu0  ;;  %v18388_v21 = vld [vmem:[#allocation89_spill] sm:$0xff] }
 0x331   :  { %18378 = vst [vmem:[#allocation32_spill] sm:$0xff] %v13080_v14  ;;  %v13092_v7 = vadd.f32 %v9576_v12, %v18382_v61  ;;  %v3536_v42 = vpop.f32.mrb[15].mxu1  ;;  %v13105_v35 = vsub.f32 %v18388_v21, %v4252_v20  ;;  %v4250_v3 = vmul.f32 0.020408163, %v12676_v33  ;;  %v4936_v12 = vsel %vm3612_vm0, %v4630_v59, 0.0  ;;  %v2583_v24 = vpop.f32.mrb[14].mxu0 }
 0x332   :  { %18380 = vst [vmem:[#allocation30_spill] sm:$0xff] %v13086_v43  ;;  %18381 = vst [vmem:[#allocation194_spill] sm:$0xff] %v13089_v63  ;;  %v13101_v14 = vadd.f32 %v3536_v42, %v18386_v36  ;;  %v13109_v61 = vpop.xlane.xlu0 %3854  ;;  %v13112_v30 = vadd.f32 %v12648_v4, %v2583_v24  ;;  %v2585_v36 = vpop.f32.mrb[15].mxu0  ;;  %v18391_v42 = vld [vmem:[#allocation88_spill] sm:$0xff]  ;;  %v18393_v57 = vld [vmem:[#allocation166_spill] sm:$0xff]  ;;  %v4635_v33 = vmul.f32 %v13095_v62, %v13095_v62  ;;  %v3958_v4 = vsel %vm3612_vm0, %v12674_v54, 0.0 }
 0x333   :  { %18383 = vst [vmem:[#allocation33_spill] sm:$0xff] %v13092_v7  ;;  %18385 = vst [vmem:[#allocation87_spill] sm:$0xff] %v13095_v62  ;;  %4934 = vadd.xlane.f32.xlu0 %v4933_v32  ;;  %v13115_v52 = vsub.f32 %v18391_v42, %v4249_v5  ;;  %v3955_v20 = vsel %vm3612_vm0, %v18393_v57, 0.0  ;;  %v18394_v32 = vld [vmem:[#allocation90_spill] sm:$0xff]  ;;  %v18396_v21 = vld [vmem:[#allocation36_spill] sm:$0xff]  ;;  %v4636_v5 = vmul.f32 %v13105_v35, %v13105_v35  ;;  %v13131_v36 = vpop.xlane.xlu1 %3857 }
 0x334   :  { %18387 = vst [vmem:[#allocation31_spill] sm:$0xff] %v13101_v14  ;;  %18389 = vst [vmem:[#allocation89_spill] sm:$0xff] %v13105_v35  ;;  %4937 = vadd.xlane.f32.xlu1 %v4936_v12  ;;  %v13122_v59 = vsub.f32 %v18394_v32, %v4250_v3  ;;  %v18398_v42 = vld [vmem:[#allocation34_spill] sm:$0xff]  ;;  %v18404_v7 = vld [vmem:[#allocation171_spill] sm:$0xff]  ;;  %v4951_v43 = vsel %vm3612_vm0, %v4635_v33, 0.0 }
 0x335   :  { %18390 = vst [vmem:[#allocation195_spill] sm:$0xff] %v13112_v30  ;;  %18392 = vst [vmem:[#allocation88_spill] sm:$0xff] %v13115_v52  ;;  %v18400_v3 = vld [vmem:[#allocation170_spill] sm:$0xff]  ;;  %v4255_v54 = vmul.f32 0.020408163, %v18404_v7  ;;  %v18405_v35 = vld [vmem:[#allocation35_spill] sm:$0xff] }
 0x336   :  { %v9579_v39 = vpop.f32.mrb[16].mxu1  ;;  %18395 = vst [vmem:[#allocation90_spill] sm:$0xff] %v13122_v59  ;;  %v13143_v30 = vpop.xlane.xlu0 %4796 }
 0x337   :  { %v13125_v14 = vadd.f32 %v9579_v39, %v18396_v21  ;;  %v3549_v12 = vpop.f32.mrb[17].mxu1  ;;  %3956 = vadd.xlane.f32.xlu0 %v3955_v20  ;;  %v2588_v24 = vpop.f32.mrb[16].mxu0  ;;  %v18402_v39 = vld [vmem:[#allocation37_spill] sm:$0xff] }
 0x338   :  { %v13134_v57 = vadd.f32 %v3549_v12, %v18398_v42  ;;  %v9580_v62 = vpop.f32.mrb[18].mxu1  ;;  %3959 = vadd.xlane.f32.xlu1 %v3958_v4  ;;  %v13137_v32 = vadd.f32 %v18400_v3, %v2588_v24  ;;  %v4633_v12 = vmul.f32 %v13115_v52, %v13115_v52  ;;  %v2590_v4 = vpop.f32.mrb[17].mxu0  ;;  %v4256_v24 = vmul.f32 0.020408163, %v12703_v28 }
 0x339   :  { %18397 = vst [vmem:[#allocation36_spill] sm:$0xff] %v13125_v14  ;;  %v13140_v21 = vadd.f32 %v9580_v62, %v18402_v39  ;;  %v3552_v20 = vpop.f32.mrb[19].mxu1  ;;  %v4954_v62 = vsel %vm3612_vm0, %v4636_v5, 0.0  ;;  %v4634_v42 = vmul.f32 %v13122_v59, %v13122_v59  ;;  %v2591_v7 = vpop.f32.mrb[18].mxu0  ;;  %v18408_v39 = vld [vmem:[#allocation91_spill] sm:$0xff]  ;;  %v18410_v5 = vld [vmem:[#allocation93_spill] sm:$0xff] }
 0x33a   :  { %18399 = vst [vmem:[#allocation34_spill] sm:$0xff] %v13134_v57  ;;  %18401 = vst [vmem:[#allocation170_spill] sm:$0xff] %v13137_v32  ;;  %v13146_v14 = vadd.f32 %v3552_v20, %v18405_v35  ;;  %v13156_v3 = vadd.f32 %v12697_v25, %v2591_v7  ;;  %v2593_v35 = vpop.f32.mrb[19].mxu0  ;;  %v13159_v33 = vsub.f32 %v18408_v39, %v4255_v54  ;;  %v4253_v20 = vmul.f32 0.020408163, %v12711_v22  ;;  %v13162_v4 = vpop.xlane.xlu1 %4799  ;;  %v18414_v22 = vld [vmem:[#allocation38_spill] sm:$0xff] }
 0x33b   :  { %18403 = vst [vmem:[#allocation37_spill] sm:$0xff] %v13140_v21  ;;  %4952 = vadd.xlane.f32.xlu0 %v4951_v43  ;;  %v4945_v43 = vsel %vm3612_vm0, %v4633_v12, 0.0  ;;  %v13166_v52 = vsub.f32 %v18410_v5, %v4256_v24  ;;  %v4254_v59 = vmul.f32 0.020408163, %v12734_v18  ;;  %v4948_v54 = vsel %vm3612_vm0, %v4634_v42, 0.0  ;;  %v13173_v35 = vpop.xlane.xlu0 %4790  ;;  %v18416_v12 = vld [vmem:[#allocation169_spill] sm:$0xff] }
 0x33c   :  { %18406 = vst [vmem:[#allocation171_spill] sm:$0xff] %v13146_v14  ;;  %4955 = vadd.xlane.f32.xlu1 %v4954_v62  ;;  %18407 = vst [vmem:[#allocation35_spill] sm:$0xff] %v13156_v3  ;;  %v18412_v62 = vld [vmem:[#allocation40_spill] sm:$0xff]  ;;  %v18418_v5 = vld [vmem:[#allocation41_spill] sm:$0xff] }
 0x33d   :  { %18409 = vst [vmem:[#allocation91_spill] sm:$0xff] %v13159_v33  ;;  %18411 = vst [vmem:[#allocation93_spill] sm:$0xff] %v13166_v52 }
 0x33e   :  { %v9583_v28 = vpop.f32.mrb[20].mxu1 }
 0x33f   :  { %v13170_v14 = vadd.f32 %v9583_v28, %v18412_v62  ;;  %v3565_v25 = vpop.f32.mrb[21].mxu1  ;;  %4946 = vadd.xlane.f32.xlu0 %v4945_v43  ;;  %v2596_v7 = vpop.f32.mrb[20].mxu0  ;;  %v18420_v62 = vld [vmem:[#allocation92_spill] sm:$0xff]  ;;  %v18422_v43 = vld [vmem:[#allocation39_spill] sm:$0xff] }
 0x340   :  { %v13176_v39 = vadd.f32 %v3565_v25, %v18414_v22  ;;  %v9584_v21 = vpop.f32.mrb[22].mxu1  ;;  %4949 = vadd.xlane.f32.xlu1 %v4948_v54  ;;  %v13179_v24 = vadd.f32 %v18416_v12, %v2596_v7  ;;  %v13185_v3 = vsub.f32 %v18420_v62, %v4253_v20  ;;  %v4639_v25 = vmul.f32 %v13159_v33, %v13159_v33  ;;  %v2598_v54 = vpop.f32.mrb[21].mxu0  ;;  %v18424_v22 = vld [vmem:[#allocation94_spill] sm:$0xff] }
 0x341   :  { %18413 = vst [vmem:[#allocation40_spill] sm:$0xff] %v13170_v14  ;;  %v13182_v18 = vadd.f32 %v9584_v21, %v18418_v5  ;;  %v3568_v28 = vpop.f32.mrb[23].mxu1  ;;  %v3961_v14 = vsel %vm3612_vm0, %v12695_v29, 0.0  ;;  %v13195_v7 = vsub.f32 %v18424_v22, %v4254_v59  ;;  %v3964_v21 = vsel %vm3612_vm0, %v12714_v1, 0.0  ;;  %v2599_v12 = vpop.f32.mrb[22].mxu0  ;;  %v18428_v1 = vld [vmem:[#allocation44_spill] sm:$0xff] }
 0x342   :  { %18415 = vst [vmem:[#allocation38_spill] sm:$0xff] %v13176_v39  ;;  %18417 = vst [vmem:[#allocation169_spill] sm:$0xff] %v13179_v24  ;;  %v13188_v42 = vadd.f32 %v3568_v28, %v18422_v43  ;;  %v4640_v20 = vmul.f32 %v13166_v52, %v13166_v52  ;;  %v13201_v5 = vpop.xlane.xlu1 %4793  ;;  %v18426_v28 = vld [vmem:[#allocation172_spill] sm:$0xff]  ;;  %v2601_v43 = vpop.f32.mrb[23].mxu0  ;;  %v4259_v54 = vmul.f32 0.020408163, %v12744_v27  ;;  %v4637_v22 = vmul.f32 %v13185_v3, %v13185_v3 }
 0x343   :  { %18419 = vst [vmem:[#allocation41_spill] sm:$0xff] %v13182_v18  ;;  %18421 = vst [vmem:[#allocation92_spill] sm:$0xff] %v13185_v3  ;;  %3962 = vadd.xlane.f32.xlu0 %v3961_v14  ;;  %v13204_v62 = vadd.f32 %v18426_v28, %v2599_v12  ;;  %v13207_v33 = vpop.xlane.xlu0 %3872  ;;  %v4963_v14 = vsel %vm3612_vm0, %v4639_v25, 0.0  ;;  %v4260_v52 = vmul.f32 0.020408163, %v12760_v50  ;;  %v4638_v27 = vmul.f32 %v13195_v7, %v13195_v7  ;;  %v18430_v43 = vld [vmem:[#allocation42_spill] sm:$0xff] }
 0x344   :  { %18423 = vst [vmem:[#allocation39_spill] sm:$0xff] %v13188_v42  ;;  %18425 = vst [vmem:[#allocation94_spill] sm:$0xff] %v13195_v7  ;;  %3965 = vadd.xlane.f32.xlu1 %v3964_v21  ;;  %v4966_v12 = vsel %vm3612_vm0, %v4640_v20, 0.0  ;;  %v18433_v50 = vld [vmem:[#allocation45_spill] sm:$0xff]  ;;  %v18438_v7 = vld [vmem:[#allocation43_spill] sm:$0xff] }
 0x345   :  { %18427 = vst [vmem:[#allocation172_spill] sm:$0xff] %v13204_v62  ;;  %v18437_v20 = vld [vmem:[#allocation181_spill] sm:$0xff] }
 0x346   :  { %v9587_v59 = vpop.f32.mrb[24].mxu1  ;;  %v4257_v62 = vmul.f32 0.020408163, %v18437_v20 }
 0x347   :  { %v13214_v29 = vadd.f32 %v9587_v59, %v18428_v1  ;;  %v3581_v21 = vpop.f32.mrb[25].mxu1  ;;  %4964 = vadd.xlane.f32.xlu0 %v4963_v14  ;;  %v2604_v28 = vpop.f32.mrb[24].mxu0  ;;  %v18435_v59 = vld [vmem:[#allocation95_spill] sm:$0xff] }
 0x348   :  { %v13220_v42 = vadd.f32 %v3581_v21, %v18430_v43  ;;  %v9588_v25 = vpop.f32.mrb[26].mxu1  ;;  %4967 = vadd.xlane.f32.xlu1 %v4966_v12  ;;  %v13223_v3 = vadd.f32 %v12730_v2, %v2604_v28  ;;  %v13229_v14 = vsub.f32 %v18435_v59, %v4259_v54  ;;  %v4957_v21 = vsel %vm3612_vm0, %v4637_v22, 0.0  ;;  %v2606_v12 = vpop.f32.mrb[25].mxu0  ;;  %v18440_v43 = vld [vmem:[#allocation97_spill] sm:$0xff] }
 0x349   :  { %18429 = vst [vmem:[#allocation44_spill] sm:$0xff] %v13214_v29  ;;  %v13226_v18 = vadd.f32 %v9588_v25, %v18433_v50  ;;  %v3584_v1 = vpop.f32.mrb[27].mxu1  ;;  %v13232_v29 = vpop.xlane.xlu1 %3875  ;;  %v13239_v2 = vsub.f32 %v18440_v43, %v4260_v52  ;;  %v4258_v28 = vmul.f32 0.020408163, %v12799_v16  ;;  %v4960_v25 = vsel %vm3612_vm0, %v4638_v27, 0.0  ;;  %v18442_v50 = vld [vmem:[#allocation180_spill] sm:$0xff] }
 0x34a   :  { %18431 = vst [vmem:[#allocation42_spill] sm:$0xff] %v13220_v42  ;;  %18432 = vst [vmem:[#allocation196_spill] sm:$0xff] %v13223_v3  ;;  %v13235_v39 = vadd.f32 %v3584_v1, %v18438_v7  ;;  %v2607_v54 = vpop.f32.mrb[26].mxu0  ;;  %v18444_v7 = vld [vmem:[#allocation96_spill] sm:$0xff]  ;;  %v18446_v12 = vld [vmem:[#allocation179_spill] sm:$0xff]  ;;  %v4643_v16 = vmul.f32 %v13229_v14, %v13229_v14 }
 0x34b   :  { %18434 = vst [vmem:[#allocation45_spill] sm:$0xff] %v13226_v18  ;;  %18436 = vst [vmem:[#allocation95_spill] sm:$0xff] %v13229_v14  ;;  %4958 = vadd.xlane.f32.xlu0 %v4957_v21  ;;  %v13244_v59 = vadd.f32 %v18442_v50, %v2607_v54  ;;  %v2609_v20 = vpop.f32.mrb[27].mxu0  ;;  %v13246_v18 = vpop.xlane.xlu0 %3866  ;;  %v13249_v1 = vsub.f32 %v18444_v7, %v4257_v62  ;;  %v3967_v52 = vsel %vm3612_vm0, %v18446_v12, 0.0  ;;  %v18447_v21 = vld [vmem:[#allocation98_spill] sm:$0xff]  ;;  %v18449_v43 = vld [vmem:[#allocation48_spill] sm:$0xff] }
 0x34c   :  { %18439 = vst [vmem:[#allocation181_spill] sm:$0xff] %v13235_v39  ;;  %18441 = vst [vmem:[#allocation43_spill] sm:$0xff] %v13239_v2  ;;  %4961 = vadd.xlane.f32.xlu1 %v4960_v25  ;;  %v13256_v27 = vsub.f32 %v18447_v21, %v4258_v28  ;;  %v18451_v50 = vld [vmem:[#allocation144_spill] sm:$0xff]  ;;  %v4644_v7 = vmul.f32 %v13239_v2, %v13239_v2  ;;  %v18452_v12 = vld [vmem:[#allocation46_spill] sm:$0xff]  ;;  %v4975_v2 = vsel %vm3612_vm0, %v4643_v16, 0.0 }
 0x34d   :  { %18443 = vst [vmem:[#allocation97_spill] sm:$0xff] %v13244_v59  ;;  %18445 = vst [vmem:[#allocation180_spill] sm:$0xff] %v13249_v1  ;;  %v3970_v20 = vsel %vm3612_vm0, %v18451_v50, 0.0  ;;  %v13265_v39 = vpop.xlane.xlu1 %3869  ;;  %v18454_v28 = vld [vmem:[#allocation177_spill] sm:$0xff]  ;;  %v4641_v3 = vmul.f32 %v13249_v1, %v13249_v1 }
 0x34e   :  { %v9591_v22 = vpop.f32.mrb[28].mxu1  ;;  %18448 = vst [vmem:[#allocation96_spill] sm:$0xff] %v13256_v27 }
 0x34f   :  { %v13259_v25 = vadd.f32 %v9591_v22, %v18449_v43  ;;  %v3597_v54 = vpop.f32.mrb[29].mxu1  ;;  %3968 = vadd.xlane.f32.xlu0 %v3967_v52  ;;  %v2612_v62 = vpop.f32.mrb[28].mxu0  ;;  %v18456_v22 = vld [vmem:[#allocation49_spill] sm:$0xff]  ;;  %v4969_v16 = vsel %vm3612_vm0, %v4641_v3, 0.0  ;;  %v18462_v3 = vld [vmem:[#allocation99_spill] sm:$0xff] }
 0x350   :  { %v13268_v59 = vadd.f32 %v3597_v54, %v18452_v12  ;;  %v9592_v14 = vpop.f32.mrb[30].mxu1  ;;  %3971 = vadd.xlane.f32.xlu1 %v3970_v20  ;;  %v13271_v21 = vadd.f32 %v18454_v28, %v2612_v62  ;;  %v2614_v42 = vpop.f32.mrb[29].mxu0  ;;  %v4978_v20 = vsel %vm3612_vm0, %v4644_v7, 0.0  ;;  %v18460_v62 = vld [vmem:[#allocation178_spill] sm:$0xff]  ;;  %v4263_v7 = vmul.f32 0.020408163, %v12805_v45 }
 0x351   :  { %18450 = vst [vmem:[#allocation98_spill] sm:$0xff] %v13259_v25  ;;  %v13274_v43 = vadd.f32 %v9592_v14, %v18456_v22  ;;  %v3600_v52 = vpop.f32.mrb[31].mxu1  ;;  %v18458_v25 = vld [vmem:[#allocation47_spill] sm:$0xff]  ;;  %v13282_v12 = vpop.xlane.xlu0 %4808  ;;  %v4642_v14 = vmul.f32 %v13256_v27, %v13256_v27  ;;  %v18467_v27 = vld [vmem:[#allocation5_spill] sm:$0xff] }
 0x352   :  { %18453 = vst [vmem:[#allocation48_spill] sm:$0xff] %v13268_v59  ;;  %18455 = vst [vmem:[#allocation46_spill] sm:$0xff] %v13271_v21  ;;  %v13277_v50 = vadd.f32 %v3600_v52, %v18458_v25  ;;  %v2615_v54 = vpop.f32.mrb[30].mxu0  ;;  %v13290_v42 = vpop.xlane.xlu1 %4811  ;;  %v3973_v52 = vsel %vm3612_vm0, %v12777_v44, 0.0 }
 0x353   :  { %18457 = vst [vmem:[#allocation177_spill] sm:$0xff] %v13274_v43  ;;  %4976 = vadd.xlane.f32.xlu0 %v4975_v2  ;;  %v13288_v28 = vadd.f32 %v18460_v62, %v2615_v54  ;;  %v2617_v25 = vpop.f32.mrb[31].mxu0  ;;  %v4972_v22 = vsel %vm3612_vm0, %v4642_v14, 0.0  ;;  %v4264_v54 = vmul.f32 0.020408163, %v12830_v15 }
 0x354   :  { %18459 = vst [vmem:[#allocation49_spill] sm:$0xff] %v13277_v50  ;;  %4979 = vadd.xlane.f32.xlu1 %v4978_v20  ;;  %v3976_v20 = vsel %vm3612_vm0, %v12802_v19, 0.0  ;;  %v13305_v25 = vsub.f32 %v18462_v3, %v4263_v7  ;;  %v4261_v14 = vmul.f32 0.020408163, %v12841_v49  ;;  %v4262_v15 = vmul.f32 0.020408163, %v12863_v38 }
 0x355   :  { %18461 = vst [vmem:[#allocation47_spill] sm:$0xff] %v13288_v28  ;;  %v13294_v2 = vpop.xlane.xlu0 %4802  ;;  %v4054_v19 = vsel %vm3612_vm0, %v18467_v27, 0.0  ;;  %v18470_v49 = vld [vmem:[#allocation2_spill] sm:$0xff]  ;;  %v4269_v43 = vmul.f32 0.020408163, %v13109_v61  ;;  %v18495_v28 = vld [vmem:[#allocation113_spill] sm:$0xff] }
 0x356   :  { %v13302_v62 = vpop.xlane.xlu1 %4805  ;;  %18463 = vst [vmem:[#allocation178_spill] sm:$0xff] %v13305_v25 }
 0x357   :  { %4970 = vadd.xlane.f32.xlu0 %v4969_v16  ;;  %v18464_v16 = vld [vmem:[#allocation4_spill] sm:$0xff] }
 0x358   :  { %4973 = vadd.xlane.f32.xlu1 %v4972_v22  ;;  %v4051_v45 = vsel %vm3612_vm0, %v18464_v16, 0.0  ;;  %v18465_v22 = vld [vmem:[#allocation101_spill] sm:$0xff]  ;;  %v4045_v16 = vsel %vm3612_vm0, %v18470_v49, 0.0 }
 0x359   :  { %v13311_v1 = vsub.f32 %v18465_v22, %v4264_v54  ;;  %v4647_v54 = vmul.f32 %v13305_v25, %v13305_v25  ;;  %v18471_v22 = vld [vmem:[#allocation103_spill] sm:$0xff] }
 0x35a   :  { %v13321_v3 = vpop.xlane.xlu1 %3887  ;;  %v13328_v38 = vsub.f32 %v18471_v22, %v4262_v15 }
 0x35b   :  { %3974 = vadd.xlane.f32.xlu0 %v3973_v52  ;;  %18466 = vst [vmem:[#allocation99_spill] sm:$0xff] %v13311_v1  ;;  %v13314_v52 = vpop.xlane.xlu0 %3884 }
 0x35c   :  { %3977 = vadd.xlane.f32.xlu1 %v3976_v20  ;;  %v18468_v20 = vld [vmem:[#allocation100_spill] sm:$0xff] }
 0x35d   :  { %v13319_v7 = vsub.f32 %v18468_v20, %v4261_v14  ;;  %18472 = vst [vmem:[#allocation100_spill] sm:$0xff] %v13328_v38  ;;  %v4987_v20 = vsel %vm3612_vm0, %v4647_v54, 0.0  ;;  %v4267_v54 = vmul.f32 0.020408163, %v12939_v8  ;;  %v18476_v8 = vld [vmem:[#allocation150_spill] sm:$0xff] }
 0x35e   :  { %v13342_v15 = vpop.xlane.xlu1 %3881 }
 0x35f   :  { %4052 = vadd.xlane.f32.xlu0 %v4051_v45  ;;  %18469 = vst [vmem:[#allocation101_spill] sm:$0xff] %v13319_v7  ;;  %v18473_v45 = vld [vmem:[#allocation3_spill] sm:$0xff]  ;;  %v13334_v14 = vpop.xlane.xlu0 %3878  ;;  %v4645_v27 = vmul.f32 %v13319_v7, %v13319_v7 }
 0x360   :  { %4055 = vadd.xlane.f32.xlu1 %v4054_v19  ;;  %v4048_v44 = vsel %vm3612_vm0, %v18473_v45, 0.0  ;;  %v4648_v19 = vmul.f32 %v13311_v1, %v13311_v1  ;;  %v18477_v45 = vld [vmem:[#allocation109_spill] sm:$0xff] }
 0x361   :  { %v4981_v22 = vsel %vm3612_vm0, %v4645_v27, 0.0 }
 0x362   :  { %v4990_v25 = vsel %vm3612_vm0, %v4648_v19, 0.0  ;;  %v13349_v7 = vpop.xlane.xlu1 %4823  ;;  %v3979_v19 = vsel %vm3612_vm0, %v12821_v17, 0.0  ;;  %v18480_v17 = vld [vmem:[#allocation108_spill] sm:$0xff] }
 0x363   :  { %4046 = vadd.xlane.f32.xlu0 %v4045_v16  ;;  %v4646_v16 = vmul.f32 %v13328_v38, %v13328_v38  ;;  %v13345_v1 = vpop.xlane.xlu0 %4820 }
 0x364   :  { %4049 = vadd.xlane.f32.xlu1 %v4048_v44 }
 0x365   :  { %v4984_v44 = vsel %vm3612_vm0, %v4646_v16, 0.0  ;;  %v4265_v16 = vmul.f32 0.020408163, %v12975_v48 }
 0x367   :  { %4988 = vadd.xlane.f32.xlu0 %v4987_v20  ;;  %v4268_v20 = vmul.f32 0.020408163, %v12964_v0  ;;  %v13356_v27 = vpop.xlane.xlu0 %4814  ;;  %v4266_v0 = vmul.f32 0.020408163, %v12997_v51 }
 0x368   :  { %4991 = vadd.xlane.f32.xlu1 %v4990_v25  ;;  %v3982_v25 = vsel %vm3612_vm0, %v12844_v58, 0.0 }
 0x369   :  { %v13365_v49 = vsub.f32 %v18477_v45, %v4268_v20  ;;  %v18483_v45 = vld [vmem:[#allocation110_spill] sm:$0xff] }
 0x36a   :  { %v13380_v20 = vsub.f32 %v18483_v45, %v4266_v0 }
 0x36b   :  { %4982 = vadd.xlane.f32.xlu0 %v4981_v22  ;;  %v18474_v22 = vld [vmem:[#allocation107_spill] sm:$0xff]  ;;  %v13382_v51 = vpop.xlane.xlu0 %3896 }
 0x36c   :  { %4985 = vadd.xlane.f32.xlu1 %v4984_v44  ;;  %v13359_v38 = vsub.f32 %v18474_v22, %v4267_v54  ;;  %v4063_v44 = vsel %vm3612_vm0, %v18476_v8, 0.0  ;;  %18478 = vst [vmem:[#allocation107_spill] sm:$0xff] %v13365_v49  ;;  %v13373_v54 = vsub.f32 %v18480_v17, %v4265_v16  ;;  %v18482_v22 = vld [vmem:[#allocation8_spill] sm:$0xff]  ;;  %18484 = vst [vmem:[#allocation108_spill] sm:$0xff] %v13380_v20 }
 0x36d   :  { %v4057_v48 = vsel %vm3612_vm0, %v18482_v22, 0.0  ;;  %v18490_v22 = vld [vmem:[#allocation10_spill] sm:$0xff] }
 0x36e   :  { %18475 = vst [vmem:[#allocation103_spill] sm:$0xff] %v13359_v38  ;;  %18481 = vst [vmem:[#allocation109_spill] sm:$0xff] %v13373_v54  ;;  %v4651_v8 = vmul.f32 %v13359_v38, %v13359_v38  ;;  %v4649_v38 = vmul.f32 %v13373_v54, %v13373_v54 }
 0x36f   :  { %3980 = vadd.xlane.f32.xlu0 %v3979_v19  ;;  %v18479_v19 = vld [vmem:[#allocation9_spill] sm:$0xff]  ;;  %v13396_v45 = vpop.xlane.xlu0 %3890 }
 0x370   :  { %3983 = vadd.xlane.f32.xlu1 %v3982_v25  ;;  %v4066_v58 = vsel %vm3612_vm0, %v18479_v19, 0.0  ;;  %v13370_v25 = vpop.xlane.xlu1 %4817  ;;  %v4999_v16 = vsel %vm3612_vm0, %v4651_v8, 0.0  ;;  %v4271_v8 = vmul.f32 0.020408163, %v13073_v41 }
 0x373   :  { %4064 = vadd.xlane.f32.xlu0 %v4063_v44  ;;  %v18485_v44 = vld [vmem:[#allocation7_spill] sm:$0xff] }
 0x374   :  { %4067 = vadd.xlane.f32.xlu1 %v4066_v58  ;;  %v4060_v19 = vsel %vm3612_vm0, %v18485_v44, 0.0  ;;  %v4652_v58 = vmul.f32 %v13365_v49, %v13365_v49  ;;  %v13388_v17 = vpop.xlane.xlu1 %3899  ;;  %v4993_v44 = vsel %vm3612_vm0, %v4649_v38, 0.0  ;;  %v5343_v38 = vmul.f32 0.020408163, %v12875_v37 }
 0x375   :  { %v4069_v37 = vsel %vm3612_vm0, %v18490_v22, 0.0 }
 0x376   :  { %v5002_v0 = vsel %vm3612_vm0, %v4652_v58, 0.0  ;;  %v13405_v58 = vpop.xlane.xlu0 %4832 }
 0x377   :  { %4058 = vadd.xlane.f32.xlu0 %v4057_v48  ;;  %v4650_v48 = vmul.f32 %v13380_v20, %v13380_v20  ;;  %v4078_v20 = vsel %vm3612_vm0, %v12872_v10, 0.0  ;;  %v18492_v10 = vld [vmem:[#allocation188_spill] sm:$0xff] }
 0x378   :  { %4061 = vadd.xlane.f32.xlu1 %v4060_v19  ;;  %v13400_v49 = vpop.xlane.xlu1 %3893  ;;  %v5341_v50 = vmul.f32 0.020408163, %v18492_v10  ;;  %v5920_v10 = vld [vmem:[%s17673_s2 + $0x18] sm:$0xff] }
 0x379   :  { %v4996_v19 = vsel %vm3612_vm0, %v4650_v48, 0.0 }
 0x37a   :  { %v5533_v22 = vadd.f32 1e-05, %v5341_v50  ;;  %v5917_v50 = vld [vmem:[%s17673_s2] sm:$0xff] }
 0x37b   :  { %5000 = vadd.xlane.f32.xlu0 %v4999_v16  ;;  %v3985_v16 = vsel %vm3612_vm0, %v12869_v6, 0.0  ;;  %v5535_v6 = vadd.f32 1e-05, %v5343_v38 }
 0x37c   :  { %5003 = vadd.xlane.f32.xlu1 %v5002_v0  ;;  %v3988_v0 = vsel %vm3612_vm0, %v12888_v31, 0.0  ;;  %v13413_v48 = vpop.xlane.xlu1 %4835  ;;  %v18489_v31 = vld [vmem:[#allocation187_spill] sm:$0xff] }
 0x37d   :  { %10012 = vrsqrt.f32 %v5535_v6 }
 0x37f   :  { %4994 = vadd.xlane.f32.xlu0 %v4993_v44  ;;  %v18486_v44 = vld [vmem:[#allocation111_spill] sm:$0xff] }
 0x380   :  { %4997 = vadd.xlane.f32.xlu1 %v4996_v19  ;;  %v13411_v54 = vsub.f32 %v18486_v44, %v4271_v8  ;;  %v18488_v19 = vld [vmem:[#allocation12_spill] sm:$0xff]  ;;  %v18491_v44 = vld [vmem:[#allocation11_spill] sm:$0xff] }
 0x381   :  { %v4075_v41 = vsel %vm3612_vm0, %v18488_v19, 0.0  ;;  %v4072_v19 = vsel %vm3612_vm0, %v18491_v44, 0.0 }
 0x382   :  { %18487 = vst [vmem:[#allocation110_spill] sm:$0xff] %v13411_v54  ;;  %v4655_v8 = vmul.f32 %v13411_v54, %v13411_v54 }
 0x383   :  { %3986 = vadd.xlane.f32.xlu0 %v3985_v16  ;;  %v13419_v16 = vpop.xlane.xlu0 %4826 }
 0x384   :  { %3989 = vadd.xlane.f32.xlu1 %v3988_v0  ;;  %v5344_v0 = vmul.f32 0.020408163, %v18489_v31  ;;  %v5011_v38 = vsel %vm3612_vm0, %v4655_v8, 0.0 }
 0x387   :  { %4076 = vadd.xlane.f32.xlu0 %v4075_v41  ;;  %v13428_v41 = vpop.xlane.xlu1 %4829  ;;  %v13432_v31 = vpop.xlane.xlu0 %3902 }
 0x388   :  { %4079 = vadd.xlane.f32.xlu1 %v4078_v20  ;;  %v5536_v20 = vadd.f32 1e-05, %v5344_v0  ;;  %v10013_v54 = vpop.eup %10012 }
 0x38a   :  { %10014 = vrsqrt.f32 %v5536_v20 }
 0x38b   :  { %4070 = vadd.xlane.f32.xlu0 %v4069_v37  ;;  %10016 = vrsqrt.f32 %v5533_v22  ;;  %v5919_v37 = vld [vmem:[%s17673_s2 + $0x10] sm:$0xff]  ;;  %v13437_v44 = vpop.xlane.xlu1 %3905 }
 0x38c   :  { %4073 = vadd.xlane.f32.xlu1 %v4072_v19  ;;  %v6111_v19 = vmul.f32 %v10013_v54, %v5919_v37 }
 0x38f   :  { %5012 = vadd.xlane.f32.xlu0 %v5011_v38  ;;  %v13445_v22 = vpop.xlane.xlu1 %4847  ;;  %v13447_v38 = vpop.xlane.xlu0 %4844 }
 0x393   :  { %v13449_v54 = vpop.xlane.xlu0 %4838 }
 0x394   :  { %v10015_v6 = vpop.eup %10014 }
 0x395   :  { %v6112_v0 = vmul.f32 %v10015_v6, %v5920_v10  ;;  %v10017_v8 = vpop.eup %10016  ;;  %v18493_v6 = vld [vmem:[#allocation112_spill] sm:$0xff] }
 0x396   :  { %v6109_v20 = vmul.f32 %v10017_v8, %v5917_v50  ;;  %v13456_v10 = vsub.f32 %v18493_v6, %v4269_v43 }
 0x397   :  { %v13451_v37 = vpop.xlane.xlu0 %3908 }
 0x398   :  { %18494 = vst [vmem:[#allocation111_spill] sm:$0xff] %v13456_v10  ;;  %v4653_v8 = vmul.f32 %v13456_v10, %v13456_v10  ;;  %v18497_v10 = vld [vmem:[#allocation118_spill] sm:$0xff] }
 0x39b   :  { %v13461_v21 = vpop.xlane.xlu0 %4856 }
 0x39d   :  { %6313 = vperm.xlu1 %9626, %v6111_v19   ;;  %v4272_v19 = vmul.f32 0.020408163, %v13098_v13  ;;  %v5005_v13 = vsel %vm3612_vm0, %v4653_v8, 0.0  ;;  %v18499_v8 = vld [vmem:[#allocation16_spill] sm:$0xff] }
 0x39f   :  { %v13459_v59 = vsub.f32 %v18495_v28, %v4272_v19  ;;  %v13472_v28 = vpop.xlane.xlu1 %4841  ;;  %v3991_v19 = vsel %vm3612_vm0, %v12911_v11, 0.0 }
 0x3a1   :  { %6318 = vperm.xlu1 %9626, %v6112_v0   ;;  %18496 = vst [vmem:[#allocation187_spill] sm:$0xff] %v13459_v59  ;;  %v5342_v0 = vmul.f32 0.020408163, %v12933_v34  ;;  %v4656_v50 = vmul.f32 %v13459_v59, %v13459_v59  ;;  %v4275_v34 = vmul.f32 0.020408163, %v13207_v33  ;;  %v18503_v33 = vld [vmem:[#allocation14_spill] sm:$0xff] }
 0x3a2   :  { %v4081_v11 = vsel %vm3612_vm0, %v18503_v33, 0.0  ;;  %v4279_v33 = vmul.f32 0.020408163, %v13314_v52  ;;  %v4093_v52 = vsel %vm3612_vm0, %v12952_v23, 0.0  ;;  %v4270_v23 = vmul.f32 0.020408163, %v13131_v36 }
 0x3a3   :  { %v5534_v61 = vadd.f32 1e-05, %v5342_v0  ;;  %v5014_v43 = vsel %vm3612_vm0, %v4656_v50, 0.0  ;;  %v13480_v59 = vsub.f32 %v18497_v10, %v4275_v34  ;;  %v4273_v0 = vmul.f32 0.020408163, %v13246_v18  ;;  %v5918_v18 = vld [vmem:[%s17673_s2 + $0x8] sm:$0xff] }
 0x3a4   :  { %v4087_v50 = vsel %vm3612_vm0, %v18499_v8, 0.0 }
 0x3a5   :  { %6303 = vperm.xlu0 %9627, %v6109_v20   ;;  %v13468_v20 = vpop.xlane.xlu0 %4850  ;;  %10018 = vrsqrt.f32 %v5534_v61  ;;  %18498 = vst [vmem:[#allocation188_spill] sm:$0xff] %v13480_v59  ;;  %v18501_v61 = vld [vmem:[#allocation119_spill] sm:$0xff] }
 0x3a9   :  { %v13477_v6 = vpop.xlane.xlu0 %3914 }
 0x3af   :  { %v10019_v10 = vpop.eup %10018 }
 0x3c4   :  { %5006 = vadd.xlane.f32.xlu0 %v5005_v13  ;;  %v13485_v13 = vpop.xlane.xlu0 %4868 }
 0x3c5   :  { %5015 = vadd.xlane.f32.xlu1 %v5014_v43  ;;  %18500 = vst [vmem:[#allocation112_spill] sm:$0xff] %v13485_v13  ;;  %v13488_v43 = vsub.f32 %v18501_v61, %v4273_v0  ;;  %v6110_v0 = vmul.f32 %v10019_v10, %v5918_v18  ;;  %v13502_v61 = vpop.xlane.xlu1 %3911  ;;  %v18505_v13 = vld [vmem:[#allocation122_spill] sm:$0xff]  ;;  %v18507_v10 = vld [vmem:[#allocation157_spill] sm:$0xff] }
 0x3c6   :  { %v4099_v18 = vsel %vm3612_vm0, %v18507_v10, 0.0 }
 0x3c7   :  { %18502 = vst [vmem:[#allocation113_spill] sm:$0xff] %v13488_v43 }
 0x3c8   :  { %3992 = vadd.xlane.f32.xlu0 %v3991_v19  ;;  %v4659_v19 = vmul.f32 %v13480_v59, %v13480_v59  ;;  %v13500_v8 = vpop.xlane.xlu0 %4862 }
 0x3c9   :  { %18504 = vst [vmem:[#allocation118_spill] sm:$0xff] %v13500_v8 }
 0x3ca   :  { %v5023_v34 = vsel %vm3612_vm0, %v4659_v19, 0.0  ;;  %v3997_v19 = vsel %vm3612_vm0, %v12955_v53, 0.0 }
 0x3cc   :  { %4088 = vadd.xlane.f32.xlu0 %v4087_v50  ;;  %v4657_v50 = vmul.f32 %v13488_v43, %v13488_v43  ;;  %v13511_v43 = vsub.f32 %v18505_v13, %v4279_v33 }
 0x3ce   :  { %v5017_v59 = vsel %vm3612_vm0, %v4657_v50, 0.0  ;;  %18506 = vst [vmem:[#allocation119_spill] sm:$0xff] %v13511_v43 }
 0x3d0   :  { %4082 = vadd.xlane.f32.xlu0 %v4081_v11  ;;  %v13505_v11 = vpop.xlane.xlu0 %3920 }
 0x3d4   :  { %5024 = vadd.xlane.f32.xlu0 %v5023_v34  ;;  %v4277_v34 = vmul.f32 0.020408163, %v13334_v14 }
 0x3d6   :  { %6308 = vperm.xlu1 %9626, %v6110_v0   ;;  %v13516_v0 = vpop.xlane.xlu0 %4880 }
 0x3d7   :  { %18508 = vst [vmem:[#allocation122_spill] sm:$0xff] %v13516_v0 }
 0x3d8   :  { %5018 = vadd.xlane.f32.xlu0 %v5017_v59  ;;  %v18509_v59 = vld [vmem:[#allocation123_spill] sm:$0xff] }
 0x3d9   :  { %v13519_v50 = vsub.f32 %v18509_v59, %v4277_v34 }
 0x3da   :  { %v13525_v13 = vpop.xlane.xlu0 %4874 }
 0x3db   :  { %18510 = vst [vmem:[#allocation123_spill] sm:$0xff] %v13519_v50  ;;  %18511 = vst [vmem:[#allocation197_spill] sm:$0xff] %v13525_v13  ;;  %v4661_v33 = vmul.f32 %v13519_v50, %v13519_v50  ;;  %v13539_v13 = vpop.xlane.xlu1 %4859  ;;  %v5926_v50 = vld [vmem:[%s17673_s2 + $0x48] sm:$0xff] }
 0x3dc   :  { %3998 = vadd.xlane.f32.xlu0 %v3997_v19  ;;  %v4663_v19 = vmul.f32 %v13511_v43, %v13511_v43  ;;  %v18512_v43 = vld [vmem:[#allocation115_spill] sm:$0xff] }
 0x3dd   :  { %v5029_v34 = vsel %vm3612_vm0, %v4661_v33, 0.0  ;;  %v13537_v53 = vsub.f32 %v18512_v43, %v4270_v23  ;;  %v5928_v23 = vld [vmem:[%s17673_s2 + $0x58] sm:$0xff]  ;;  %v5347_v43 = vmul.f32 0.020408163, %v13009_v56  ;;  %v18517_v56 = vld [vmem:[#allocation15_spill] sm:$0xff] }
 0x3de   :  { %v5035_v14 = vsel %vm3612_vm0, %v4663_v19, 0.0  ;;  %v13532_v59 = vpop.xlane.xlu0 %3926  ;;  %v4084_v0 = vsel %vm3612_vm0, %v18517_v56, 0.0  ;;  %v18522_v56 = vld [vmem:[#allocation22_spill] sm:$0xff] }
 0x3df   :  { %18513 = vst [vmem:[#allocation115_spill] sm:$0xff] %v13537_v53  ;;  %v13544_v33 = vpop.xlane.xlu1 %4853 }
 0x3e0   :  { %4100 = vadd.xlane.f32.xlu0 %v4099_v18  ;;  %v5352_v18 = vmul.f32 0.020408163, %v13162_v4  ;;  %v4654_v4 = vmul.f32 %v13537_v53, %v13537_v53  ;;  %v5539_v53 = vadd.f32 1e-05, %v5347_v43 }
 0x3e2   :  { %v5544_v10 = vadd.f32 1e-05, %v5352_v18  ;;  %v18514_v18 = vld [vmem:[#allocation189_spill] sm:$0xff] }
 0x3e4   :  { %4094 = vadd.xlane.f32.xlu0 %v4093_v52  ;;  %v5350_v52 = vmul.f32 0.020408163, %v13201_v5  ;;  %10020 = vrsqrt.f32 %v5544_v10  ;;  %v3994_v5 = vsel %vm3612_vm0, %v18514_v18, 0.0  ;;  %v13552_v10 = vpop.xlane.xlu1 %3917 }
 0x3e6   :  { %v5542_v19 = vadd.f32 1e-05, %v5350_v52 }
 0x3e8   :  { %5036 = vadd.xlane.f32.xlu0 %v5035_v14  ;;  %10022 = vrsqrt.f32 %v5542_v19  ;;  %v5008_v14 = vsel %vm3612_vm0, %v4654_v4, 0.0  ;;  %v18516_v4 = vld [vmem:[#allocation17_spill] sm:$0xff]  ;;  %v13564_v8 = vpop.xlane.xlu1 %4871 }
 0x3e9   :  { %10024 = vrsqrt.f32 %v5539_v53 }
 0x3ec   :  { %5030 = vadd.xlane.f32.xlu0 %v5029_v34  ;;  %v13554_v34 = vpop.xlane.xlu0 %4892 }
 0x3ed   :  { %18515 = vst [vmem:[#allocation198_spill] sm:$0xff] %v13554_v34 }
 0x3ee   :  { %v10021_v36 = vpop.eup %10020 }
 0x3ef   :  { %v6120_v52 = vmul.f32 %v10021_v36, %v5928_v23  ;;  %v5348_v23 = vmul.f32 0.020408163, %v13028_v47 }
 0x3f0   :  { %v13566_v36 = vpop.xlane.xlu0 %4886 }
 0x3f1   :  { %v5540_v34 = vadd.f32 1e-05, %v5348_v23 }
 0x3f2   :  { %v10023_v19 = vpop.eup %10022 }
 0x3f3   :  { %v6118_v18 = vmul.f32 %v10023_v19, %v5926_v50  ;;  %v10025_v43 = vpop.eup %10024  ;;  %v13572_v50 = vpop.xlane.xlu1 %4865 }
 0x3f7   :  { %v13577_v53 = vpop.xlane.xlu1 %3923 }
 0x3fa   :  { %5009 = vadd.xlane.f32.xlu1 %v5008_v14  ;;  %v4090_v14 = vsel %vm3612_vm0, %v18516_v4, 0.0 }
 0x3fe   :  { %3995 = vadd.xlane.f32.xlu1 %v3994_v5  ;;  %v5345_v5 = vmul.f32 0.020408163, %v13039_v26  ;;  %v5923_v26 = vld [vmem:[%s17673_s2 + $0x30] sm:$0xff] }
 0x400   :  { %v5537_v4 = vadd.f32 1e-05, %v5345_v5  ;;  %v13584_v5 = vpop.xlane.xlu1 %4883 }
 0x402   :  { %4091 = vadd.xlane.f32.xlu1 %v4090_v14  ;;  %6358 = vperm.xlu0 %9627, %v6120_v52   ;;  %10026 = vrsqrt.f32 %v5537_v4  ;;  %v6115_v52 = vmul.f32 %v10025_v43, %v5923_v26  ;;  %v13582_v4 = vpop.xlane.xlu0 %3932  ;;  %v4283_v43 = vmul.f32 0.020408163, %v13382_v51  ;;  %v4003_v26 = vsel %vm3612_vm0, %v13003_v55, 0.0 }
 0x403   :  { %10028 = vrsqrt.f32 %v5540_v34  ;;  %v5924_v34 = vld [vmem:[%s17673_s2 + $0x38] sm:$0xff]  ;;  %v4105_v51 = vsel %vm3612_vm0, %v18522_v56, 0.0  ;;  %v4276_v56 = vmul.f32 0.020408163, %v13232_v29 }
 0x406   :  { %4085 = vadd.xlane.f32.xlu1 %v4084_v0  ;;  %6348 = vperm.xlu0 %9627, %v6118_v18   ;;  %v5921_v0 = vld [vmem:[%s17673_s2 + $0x20] sm:$0xff]  ;;  %v13586_v23 = vpop.xlane.xlu0 %4904 }
 0x40c   :  { %v10027_v19 = vpop.eup %10026 }
 0x40d   :  { %v6113_v47 = vmul.f32 %v10027_v19, %v5921_v0  ;;  %v10029_v18 = vpop.eup %10028  ;;  %v4281_v0 = vmul.f32 0.020408163, %v13396_v45 }
 0x40e   :  { %v6116_v14 = vmul.f32 %v10029_v18, %v5924_v34  ;;  %v13597_v18 = vpop.xlane.xlu0 %4898  ;;  %v18520_v34 = vld [vmem:[#allocation129_spill] sm:$0xff] }
 0x417   :  { %6333 = vperm.xlu1 %9626, %v6115_v52   ;;  %v18518_v52 = vld [vmem:[#allocation128_spill] sm:$0xff] }
 0x418   :  { %v13592_v19 = vsub.f32 %v18518_v52, %v4283_v43  ;;  %v13606_v43 = vpop.xlane.xlu0 %3938 }
 0x41a   :  { %18519 = vst [vmem:[#allocation128_spill] sm:$0xff] %v13592_v19 }
 0x41b   :  { %6323 = vperm.xlu1 %9626, %v6113_v47   ;;  %v4111_v47 = vsel %vm3612_vm0, %v12991_v46, 0.0 }
 0x41f   :  { %6338 = vperm.xlu1 %9626, %v6116_v14   ;;  %v13600_v14 = vsub.f32 %v18520_v34, %v4281_v0  ;;  %v13613_v34 = vpop.xlane.xlu0 %4916 }
 0x421   :  { %18521 = vst [vmem:[#allocation129_spill] sm:$0xff] %v13600_v14  ;;  %v4665_v52 = vmul.f32 %v13600_v14, %v13600_v14  ;;  %v5346_v14 = vmul.f32 0.020408163, %v13067_v40 }
 0x423   :  { %v5041_v0 = vsel %vm3612_vm0, %v4665_v52, 0.0 }
 0x425   :  { %4004 = vadd.xlane.f32.xlu0 %v4003_v26  ;;  %v4667_v26 = vmul.f32 %v13592_v19, %v13592_v19  ;;  %v18523_v19 = vld [vmem:[#allocation120_spill] sm:$0xff] }
 0x426   :  { %v13618_v55 = vsub.f32 %v18523_v19, %v4276_v56  ;;  %v5930_v19 = vld [vmem:[%s17673_s2 + $0x68] sm:$0xff] }
 0x427   :  { %v5047_v45 = vsel %vm3612_vm0, %v4667_v26, 0.0 }
 0x428   :  { %18524 = vst [vmem:[#allocation120_spill] sm:$0xff] %v13618_v55 }
 0x429   :  { %4112 = vadd.xlane.f32.xlu0 %v4111_v47  ;;  %v5356_v47 = vmul.f32 0.020408163, %v13290_v42  ;;  %v4660_v42 = vmul.f32 %v13618_v55, %v13618_v55  ;;  %v18530_v55 = vld [vmem:[#allocation132_spill] sm:$0xff] }
 0x42b   :  { %v5548_v46 = vadd.f32 1e-05, %v5356_v47  ;;  %v5026_v52 = vsel %vm3612_vm0, %v4660_v42, 0.0 }
 0x42d   :  { %4106 = vadd.xlane.f32.xlu0 %v4105_v51  ;;  %v5354_v51 = vmul.f32 0.020408163, %v13302_v62  ;;  %10030 = vrsqrt.f32 %v5548_v46  ;;  %v5932_v62 = vld [vmem:[%s17673_s2 + $0x78] sm:$0xff]  ;;  %v13629_v46 = vpop.xlane.xlu0 %4910 }
 0x42e   :  { %18525 = vst [vmem:[#allocation199_spill] sm:$0xff] %v13629_v46 }
 0x42f   :  { %v5546_v26 = vadd.f32 1e-05, %v5354_v51 }
 0x431   :  { %5048 = vadd.xlane.f32.xlu0 %v5047_v45  ;;  %10032 = vrsqrt.f32 %v5546_v26  ;;  %v5538_v45 = vadd.f32 1e-05, %v5346_v14  ;;  %v13634_v51 = vpop.xlane.xlu0 %3944  ;;  %v5922_v26 = vld [vmem:[%s17673_s2 + $0x28] sm:$0xff] }
 0x433   :  { %10034 = vrsqrt.f32 %v5538_v45 }
 0x435   :  { %5042 = vadd.xlane.f32.xlu0 %v5041_v0  ;;  %v13624_v0 = vpop.xlane.xlu1 %4877 }
 0x437   :  { %v10031_v29 = vpop.eup %10030 }
 0x438   :  { %v6124_v56 = vmul.f32 %v10031_v29, %v5932_v62  ;;  %v4274_v29 = vmul.f32 0.020408163, %v13265_v39  ;;  %v4285_v62 = vmul.f32 0.020408163, %v13432_v31 }
 0x439   :  { %v13639_v45 = vpop.xlane.xlu1 %3929 }
 0x43b   :  { %v10033_v40 = vpop.eup %10032 }
 0x43c   :  { %v6122_v14 = vmul.f32 %v10033_v40, %v5930_v19  ;;  %v18528_v19 = vld [vmem:[#allocation121_spill] sm:$0xff] }
 0x43d   :  { %v10035_v47 = vpop.eup %10034 }
 0x43e   :  { %v6114_v42 = vmul.f32 %v10035_v47, %v5922_v26  ;;  %v13653_v47 = vsub.f32 %v18530_v55, %v4285_v62  ;;  %v18532_v26 = vld [vmem:[#allocation28_spill] sm:$0xff] }
 0x440   :  { %18531 = vst [vmem:[#allocation132_spill] sm:$0xff] %v13653_v47 }
 0x443   :  { %5027 = vadd.xlane.f32.xlu1 %v5026_v52  ;;  %v13641_v52 = vpop.xlane.xlu0 %4928 }
 0x444   :  { %18526 = vst [vmem:[#allocation200_spill] sm:$0xff] %v13641_v52  ;;  %v13657_v52 = vpop.xlane.xlu1 %4895 }
 0x447   :  { %v13647_v40 = vpop.xlane.xlu0 %4922 }
 0x448   :  { %18527 = vst [vmem:[#allocation201_spill] sm:$0xff] %v13647_v40  ;;  %v13668_v62 = vpop.xlane.xlu1 %4889  ;;  %v18535_v40 = vld [vmem:[#allocation21_spill] sm:$0xff] }
 0x44b   :  { %6378 = vperm.xlu0 %9627, %v6124_v56   ;;  %v4009_v56 = vsel %vm3612_vm0, %v13045_v60, 0.0  ;;  %v13661_v31 = vpop.xlane.xlu0 %3950 }
 0x44f   :  { %6368 = vperm.xlu0 %9627, %v6122_v14   ;;  %v13650_v14 = vsub.f32 %v18528_v19, %v4274_v29  ;;  %v4669_v29 = vmul.f32 %v13653_v47, %v13653_v47  ;;  %v5360_v19 = vmul.f32 0.020408163, %v13349_v7  ;;  %v5358_v47 = vmul.f32 0.020408163, %v13370_v25 }
 0x451   :  { %18529 = vst [vmem:[#allocation121_spill] sm:$0xff] %v13650_v14  ;;  %v4658_v39 = vmul.f32 %v13650_v14, %v13650_v14  ;;  %v18534_v14 = vld [vmem:[#allocation190_spill] sm:$0xff]  ;;  %v5550_v7 = vadd.f32 1e-05, %v5358_v47 }
 0x452   :  { %v4000_v60 = vsel %vm3612_vm0, %v18534_v14, 0.0 }
 0x453   :  { %v5020_v55 = vsel %vm3612_vm0, %v4658_v39, 0.0  ;;  %v13678_v39 = vpop.xlane.xlu1 %3935 }
 0x454   :  { %6328 = vperm.xlu1 %9626, %v6114_v42   ;;  %v4123_v42 = vsel %vm3612_vm0, %v18532_v26, 0.0  ;;  %v13672_v26 = vpop.xlane.xlu0 %4940 }
 0x455   :  { %18533 = vst [vmem:[#allocation202_spill] sm:$0xff] %v13672_v26  ;;  %v18536_v26 = vld [vmem:[#allocation19_spill] sm:$0xff] }
 0x456   :  { %v4096_v14 = vsel %vm3612_vm0, %v18536_v26, 0.0 }
 0x46e   :  { %4010 = vadd.xlane.f32.xlu0 %v4009_v56  ;;  %v4117_v56 = vsel %vm3612_vm0, %v13042_v9, 0.0  ;;  %v5552_v9 = vadd.f32 1e-05, %v5360_v19  ;;  %v5936_v19 = vld [vmem:[%s17673_s2 + $0x98] sm:$0xff] }
 0x470   :  { %10036 = vrsqrt.f32 %v5552_v9  ;;  %v13690_v9 = vpop.xlane.xlu0 %4934 }
 0x471   :  { %10038 = vrsqrt.f32 %v5550_v7  ;;  %18537 = vst [vmem:[#allocation203_spill] sm:$0xff] %v13690_v9 }
 0x472   :  { %4124 = vadd.xlane.f32.xlu0 %v4123_v42  ;;  %v5053_v42 = vsel %vm3612_vm0, %v4669_v29, 0.0 }
 0x474   :  { %v13700_v26 = vpop.xlane.xlu0 %3956 }
 0x476   :  { %4118 = vadd.xlane.f32.xlu0 %v4117_v56  ;;  %v5351_v56 = vmul.f32 0.020408163, %v13143_v30 }
 0x478   :  { %5021 = vadd.xlane.f32.xlu1 %v5020_v55  ;;  %v4102_v55 = vsel %vm3612_vm0, %v18535_v40, 0.0  ;;  %v5543_v29 = vadd.f32 1e-05, %v5351_v56 }
 0x47a   :  { %5054 = vadd.xlane.f32.xlu0 %v5053_v42  ;;  %v5349_v42 = vmul.f32 0.020408163, %v13173_v35  ;;  %10040 = vrsqrt.f32 %v5543_v29  ;;  %v10037_v25 = vpop.eup %10036  ;;  %v5934_v35 = vld [vmem:[%s17673_s2 + $0x88] sm:$0xff] }
 0x47b   :  { %v6128_v47 = vmul.f32 %v10037_v25, %v5936_v19  ;;  %v10039_v56 = vpop.eup %10038  ;;  %v5925_v25 = vld [vmem:[%s17673_s2 + $0x40] sm:$0xff] }
 0x47c   :  { %4001 = vadd.xlane.f32.xlu1 %v4000_v60  ;;  %v13685_v60 = vpop.xlane.xlu1 %4907  ;;  %v5541_v30 = vadd.f32 1e-05, %v5349_v42  ;;  %v6126_v7 = vmul.f32 %v10039_v56, %v5934_v35  ;;  %v4280_v56 = vmul.f32 0.020408163, %v13321_v3  ;;  %v4287_v35 = vmul.f32 0.020408163, %v13451_v37 }
 0x47d   :  { %v18545_v37 = vld [vmem:[#allocation125_spill] sm:$0xff] }
 0x47e   :  { %10042 = vrsqrt.f32 %v5541_v30 }
 0x480   :  { %4103 = vadd.xlane.f32.xlu1 %v4102_v55  ;;  %v13698_v29 = vpop.xlane.xlu1 %4901 }
 0x484   :  { %4097 = vadd.xlane.f32.xlu1 %v4096_v14  ;;  %v10041_v55 = vpop.eup %10040  ;;  %v5927_v14 = vld [vmem:[%s17673_s2 + $0x50] sm:$0xff]  ;;  %v13705_v40 = vpop.xlane.xlu1 %3941 }
 0x485   :  { %v6119_v42 = vmul.f32 %v10041_v55, %v5927_v14  ;;  %v4015_v55 = vsel %vm3612_vm0, %v13089_v63, 0.0 }
 0x488   :  { %v10043_v30 = vpop.eup %10042 }
 0x489   :  { %v6117_v19 = vmul.f32 %v10043_v30, %v5925_v25  ;;  %v13719_v30 = vpop.xlane.xlu1 %4919  ;;  %v18542_v25 = vld [vmem:[#allocation136_spill] sm:$0xff] }
 0x490   :  { %6398 = vperm.xlu0 %9627, %v6128_v47   ;;  %v13707_v47 = vpop.xlane.xlu0 %4952 }
 0x491   :  { %18538 = vst [vmem:[#allocation204_spill] sm:$0xff] %v13707_v47  ;;  %v18544_v47 = vld [vmem:[#allocation32_spill] sm:$0xff] }
 0x492   :  { %v4135_v3 = vsel %vm3612_vm0, %v18544_v47, 0.0 }
 0x494   :  { %6388 = vperm.xlu0 %9627, %v6126_v7   ;;  %v13713_v14 = vpop.xlane.xlu0 %4946  ;;  %v18540_v7 = vld [vmem:[#allocation124_spill] sm:$0xff] }
 0x495   :  { %6353 = vperm.xlu1 %9626, %v6119_v42   ;;  %18539 = vst [vmem:[#allocation205_spill] sm:$0xff] %v13713_v14  ;;  %v13716_v9 = vsub.f32 %v18540_v7, %v4280_v56  ;;  %v4278_v42 = vmul.f32 0.020408163, %v13342_v15  ;;  %v18547_v56 = vld [vmem:[#allocation30_spill] sm:$0xff] }
 0x496   :  { %v4129_v15 = vsel %vm3612_vm0, %v18547_v56, 0.0 }
 0x497   :  { %18541 = vst [vmem:[#allocation124_spill] sm:$0xff] %v13716_v9  ;;  %v13727_v46 = vsub.f32 %v18545_v37, %v4278_v42 }
 0x498   :  { %v13731_v63 = vpop.xlane.xlu0 %3962 }
 0x499   :  { %6343 = vperm.xlu1 %9626, %v6117_v19   ;;  %v13722_v19 = vsub.f32 %v18542_v25, %v4287_v35  ;;  %18546 = vst [vmem:[#allocation125_spill] sm:$0xff] %v13727_v46  ;;  %v13737_v35 = vpop.xlane.xlu1 %4913  ;;  %v4662_v42 = vmul.f32 %v13727_v46, %v13727_v46  ;;  %v18550_v46 = vld [vmem:[#allocation25_spill] sm:$0xff] }
 0x49b   :  { %18543 = vst [vmem:[#allocation136_spill] sm:$0xff] %v13722_v19  ;;  %v4671_v7 = vmul.f32 %v13722_v19, %v13722_v19  ;;  %v5032_v56 = vsel %vm3612_vm0, %v4662_v42, 0.0 }
 0x49d   :  { %v5059_v37 = vsel %vm3612_vm0, %v4671_v7, 0.0  ;;  %v13747_v47 = vpop.xlane.xlu1 %3947 }
 0x4a1   :  { %v13753_v7 = vpop.xlane.xlu1 %4931 }
 0x4b3   :  { %4016 = vadd.xlane.f32.xlu0 %v4015_v55  ;;  %v4664_v55 = vmul.f32 %v13716_v9, %v13716_v9  ;;  %v13744_v9 = vpop.xlane.xlu0 %4964 }
 0x4b4   :  { %18548 = vst [vmem:[#allocation206_spill] sm:$0xff] %v13744_v9  ;;  %v13760_v9 = vpop.xlane.xlu1 %4925 }
 0x4b5   :  { %v5038_v25 = vsel %vm3612_vm0, %v4664_v55, 0.0  ;;  %v18549_v55 = vld [vmem:[#allocation162_spill] sm:$0xff] }
 0x4b6   :  { %v4006_v14 = vsel %vm3612_vm0, %v18549_v55, 0.0 }
 0x4b7   :  { %4136 = vadd.xlane.f32.xlu0 %v4135_v3  ;;  %v5364_v3 = vmul.f32 0.020408163, %v13413_v48  ;;  %v5355_v48 = vmul.f32 0.020408163, %v13282_v12  ;;  %v5940_v12 = vld [vmem:[%s17673_s2 + $0xb8] sm:$0xff] }
 0x4b9   :  { %v5556_v19 = vadd.f32 1e-05, %v5364_v3  ;;  %v5547_v42 = vadd.f32 1e-05, %v5355_v48  ;;  %v18551_v3 = vld [vmem:[#allocation23_spill] sm:$0xff] }
 0x4bb   :  { %4130 = vadd.xlane.f32.xlu0 %v4129_v15  ;;  %v5362_v15 = vmul.f32 0.020408163, %v13428_v41  ;;  %10044 = vrsqrt.f32 %v5556_v19  ;;  %v4108_v41 = vsel %vm3612_vm0, %v18551_v3, 0.0 }
 0x4bd   :  { %5039 = vadd.xlane.f32.xlu1 %v5038_v25  ;;  %v5554_v25 = vadd.f32 1e-05, %v5362_v15  ;;  %v13765_v15 = vpop.xlane.xlu0 %4958 }
 0x4be   :  { %18552 = vst [vmem:[#allocation207_spill] sm:$0xff] %v13765_v15 }
 0x4bf   :  { %5060 = vadd.xlane.f32.xlu0 %v5059_v37  ;;  %v4114_v37 = vsel %vm3612_vm0, %v18550_v46, 0.0  ;;  %10046 = vrsqrt.f32 %v5554_v25 }
 0x4c0   :  { %10048 = vrsqrt.f32 %v5547_v42  ;;  %v5931_v42 = vld [vmem:[%s17673_s2 + $0x70] sm:$0xff] }
 0x4c1   :  { %5033 = vadd.xlane.f32.xlu1 %v5032_v56  ;;  %v5353_v56 = vmul.f32 0.020408163, %v13294_v2  ;;  %v5938_v2 = vld [vmem:[%s17673_s2 + $0xa8] sm:$0xff] }
 0x4c5   :  { %4007 = vadd.xlane.f32.xlu1 %v4006_v14  ;;  %v5545_v14 = vadd.f32 1e-05, %v5353_v56  ;;  %v10045_v19 = vpop.eup %10044  ;;  %v13775_v56 = vpop.xlane.xlu1 %3953 }
 0x4c6   :  { %v6132_v25 = vmul.f32 %v10045_v19, %v5940_v12  ;;  %v5929_v19 = vld [vmem:[%s17673_s2 + $0x60] sm:$0xff] }
 0x4c7   :  { %10050 = vrsqrt.f32 %v5545_v14 }
 0x4c9   :  { %4115 = vadd.xlane.f32.xlu1 %v4114_v37  ;;  %v10047_v48 = vpop.eup %10046 }
 0x4ca   :  { %v6130_v37 = vmul.f32 %v10047_v48, %v5938_v2  ;;  %v10049_v3 = vpop.eup %10048  ;;  %v4289_v2 = vmul.f32 0.020408163, %v13477_v6  ;;  %v4282_v6 = vmul.f32 0.020408163, %v13400_v49 }
 0x4cb   :  { %v6123_v14 = vmul.f32 %v10049_v3, %v5931_v42  ;;  %v4284_v3 = vmul.f32 0.020408163, %v13388_v17  ;;  %v18555_v42 = vld [vmem:[#allocation138_spill] sm:$0xff] }
 0x4cc   :  { %v13791_v15 = vsub.f32 %v18555_v42, %v4289_v2  ;;  %v18560_v2 = vld [vmem:[#allocation130_spill] sm:$0xff] }
 0x4cd   :  { %4109 = vadd.xlane.f32.xlu1 %v4108_v41  ;;  %v13770_v41 = vpop.xlane.xlu0 %3968  ;;  %v13808_v42 = vsub.f32 %v18560_v2, %v4282_v6  ;;  %v5366_v2 = vmul.f32 0.020408163, %v13472_v28 }
 0x4ce   :  { %18556 = vst [vmem:[#allocation138_spill] sm:$0xff] %v13791_v15  ;;  %v4673_v17 = vmul.f32 %v13791_v15, %v13791_v15 }
 0x4cf   :  { %18561 = vst [vmem:[#allocation130_spill] sm:$0xff] %v13808_v42 }
 0x4d0   :  { %v5065_v49 = vsel %vm3612_vm0, %v4673_v17, 0.0  ;;  %v18562_v17 = vld [vmem:[#allocation193_spill] sm:$0xff] }
 0x4d1   :  { %v10051_v46 = vpop.eup %10050  ;;  %v13782_v48 = vpop.xlane.xlu0 %4976 }
 0x4d2   :  { %v6121_v12 = vmul.f32 %v10051_v46, %v5929_v19  ;;  %18553 = vst [vmem:[#allocation208_spill] sm:$0xff] %v13782_v48  ;;  %v18558_v19 = vld [vmem:[#allocation131_spill] sm:$0xff] }
 0x4d5   :  { %6418 = vperm.xlu0 %9627, %v6132_v25   ;;  %v13780_v25 = vpop.xlane.xlu1 %4943  ;;  %v13787_v55 = vpop.xlane.xlu0 %4970 }
 0x4d6   :  { %18554 = vst [vmem:[#allocation209_spill] sm:$0xff] %v13787_v55  ;;  %v4012_v55 = vsel %vm3612_vm0, %v18562_v17, 0.0 }
 0x4d9   :  { %6408 = vperm.xlu0 %9627, %v6130_v37   ;;  %v4021_v37 = vsel %vm3612_vm0, %v13137_v32, 0.0  ;;  %v13799_v48 = vpop.xlane.xlu1 %4937  ;;  %v13801_v32 = vpop.xlane.xlu0 %3974 }
 0x4de   :  { %6373 = vperm.xlu1 %9626, %v6123_v14   ;;  %v18557_v14 = vld [vmem:[#allocation36_spill] sm:$0xff] }
 0x4df   :  { %v4147_v46 = vsel %vm3612_vm0, %v18557_v14, 0.0  ;;  %v13816_v14 = vpop.xlane.xlu0 %4052 }
 0x4e2   :  { %6363 = vperm.xlu1 %9626, %v6121_v12   ;;  %v13796_v12 = vsub.f32 %v18558_v19, %v4284_v3  ;;  %v13814_v19 = vpop.xlane.xlu1 %3959 }
 0x4e4   :  { %18559 = vst [vmem:[#allocation131_spill] sm:$0xff] %v13796_v12  ;;  %v4668_v3 = vmul.f32 %v13796_v12, %v13796_v12 }
 0x4e6   :  { %v13823_v12 = vpop.xlane.xlu1 %4955 }
 0x4f8   :  { %4022 = vadd.xlane.f32.xlu0 %v4021_v37  ;;  %v4141_v37 = vsel %vm3612_vm0, %v13134_v57, 0.0  ;;  %v5050_v57 = vsel %vm3612_vm0, %v4668_v3, 0.0  ;;  %v5359_v3 = vmul.f32 0.020408163, %v13345_v1 }
 0x4fa   :  { %v5551_v28 = vadd.f32 1e-05, %v5359_v3 }
 0x4fc   :  { %4148 = vadd.xlane.f32.xlu0 %v4147_v46  ;;  %v5368_v46 = vmul.f32 0.020408163, %v13445_v22  ;;  %v5558_v22 = vadd.f32 1e-05, %v5366_v2 }
 0x4fe   :  { %v5560_v6 = vadd.f32 1e-05, %v5368_v46 }
 0x500   :  { %4142 = vadd.xlane.f32.xlu0 %v4141_v37  ;;  %v4666_v37 = vmul.f32 %v13808_v42, %v13808_v42  ;;  %10052 = vrsqrt.f32 %v5560_v6 }
 0x501   :  { %10054 = vrsqrt.f32 %v5558_v22  ;;  %v13840_v22 = vpop.xlane.xlu0 %4046 }
 0x502   :  { %v5044_v15 = vsel %vm3612_vm0, %v4666_v37, 0.0  ;;  %v5357_v37 = vmul.f32 0.020408163, %v13356_v27  ;;  %10056 = vrsqrt.f32 %v5551_v28  ;;  %v5942_v27 = vld [vmem:[%s17673_s2 + $0xc8] sm:$0xff]  ;;  %v5935_v28 = vld [vmem:[%s17673_s2 + $0x90] sm:$0xff] }
 0x504   :  { %5066 = vadd.xlane.f32.xlu0 %v5065_v49  ;;  %v13828_v49 = vpop.xlane.xlu1 %4949  ;;  %v5549_v1 = vadd.f32 1e-05, %v5357_v37 }
 0x506   :  { %5051 = vadd.xlane.f32.xlu1 %v5050_v57  ;;  %v18563_v57 = vld [vmem:[#allocation29_spill] sm:$0xff]  ;;  %10058 = vrsqrt.f32 %v5549_v1 }
 0x507   :  { %v4126_v46 = vsel %vm3612_vm0, %v18563_v57, 0.0 }
 0x508   :  { %v13838_v2 = vpop.xlane.xlu1 %3965 }
 0x509   :  { %18565 = vst [vmem:[#allocation210_spill] sm:$0xff] %v13838_v2  ;;  %v18570_v2 = vld [vmem:[#allocation40_spill] sm:$0xff] }
 0x50a   :  { %5045 = vadd.xlane.f32.xlu1 %v5044_v15  ;;  %v10053_v42 = vpop.eup %10052  ;;  %v18564_v15 = vld [vmem:[#allocation27_spill] sm:$0xff] }
 0x50b   :  { %v4120_v6 = vsel %vm3612_vm0, %v18564_v15, 0.0  ;;  %v13845_v15 = vpop.xlane.xlu0 %4988 }
 0x50c   :  { %18566 = vst [vmem:[#allocation211_spill] sm:$0xff] %v13845_v15  ;;  %v13850_v37 = vpop.xlane.xlu1 %4967 }
 0x50e   :  { %4013 = vadd.xlane.f32.xlu1 %v4012_v55  ;;  %v5944_v55 = vld [vmem:[%s17673_s2 + $0xd8] sm:$0xff] }
 0x50f   :  { %v6136_v57 = vmul.f32 %v10053_v42, %v5944_v55  ;;  %v5933_v55 = vld [vmem:[%s17673_s2 + $0x80] sm:$0xff] }
 0x510   :  { %v13855_v1 = vpop.xlane.xlu1 %4961 }
 0x512   :  { %4127 = vadd.xlane.f32.xlu1 %v4126_v46  ;;  %v10055_v46 = vpop.eup %10054 }
 0x513   :  { %v6134_v3 = vmul.f32 %v10055_v46, %v5942_v27  ;;  %v10057_v17 = vpop.eup %10056  ;;  %v13857_v46 = vpop.xlane.xlu0 %4982  ;;  %v4291_v27 = vmul.f32 0.020408163, %v13505_v11 }
 0x514   :  { %v10059_v42 = vpop.eup %10058  ;;  %18567 = vst [vmem:[#allocation212_spill] sm:$0xff] %v13857_v46  ;;  %v18573_v46 = vld [vmem:[#allocation134_spill] sm:$0xff] }
 0x516   :  { %4121 = vadd.xlane.f32.xlu1 %v4120_v6  ;;  %v6127_v6 = vmul.f32 %v10057_v17, %v5935_v28  ;;  %v18568_v17 = vld [vmem:[#allocation142_spill] sm:$0xff] }
 0x517   :  { %v13862_v15 = vpop.xlane.xlu0 %3980  ;;  %v13865_v28 = vsub.f32 %v18568_v17, %v4291_v27  ;;  %v5372_v27 = vmul.f32 0.020408163, %v13539_v13 }
 0x519   :  { %18569 = vst [vmem:[#allocation142_spill] sm:$0xff] %v13865_v28 }
 0x51a   :  { %6438 = vperm.xlu0 %9627, %v6136_v57   ;;  %v6125_v57 = vmul.f32 %v10059_v42, %v5933_v55  ;;  %v4286_v42 = vmul.f32 0.020408163, %v13437_v44 }
 0x51b   :  { %v13870_v55 = vpop.xlane.xlu0 %4064 }
 0x51c   :  { %18571 = vst [vmem:[#allocation213_spill] sm:$0xff] %v13870_v55  ;;  %v5370_v55 = vmul.f32 0.020408163, %v13544_v33 }
 0x51e   :  { %6428 = vperm.xlu0 %9627, %v6134_v3   ;;  %v4027_v3 = vsel %vm3612_vm0, %v13179_v24, 0.0  ;;  %v4675_v24 = vmul.f32 %v13865_v28, %v13865_v28  ;;  %v5562_v13 = vadd.f32 1e-05, %v5370_v55 }
 0x520   :  { %v5071_v17 = vsel %vm3612_vm0, %v4675_v24, 0.0 }
 0x527   :  { %6393 = vperm.xlu1 %9626, %v6127_v6   ;;  %v4159_v6 = vsel %vm3612_vm0, %v18570_v2, 0.0  ;;  %v13881_v2 = vpop.xlane.xlu1 %3971 }
 0x528   :  { %18575 = vst [vmem:[#allocation214_spill] sm:$0xff] %v13881_v2 }
 0x52b   :  { %6383 = vperm.xlu1 %9626, %v6125_v57   ;;  %v18572_v57 = vld [vmem:[#allocation38_spill] sm:$0xff]  ;;  %v13889_v28 = vpop.xlane.xlu1 %4979 }
 0x52c   :  { %v4153_v11 = vsel %vm3612_vm0, %v18572_v57, 0.0  ;;  %v5564_v57 = vadd.f32 1e-05, %v5372_v27 }
 0x52e   :  { %10060 = vrsqrt.f32 %v5564_v57  ;;  %v5948_v57 = vld [vmem:[%s17673_s2 + $0xf8] sm:$0xff] }
 0x52f   :  { %10062 = vrsqrt.f32 %v5562_v13 }
 0x538   :  { %v10061_v2 = vpop.eup %10060 }
 0x53d   :  { %4028 = vadd.xlane.f32.xlu0 %v4027_v3  ;;  %v13877_v3 = vsub.f32 %v18573_v46, %v4286_v42  ;;  %v18576_v46 = vld [vmem:[#allocation195_spill] sm:$0xff]  ;;  %v5363_v42 = vmul.f32 0.020408163, %v13405_v58 }
 0x53e   :  { %v4018_v24 = vsel %vm3612_vm0, %v18576_v46, 0.0 }
 0x53f   :  { %18574 = vst [vmem:[#allocation134_spill] sm:$0xff] %v13877_v3  ;;  %v4670_v44 = vmul.f32 %v13877_v3, %v13877_v3  ;;  %v18577_v3 = vld [vmem:[#allocation33_spill] sm:$0xff]  ;;  %v5555_v33 = vadd.f32 1e-05, %v5363_v42 }
 0x540   :  { %v4138_v27 = vsel %vm3612_vm0, %v18577_v3, 0.0  ;;  %v6140_v3 = vmul.f32 %v10061_v2, %v5948_v57  ;;  %v5937_v57 = vld [vmem:[%s17673_s2 + $0xa0] sm:$0xff] }
 0x541   :  { %4160 = vadd.xlane.f32.xlu0 %v4159_v6  ;;  %v13883_v6 = vpop.xlane.xlu0 %4058  ;;  %10064 = vrsqrt.f32 %v5555_v33  ;;  %v5939_v33 = vld [vmem:[%s17673_s2 + $0xb0] sm:$0xff] }
 0x545   :  { %4154 = vadd.xlane.f32.xlu0 %v4153_v11  ;;  %v5056_v11 = vsel %vm3612_vm0, %v4670_v44, 0.0  ;;  %v5361_v44 = vmul.f32 0.020408163, %v13419_v16  ;;  %v5946_v16 = vld [vmem:[%s17673_s2 + $0xe8] sm:$0xff] }
 0x547   :  { %v5553_v58 = vadd.f32 1e-05, %v5361_v44 }
 0x549   :  { %5072 = vadd.xlane.f32.xlu0 %v5071_v17  ;;  %v13894_v17 = vpop.xlane.xlu1 %4973  ;;  %10066 = vrsqrt.f32 %v5553_v58 }
 0x54d   :  { %v13904_v13 = vpop.xlane.xlu1 %3977 }
 0x54e   :  { %18579 = vst [vmem:[#allocation215_spill] sm:$0xff] %v13904_v13  ;;  %v5374_v13 = vmul.f32 0.020408163, %v13572_v50 }
 0x54f   :  { %5057 = vadd.xlane.f32.xlu1 %v5056_v11  ;;  %v18578_v11 = vld [vmem:[#allocation31_spill] sm:$0xff] }
 0x550   :  { %v4132_v55 = vsel %vm3612_vm0, %v18578_v11, 0.0 }
 0x551   :  { %v13916_v44 = vpop.xlane.xlu1 %4055 }
 0x552   :  { %18582 = vst [vmem:[#allocation218_spill] sm:$0xff] %v13916_v44  ;;  %v18587_v44 = vld [vmem:[#allocation44_spill] sm:$0xff] }
 0x553   :  { %4019 = vadd.xlane.f32.xlu1 %v4018_v24  ;;  %v13906_v24 = vpop.xlane.xlu0 %5000 }
 0x554   :  { %18580 = vst [vmem:[#allocation216_spill] sm:$0xff] %v13906_v24 }
 0x555   :  { %v13921_v58 = vpop.xlane.xlu1 %4049 }
 0x556   :  { %18583 = vst [vmem:[#allocation219_spill] sm:$0xff] %v13921_v58  ;;  %v18589_v58 = vld [vmem:[#allocation137_spill] sm:$0xff] }
 0x557   :  { %4139 = vadd.xlane.f32.xlu1 %v4138_v27  ;;  %v10063_v27 = vpop.eup %10062  ;;  %v13911_v11 = vpop.xlane.xlu0 %4994 }
 0x558   :  { %v6138_v42 = vmul.f32 %v10063_v27, %v5946_v16  ;;  %18581 = vst [vmem:[#allocation217_spill] sm:$0xff] %v13911_v11  ;;  %v10065_v46 = vpop.eup %10064  ;;  %v4293_v16 = vmul.f32 0.020408163, %v13532_v59 }
 0x559   :  { %v10067_v2 = vpop.eup %10066 }
 0x55b   :  { %4133 = vadd.xlane.f32.xlu1 %v4132_v55  ;;  %v6131_v55 = vmul.f32 %v10065_v46, %v5939_v33  ;;  %v13923_v27 = vpop.xlane.xlu0 %3986  ;;  %v18585_v46 = vld [vmem:[#allocation145_spill] sm:$0xff] }
 0x55c   :  { %v13931_v33 = vsub.f32 %v18585_v46, %v4293_v16  ;;  %v5376_v16 = vmul.f32 0.020408163, %v13564_v8  ;;  %v5566_v8 = vadd.f32 1e-05, %v5374_v13 }
 0x55e   :  { %18586 = vst [vmem:[#allocation145_spill] sm:$0xff] %v13931_v33 }
 0x55f   :  { %6458 = vperm.xlu0 %9627, %v6140_v3   ;;  %v6129_v3 = vmul.f32 %v10067_v2, %v5937_v57  ;;  %v13928_v24 = vpop.xlane.xlu0 %4076  ;;  %v4288_v2 = vmul.f32 0.020408163, %v13502_v61 }
 0x563   :  { %6448 = vperm.xlu0 %9627, %v6138_v42   ;;  %v18584_v42 = vld [vmem:[#allocation196_spill] sm:$0xff]  ;;  %v13936_v57 = vpop.xlane.xlu0 %4070 }
 0x564   :  { %v4033_v11 = vsel %vm3612_vm0, %v18584_v42, 0.0  ;;  %v4677_v42 = vmul.f32 %v13931_v33, %v13931_v33 }
 0x566   :  { %v5077_v46 = vsel %vm3612_vm0, %v4677_v42, 0.0 }
 0x56c   :  { %6413 = vperm.xlu1 %9626, %v6131_v55   ;;  %v4171_v55 = vsel %vm3612_vm0, %v18587_v44, 0.0  ;;  %v13947_v44 = vpop.xlane.xlu1 %4991 }
 0x570   :  { %6403 = vperm.xlu1 %9626, %v6129_v3   ;;  %v18588_v3 = vld [vmem:[#allocation42_spill] sm:$0xff]  ;;  %v13955_v33 = vpop.xlane.xlu1 %4985 }
 0x571   :  { %v4165_v59 = vsel %vm3612_vm0, %v18588_v3, 0.0  ;;  %v5568_v3 = vadd.f32 1e-05, %v5376_v16 }
 0x573   :  { %10068 = vrsqrt.f32 %v5568_v3  ;;  %v5952_v3 = vld [vmem:[%s17673_s2 + $0x118] sm:$0xff] }
 0x574   :  { %10070 = vrsqrt.f32 %v5566_v8 }
 0x582   :  { %4034 = vadd.xlane.f32.xlu0 %v4033_v11  ;;  %v13943_v11 = vsub.f32 %v18589_v58, %v4288_v2  ;;  %v18592_v58 = vld [vmem:[#allocation35_spill] sm:$0xff]  ;;  %v5367_v2 = vmul.f32 0.020408163, %v13447_v38 }
 0x583   :  { %v4024_v42 = vsel %vm3612_vm0, %v18592_v58, 0.0 }
 0x584   :  { %18590 = vst [vmem:[#allocation137_spill] sm:$0xff] %v13943_v11  ;;  %v4672_v61 = vmul.f32 %v13943_v11, %v13943_v11  ;;  %v18594_v11 = vld [vmem:[#allocation37_spill] sm:$0xff]  ;;  %v5559_v50 = vadd.f32 1e-05, %v5367_v2  ;;  %v5950_v2 = vld [vmem:[%s17673_s2 + $0x108] sm:$0xff] }
 0x585   :  { %v4150_v16 = vsel %vm3612_vm0, %v18594_v11, 0.0 }
 0x586   :  { %4172 = vadd.xlane.f32.xlu0 %v4171_v55  ;;  %v13949_v55 = vpop.xlane.xlu0 %5012  ;;  %10072 = vrsqrt.f32 %v5559_v50  ;;  %v5943_v50 = vld [vmem:[%s17673_s2 + $0xd0] sm:$0xff] }
 0x587   :  { %18591 = vst [vmem:[#allocation220_spill] sm:$0xff] %v13949_v55  ;;  %v10069_v55 = vpop.eup %10068 }
 0x588   :  { %v10071_v58 = vpop.eup %10070 }
 0x58a   :  { %4166 = vadd.xlane.f32.xlu0 %v4165_v59  ;;  %v5062_v59 = vsel %vm3612_vm0, %v4672_v61, 0.0  ;;  %v5365_v61 = vmul.f32 0.020408163, %v13449_v54  ;;  %v13975_v54 = vpop.permute.xlu0 %6303 }
 0x58b   :  { %18597 = vst [vmem:[#allocation223_spill] sm:$0xff] %v13975_v54 }
 0x58c   :  { %v5557_v38 = vadd.f32 1e-05, %v5365_v61 }
 0x58e   :  { %5078 = vadd.xlane.f32.xlu0 %v5077_v46  ;;  %v13960_v46 = vpop.xlane.xlu1 %3983  ;;  %10074 = vrsqrt.f32 %v5557_v38 }
 0x58f   :  { %18593 = vst [vmem:[#allocation221_spill] sm:$0xff] %v13960_v46  ;;  %v5378_v46 = vmul.f32 0.020408163, %v13624_v0 }
 0x590   :  { %v10073_v11 = vpop.eup %10072 }
 0x592   :  { %v13970_v8 = vpop.xlane.xlu1 %4067 }
 0x593   :  { %18596 = vst [vmem:[#allocation222_spill] sm:$0xff] %v13970_v8  ;;  %v18605_v8 = vld [vmem:[#allocation140_spill] sm:$0xff] }
 0x594   :  { %5063 = vadd.xlane.f32.xlu1 %v5062_v59  ;;  %v18595_v59 = vld [vmem:[#allocation171_spill] sm:$0xff] }
 0x595   :  { %v4144_v13 = vsel %vm3612_vm0, %v18595_v59, 0.0  ;;  %v13977_v59 = vpop.xlane.xlu0 %5006 }
 0x596   :  { %18598 = vst [vmem:[#allocation224_spill] sm:$0xff] %v13977_v59  ;;  %v13982_v61 = vpop.xlane.xlu1 %4061 }
 0x597   :  { %18599 = vst [vmem:[#allocation225_spill] sm:$0xff] %v13982_v61  ;;  %v18603_v61 = vld [vmem:[#allocation98_spill] sm:$0xff] }
 0x598   :  { %4025 = vadd.xlane.f32.xlu1 %v4024_v42  ;;  %v6144_v42 = vmul.f32 %v10069_v55, %v5952_v3  ;;  %v6135_v55 = vmul.f32 %v10073_v11, %v5943_v50  ;;  %v5941_v3 = vld [vmem:[%s17673_s2 + $0xc0] sm:$0xff]  ;;  %v18601_v11 = vld [vmem:[#allocation149_spill] sm:$0xff] }
 0x59a   :  { %v13987_v38 = vpop.xlane.xlu1 %5003 }
 0x59c   :  { %4151 = vadd.xlane.f32.xlu1 %v4150_v16  ;;  %v6142_v16 = vmul.f32 %v10071_v58, %v5950_v2  ;;  %v13989_v58 = vpop.xlane.xlu0 %3992  ;;  %v4295_v2 = vmul.f32 0.020408163, %v13582_v4 }
 0x59e   :  { %v13997_v50 = vsub.f32 %v18601_v11, %v4295_v2  ;;  %v5380_v2 = vmul.f32 0.020408163, %v13584_v5  ;;  %v5570_v5 = vadd.f32 1e-05, %v5378_v46 }
 0x5a0   :  { %4145 = vadd.xlane.f32.xlu1 %v4144_v13  ;;  %v10075_v13 = vpop.eup %10074  ;;  %v13994_v59 = vpop.xlane.xlu0 %4088  ;;  %18602 = vst [vmem:[#allocation149_spill] sm:$0xff] %v13997_v50 }
 0x5a4   :  { %6478 = vperm.xlu0 %9627, %v6144_v42   ;;  %v6133_v42 = vmul.f32 %v10075_v13, %v5941_v3  ;;  %v4290_v13 = vmul.f32 0.020408163, %v13552_v10  ;;  %v14002_v3 = vpop.xlane.xlu0 %4082 }
 0x5a8   :  { %6468 = vperm.xlu0 %9627, %v6142_v16   ;;  %v18600_v16 = vld [vmem:[#allocation46_spill] sm:$0xff] }
 0x5a9   :  { %v4039_v54 = vsel %vm3612_vm0, %v18600_v16, 0.0  ;;  %v4679_v16 = vmul.f32 %v13997_v50, %v13997_v50 }
 0x5ab   :  { %v5083_v11 = vsel %vm3612_vm0, %v4679_v16, 0.0 }
 0x5b1   :  { %6433 = vperm.xlu1 %9626, %v6135_v55   ;;  %v4183_v55 = vsel %vm3612_vm0, %v18603_v61, 0.0  ;;  %v14013_v61 = vpop.xlane.xlu1 %4997 }
 0x5b5   :  { %6423 = vperm.xlu1 %9626, %v6133_v42   ;;  %v18604_v42 = vld [vmem:[#allocation48_spill] sm:$0xff]  ;;  %v14021_v50 = vpop.xlane.xlu1 %3989 }
 0x5b6   :  { %v4177_v4 = vsel %vm3612_vm0, %v18604_v42, 0.0  ;;  %v5572_v42 = vadd.f32 1e-05, %v5380_v2  ;;  %18608 = vst [vmem:[#allocation227_spill] sm:$0xff] %v14021_v50 }
 0x5b8   :  { %10076 = vrsqrt.f32 %v5572_v42  ;;  %v5956_v42 = vld [vmem:[%s17673_s2 + $0x138] sm:$0xff] }
 0x5b9   :  { %10078 = vrsqrt.f32 %v5570_v5 }
 0x5c7   :  { %4040 = vadd.xlane.f32.xlu0 %v4039_v54  ;;  %v14009_v54 = vsub.f32 %v18605_v8, %v4290_v13  ;;  %v18609_v8 = vld [vmem:[#allocation172_spill] sm:$0xff]  ;;  %v5371_v13 = vmul.f32 0.020408163, %v13461_v21 }
 0x5c8   :  { %v4030_v16 = vsel %vm3612_vm0, %v18609_v8, 0.0 }
 0x5c9   :  { %18606 = vst [vmem:[#allocation140_spill] sm:$0xff] %v14009_v54  ;;  %v4674_v10 = vmul.f32 %v14009_v54, %v14009_v54  ;;  %v18611_v54 = vld [vmem:[#allocation41_spill] sm:$0xff]  ;;  %v5563_v0 = vadd.f32 1e-05, %v5371_v13 }
 0x5ca   :  { %v4162_v2 = vsel %vm3612_vm0, %v18611_v54, 0.0 }
 0x5cb   :  { %4184 = vadd.xlane.f32.xlu0 %v4183_v55  ;;  %v14015_v55 = vpop.xlane.xlu0 %5024  ;;  %10080 = vrsqrt.f32 %v5563_v0  ;;  %v5947_v0 = vld [vmem:[%s17673_s2 + $0xf0] sm:$0xff] }
 0x5cc   :  { %18607 = vst [vmem:[#allocation226_spill] sm:$0xff] %v14015_v55  ;;  %v10077_v55 = vpop.eup %10076 }
 0x5cd   :  { %v6148_v54 = vmul.f32 %v10077_v55, %v5956_v42  ;;  %v5945_v42 = vld [vmem:[%s17673_s2 + $0xe0] sm:$0xff] }
 0x5cf   :  { %4178 = vadd.xlane.f32.xlu0 %v4177_v4  ;;  %v5068_v4 = vsel %vm3612_vm0, %v4674_v10, 0.0  ;;  %v5369_v10 = vmul.f32 0.020408163, %v13468_v20  ;;  %v5954_v20 = vld [vmem:[%s17673_s2 + $0x128] sm:$0xff] }
 0x5d1   :  { %v5561_v21 = vadd.f32 1e-05, %v5369_v10 }
 0x5d3   :  { %5084 = vadd.xlane.f32.xlu0 %v5083_v11  ;;  %v14026_v11 = vpop.xlane.xlu1 %4079  ;;  %10082 = vrsqrt.f32 %v5561_v21 }
 0x5d4   :  { %18610 = vst [vmem:[#allocation228_spill] sm:$0xff] %v14026_v11  ;;  %v18626_v11 = vld [vmem:[#allocation181_spill] sm:$0xff] }
 0x5d5   :  { %v4168_v50 = vsel %vm3612_vm0, %v18626_v11, 0.0 }
 0x5d7   :  { %v14036_v5 = vpop.xlane.xlu1 %4073 }
 0x5d8   :  { %18613 = vst [vmem:[#allocation229_spill] sm:$0xff] %v14036_v5 }
 0x5d9   :  { %5069 = vadd.xlane.f32.xlu1 %v5068_v4  ;;  %v18612_v4 = vld [vmem:[#allocation39_spill] sm:$0xff] }
 0x5da   :  { %v4156_v46 = vsel %vm3612_vm0, %v18612_v4, 0.0 }
 0x5db   :  { %v14048_v10 = vpop.permute.xlu1 %6313 }
 0x5dc   :  { %18615 = vst [vmem:[#allocation231_spill] sm:$0xff] %v14048_v10 }
 0x5dd   :  { %4031 = vadd.xlane.f32.xlu1 %v4030_v16  ;;  %v14038_v16 = vpop.xlane.xlu0 %5018 }
 0x5de   :  { %18614 = vst [vmem:[#allocation230_spill] sm:$0xff] %v14038_v16 }
 0x5df   :  { %v14053_v21 = vpop.permute.xlu1 %6318 }
 0x5e0   :  { %18616 = vst [vmem:[#allocation232_spill] sm:$0xff] %v14053_v21  ;;  %v18624_v21 = vld [vmem:[#allocation45_spill] sm:$0xff] }
 0x5e1   :  { %4163 = vadd.xlane.f32.xlu1 %v4162_v2  ;;  %v10079_v2 = vpop.eup %10078  ;;  %v14043_v4 = vpop.xlane.xlu0 %3998 }
 0x5e2   :  { %v6146_v13 = vmul.f32 %v10079_v2, %v5954_v20  ;;  %v10081_v8 = vpop.eup %10080  ;;  %v4297_v2 = vmul.f32 0.020408163, %v13606_v43  ;;  %v18617_v20 = vld [vmem:[#allocation153_spill] sm:$0xff] }
 0x5e3   :  { %v10083_v55 = vpop.eup %10082 }
 0x5e5   :  { %4157 = vadd.xlane.f32.xlu1 %v4156_v46  ;;  %v6139_v46 = vmul.f32 %v10081_v8, %v5947_v0  ;;  %v5384_v8 = vmul.f32 0.020408163, %v13657_v52  ;;  %v14063_v10 = vpop.xlane.xlu0 %4100  ;;  %v14072_v52 = vpop.xlane.xlu1 %5015 }
 0x5e9   :  { %6498 = vperm.xlu0 %9627, %v6148_v54   ;;  %v6137_v54 = vmul.f32 %v10083_v55, %v5945_v42  ;;  %v5382_v55 = vmul.f32 0.020408163, %v13668_v62  ;;  %v4292_v42 = vmul.f32 0.020408163, %v13577_v53  ;;  %v5960_v62 = vld [vmem:[%s17673_s2 + $0x158] sm:$0xff]  ;;  %v14078_v53 = vpop.permute.xlu1 %6308 }
 0x5ea   :  { %18621 = vst [vmem:[#allocation233_spill] sm:$0xff] %v14078_v53  ;;  %v4174_v53 = vsel %vm3612_vm0, %v18624_v21, 0.0 }
 0x5eb   :  { %v5574_v43 = vadd.f32 1e-05, %v5382_v55  ;;  %v18622_v55 = vld [vmem:[#allocation97_spill] sm:$0xff] }
 0x5ed   :  { %6488 = vperm.xlu0 %9627, %v6146_v13   ;;  %v14057_v13 = vsub.f32 %v18617_v20, %v4297_v2 }
 0x5ef   :  { %18618 = vst [vmem:[#allocation153_spill] sm:$0xff] %v14057_v13  ;;  %v4681_v16 = vmul.f32 %v14057_v13, %v14057_v13 }
 0x5f1   :  { %v5089_v0 = vsel %vm3612_vm0, %v4681_v16, 0.0 }
 0x5f6   :  { %6453 = vperm.xlu1 %9626, %v6139_v46   ;;  %v5576_v46 = vadd.f32 1e-05, %v5384_v8  ;;  %v14080_v8 = vpop.xlane.xlu0 %4094 }
 0x5f8   :  { %10084 = vrsqrt.f32 %v5576_v46 }
 0x5f9   :  { %10086 = vrsqrt.f32 %v5574_v43  ;;  %v5958_v43 = vld [vmem:[%s17673_s2 + $0x148] sm:$0xff] }
 0x5fa   :  { %6443 = vperm.xlu1 %9626, %v6137_v54   ;;  %v18619_v54 = vld [vmem:[#allocation143_spill] sm:$0xff]  ;;  %v14092_v5 = vpop.xlane.xlu0 %5036 }
 0x5fb   :  { %v14068_v2 = vsub.f32 %v18619_v54, %v4292_v42  ;;  %v4036_v42 = vsel %vm3612_vm0, %v18622_v55, 0.0  ;;  %v18623_v54 = vld [vmem:[#allocation112_spill] sm:$0xff] }
 0x5fd   :  { %18620 = vst [vmem:[#allocation143_spill] sm:$0xff] %v14068_v2  ;;  %v4676_v20 = vmul.f32 %v14068_v2, %v14068_v2  ;;  %v14088_v2 = vpop.xlane.xlu1 %5009 }
 0x5ff   :  { %v5074_v13 = vsel %vm3612_vm0, %v4676_v20, 0.0  ;;  %v5375_v20 = vmul.f32 0.020408163, %v18623_v54 }
 0x602   :  { %v10085_v16 = vpop.eup %10084 }
 0x603   :  { %v10087_v46 = vpop.eup %10086 }
 0x60c   :  { %5090 = vadd.xlane.f32.xlu0 %v5089_v0  ;;  %v6152_v0 = vmul.f32 %v10085_v16, %v5960_v62  ;;  %v5567_v16 = vadd.f32 1e-05, %v5375_v20  ;;  %v18625_v62 = vld [vmem:[#allocation118_spill] sm:$0xff] }
 0x60d   :  { %v5373_v55 = vmul.f32 0.020408163, %v18625_v62  ;;  %v5949_v62 = vld [vmem:[%s17673_s2 + $0x100] sm:$0xff] }
 0x60e   :  { %10088 = vrsqrt.f32 %v5567_v16 }
 0x61e   :  { %5075 = vadd.xlane.f32.xlu1 %v5074_v13  ;;  %v6150_v13 = vmul.f32 %v10087_v46, %v5958_v43  ;;  %v10089_v46 = vpop.eup %10088  ;;  %v5951_v43 = vld [vmem:[%s17673_s2 + $0x110] sm:$0xff] }
 0x61f   :  { %v6143_v20 = vmul.f32 %v10089_v46, %v5951_v43  ;;  %v14117_v43 = vpop.xlane.xlu0 %5030 }
 0x620   :  { %18629 = vst [vmem:[#allocation118_spill] sm:$0xff] %v14117_v43 }
 0x622   :  { %4037 = vadd.xlane.f32.xlu1 %v4036_v42  ;;  %6518 = vperm.xlu0 %9627, %v6152_v0   ;;  %v14097_v42 = vpop.xlane.xlu1 %3995  ;;  %v5565_v0 = vadd.f32 1e-05, %v5373_v55 }
 0x624   :  { %10090 = vrsqrt.f32 %v5565_v0 }
 0x626   :  { %4175 = vadd.xlane.f32.xlu1 %v4174_v53  ;;  %6508 = vperm.xlu0 %9627, %v6150_v13   ;;  %v4299_v53 = vmul.f32 0.020408163, %v13634_v51  ;;  %v14103_v54 = vpop.xlane.xlu1 %4091  ;;  %v5388_v51 = vmul.f32 0.020408163, %v13685_v60 }
 0x628   :  { %v5580_v21 = vadd.f32 1e-05, %v5388_v51 }
 0x62a   :  { %4169 = vadd.xlane.f32.xlu1 %v4168_v50  ;;  %v18627_v50 = vld [vmem:[#allocation158_spill] sm:$0xff]  ;;  %v14111_v0 = vpop.xlane.xlu1 %4085  ;;  %10092 = vrsqrt.f32 %v5580_v21 }
 0x62b   :  { %v14109_v16 = vsub.f32 %v18627_v50, %v4299_v53  ;;  %v5964_v50 = vld [vmem:[%s17673_s2 + $0x178] sm:$0xff] }
 0x62d   :  { %18628 = vst [vmem:[#allocation112_spill] sm:$0xff] %v14109_v16  ;;  %v4683_v11 = vmul.f32 %v14109_v16, %v14109_v16  ;;  %v18631_v16 = vld [vmem:[#allocation147_spill] sm:$0xff] }
 0x62e   :  { %v10091_v13 = vpop.eup %10090 }
 0x62f   :  { %v6141_v55 = vmul.f32 %v10091_v13, %v5949_v62  ;;  %v5095_v46 = vsel %vm3612_vm0, %v4683_v11, 0.0  ;;  %v4294_v62 = vmul.f32 0.020408163, %v13639_v45 }
 0x631   :  { %v14127_v43 = vsub.f32 %v18631_v16, %v4294_v62  ;;  %v18636_v16 = vld [vmem:[#allocation47_spill] sm:$0xff]  ;;  %v18637_v62 = vld [vmem:[#allocation122_spill] sm:$0xff] }
 0x633   :  { %18632 = vst [vmem:[#allocation147_spill] sm:$0xff] %v14127_v43  ;;  %v4678_v45 = vmul.f32 %v14127_v43, %v14127_v43 }
 0x634   :  { %v10093_v13 = vpop.eup %10092 }
 0x635   :  { %v6156_v60 = vmul.f32 %v10093_v13, %v5964_v50  ;;  %v4042_v13 = vsel %vm3612_vm0, %v18636_v16, 0.0  ;;  %v5379_v50 = vmul.f32 0.020408163, %v18637_v62  ;;  %v18642_v62 = vld [vmem:[#allocation163_spill] sm:$0xff] }
 0x637   :  { %v5571_v43 = vadd.f32 1e-05, %v5379_v50 }
 0x63b   :  { %6473 = vperm.xlu1 %9626, %v6143_v20   ;;  %v5386_v20 = vmul.f32 0.020408163, %v13698_v29  ;;  %v5962_v29 = vld [vmem:[%s17673_s2 + $0x168] sm:$0xff] }
 0x63d   :  { %v5578_v53 = vadd.f32 1e-05, %v5386_v20  ;;  %v5080_v20 = vsel %vm3612_vm0, %v4678_v45, 0.0 }
 0x63f   :  { %6463 = vperm.xlu1 %9626, %v6141_v55   ;;  %10094 = vrsqrt.f32 %v5578_v53  ;;  %v14124_v55 = vpop.permute.xlu0 %6358 }
 0x640   :  { %18630 = vst [vmem:[#allocation158_spill] sm:$0xff] %v14124_v55  ;;  %v18641_v55 = vld [vmem:[#allocation49_spill] sm:$0xff]  ;;  %10096 = vrsqrt.f32 %v5571_v43 }
 0x641   :  { %v4180_v45 = vsel %vm3612_vm0, %v18641_v55, 0.0 }
 0x643   :  { %v14134_v51 = vpop.permute.xlu0 %6348 }
 0x644   :  { %18633 = vst [vmem:[#allocation234_spill] sm:$0xff] %v14134_v51 }
 0x645   :  { %5096 = vadd.xlane.f32.xlu0 %v5095_v46  ;;  %v14136_v46 = vpop.permute.xlu1 %6333 }
 0x646   :  { %18634 = vst [vmem:[#allocation235_spill] sm:$0xff] %v14136_v46  ;;  %v18640_v46 = vld [vmem:[#allocation197_spill] sm:$0xff] }
 0x647   :  { %v14164_v43 = vpop.xlane.xlu0 %4004 }
 0x649   :  { %v10095_v11 = vpop.eup %10094  ;;  %v14139_v53 = vpop.permute.xlu1 %6323 }
 0x64a   :  { %v6154_v21 = vmul.f32 %v10095_v11, %v5962_v29  ;;  %18635 = vst [vmem:[#allocation236_spill] sm:$0xff] %v14139_v53  ;;  %v10097_v50 = vpop.eup %10096 }
 0x64d   :  { %v14146_v29 = vpop.permute.xlu1 %6338 }
 0x64e   :  { %18639 = vst [vmem:[#allocation122_spill] sm:$0xff] %v14146_v29  ;;  %v5392_v29 = vmul.f32 0.020408163, %v13719_v30 }
 0x65b   :  { %6538 = vperm.xlu0 %9627, %v6156_v60   ;;  %v18638_v60 = vld [vmem:[#allocation177_spill] sm:$0xff] }
 0x65c   :  { %v4186_v11 = vsel %vm3612_vm0, %v18638_v60, 0.0 }
 0x65f   :  { %6528 = vperm.xlu0 %9627, %v6154_v21   ;;  %v5377_v21 = vmul.f32 0.020408163, %v18640_v46  ;;  %v5955_v46 = vld [vmem:[%s17673_s2 + $0x130] sm:$0xff] }
 0x661   :  { %v5569_v53 = vadd.f32 1e-05, %v5377_v21  ;;  %v5953_v21 = vld [vmem:[%s17673_s2 + $0x120] sm:$0xff] }
 0x663   :  { %5081 = vadd.xlane.f32.xlu1 %v5080_v20  ;;  %v14151_v20 = vpop.xlane.xlu1 %5027  ;;  %10098 = vrsqrt.f32 %v5569_v53 }
 0x667   :  { %4043 = vadd.xlane.f32.xlu1 %v4042_v13  ;;  %v4301_v13 = vmul.f32 0.020408163, %v13661_v31  ;;  %v6147_v31 = vmul.f32 %v10097_v50, %v5955_v46  ;;  %v5968_v50 = vld [vmem:[%s17673_s2 + $0x198] sm:$0xff]  ;;  %v14177_v46 = vpop.xlane.xlu0 %4112 }
 0x669   :  { %v14155_v51 = vsub.f32 %v18642_v62, %v4301_v13  ;;  %v14169_v13 = vpop.permute.xlu1 %6328  ;;  %v5584_v62 = vadd.f32 1e-05, %v5392_v29 }
 0x66a   :  { %18644 = vst [vmem:[#allocation163_spill] sm:$0xff] %v14169_v13 }
 0x66b   :  { %4187 = vadd.xlane.f32.xlu1 %v4186_v11  ;;  %18643 = vst [vmem:[#allocation197_spill] sm:$0xff] %v14155_v51  ;;  %v4685_v11 = vmul.f32 %v14155_v51, %v14155_v51  ;;  %v5390_v51 = vmul.f32 0.020408163, %v13737_v35  ;;  %10100 = vrsqrt.f32 %v5584_v62  ;;  %v5966_v35 = vld [vmem:[%s17673_s2 + $0x188] sm:$0xff] }
 0x66d   :  { %v10099_v53 = vpop.eup %10098  ;;  %v14172_v60 = vpop.xlane.xlu1 %5021  ;;  %v5582_v30 = vadd.f32 1e-05, %v5390_v51  ;;  %v18645_v51 = vld [vmem:[#allocation151_spill] sm:$0xff] }
 0x66e   :  { %v6145_v55 = vmul.f32 %v10099_v53, %v5953_v21  ;;  %v18647_v21 = vld [vmem:[#allocation198_spill] sm:$0xff] }
 0x66f   :  { %4181 = vadd.xlane.f32.xlu1 %v4180_v45  ;;  %v5101_v45 = vsel %vm3612_vm0, %v4685_v11, 0.0  ;;  %10102 = vrsqrt.f32 %v5582_v30  ;;  %v5383_v62 = vmul.f32 0.020408163, %v18647_v21  ;;  %v5396_v21 = vmul.f32 0.020408163, %v13753_v7 }
 0x675   :  { %v10101_v11 = vpop.eup %10100 }
 0x679   :  { %v10103_v13 = vpop.eup %10102 }
 0x67a   :  { %v6158_v29 = vmul.f32 %v10103_v13, %v5966_v35  ;;  %v18648_v35 = vld [vmem:[#allocation166_spill] sm:$0xff] }
 0x67e   :  { %5102 = vadd.xlane.f32.xlu0 %v5101_v45  ;;  %v6160_v45 = vmul.f32 %v10101_v11, %v5968_v50  ;;  %v5575_v11 = vadd.f32 1e-05, %v5383_v62  ;;  %v5381_v50 = vmul.f32 0.020408163, %v13566_v36  ;;  %v5959_v36 = vld [vmem:[%s17673_s2 + $0x150] sm:$0xff] }
 0x680   :  { %6493 = vperm.xlu1 %9626, %v6147_v31   ;;  %v14182_v31 = vpop.xlane.xlu0 %4106  ;;  %10104 = vrsqrt.f32 %v5575_v11  ;;  %v5573_v13 = vadd.f32 1e-05, %v5381_v50  ;;  %v5957_v50 = vld [vmem:[%s17673_s2 + $0x140] sm:$0xff] }
 0x682   :  { %10106 = vrsqrt.f32 %v5573_v13  ;;  %v5588_v13 = vadd.f32 1e-05, %v5396_v21  ;;  %v5970_v21 = vld [vmem:[%s17673_s2 + $0x1a8] sm:$0xff] }
 0x684   :  { %6483 = vperm.xlu1 %9626, %v6145_v55   ;;  %v4296_v55 = vmul.f32 0.020408163, %v13678_v39  ;;  %v4303_v39 = vmul.f32 0.020408163, %v13700_v26  ;;  %v14206_v62 = vpop.xlane.xlu0 %5048  ;;  %10108 = vrsqrt.f32 %v5588_v13  ;;  %v18651_v13 = vld [vmem:[#allocation155_spill] sm:$0xff] }
 0x686   :  { %v14186_v53 = vsub.f32 %v18645_v51, %v4296_v55 }
 0x688   :  { %18646 = vst [vmem:[#allocation151_spill] sm:$0xff] %v14186_v53  ;;  %v4680_v30 = vmul.f32 %v14186_v53, %v14186_v53 }
 0x68a   :  { %v5086_v16 = vsel %vm3612_vm0, %v4680_v30, 0.0  ;;  %v10105_v51 = vpop.eup %10104 }
 0x68b   :  { %v6151_v26 = vmul.f32 %v10105_v51, %v5959_v36  ;;  %v5972_v51 = vld [vmem:[%s17673_s2 + $0x1b8] sm:$0xff] }
 0x68c   :  { %v10107_v11 = vpop.eup %10106 }
 0x694   :  { %6558 = vperm.xlu0 %9627, %v6160_v45   ;;  %v14193_v45 = vpop.xlane.xlu1 %4001 }
 0x698   :  { %6548 = vperm.xlu0 %9627, %v6158_v29   ;;  %v14197_v29 = vsub.f32 %v18648_v35, %v4303_v39  ;;  %v14208_v30 = vpop.xlane.xlu1 %4103  ;;  %v5394_v39 = vmul.f32 0.020408163, %v13760_v9  ;;  %v6149_v35 = vmul.f32 %v10107_v11, %v5957_v50  ;;  %v4298_v50 = vmul.f32 0.020408163, %v13705_v40 }
 0x699   :  { %v4305_v40 = vmul.f32 0.020408163, %v13731_v63 }
 0x69a   :  { %18649 = vst [vmem:[#allocation198_spill] sm:$0xff] %v14197_v29  ;;  %v4687_v55 = vmul.f32 %v14197_v29, %v14197_v29  ;;  %v5586_v7 = vadd.f32 1e-05, %v5394_v39  ;;  %v14228_v39 = vsub.f32 %v18651_v13, %v4298_v50  ;;  %v5400_v13 = vmul.f32 0.020408163, %v13780_v25 }
 0x69c   :  { %v14214_v29 = vpop.xlane.xlu1 %4097  ;;  %10110 = vrsqrt.f32 %v5586_v7  ;;  %18652 = vst [vmem:[#allocation155_spill] sm:$0xff] %v14228_v39  ;;  %v4682_v7 = vmul.f32 %v14228_v39, %v14228_v39 }
 0x69e   :  { %v5092_v53 = vsel %vm3612_vm0, %v4682_v7, 0.0 }
 0x6a8   :  { %5087 = vadd.xlane.f32.xlu1 %v5086_v16  ;;  %v5107_v16 = vsel %vm3612_vm0, %v4687_v55, 0.0  ;;  %v10109_v55 = vpop.eup %10108 }
 0x6a9   :  { %v6164_v36 = vmul.f32 %v10109_v55, %v5972_v51  ;;  %v5385_v51 = vmul.f32 0.020408163, %v13597_v18  ;;  %v5963_v18 = vld [vmem:[%s17673_s2 + $0x170] sm:$0xff] }
 0x6b7   :  { %5108 = vadd.xlane.f32.xlu0 %v5107_v16  ;;  %v10111_v16 = vpop.eup %10110 }
 0x6b8   :  { %v6162_v9 = vmul.f32 %v10111_v16, %v5970_v21  ;;  %v5577_v16 = vadd.f32 1e-05, %v5385_v51  ;;  %v18654_v21 = vld [vmem:[#allocation173_spill] sm:$0xff] }
 0x6b9   :  { %6513 = vperm.xlu1 %9626, %v6151_v26   ;;  %v14222_v26 = vpop.xlane.xlu0 %5042 }
 0x6bd   :  { %6503 = vperm.xlu1 %9626, %v6149_v35   ;;  %v14224_v11 = vpop.permute.xlu0 %6378  ;;  %v5387_v35 = vmul.f32 0.020408163, %v13586_v23 }
 0x6be   :  { %18650 = vst [vmem:[#allocation166_spill] sm:$0xff] %v14224_v11 }
 0x6bf   :  { %v5579_v55 = vadd.f32 1e-05, %v5387_v35 }
 0x6c1   :  { %10112 = vrsqrt.f32 %v5579_v55  ;;  %v14248_v35 = vpop.permute.xlu0 %6368  ;;  %v5961_v55 = vld [vmem:[%s17673_s2 + $0x160] sm:$0xff] }
 0x6c2   :  { %10114 = vrsqrt.f32 %v5577_v16  ;;  %18656 = vst [vmem:[#allocation238_spill] sm:$0xff] %v14248_v35  ;;  %v5592_v16 = vadd.f32 1e-05, %v5400_v13 }
 0x6c4   :  { %10116 = vrsqrt.f32 %v5592_v16 }
 0x6cb   :  { %v10113_v50 = vpop.eup %10112 }
 0x6cc   :  { %v6155_v63 = vmul.f32 %v10113_v50, %v5963_v18  ;;  %v10115_v7 = vpop.eup %10114  ;;  %v5976_v50 = vld [vmem:[%s17673_s2 + $0x1d8] sm:$0xff]  ;;  %v14261_v18 = vpop.xlane.xlu0 %4010 }
 0x6cd   :  { %6578 = vperm.xlu0 %9627, %v6164_v36   ;;  %v14235_v36 = vpop.permute.xlu1 %6353 }
 0x6ce   :  { %18653 = vst [vmem:[#allocation237_spill] sm:$0xff] %v14235_v36 }
 0x6d1   :  { %6568 = vperm.xlu0 %9627, %v6162_v9   ;;  %v14239_v9 = vsub.f32 %v18654_v21, %v4305_v40  ;;  %v14253_v51 = vpop.permute.xlu1 %6343  ;;  %v5398_v40 = vmul.f32 0.020408163, %v13799_v48  ;;  %v6153_v21 = vmul.f32 %v10115_v7, %v5961_v55  ;;  %v5974_v48 = vld [vmem:[%s17673_s2 + $0x1c8] sm:$0xff]  ;;  %v4300_v7 = vmul.f32 0.020408163, %v13747_v47  ;;  %v18658_v55 = vld [vmem:[#allocation160_spill] sm:$0xff] }
 0x6d2   :  { %18657 = vst [vmem:[#allocation239_spill] sm:$0xff] %v14253_v51  ;;  %v4307_v47 = vmul.f32 0.020408163, %v13770_v41 }
 0x6d3   :  { %18655 = vst [vmem:[#allocation173_spill] sm:$0xff] %v14239_v9  ;;  %v4689_v23 = vmul.f32 %v14239_v9, %v14239_v9  ;;  %v5590_v25 = vadd.f32 1e-05, %v5398_v40  ;;  %v14270_v16 = vsub.f32 %v18658_v55, %v4300_v7  ;;  %v5391_v40 = vmul.f32 0.020408163, %v13613_v34  ;;  %v5967_v55 = vld [vmem:[%s17673_s2 + $0x190] sm:$0xff] }
 0x6d5   :  { %v14256_v9 = vpop.xlane.xlu1 %5039  ;;  %10118 = vrsqrt.f32 %v5590_v25  ;;  %18659 = vst [vmem:[#allocation160_spill] sm:$0xff] %v14270_v16  ;;  %v5583_v25 = vadd.f32 1e-05, %v5391_v40  ;;  %v5404_v40 = vmul.f32 0.020408163, %v13823_v12 }
 0x6d7   :  { %10120 = vrsqrt.f32 %v5583_v25 }
 0x6e1   :  { %5093 = vadd.xlane.f32.xlu1 %v5092_v53  ;;  %v5113_v53 = vsel %vm3612_vm0, %v4689_v23, 0.0  ;;  %v10117_v23 = vpop.eup %10116 }
 0x6e2   :  { %v10119_v39 = vpop.eup %10118 }
 0x6e3   :  { %v6166_v13 = vmul.f32 %v10119_v39, %v5974_v48  ;;  %v18661_v48 = vld [vmem:[#allocation179_spill] sm:$0xff]  ;;  %v10121_v7 = vpop.eup %10120 }
 0x6e4   :  { %v6159_v41 = vmul.f32 %v10121_v7, %v5967_v55  ;;  %v5980_v7 = vld [vmem:[%s17673_s2 + $0x1f8] sm:$0xff] }
 0x6f0   :  { %5114 = vadd.xlane.f32.xlu0 %v5113_v53  ;;  %v6168_v53 = vmul.f32 %v10117_v23, %v5976_v50  ;;  %v18660_v23 = vld [vmem:[#allocation199_spill] sm:$0xff] }
 0x6f1   :  { %v5389_v50 = vmul.f32 0.020408163, %v18660_v23 }
 0x6f2   :  { %6533 = vperm.xlu1 %9626, %v6155_v63   ;;  %v14266_v63 = vpop.xlane.xlu0 %4124 }
 0x6f3   :  { %v5581_v39 = vadd.f32 1e-05, %v5389_v50  ;;  %v5965_v50 = vld [vmem:[%s17673_s2 + $0x180] sm:$0xff] }
 0x6f5   :  { %10122 = vrsqrt.f32 %v5581_v39  ;;  %v5596_v39 = vadd.f32 1e-05, %v5404_v40  ;;  %v5978_v40 = vld [vmem:[%s17673_s2 + $0x1e8] sm:$0xff] }
 0x6f6   :  { %6523 = vperm.xlu1 %9626, %v6153_v21   ;;  %v4684_v21 = vmul.f32 %v14270_v16, %v14270_v16  ;;  %v18667_v16 = vld [vmem:[#allocation201_spill] sm:$0xff] }
 0x6f7   :  { %10124 = vrsqrt.f32 %v5596_v39  ;;  %v18664_v39 = vld [vmem:[#allocation164_spill] sm:$0xff]  ;;  %v5393_v51 = vmul.f32 0.020408163, %v18667_v16  ;;  %v4333_v16 = vmul.f32 0.020408163, %v13840_v22 }
 0x6f8   :  { %v5098_v36 = vsel %vm3612_vm0, %v4684_v21, 0.0  ;;  %v14290_v21 = vpop.xlane.xlu0 %4118 }
 0x6ff   :  { %v10123_v23 = vpop.eup %10122 }
 0x706   :  { %6598 = vperm.xlu0 %9627, %v6168_v53   ;;  %v14277_v53 = vpop.xlane.xlu1 %5033 }
 0x70a   :  { %6588 = vperm.xlu0 %9627, %v6166_v13   ;;  %v14281_v13 = vsub.f32 %v18661_v48, %v4307_v47  ;;  %v14292_v25 = vpop.xlane.xlu1 %4007  ;;  %v5402_v47 = vmul.f32 0.020408163, %v13828_v49  ;;  %v6157_v48 = vmul.f32 %v10123_v23, %v5965_v50  ;;  %v4302_v50 = vmul.f32 0.020408163, %v13775_v56 }
 0x70b   :  { %v4309_v56 = vmul.f32 0.020408163, %v13801_v32 }
 0x70c   :  { %18662 = vst [vmem:[#allocation199_spill] sm:$0xff] %v14281_v13  ;;  %v4691_v34 = vmul.f32 %v14281_v13, %v14281_v13  ;;  %v5594_v12 = vadd.f32 1e-05, %v5402_v47  ;;  %v14312_v47 = vsub.f32 %v18664_v39, %v4302_v50  ;;  %v4335_v50 = vmul.f32 0.020408163, %v13816_v14  ;;  %v18670_v39 = vld [vmem:[#allocation4_spill] sm:$0xff] }
 0x70e   :  { %v14298_v13 = vpop.xlane.xlu1 %4115  ;;  %10126 = vrsqrt.f32 %v5594_v12  ;;  %18665 = vst [vmem:[#allocation164_spill] sm:$0xff] %v14312_v47 }
 0x71a   :  { %5099 = vadd.xlane.f32.xlu1 %v5098_v36  ;;  %v5119_v36 = vsel %vm3612_vm0, %v4691_v34, 0.0  ;;  %v10125_v34 = vpop.eup %10124 }
 0x71b   :  { %v6172_v55 = vmul.f32 %v10125_v34, %v5980_v7  ;;  %v4686_v34 = vmul.f32 %v14312_v47, %v14312_v47 }
 0x71d   :  { %v5104_v11 = vsel %vm3612_vm0, %v4686_v34, 0.0 }
 0x729   :  { %5120 = vadd.xlane.f32.xlu0 %v5119_v36  ;;  %v10127_v36 = vpop.eup %10126 }
 0x72a   :  { %v6170_v49 = vmul.f32 %v10127_v36, %v5978_v40  ;;  %v5585_v36 = vadd.f32 1e-05, %v5393_v51  ;;  %v18668_v40 = vld [vmem:[#allocation182_spill] sm:$0xff] }
 0x72b   :  { %6553 = vperm.xlu1 %9626, %v6159_v41   ;;  %v14306_v41 = vpop.xlane.xlu0 %5054  ;;  %v18673_v51 = vld [vmem:[#allocation2_spill] sm:$0xff] }
 0x72f   :  { %6543 = vperm.xlu1 %9626, %v6157_v48   ;;  %v14308_v23 = vpop.permute.xlu0 %6398  ;;  %v18666_v48 = vld [vmem:[#allocation200_spill] sm:$0xff] }
 0x730   :  { %18663 = vst [vmem:[#allocation179_spill] sm:$0xff] %v14308_v23  ;;  %v5395_v12 = vmul.f32 0.020408163, %v18666_v48  ;;  %v14327_v48 = vsub.f32 %v18670_v39, %v4335_v50  ;;  %v5969_v50 = vld [vmem:[%s17673_s2 + $0x1a0] sm:$0xff] }
 0x732   :  { %v5587_v7 = vadd.f32 1e-05, %v5395_v12  ;;  %18671 = vst [vmem:[#allocation201_spill] sm:$0xff] %v14327_v48 }
 0x733   :  { %v14335_v32 = vpop.permute.xlu0 %6388 }
 0x734   :  { %10128 = vrsqrt.f32 %v5587_v7  ;;  %18672 = vst [vmem:[#allocation182_spill] sm:$0xff] %v14335_v32  ;;  %v14338_v7 = vsub.f32 %v18673_v51, %v4333_v16 }
 0x735   :  { %10130 = vrsqrt.f32 %v5585_v36  ;;  %v4719_v36 = vmul.f32 %v14327_v48, %v14327_v48 }
 0x736   :  { %18674 = vst [vmem:[#allocation4_spill] sm:$0xff] %v14338_v7 }
 0x737   :  { %v14348_v39 = vpop.xlane.xlu0 %4016  ;;  %v5203_v16 = vsel %vm3612_vm0, %v4719_v36, 0.0 }
 0x73e   :  { %v10129_v34 = vpop.eup %10128 }
 0x73f   :  { %6618 = vperm.xlu0 %9627, %v6172_v55   ;;  %v14319_v55 = vpop.xlane.xlu1 %4109 }
 0x743   :  { %6608 = vperm.xlu0 %9627, %v6170_v49   ;;  %v14323_v49 = vsub.f32 %v18668_v40, %v4309_v56  ;;  %v14343_v56 = vpop.permute.xlu1 %6373  ;;  %v10131_v40 = vpop.eup %10130 }
 0x744   :  { %18675 = vst [vmem:[#allocation2_spill] sm:$0xff] %v14343_v56  ;;  %v6161_v51 = vmul.f32 %v10131_v40, %v5969_v50  ;;  %v5984_v40 = vld [vmem:[%s17673_s2 + $0x218] sm:$0xff] }
 0x745   :  { %18669 = vst [vmem:[#allocation200_spill] sm:$0xff] %v14323_v49  ;;  %v4693_v12 = vmul.f32 %v14323_v49, %v14323_v49 }
 0x747   :  { %v5125_v14 = vsel %vm3612_vm0, %v4693_v12, 0.0  ;;  %v4717_v12 = vmul.f32 %v14338_v7, %v14338_v7  ;;  %v14353_v48 = vpop.permute.xlu1 %6363  ;;  %v18680_v7 = vld [vmem:[#allocation203_spill] sm:$0xff] }
 0x748   :  { %18676 = vst [vmem:[#allocation240_spill] sm:$0xff] %v14353_v48 }
 0x74b   :  { %v14379_v48 = vpop.xlane.xlu1 %5051 }
 0x753   :  { %5105 = vadd.xlane.f32.xlu1 %v5104_v11  ;;  %v5971_v11 = vld [vmem:[%s17673_s2 + $0x1b0] sm:$0xff] }
 0x754   :  { %v6163_v22 = vmul.f32 %v10129_v34, %v5971_v11  ;;  %v5408_v34 = vmul.f32 0.020408163, %v13850_v37  ;;  %v5197_v11 = vsel %vm3612_vm0, %v4717_v12, 0.0  ;;  %v4304_v12 = vmul.f32 0.020408163, %v13814_v19 }
 0x755   :  { %v5397_v19 = vmul.f32 0.020408163, %v18680_v7 }
 0x756   :  { %v5600_v49 = vadd.f32 1e-05, %v5408_v34 }
 0x758   :  { %10132 = vrsqrt.f32 %v5600_v49  ;;  %v18677_v49 = vld [vmem:[#allocation168_spill] sm:$0xff] }
 0x759   :  { %v14370_v34 = vsub.f32 %v18677_v49, %v4304_v12 }
 0x75b   :  { %18678 = vst [vmem:[#allocation168_spill] sm:$0xff] %v14370_v34 }
 0x762   :  { %5126 = vadd.xlane.f32.xlu0 %v5125_v14  ;;  %v14357_v14 = vpop.xlane.xlu0 %4136  ;;  %v10133_v47 = vpop.eup %10132 }
 0x764   :  { %6573 = vperm.xlu1 %9626, %v6163_v22   ;;  %v5406_v22 = vmul.f32 0.020408163, %v13855_v1 }
 0x766   :  { %5204 = vadd.xlane.f32.xlu0 %v5203_v16  ;;  %v5598_v36 = vadd.f32 1e-05, %v5406_v22  ;;  %v14363_v50 = vpop.xlane.xlu0 %4130  ;;  %v6176_v16 = vmul.f32 %v10133_v47, %v5984_v40  ;;  %v18679_v22 = vld [vmem:[#allocation202_spill] sm:$0xff]  ;;  %v4688_v47 = vmul.f32 %v14370_v34, %v14370_v34 }
 0x768   :  { %6563 = vperm.xlu1 %9626, %v6161_v51   ;;  %10134 = vrsqrt.f32 %v5598_v36  ;;  %v5982_v51 = vld [vmem:[%s17673_s2 + $0x208] sm:$0xff]  ;;  %v5399_v36 = vmul.f32 0.020408163, %v18679_v22  ;;  %v5110_v56 = vsel %vm3612_vm0, %v4688_v47, 0.0  ;;  %v18683_v22 = vld [vmem:[#allocation213_spill] sm:$0xff] }
 0x769   :  { %v4339_v7 = vmul.f32 0.020408163, %v18683_v22 }
 0x76a   :  { %5198 = vadd.xlane.f32.xlu0 %v5197_v11  ;;  %v14372_v11 = vpop.xlane.xlu0 %5060  ;;  %v5591_v40 = vadd.f32 1e-05, %v5399_v36  ;;  %v14389_v36 = vpop.xlane.xlu1 %5045 }
 0x76c   :  { %10136 = vrsqrt.f32 %v5591_v40 }
 0x76e   :  { %v14402_v22 = vpop.xlane.xlu1 %4013 }
 0x772   :  { %v10135_v37 = vpop.eup %10134 }
 0x773   :  { %v6174_v1 = vmul.f32 %v10135_v37, %v5982_v51  ;;  %v4311_v37 = vmul.f32 0.020408163, %v13862_v15  ;;  %v5975_v51 = vld [vmem:[%s17673_s2 + $0x1d0] sm:$0xff]  ;;  %v18684_v15 = vld [vmem:[#allocation150_spill] sm:$0xff] }
 0x774   :  { %v14395_v40 = vsub.f32 %v18684_v15, %v4339_v7 }
 0x776   :  { %v10137_v12 = vpop.eup %10136  ;;  %18685 = vst [vmem:[#allocation203_spill] sm:$0xff] %v14395_v40  ;;  %v4723_v7 = vmul.f32 %v14395_v40, %v14395_v40 }
 0x777   :  { %v6167_v47 = vmul.f32 %v10137_v12, %v5975_v51  ;;  %v18687_v12 = vld [vmem:[#allocation8_spill] sm:$0xff] }
 0x780   :  { %6638 = vperm.xlu0 %9627, %v6176_v16   ;;  %v5589_v16 = vadd.f32 1e-05, %v5397_v19  ;;  %v4337_v19 = vmul.f32 0.020408163, %v13883_v6  ;;  %v5215_v6 = vsel %vm3612_vm0, %v4723_v7, 0.0 }
 0x782   :  { %10138 = vrsqrt.f32 %v5589_v16  ;;  %v14405_v51 = vsub.f32 %v18687_v12, %v4337_v19  ;;  %v18690_v12 = vld [vmem:[#allocation210_spill] sm:$0xff] }
 0x783   :  { %v4306_v7 = vmul.f32 0.020408163, %v18690_v12 }
 0x784   :  { %6628 = vperm.xlu0 %9627, %v6174_v1   ;;  %v18681_v1 = vld [vmem:[#allocation6_spill] sm:$0xff]  ;;  %18688 = vst [vmem:[#allocation213_spill] sm:$0xff] %v14405_v51 }
 0x785   :  { %v14386_v49 = vsub.f32 %v18681_v1, %v4311_v37  ;;  %v14400_v1 = vpop.permute.xlu0 %6418 }
 0x786   :  { %18686 = vst [vmem:[#allocation6_spill] sm:$0xff] %v14400_v1 }
 0x787   :  { %18682 = vst [vmem:[#allocation202_spill] sm:$0xff] %v14386_v49  ;;  %v4695_v16 = vmul.f32 %v14386_v49, %v14386_v49 }
 0x789   :  { %v5131_v23 = vsel %vm3612_vm0, %v4695_v16, 0.0 }
 0x78c   :  { %5111 = vadd.xlane.f32.xlu1 %v5110_v56  ;;  %v10139_v34 = vpop.eup %10138  ;;  %v5973_v56 = vld [vmem:[%s17673_s2 + $0x1c0] sm:$0xff] }
 0x78d   :  { %v6165_v37 = vmul.f32 %v10139_v34, %v5973_v56  ;;  %v14413_v34 = vpop.permute.xlu0 %6408  ;;  %v5412_v56 = vmul.f32 0.020408163, %v13889_v28  ;;  %v5988_v28 = vld [vmem:[%s17673_s2 + $0x238] sm:$0xff] }
 0x78e   :  { %18689 = vst [vmem:[#allocation150_spill] sm:$0xff] %v14413_v34 }
 0x78f   :  { %v5604_v16 = vadd.f32 1e-05, %v5412_v56 }
 0x791   :  { %v14417_v19 = vpop.xlane.xlu0 %4022  ;;  %10140 = vrsqrt.f32 %v5604_v16 }
 0x795   :  { %v14428_v1 = vpop.xlane.xlu0 %4148 }
 0x799   :  { %v14437_v34 = vpop.xlane.xlu0 %4142 }
 0x79b   :  { %v10141_v40 = vpop.eup %10140 }
 0x79c   :  { %v6180_v56 = vmul.f32 %v10141_v40, %v5988_v28 }
 0x79d   :  { %6593 = vperm.xlu1 %9626, %v6167_v47   ;;  %v4721_v47 = vmul.f32 %v14405_v51, %v14405_v51  ;;  %v18691_v51 = vld [vmem:[#allocation175_spill] sm:$0xff] }
 0x79e   :  { %v14422_v49 = vsub.f32 %v18691_v51, %v4306_v7 }
 0x79f   :  { %v5209_v15 = vsel %vm3612_vm0, %v4721_v47, 0.0 }
 0x7a0   :  { %18692 = vst [vmem:[#allocation8_spill] sm:$0xff] %v14422_v49  ;;  %v4690_v16 = vmul.f32 %v14422_v49, %v14422_v49  ;;  %v18698_v49 = vld [vmem:[#allocation12_spill] sm:$0xff] }
 0x7a1   :  { %6583 = vperm.xlu1 %9626, %v6165_v37   ;;  %v5410_v37 = vmul.f32 0.020408163, %v13894_v17  ;;  %v5986_v17 = vld [vmem:[%s17673_s2 + $0x228] sm:$0xff] }
 0x7a2   :  { %v5116_v7 = vsel %vm3612_vm0, %v4690_v16, 0.0  ;;  %v4313_v16 = vmul.f32 0.020408163, %v13923_v27  ;;  %v18701_v27 = vld [vmem:[#allocation10_spill] sm:$0xff] }
 0x7a3   :  { %5132 = vadd.xlane.f32.xlu0 %v5131_v23  ;;  %v5602_v23 = vadd.f32 1e-05, %v5410_v37  ;;  %v18694_v37 = vld [vmem:[#allocation205_spill] sm:$0xff] }
 0x7a5   :  { %10142 = vrsqrt.f32 %v5602_v23  ;;  %v5401_v23 = vmul.f32 0.020408163, %v18694_v37 }
 0x7a7   :  { %5216 = vadd.xlane.f32.xlu0 %v5215_v6  ;;  %v18693_v6 = vld [vmem:[#allocation204_spill] sm:$0xff]  ;;  %v5593_v40 = vadd.f32 1e-05, %v5401_v23  ;;  %v18696_v23 = vld [vmem:[#allocation185_spill] sm:$0xff] }
 0x7a8   :  { %v5403_v47 = vmul.f32 0.020408163, %v18693_v6  ;;  %v14439_v6 = vpop.xlane.xlu1 %4127 }
 0x7aa   :  { %v5595_v51 = vadd.f32 1e-05, %v5403_v47 }
 0x7ab   :  { %5210 = vadd.xlane.f32.xlu0 %v5209_v15 }
 0x7ac   :  { %10144 = vrsqrt.f32 %v5595_v51  ;;  %v14444_v47 = vpop.xlane.xlu1 %4121 }
 0x7ad   :  { %10146 = vrsqrt.f32 %v5593_v40  ;;  %v4343_v40 = vmul.f32 0.020408163, %v13928_v24 }
 0x7af   :  { %v10143_v15 = vpop.eup %10142  ;;  %v14457_v32 = vsub.f32 %v18698_v49, %v4343_v40 }
 0x7b0   :  { %v6178_v12 = vmul.f32 %v10143_v15, %v5986_v17  ;;  %v5977_v17 = vld [vmem:[%s17673_s2 + $0x1e0] sm:$0xff]  ;;  %v14450_v51 = vpop.permute.xlu1 %6393 }
 0x7b1   :  { %18695 = vst [vmem:[#allocation210_spill] sm:$0xff] %v14450_v51  ;;  %18699 = vst [vmem:[#allocation204_spill] sm:$0xff] %v14457_v32  ;;  %v18709_v51 = vld [vmem:[#allocation207_spill] sm:$0xff] }
 0x7b6   :  { %v10145_v28 = vpop.eup %10144 }
 0x7b7   :  { %v10147_v15 = vpop.eup %10146 }
 0x7c1   :  { %6658 = vperm.xlu0 %9627, %v6180_v56   ;;  %v5979_v56 = vld [vmem:[%s17673_s2 + $0x1f0] sm:$0xff] }
 0x7c2   :  { %v6171_v37 = vmul.f32 %v10145_v28, %v5979_v56  ;;  %v4341_v28 = vmul.f32 0.020408163, %v13936_v57 }
 0x7c5   :  { %6648 = vperm.xlu0 %9627, %v6178_v12   ;;  %5117 = vadd.xlane.f32.xlu1 %v5116_v7  ;;  %v6169_v12 = vmul.f32 %v10147_v15, %v5977_v17  ;;  %v14453_v7 = vsub.f32 %v18696_v23, %v4313_v16  ;;  %v14465_v15 = vsub.f32 %v18701_v27, %v4341_v28  ;;  %v18705_v27 = vld [vmem:[#allocation214_spill] sm:$0xff] }
 0x7c6   :  { %v4727_v16 = vmul.f32 %v14457_v32, %v14457_v32 }
 0x7c7   :  { %18697 = vst [vmem:[#allocation175_spill] sm:$0xff] %v14453_v7  ;;  %v4697_v56 = vmul.f32 %v14453_v7, %v14453_v7  ;;  %18702 = vst [vmem:[#allocation185_spill] sm:$0xff] %v14465_v15  ;;  %v4725_v57 = vmul.f32 %v14465_v15, %v14465_v15  ;;  %v18706_v7 = vld [vmem:[#allocation144_spill] sm:$0xff]  ;;  %v18708_v15 = vld [vmem:[#allocation206_spill] sm:$0xff] }
 0x7c8   :  { %v5227_v49 = vsel %vm3612_vm0, %v4727_v16, 0.0 }
 0x7c9   :  { %v5137_v17 = vsel %vm3612_vm0, %v4697_v56, 0.0  ;;  %v5221_v23 = vsel %vm3612_vm0, %v4725_v57, 0.0  ;;  %v5414_v56 = vmul.f32 0.020408163, %v13955_v33  ;;  %v5992_v33 = vld [vmem:[%s17673_s2 + $0x258] sm:$0xff] }
 0x7cb   :  { %v5606_v32 = vadd.f32 1e-05, %v5414_v56 }
 0x7d6   :  { %6613 = vperm.xlu1 %9626, %v6171_v37   ;;  %v14462_v37 = vpop.xlane.xlu0 %5066 }
 0x7d7   :  { %18700 = vst [vmem:[#allocation205_spill] sm:$0xff] %v14462_v37  ;;  %v18768_v37 = vld [vmem:[#allocation11_spill] sm:$0xff] }
 0x7da   :  { %6603 = vperm.xlu1 %9626, %v6169_v12   ;;  %v14470_v24 = vpop.permute.xlu0 %6438  ;;  %v5416_v12 = vmul.f32 0.020408163, %v13947_v44 }
 0x7db   :  { %18703 = vst [vmem:[#allocation12_spill] sm:$0xff] %v14470_v24  ;;  %v5405_v24 = vmul.f32 0.020408163, %v18709_v51  ;;  %v5990_v51 = vld [vmem:[%s17673_s2 + $0x248] sm:$0xff] }
 0x7dc   :  { %v5608_v28 = vadd.f32 1e-05, %v5416_v12 }
 0x7de   :  { %v14477_v40 = vpop.permute.xlu0 %6428  ;;  %10148 = vrsqrt.f32 %v5608_v28  ;;  %v14492_v28 = vpop.permute.xlu1 %6383 }
 0x7df   :  { %18704 = vst [vmem:[#allocation10_spill] sm:$0xff] %v14477_v40  ;;  %10150 = vrsqrt.f32 %v5606_v32  ;;  %18710 = vst [vmem:[#allocation144_spill] sm:$0xff] %v14492_v28  ;;  %v5597_v32 = vadd.f32 1e-05, %v5405_v24  ;;  %v18723_v40 = vld [vmem:[#allocation5_spill] sm:$0xff] }
 0x7e2   :  { %v14504_v24 = vpop.xlane.xlu1 %5057 }
 0x7e4   :  { %5138 = vadd.xlane.f32.xlu0 %v5137_v17  ;;  %v4308_v17 = vmul.f32 0.020408163, %v18705_v27 }
 0x7e6   :  { %v14482_v16 = vsub.f32 %v18706_v7, %v4308_v17  ;;  %v14494_v7 = vpop.xlane.xlu0 %4028 }
 0x7e8   :  { %5228 = vadd.xlane.f32.xlu0 %v5227_v49  ;;  %18707 = vst [vmem:[#allocation214_spill] sm:$0xff] %v14482_v16  ;;  %v5407_v49 = vmul.f32 0.020408163, %v18708_v15  ;;  %v4692_v44 = vmul.f32 %v14482_v16, %v14482_v16  ;;  %v18713_v16 = vld [vmem:[#allocation16_spill] sm:$0xff] }
 0x7ea   :  { %v5599_v57 = vadd.f32 1e-05, %v5407_v49  ;;  %v5122_v12 = vsel %vm3612_vm0, %v4692_v44, 0.0  ;;  %v14499_v17 = vpop.xlane.xlu0 %4160  ;;  %v5983_v44 = vld [vmem:[%s17673_s2 + $0x210] sm:$0xff] }
 0x7ec   :  { %5222 = vadd.xlane.f32.xlu0 %v5221_v23  ;;  %v10149_v23 = vpop.eup %10148  ;;  %10152 = vrsqrt.f32 %v5599_v57 }
 0x7ed   :  { %v6184_v15 = vmul.f32 %v10149_v23, %v5992_v33  ;;  %v10151_v56 = vpop.eup %10150  ;;  %10154 = vrsqrt.f32 %v5597_v32  ;;  %v14509_v32 = vpop.xlane.xlu1 %4019 }
 0x7ee   :  { %v6182_v27 = vmul.f32 %v10151_v56, %v5990_v51  ;;  %v18711_v56 = vld [vmem:[#allocation156_spill] sm:$0xff] }
 0x7f6   :  { %v10153_v49 = vpop.eup %10152 }
 0x7f7   :  { %v6175_v57 = vmul.f32 %v10153_v49, %v5983_v44  ;;  %v10155_v23 = vpop.eup %10154  ;;  %v4345_v49 = vmul.f32 0.020408163, %v14002_v3 }
 0x7fe   :  { %5123 = vadd.xlane.f32.xlu1 %v5122_v12  ;;  %v5981_v12 = vld [vmem:[%s17673_s2 + $0x200] sm:$0xff] }
 0x7ff   :  { %v6173_v33 = vmul.f32 %v10155_v23, %v5981_v12  ;;  %v18715_v23 = vld [vmem:[#allocation14_spill] sm:$0xff] }
 0x800   :  { %v14525_v12 = vsub.f32 %v18715_v23, %v4345_v49 }
 0x802   :  { %6678 = vperm.xlu0 %9627, %v6184_v15   ;;  %v4315_v15 = vmul.f32 0.020408163, %v13989_v58  ;;  %18716 = vst [vmem:[#allocation156_spill] sm:$0xff] %v14525_v12 }
 0x804   :  { %v14513_v51 = vsub.f32 %v18711_v56, %v4315_v15  ;;  %v18718_v15 = vld [vmem:[#allocation215_spill] sm:$0xff] }
 0x805   :  { %v4310_v56 = vmul.f32 0.020408163, %v18718_v15 }
 0x806   :  { %6668 = vperm.xlu0 %9627, %v6182_v27   ;;  %18712 = vst [vmem:[#allocation206_spill] sm:$0xff] %v14513_v51  ;;  %v4347_v27 = vmul.f32 0.020408163, %v13994_v59  ;;  %v4699_v44 = vmul.f32 %v14513_v51, %v14513_v51 }
 0x808   :  { %v14517_v28 = vsub.f32 %v18713_v16, %v4347_v27  ;;  %v5143_v58 = vsel %vm3612_vm0, %v4699_v44, 0.0  ;;  %v4729_v16 = vmul.f32 %v14525_v12, %v14525_v12  ;;  %v5420_v27 = vmul.f32 0.020408163, %v13987_v38  ;;  %v18720_v44 = vld [vmem:[#allocation183_spill] sm:$0xff] }
 0x809   :  { %v5418_v12 = vmul.f32 0.020408163, %v14013_v61 }
 0x80a   :  { %18714 = vst [vmem:[#allocation207_spill] sm:$0xff] %v14517_v28  ;;  %v5233_v49 = vsel %vm3612_vm0, %v4729_v16, 0.0  ;;  %v5612_v51 = vadd.f32 1e-05, %v5420_v27  ;;  %v14551_v16 = vpop.xlane.xlu1 %4139 }
 0x80c   :  { %10156 = vrsqrt.f32 %v5612_v51 }
 0x80f   :  { %6633 = vperm.xlu1 %9626, %v6175_v57   ;;  %v14522_v57 = vpop.xlane.xlu0 %4154 }
 0x813   :  { %6623 = vperm.xlu1 %9626, %v6173_v33   ;;  %v4731_v33 = vmul.f32 %v14517_v28, %v14517_v28  ;;  %v14533_v3 = vpop.xlane.xlu0 %5072  ;;  %v14541_v28 = vsub.f32 %v18720_v44, %v4310_v56 }
 0x814   :  { %18717 = vst [vmem:[#allocation16_spill] sm:$0xff] %v14533_v3  ;;  %v18744_v3 = vld [vmem:[#allocation9_spill] sm:$0xff] }
 0x815   :  { %v5239_v59 = vsel %vm3612_vm0, %v4731_v33, 0.0  ;;  %18721 = vst [vmem:[#allocation215_spill] sm:$0xff] %v14541_v28  ;;  %v4694_v38 = vmul.f32 %v14541_v28, %v14541_v28  ;;  %v4351_v28 = vmul.f32 0.020408163, %v14063_v10 }
 0x817   :  { %v14538_v23 = vpop.permute.xlu0 %6458  ;;  %v5128_v44 = vsel %vm3612_vm0, %v4694_v38, 0.0 }
 0x818   :  { %18719 = vst [vmem:[#allocation14_spill] sm:$0xff] %v14538_v23  ;;  %v18726_v23 = vld [vmem:[#allocation3_spill] sm:$0xff] }
 0x825   :  { %5144 = vadd.xlane.f32.xlu0 %v5143_v58  ;;  %v18722_v58 = vld [vmem:[#allocation218_spill] sm:$0xff] }
 0x826   :  { %v4336_v33 = vmul.f32 0.020408163, %v18722_v58  ;;  %v14560_v58 = vpop.xlane.xlu1 %4133 }
 0x828   :  { %v14546_v35 = vsub.f32 %v18723_v40, %v4336_v33  ;;  %v18728_v40 = vld [vmem:[#allocation208_spill] sm:$0xff] }
 0x829   :  { %5240 = vadd.xlane.f32.xlu0 %v5239_v59  ;;  %v18725_v59 = vld [vmem:[#allocation219_spill] sm:$0xff]  ;;  %v5411_v27 = vmul.f32 0.020408163, %v18728_v40 }
 0x82a   :  { %18724 = vst [vmem:[#allocation183_spill] sm:$0xff] %v14546_v35  ;;  %v4334_v15 = vmul.f32 0.020408163, %v18725_v59  ;;  %v4720_v61 = vmul.f32 %v14546_v35, %v14546_v35 }
 0x82c   :  { %v14554_v56 = vsub.f32 %v18726_v23, %v4334_v15  ;;  %v5206_v33 = vsel %vm3612_vm0, %v4720_v61, 0.0  ;;  %v18729_v23 = vld [vmem:[#allocation209_spill] sm:$0xff]  ;;  %v10157_v15 = vpop.eup %10156 }
 0x82d   :  { %5234 = vadd.xlane.f32.xlu0 %v5233_v49  ;;  %v5610_v49 = vadd.f32 1e-05, %v5418_v12  ;;  %v5603_v12 = vadd.f32 1e-05, %v5411_v27  ;;  %v5409_v59 = vmul.f32 0.020408163, %v18729_v23 }
 0x82e   :  { %18727 = vst [vmem:[#allocation218_spill] sm:$0xff] %v14554_v56  ;;  %v4718_v51 = vmul.f32 %v14554_v56, %v14554_v56  ;;  %v5994_v27 = vld [vmem:[%s17673_s2 + $0x268] sm:$0xff] }
 0x82f   :  { %10158 = vrsqrt.f32 %v5610_v49  ;;  %v5996_v49 = vld [vmem:[%s17673_s2 + $0x278] sm:$0xff]  ;;  %v5601_v40 = vadd.f32 1e-05, %v5409_v59 }
 0x830   :  { %v5200_v38 = vsel %vm3612_vm0, %v4718_v51, 0.0  ;;  %10160 = vrsqrt.f32 %v5603_v12  ;;  %v6188_v61 = vmul.f32 %v10157_v15, %v5996_v49  ;;  %v5987_v12 = vld [vmem:[%s17673_s2 + $0x230] sm:$0xff] }
 0x831   :  { %10162 = vrsqrt.f32 %v5601_v40 }
 0x837   :  { %5129 = vadd.xlane.f32.xlu1 %v5128_v44  ;;  %v14570_v44 = vpop.permute.xlu1 %6413 }
 0x838   :  { %18730 = vst [vmem:[#allocation5_spill] sm:$0xff] %v14570_v44  ;;  %v4349_v44 = vmul.f32 0.020408163, %v14080_v8 }
 0x839   :  { %v10159_v35 = vpop.eup %10158 }
 0x83a   :  { %v6186_v51 = vmul.f32 %v10159_v35, %v5994_v27  ;;  %v10161_v56 = vpop.eup %10160  ;;  %v4317_v35 = vmul.f32 0.020408163, %v14043_v4  ;;  %v18733_v27 = vld [vmem:[#allocation18_spill] sm:$0xff] }
 0x83b   :  { %5207 = vadd.xlane.f32.xlu1 %v5206_v33  ;;  %v14575_v33 = vpop.permute.xlu0 %6448  ;;  %v6179_v59 = vmul.f32 %v10161_v56, %v5987_v12  ;;  %v10163_v15 = vpop.eup %10162  ;;  %v18735_v56 = vld [vmem:[#allocation157_spill] sm:$0xff] }
 0x83c   :  { %18731 = vst [vmem:[#allocation219_spill] sm:$0xff] %v14575_v33  ;;  %v14585_v49 = vpop.permute.xlu1 %6403  ;;  %v14595_v12 = vsub.f32 %v18735_v56, %v4351_v28  ;;  %v5424_v56 = vmul.f32 0.020408163, %v14072_v52 }
 0x83d   :  { %18732 = vst [vmem:[#allocation3_spill] sm:$0xff] %v14585_v49 }
 0x83e   :  { %18736 = vst [vmem:[#allocation209_spill] sm:$0xff] %v14595_v12  ;;  %v5616_v33 = vadd.f32 1e-05, %v5424_v56 }
 0x83f   :  { %5201 = vadd.xlane.f32.xlu1 %v5200_v38  ;;  %v14577_v23 = vpop.xlane.xlu0 %4034  ;;  %v5985_v38 = vld [vmem:[%s17673_s2 + $0x220] sm:$0xff] }
 0x840   :  { %v14587_v40 = vpop.xlane.xlu1 %5063  ;;  %10164 = vrsqrt.f32 %v5616_v33 }
 0x843   :  { %6698 = vperm.xlu0 %9627, %v6188_v61   ;;  %v6177_v61 = vmul.f32 %v10163_v15, %v5985_v38  ;;  %v18737_v15 = vld [vmem:[#allocation20_spill] sm:$0xff] }
 0x844   :  { %v14603_v38 = vsub.f32 %v18737_v15, %v4349_v44 }
 0x846   :  { %18738 = vst [vmem:[#allocation18_spill] sm:$0xff] %v14603_v38  ;;  %v4733_v8 = vmul.f32 %v14603_v38, %v14603_v38 }
 0x847   :  { %6688 = vperm.xlu0 %9627, %v6186_v51   ;;  %v14591_v51 = vsub.f32 %v18733_v27, %v4317_v35  ;;  %v18739_v35 = vld [vmem:[#allocation221_spill] sm:$0xff] }
 0x848   :  { %v4312_v27 = vmul.f32 0.020408163, %v18739_v35  ;;  %v5245_v44 = vsel %vm3612_vm0, %v4733_v8, 0.0  ;;  %v14629_v8 = vpop.xlane.xlu1 %4025 }
 0x849   :  { %18734 = vst [vmem:[#allocation208_spill] sm:$0xff] %v14591_v51  ;;  %v4701_v49 = vmul.f32 %v14591_v51, %v14591_v51 }
 0x84b   :  { %v5149_v4 = vsel %vm3612_vm0, %v4701_v49, 0.0  ;;  %v18741_v49 = vld [vmem:[#allocation184_spill] sm:$0xff] }
 0x84c   :  { %v14638_v56 = vpop.xlane.xlu1 %4151 }
 0x850   :  { %6653 = vperm.xlu1 %9626, %v6179_v59   ;;  %v14600_v59 = vpop.xlane.xlu0 %4172 }
 0x854   :  { %6643 = vperm.xlu1 %9626, %v6177_v61   ;;  %v4735_v61 = vmul.f32 %v14595_v12, %v14595_v12  ;;  %v14608_v10 = vpop.xlane.xlu0 %4166  ;;  %v14619_v12 = vsub.f32 %v18741_v49, %v4312_v27 }
 0x856   :  { %v5251_v28 = vsel %vm3612_vm0, %v4735_v61, 0.0  ;;  %18742 = vst [vmem:[#allocation20_spill] sm:$0xff] %v14619_v12  ;;  %v5422_v61 = vmul.f32 0.020408163, %v14088_v2  ;;  %v4696_v52 = vmul.f32 %v14619_v12, %v14619_v12  ;;  %v4355_v12 = vmul.f32 0.020408163, %v14177_v46 }
 0x858   :  { %v14616_v15 = vpop.xlane.xlu0 %5078  ;;  %v5134_v49 = vsel %vm3612_vm0, %v4696_v52, 0.0 }
 0x859   :  { %18740 = vst [vmem:[#allocation157_spill] sm:$0xff] %v14616_v15  ;;  %v18747_v15 = vld [vmem:[#allocation7_spill] sm:$0xff] }
 0x866   :  { %5150 = vadd.xlane.f32.xlu0 %v5149_v4  ;;  %v18743_v4 = vld [vmem:[#allocation222_spill] sm:$0xff] }
 0x867   :  { %v4340_v51 = vmul.f32 0.020408163, %v18743_v4 }
 0x869   :  { %v14624_v38 = vsub.f32 %v18744_v3, %v4340_v51  ;;  %v18749_v3 = vld [vmem:[#allocation211_spill] sm:$0xff] }
 0x86a   :  { %5252 = vadd.xlane.f32.xlu0 %v5251_v28  ;;  %v18746_v28 = vld [vmem:[#allocation225_spill] sm:$0xff]  ;;  %v5415_v51 = vmul.f32 0.020408163, %v18749_v3 }
 0x86b   :  { %18745 = vst [vmem:[#allocation221_spill] sm:$0xff] %v14624_v38  ;;  %v4338_v35 = vmul.f32 0.020408163, %v18746_v28  ;;  %v4724_v2 = vmul.f32 %v14624_v38, %v14624_v38 }
 0x86d   :  { %v14632_v27 = vsub.f32 %v18747_v15, %v4338_v35  ;;  %v5218_v4 = vsel %vm3612_vm0, %v4724_v2, 0.0  ;;  %v18750_v15 = vld [vmem:[#allocation212_spill] sm:$0xff]  ;;  %v10165_v35 = vpop.eup %10164  ;;  %v14650_v2 = vpop.permute.xlu0 %6478 }
 0x86e   :  { %5246 = vadd.xlane.f32.xlu0 %v5245_v44  ;;  %v5614_v44 = vadd.f32 1e-05, %v5422_v61  ;;  %v5607_v61 = vadd.f32 1e-05, %v5415_v51  ;;  %v5413_v28 = vmul.f32 0.020408163, %v18750_v15 }
 0x86f   :  { %18748 = vst [vmem:[#allocation184_spill] sm:$0xff] %v14632_v27  ;;  %v4722_v33 = vmul.f32 %v14632_v27, %v14632_v27  ;;  %18751 = vst [vmem:[#allocation222_spill] sm:$0xff] %v14650_v2  ;;  %v5998_v51 = vld [vmem:[%s17673_s2 + $0x288] sm:$0xff]  ;;  %v18757_v2 = vld [vmem:[#allocation24_spill] sm:$0xff] }
 0x870   :  { %10166 = vrsqrt.f32 %v5614_v44  ;;  %v6000_v44 = vld [vmem:[%s17673_s2 + $0x298] sm:$0xff]  ;;  %v5605_v3 = vadd.f32 1e-05, %v5413_v28 }
 0x871   :  { %v5212_v52 = vsel %vm3612_vm0, %v4722_v33, 0.0  ;;  %10168 = vrsqrt.f32 %v5607_v61  ;;  %v6192_v38 = vmul.f32 %v10165_v35, %v6000_v44  ;;  %v14655_v33 = vpop.permute.xlu0 %6468  ;;  %v5991_v61 = vld [vmem:[%s17673_s2 + $0x250] sm:$0xff]  ;;  %v5989_v44 = vld [vmem:[%s17673_s2 + $0x240] sm:$0xff] }
 0x872   :  { %10170 = vrsqrt.f32 %v5605_v3  ;;  %18752 = vst [vmem:[#allocation9_spill] sm:$0xff] %v14655_v33  ;;  %v18765_v33 = vld [vmem:[#allocation13_spill] sm:$0xff] }
 0x878   :  { %5135 = vadd.xlane.f32.xlu1 %v5134_v49  ;;  %v14648_v49 = vpop.xlane.xlu1 %4145 }
 0x87a   :  { %v10167_v27 = vpop.eup %10166 }
 0x87b   :  { %v10169_v15 = vpop.eup %10168 }
 0x87c   :  { %5219 = vadd.xlane.f32.xlu1 %v5218_v4  ;;  %v6190_v4 = vmul.f32 %v10167_v27, %v5998_v51  ;;  %v14660_v28 = vpop.permute.xlu1 %6433  ;;  %v10171_v35 = vpop.eup %10170  ;;  %v4319_v27 = vmul.f32 0.020408163, %v14164_v43  ;;  %v18755_v51 = vld [vmem:[#allocation191_spill] sm:$0xff] }
 0x87d   :  { %18753 = vst [vmem:[#allocation225_spill] sm:$0xff] %v14660_v28  ;;  %v14673_v28 = vsub.f32 %v18757_v2, %v4355_v12  ;;  %v18761_v2 = vld [vmem:[#allocation227_spill] sm:$0xff] }
 0x87f   :  { %18758 = vst [vmem:[#allocation212_spill] sm:$0xff] %v14673_v28 }
 0x880   :  { %5213 = vadd.xlane.f32.xlu1 %v5212_v52  ;;  %v6183_v52 = vmul.f32 %v10169_v15, %v5991_v61  ;;  %v14665_v3 = vpop.permute.xlu1 %6423  ;;  %v4353_v15 = vmul.f32 0.020408163, %v14182_v31 }
 0x881   :  { %18754 = vst [vmem:[#allocation7_spill] sm:$0xff] %v14665_v3 }
 0x884   :  { %6718 = vperm.xlu0 %9627, %v6192_v38   ;;  %v6181_v38 = vmul.f32 %v10171_v35, %v5989_v44  ;;  %v18759_v35 = vld [vmem:[#allocation22_spill] sm:$0xff] }
 0x885   :  { %v14681_v44 = vsub.f32 %v18759_v35, %v4353_v15 }
 0x887   :  { %18760 = vst [vmem:[#allocation191_spill] sm:$0xff] %v14681_v44  ;;  %v4737_v31 = vmul.f32 %v14681_v44, %v14681_v44 }
 0x888   :  { %6708 = vperm.xlu0 %9627, %v6190_v4   ;;  %v14669_v4 = vsub.f32 %v18755_v51, %v4319_v27  ;;  %v4314_v27 = vmul.f32 0.020408163, %v18761_v2  ;;  %v5428_v51 = vmul.f32 0.020408163, %v14151_v20 }
 0x889   :  { %v5257_v15 = vsel %vm3612_vm0, %v4737_v31, 0.0  ;;  %v14707_v31 = vpop.xlane.xlu1 %5069 }
 0x88a   :  { %18756 = vst [vmem:[#allocation211_spill] sm:$0xff] %v14669_v4  ;;  %v4703_v61 = vmul.f32 %v14669_v4, %v14669_v4  ;;  %v5620_v3 = vadd.f32 1e-05, %v5428_v51 }
 0x88c   :  { %v5155_v43 = vsel %vm3612_vm0, %v4703_v61, 0.0  ;;  %v18762_v61 = vld [vmem:[#allocation186_spill] sm:$0xff]  ;;  %10172 = vrsqrt.f32 %v5620_v3 }
 0x88d   :  { %v14716_v51 = vpop.xlane.xlu1 %4031 }
 0x891   :  { %6673 = vperm.xlu1 %9626, %v6183_v52   ;;  %v14678_v52 = vpop.xlane.xlu0 %4040 }
 0x895   :  { %6663 = vperm.xlu1 %9626, %v6181_v38   ;;  %v4739_v38 = vmul.f32 %v14673_v28, %v14673_v28  ;;  %v14686_v46 = vpop.xlane.xlu0 %4184  ;;  %v14697_v28 = vsub.f32 %v18762_v61, %v4314_v27 }
 0x897   :  { %v5263_v12 = vsel %vm3612_vm0, %v4739_v38, 0.0  ;;  %18763 = vst [vmem:[#allocation24_spill] sm:$0xff] %v14697_v28  ;;  %v5426_v38 = vmul.f32 0.020408163, %v14172_v60  ;;  %v4698_v20 = vmul.f32 %v14697_v28, %v14697_v28  ;;  %v4359_v28 = vmul.f32 0.020408163, %v14266_v63 }
 0x899   :  { %v14694_v35 = vpop.xlane.xlu0 %4178  ;;  %v5140_v61 = vsel %vm3612_vm0, %v4698_v20, 0.0 }
 0x8a7   :  { %5156 = vadd.xlane.f32.xlu0 %v5155_v43  ;;  %v18764_v43 = vld [vmem:[#allocation228_spill] sm:$0xff] }
 0x8a8   :  { %v4344_v4 = vmul.f32 0.020408163, %v18764_v43 }
 0x8aa   :  { %v14702_v44 = vsub.f32 %v18765_v33, %v4344_v4  ;;  %v18770_v33 = vld [vmem:[#allocation216_spill] sm:$0xff] }
 0x8ab   :  { %5264 = vadd.xlane.f32.xlu0 %v5263_v12  ;;  %v18767_v12 = vld [vmem:[#allocation229_spill] sm:$0xff]  ;;  %v5419_v4 = vmul.f32 0.020408163, %v18770_v33 }
 0x8ac   :  { %18766 = vst [vmem:[#allocation22_spill] sm:$0xff] %v14702_v44  ;;  %v4342_v2 = vmul.f32 0.020408163, %v18767_v12  ;;  %v4728_v60 = vmul.f32 %v14702_v44, %v14702_v44 }
 0x8ae   :  { %v14710_v27 = vsub.f32 %v18768_v37, %v4342_v2  ;;  %v5230_v43 = vsel %vm3612_vm0, %v4728_v60, 0.0  ;;  %v18771_v37 = vld [vmem:[#allocation217_spill] sm:$0xff]  ;;  %v10173_v2 = vpop.eup %10172 }
 0x8af   :  { %5258 = vadd.xlane.f32.xlu0 %v5257_v15  ;;  %v5618_v15 = vadd.f32 1e-05, %v5426_v38  ;;  %v5611_v38 = vadd.f32 1e-05, %v5419_v4  ;;  %v5417_v12 = vmul.f32 0.020408163, %v18771_v37 }
 0x8b0   :  { %18769 = vst [vmem:[#allocation227_spill] sm:$0xff] %v14710_v27  ;;  %v4726_v3 = vmul.f32 %v14710_v27, %v14710_v27  ;;  %v6002_v4 = vld [vmem:[%s17673_s2 + $0x2a8] sm:$0xff] }
 0x8b1   :  { %10174 = vrsqrt.f32 %v5618_v15  ;;  %v6004_v15 = vld [vmem:[%s17673_s2 + $0x2b8] sm:$0xff]  ;;  %v5609_v33 = vadd.f32 1e-05, %v5417_v12 }
 0x8b2   :  { %v5224_v20 = vsel %vm3612_vm0, %v4726_v3, 0.0  ;;  %10176 = vrsqrt.f32 %v5611_v38  ;;  %v6196_v60 = vmul.f32 %v10173_v2, %v6004_v15  ;;  %v5995_v38 = vld [vmem:[%s17673_s2 + $0x270] sm:$0xff]  ;;  %v5993_v15 = vld [vmem:[%s17673_s2 + $0x260] sm:$0xff] }
 0x8b3   :  { %10178 = vrsqrt.f32 %v5609_v33 }
 0x8b9   :  { %5141 = vadd.xlane.f32.xlu1 %v5140_v61  ;;  %v14726_v61 = vpop.xlane.xlu1 %4163 }
 0x8bb   :  { %v10175_v44 = vpop.eup %10174 }
 0x8bc   :  { %v6194_v3 = vmul.f32 %v10175_v44, %v6002_v4  ;;  %v10177_v27 = vpop.eup %10176  ;;  %v4321_v44 = vmul.f32 0.020408163, %v14261_v18  ;;  %v18775_v4 = vld [vmem:[#allocation192_spill] sm:$0xff] }
 0x8bd   :  { %5231 = vadd.xlane.f32.xlu1 %v5230_v43  ;;  %v14731_v43 = vpop.xlane.xlu0 %5084  ;;  %v14738_v12 = vpop.xlane.xlu1 %4157  ;;  %v6187_v2 = vmul.f32 %v10177_v27, %v5995_v38  ;;  %v4357_v27 = vmul.f32 0.020408163, %v14290_v21 }
 0x8be   :  { %18772 = vst [vmem:[#allocation186_spill] sm:$0xff] %v14731_v43 }
 0x8c1   :  { %5225 = vadd.xlane.f32.xlu1 %v5224_v20  ;;  %v14733_v37 = vpop.permute.xlu0 %6498  ;;  %v10179_v20 = vpop.eup %10178 }
 0x8c2   :  { %18773 = vst [vmem:[#allocation228_spill] sm:$0xff] %v14733_v37  ;;  %v14743_v33 = vpop.permute.xlu1 %6453  ;;  %v18777_v37 = vld [vmem:[#allocation28_spill] sm:$0xff] }
 0x8c3   :  { %18774 = vst [vmem:[#allocation13_spill] sm:$0xff] %v14743_v33  ;;  %v14751_v43 = vsub.f32 %v18777_v37, %v4359_v28  ;;  %v4316_v37 = vmul.f32 0.020408163, %v14097_v42  ;;  %v4346_v42 = vmul.f32 0.020408163, %v14111_v0 }
 0x8c5   :  { %6738 = vperm.xlu0 %9627, %v6196_v60   ;;  %v6185_v60 = vmul.f32 %v10179_v20, %v5993_v15  ;;  %18778 = vst [vmem:[#allocation11_spill] sm:$0xff] %v14751_v43  ;;  %v4743_v18 = vmul.f32 %v14751_v43, %v14751_v43  ;;  %v5430_v43 = vmul.f32 0.020408163, %v14277_v53 }
 0x8c7   :  { %v5275_v63 = vsel %vm3612_vm0, %v4743_v18, 0.0 }
 0x8c9   :  { %6728 = vperm.xlu0 %9627, %v6194_v3   ;;  %v14747_v3 = vsub.f32 %v18775_v4, %v4321_v44  ;;  %v5432_v44 = vmul.f32 0.020408163, %v14256_v9 }
 0x8cb   :  { %18776 = vst [vmem:[#allocation229_spill] sm:$0xff] %v14747_v3  ;;  %v4705_v38 = vmul.f32 %v14747_v3, %v14747_v3  ;;  %v5624_v18 = vadd.f32 1e-05, %v5432_v44 }
 0x8cd   :  { %v5161_v15 = vsel %vm3612_vm0, %v4705_v38, 0.0  ;;  %v18782_v38 = vld [vmem:[#allocation189_spill] sm:$0xff]  ;;  %10180 = vrsqrt.f32 %v5624_v18  ;;  %v18789_v18 = vld [vmem:[#allocation224_spill] sm:$0xff] }
 0x8d2   :  { %6693 = vperm.xlu1 %9626, %v6187_v2   ;;  %v18779_v2 = vld [vmem:[#allocation26_spill] sm:$0xff] }
 0x8d3   :  { %v14757_v20 = vsub.f32 %v18779_v2, %v4357_v27  ;;  %v14775_v2 = vsub.f32 %v18782_v38, %v4316_v37 }
 0x8d5   :  { %18780 = vst [vmem:[#allocation216_spill] sm:$0xff] %v14757_v20  ;;  %v4741_v28 = vmul.f32 %v14757_v20, %v14757_v20  ;;  %18783 = vst [vmem:[#allocation192_spill] sm:$0xff] %v14775_v2  ;;  %v18784_v20 = vld [vmem:[#allocation17_spill] sm:$0xff]  ;;  %v4700_v9 = vmul.f32 %v14775_v2, %v14775_v2  ;;  %v4363_v2 = vmul.f32 0.020408163, %v14357_v14 }
 0x8d6   :  { %6683 = vperm.xlu1 %9626, %v6185_v60   ;;  %v14762_v60 = vpop.permute.xlu0 %6488 }
 0x8d7   :  { %v5269_v4 = vsel %vm3612_vm0, %v4741_v28, 0.0  ;;  %v14785_v28 = vpop.permute.xlu1 %6443 }
 0x8da   :  { %v14767_v21 = vpop.xlane.xlu0 %5090 }
 0x8db   :  { %v14794_v0 = vpop.xlane.xlu1 %5075 }
 0x8de   :  { %v14772_v27 = vpop.permute.xlu0 %6518 }
 0x8df   :  { %18781 = vst [vmem:[#allocation217_spill] sm:$0xff] %v14772_v27  ;;  %v18792_v27 = vld [vmem:[#allocation32_spill] sm:$0xff] }
 0x8e0   :  { %v14829_v33 = vsub.f32 %v18792_v27, %v4363_v2  ;;  %v4318_v2 = vmul.f32 0.020408163, %v14193_v45  ;;  %v4350_v45 = vmul.f32 0.020408163, %v14214_v29 }
 0x8e2   :  { %18793 = vst [vmem:[#allocation17_spill] sm:$0xff] %v14829_v33 }
 0x8e8   :  { %5162 = vadd.xlane.f32.xlu0 %v5161_v15  ;;  %v4348_v15 = vmul.f32 0.020408163, %v14103_v54  ;;  %v5146_v54 = vsel %vm3612_vm0, %v4700_v9, 0.0 }
 0x8ea   :  { %v14780_v3 = vsub.f32 %v18784_v20, %v4348_v15  ;;  %v18788_v20 = vld [vmem:[#allocation220_spill] sm:$0xff] }
 0x8eb   :  { %v5423_v44 = vmul.f32 0.020408163, %v18788_v20 }
 0x8ec   :  { %5276 = vadd.xlane.f32.xlu0 %v5275_v63  ;;  %18785 = vst [vmem:[#allocation28_spill] sm:$0xff] %v14780_v3  ;;  %v5622_v63 = vadd.f32 1e-05, %v5430_v43  ;;  %v4732_v53 = vmul.f32 %v14780_v3, %v14780_v3 }
 0x8ed   :  { %v5615_v15 = vadd.f32 1e-05, %v5423_v44  ;;  %v6006_v44 = vld [vmem:[%s17673_s2 + $0x2c8] sm:$0xff] }
 0x8ee   :  { %10182 = vrsqrt.f32 %v5622_v63  ;;  %v5242_v38 = vsel %vm3612_vm0, %v4732_v53, 0.0  ;;  %v6008_v63 = vld [vmem:[%s17673_s2 + $0x2d8] sm:$0xff] }
 0x8ef   :  { %10184 = vrsqrt.f32 %v5615_v15  ;;  %v5999_v15 = vld [vmem:[%s17673_s2 + $0x290] sm:$0xff] }
 0x8f0   :  { %5270 = vadd.xlane.f32.xlu0 %v5269_v4  ;;  %v18786_v4 = vld [vmem:[#allocation15_spill] sm:$0xff] }
 0x8f1   :  { %v14788_v37 = vsub.f32 %v18786_v4, %v4346_v42  ;;  %v5421_v42 = vmul.f32 0.020408163, %v18789_v18  ;;  %v10181_v4 = vpop.eup %10180 }
 0x8f2   :  { %v6200_v53 = vmul.f32 %v10181_v4, %v6008_v63  ;;  %v5997_v63 = vld [vmem:[%s17673_s2 + $0x280] sm:$0xff] }
 0x8f3   :  { %18787 = vst [vmem:[#allocation26_spill] sm:$0xff] %v14788_v37  ;;  %v4730_v43 = vmul.f32 %v14788_v37, %v14788_v37  ;;  %v5613_v20 = vadd.f32 1e-05, %v5421_v42 }
 0x8f5   :  { %v5236_v9 = vsel %vm3612_vm0, %v4730_v43, 0.0  ;;  %10186 = vrsqrt.f32 %v5613_v20 }
 0x8f8   :  { %v10183_v3 = vpop.eup %10182 }
 0x8f9   :  { %v6198_v43 = vmul.f32 %v10183_v3, %v6006_v44  ;;  %v10185_v37 = vpop.eup %10184  ;;  %v4323_v3 = vmul.f32 0.020408163, %v14348_v39  ;;  %v18790_v44 = vld [vmem:[#allocation194_spill] sm:$0xff] }
 0x8fa   :  { %5147 = vadd.xlane.f32.xlu1 %v5146_v54  ;;  %v14804_v54 = vpop.xlane.xlu1 %4037  ;;  %v6191_v4 = vmul.f32 %v10185_v37, %v5999_v15  ;;  %v4361_v37 = vmul.f32 0.020408163, %v14363_v50 }
 0x8fe   :  { %5243 = vadd.xlane.f32.xlu1 %v5242_v38  ;;  %v14809_v38 = vpop.permute.xlu0 %6508  ;;  %v14816_v42 = vpop.xlane.xlu1 %4175 }
 0x902   :  { %5237 = vadd.xlane.f32.xlu1 %v5236_v9  ;;  %v14811_v18 = vpop.xlane.xlu0 %5096  ;;  %v10187_v9 = vpop.eup %10186 }
 0x903   :  { %v14821_v20 = vpop.xlane.xlu1 %4169 }
 0x906   :  { %6758 = vperm.xlu0 %9627, %v6200_v53   ;;  %v6189_v53 = vmul.f32 %v10187_v9, %v5997_v63  ;;  %v18795_v9 = vld [vmem:[#allocation30_spill] sm:$0xff] }
 0x907   :  { %v14837_v63 = vsub.f32 %v18795_v9, %v4361_v37 }
 0x909   :  { %18796 = vst [vmem:[#allocation220_spill] sm:$0xff] %v14837_v63  ;;  %v4745_v27 = vmul.f32 %v14837_v63, %v14837_v63  ;;  %v18799_v63 = vld [vmem:[#allocation21_spill] sm:$0xff] }
 0x90a   :  { %6748 = vperm.xlu0 %9627, %v6198_v43   ;;  %v14825_v43 = vsub.f32 %v18790_v44, %v4323_v3  ;;  %v5436_v3 = vmul.f32 0.020408163, %v14379_v48 }
 0x90b   :  { %v5281_v44 = vsel %vm3612_vm0, %v4745_v27, 0.0  ;;  %v14863_v27 = vpop.permute.xlu1 %6473 }
 0x90c   :  { %18791 = vst [vmem:[#allocation189_spill] sm:$0xff] %v14825_v43  ;;  %v4707_v15 = vmul.f32 %v14825_v43, %v14825_v43  ;;  %18801 = vst [vmem:[#allocation32_spill] sm:$0xff] %v14863_v27 }
 0x90e   :  { %v5167_v39 = vsel %vm3612_vm0, %v4707_v15, 0.0  ;;  %v18797_v15 = vld [vmem:[#allocation190_spill] sm:$0xff] }
 0x90f   :  { %v14853_v9 = vsub.f32 %v18797_v15, %v4318_v2 }
 0x911   :  { %18798 = vst [vmem:[#allocation224_spill] sm:$0xff] %v14853_v9  ;;  %v4702_v48 = vmul.f32 %v14853_v9, %v14853_v9 }
 0x913   :  { %6713 = vperm.xlu1 %9626, %v6191_v4   ;;  %v14834_v4 = vpop.permute.xlu0 %6538 }
 0x914   :  { %18794 = vst [vmem:[#allocation15_spill] sm:$0xff] %v14834_v4 }
 0x917   :  { %6703 = vperm.xlu1 %9626, %v6189_v53   ;;  %v4747_v53 = vmul.f32 %v14829_v33, %v14829_v33  ;;  %v14845_v50 = vpop.permute.xlu0 %6528  ;;  %v5434_v33 = vmul.f32 0.020408163, %v14389_v36 }
 0x919   :  { %v5287_v14 = vsel %vm3612_vm0, %v4747_v53, 0.0  ;;  %v5628_v53 = vadd.f32 1e-05, %v5436_v3 }
 0x91b   :  { %v14850_v37 = vpop.xlane.xlu0 %5102  ;;  %10188 = vrsqrt.f32 %v5628_v53  ;;  %v18805_v53 = vld [vmem:[#allocation230_spill] sm:$0xff] }
 0x929   :  { %5168 = vadd.xlane.f32.xlu0 %v5167_v39  ;;  %v4352_v39 = vmul.f32 0.020408163, %v14208_v30  ;;  %v5152_v30 = vsel %vm3612_vm0, %v4702_v48, 0.0 }
 0x92b   :  { %v14858_v43 = vsub.f32 %v18799_v63, %v4352_v39  ;;  %v18804_v63 = vld [vmem:[#allocation226_spill] sm:$0xff] }
 0x92c   :  { %v5427_v3 = vmul.f32 0.020408163, %v18804_v63  ;;  %v14884_v63 = vpop.permute.xlu0 %6558 }
 0x92d   :  { %5288 = vadd.xlane.f32.xlu0 %v5287_v14  ;;  %18800 = vst [vmem:[#allocation194_spill] sm:$0xff] %v14858_v43  ;;  %v5626_v14 = vadd.f32 1e-05, %v5434_v33  ;;  %v4736_v36 = vmul.f32 %v14858_v43, %v14858_v43  ;;  %v14875_v33 = vpop.permute.xlu1 %6463  ;;  %18806 = vst [vmem:[#allocation190_spill] sm:$0xff] %v14884_v63 }
 0x92e   :  { %v5619_v39 = vadd.f32 1e-05, %v5427_v3  ;;  %v6010_v3 = vld [vmem:[%s17673_s2 + $0x2e8] sm:$0xff] }
 0x92f   :  { %10190 = vrsqrt.f32 %v5626_v14  ;;  %v5254_v29 = vsel %vm3612_vm0, %v4736_v36, 0.0  ;;  %v6012_v14 = vld [vmem:[%s17673_s2 + $0x2f8] sm:$0xff] }
 0x930   :  { %10192 = vrsqrt.f32 %v5619_v39  ;;  %v6003_v39 = vld [vmem:[%s17673_s2 + $0x2b0] sm:$0xff] }
 0x931   :  { %5282 = vadd.xlane.f32.xlu0 %v5281_v44  ;;  %v18802_v44 = vld [vmem:[#allocation19_spill] sm:$0xff] }
 0x932   :  { %v14866_v2 = vsub.f32 %v18802_v44, %v4350_v45  ;;  %v5425_v45 = vmul.f32 0.020408163, %v18805_v53  ;;  %v10189_v44 = vpop.eup %10188  ;;  %v14891_v53 = vpop.permute.xlu0 %6548 }
 0x933   :  { %v6204_v43 = vmul.f32 %v10189_v44, %v6012_v14  ;;  %18807 = vst [vmem:[#allocation21_spill] sm:$0xff] %v14891_v53  ;;  %v4367_v53 = vmul.f32 0.020408163, %v14428_v1 }
 0x934   :  { %18803 = vst [vmem:[#allocation30_spill] sm:$0xff] %v14866_v2  ;;  %v4734_v15 = vmul.f32 %v14866_v2, %v14866_v2  ;;  %v5617_v36 = vadd.f32 1e-05, %v5425_v45 }
 0x936   :  { %v5248_v48 = vsel %vm3612_vm0, %v4734_v15, 0.0  ;;  %10194 = vrsqrt.f32 %v5617_v36 }
 0x939   :  { %v10191_v2 = vpop.eup %10190 }
 0x93a   :  { %v6202_v15 = vmul.f32 %v10191_v2, %v6010_v3  ;;  %v10193_v9 = vpop.eup %10192  ;;  %v4325_v3 = vmul.f32 0.020408163, %v14417_v19  ;;  %v18813_v19 = vld [vmem:[#allocation34_spill] sm:$0xff] }
 0x93b   :  { %5153 = vadd.xlane.f32.xlu1 %v5152_v30  ;;  %v14882_v30 = vpop.xlane.xlu1 %5081  ;;  %v6195_v45 = vmul.f32 %v10193_v9, %v6003_v39  ;;  %v18811_v39 = vld [vmem:[#allocation36_spill] sm:$0xff] }
 0x93c   :  { %v14913_v4 = vsub.f32 %v18811_v39, %v4367_v53 }
 0x93e   :  { %18812 = vst [vmem:[#allocation230_spill] sm:$0xff] %v14913_v4  ;;  %v4751_v1 = vmul.f32 %v14913_v4, %v14913_v4 }
 0x93f   :  { %5255 = vadd.xlane.f32.xlu1 %v5254_v29  ;;  %v14889_v29 = vpop.xlane.xlu1 %4043 }
 0x940   :  { %v10195_v44 = vpop.eup %10194 }
 0x943   :  { %5249 = vadd.xlane.f32.xlu1 %v5248_v48  ;;  %v14893_v48 = vpop.xlane.xlu1 %4187 }
 0x947   :  { %6778 = vperm.xlu0 %9627, %v6204_v43   ;;  %v6001_v43 = vld [vmem:[%s17673_s2 + $0x2a0] sm:$0xff]  ;;  %v14901_v14 = vpop.xlane.xlu1 %4181 }
 0x948   :  { %v6193_v2 = vmul.f32 %v10195_v44, %v6001_v43  ;;  %v14920_v43 = vpop.xlane.xlu0 %5108 }
 0x94b   :  { %6768 = vperm.xlu0 %9627, %v6202_v15   ;;  %v14903_v36 = vpop.permute.xlu1 %6493  ;;  %v18809_v15 = vld [vmem:[#allocation170_spill] sm:$0xff] }
 0x94c   :  { %18808 = vst [vmem:[#allocation19_spill] sm:$0xff] %v14903_v36  ;;  %v14907_v63 = vsub.f32 %v18809_v15, %v4325_v3  ;;  %v14930_v15 = vpop.permute.xlu0 %6578 }
 0x94d   :  { %18816 = vst [vmem:[#allocation34_spill] sm:$0xff] %v14930_v15 }
 0x94e   :  { %18810 = vst [vmem:[#allocation226_spill] sm:$0xff] %v14907_v63  ;;  %v4709_v44 = vmul.f32 %v14907_v63, %v14907_v63  ;;  %v4320_v63 = vmul.f32 0.020408163, %v14292_v25  ;;  %v4354_v25 = vmul.f32 0.020408163, %v14319_v55 }
 0x94f   :  { %v14910_v9 = vpop.permute.xlu1 %6483 }
 0x950   :  { %v5173_v3 = vsel %vm3612_vm0, %v4709_v44, 0.0  ;;  %v14940_v4 = vpop.permute.xlu0 %6568 }
 0x951   :  { %18818 = vst [vmem:[#allocation242_spill] sm:$0xff] %v14940_v4 }
 0x953   :  { %v14916_v27 = vpop.xlane.xlu1 %5087 }
 0x954   :  { %6733 = vperm.xlu1 %9626, %v6195_v45   ;;  %v4365_v45 = vmul.f32 0.020408163, %v14437_v34  ;;  %v5299_v34 = vsel %vm3612_vm0, %v4751_v1, 0.0  ;;  %v4356_v1 = vmul.f32 0.020408163, %v14298_v13 }
 0x957   :  { %v14928_v53 = vpop.permute.xlu1 %6513 }
 0x958   :  { %6723 = vperm.xlu1 %9626, %v6193_v2   ;;  %v14923_v2 = vsub.f32 %v18813_v19, %v4365_v45  ;;  %18815 = vst [vmem:[#allocation36_spill] sm:$0xff] %v14928_v53  ;;  %v5438_v45 = vmul.f32 0.020408163, %v14504_v24 }
 0x95a   :  { %18814 = vst [vmem:[#allocation170_spill] sm:$0xff] %v14923_v2  ;;  %v4749_v39 = vmul.f32 %v14923_v2, %v14923_v2  ;;  %v5630_v15 = vadd.f32 1e-05, %v5438_v45  ;;  %v5431_v45 = vmul.f32 0.020408163, %v14092_v5 }
 0x95b   :  { %v14937_v19 = vpop.permute.xlu1 %6503 }
 0x95c   :  { %18817 = vst [vmem:[#allocation241_spill] sm:$0xff] %v14937_v19  ;;  %v5293_v44 = vsel %vm3612_vm0, %v4749_v39, 0.0  ;;  %10196 = vrsqrt.f32 %v5630_v15  ;;  %v18823_v39 = vld [vmem:[#allocation23_spill] sm:$0xff] }
 0x95d   :  { %v14955_v4 = vsub.f32 %v18823_v39, %v4354_v25  ;;  %v6022_v19 = vld [vmem:[%s17673_s2 + $0x348] sm:$0xff] }
 0x95f   :  { %v14946_v36 = vpop.xlane.xlu1 %5093  ;;  %18824 = vst [vmem:[#allocation23_spill] sm:$0xff] %v14955_v4  ;;  %v4738_v55 = vmul.f32 %v14955_v4, %v14955_v4  ;;  %v14975_v4 = vpop.xlane.xlu0 %5114 }
 0x966   :  { %v10197_v39 = vpop.eup %10196 }
 0x96a   :  { %5174 = vadd.xlane.f32.xlu0 %v5173_v3  ;;  %v18819_v3 = vld [vmem:[#allocation162_spill] sm:$0xff] }
 0x96b   :  { %v14943_v53 = vsub.f32 %v18819_v3, %v4320_v63 }
 0x96d   :  { %18820 = vst [vmem:[#allocation162_spill] sm:$0xff] %v14943_v53  ;;  %v4704_v24 = vmul.f32 %v14943_v53, %v14943_v53 }
 0x96e   :  { %5300 = vadd.xlane.f32.xlu0 %v5299_v34  ;;  %v18821_v34 = vld [vmem:[#allocation25_spill] sm:$0xff] }
 0x96f   :  { %v14949_v2 = vsub.f32 %v18821_v34, %v4356_v1  ;;  %v5158_v63 = vsel %vm3612_vm0, %v4704_v24, 0.0  ;;  %v5623_v1 = vadd.f32 1e-05, %v5431_v45  ;;  %v18827_v34 = vld [vmem:[#allocation118_spill] sm:$0xff]  ;;  %v5260_v24 = vsel %vm3612_vm0, %v4738_v55, 0.0  ;;  %v6007_v55 = vld [vmem:[%s17673_s2 + $0x2d0] sm:$0xff] }
 0x970   :  { %v5429_v25 = vmul.f32 0.020408163, %v18827_v34 }
 0x971   :  { %18822 = vst [vmem:[#allocation25_spill] sm:$0xff] %v14949_v2  ;;  %v4740_v13 = vmul.f32 %v14949_v2, %v14949_v2  ;;  %10198 = vrsqrt.f32 %v5623_v1  ;;  %v6005_v1 = vld [vmem:[%s17673_s2 + $0x2c0] sm:$0xff] }
 0x972   :  { %5294 = vadd.xlane.f32.xlu0 %v5293_v44  ;;  %v14957_v44 = vpop.permute.xlu1 %6533 }
 0x973   :  { %18825 = vst [vmem:[#allocation243_spill] sm:$0xff] %v14957_v44  ;;  %v5266_v3 = vsel %vm3612_vm0, %v4740_v13, 0.0  ;;  %v5621_v13 = vadd.f32 1e-05, %v5429_v25 }
 0x975   :  { %10200 = vrsqrt.f32 %v5621_v13  ;;  %v18831_v13 = vld [vmem:[#allocation169_spill] sm:$0xff] }
 0x976   :  { %v14966_v15 = vpop.permute.xlu1 %6523 }
 0x977   :  { %18826 = vst [vmem:[#allocation244_spill] sm:$0xff] %v14966_v15  ;;  %v4369_v15 = vmul.f32 0.020408163, %v14522_v57 }
 0x97a   :  { %v14973_v5 = vpop.xlane.xlu1 %5099 }
 0x97c   :  { %5159 = vadd.xlane.f32.xlu1 %v5158_v63  ;;  %v6014_v63 = vld [vmem:[%s17673_s2 + $0x308] sm:$0xff] }
 0x97d   :  { %v6206_v2 = vmul.f32 %v10197_v39, %v6014_v63  ;;  %v4327_v39 = vmul.f32 0.020408163, %v14494_v7 }
 0x97e   :  { %v14977_v45 = vpop.permute.xlu1 %6553 }
 0x97f   :  { %18828 = vst [vmem:[#allocation118_spill] sm:$0xff] %v14977_v45  ;;  %v14993_v45 = vsub.f32 %v18831_v13, %v4327_v39 }
 0x980   :  { %5267 = vadd.xlane.f32.xlu1 %v5266_v3  ;;  %v10199_v3 = vpop.eup %10198 }
 0x981   :  { %v6199_v53 = vmul.f32 %v10199_v3, %v6007_v55  ;;  %18832 = vst [vmem:[#allocation169_spill] sm:$0xff] %v14993_v45  ;;  %v18834_v55 = vld [vmem:[#allocation40_spill] sm:$0xff] }
 0x982   :  { %v14982_v34 = vpop.permute.xlu1 %6543 }
 0x983   :  { %18829 = vst [vmem:[#allocation245_spill] sm:$0xff] %v14982_v34  ;;  %v4371_v34 = vmul.f32 0.020408163, %v14499_v17 }
 0x984   :  { %5261 = vadd.xlane.f32.xlu1 %v5260_v24  ;;  %v10201_v24 = vpop.eup %10200 }
 0x985   :  { %v14999_v44 = vsub.f32 %v18834_v55, %v4371_v34 }
 0x986   :  { %v14987_v25 = vpop.xlane.xlu1 %5105 }
 0x987   :  { %18835 = vst [vmem:[#allocation40_spill] sm:$0xff] %v14999_v44  ;;  %v4755_v17 = vmul.f32 %v14999_v44, %v14999_v44  ;;  %v18842_v44 = vld [vmem:[#allocation193_spill] sm:$0xff] }
 0x988   :  { %6788 = vperm.xlu0 %9627, %v6206_v2   ;;  %v6197_v2 = vmul.f32 %v10201_v24, %v6005_v1  ;;  %v15004_v24 = vpop.permute.xlu0 %6598  ;;  %v18837_v1 = vld [vmem:[#allocation38_spill] sm:$0xff] }
 0x989   :  { %18836 = vst [vmem:[#allocation248_spill] sm:$0xff] %v15004_v24  ;;  %v5311_v34 = vsel %vm3612_vm0, %v4755_v17, 0.0 }
 0x98a   :  { %v14990_v63 = vpop.permute.xlu1 %6573 }
 0x98b   :  { %18830 = vst [vmem:[#allocation246_spill] sm:$0xff] %v14990_v63 }
 0x98c   :  { %v15017_v13 = vpop.permute.xlu0 %6588 }
 0x98d   :  { %18839 = vst [vmem:[#allocation249_spill] sm:$0xff] %v15017_v13 }
 0x98e   :  { %v14996_v3 = vpop.permute.xlu1 %6563 }
 0x98f   :  { %18833 = vst [vmem:[#allocation247_spill] sm:$0xff] %v14996_v3 }
 0x992   :  { %v15006_v7 = vpop.xlane.xlu1 %5111 }
 0x995   :  { %6753 = vperm.xlu1 %9626, %v6199_v53   ;;  %v4711_v53 = vmul.f32 %v14993_v45, %v14993_v45  ;;  %v5440_v45 = vmul.f32 0.020408163, %v14587_v40 }
 0x996   :  { %v15019_v55 = vpop.permute.xlu1 %6593 }
 0x997   :  { %v5179_v39 = vsel %vm3612_vm0, %v4711_v53, 0.0  ;;  %18840 = vst [vmem:[#allocation250_spill] sm:$0xff] %v15019_v55  ;;  %v4322_v53 = vmul.f32 0.020408163, %v14402_v22  ;;  %v5632_v17 = vadd.f32 1e-05, %v5440_v45 }
 0x998   :  { %v18847_v55 = vld [vmem:[#allocation27_spill] sm:$0xff] }
 0x999   :  { %6743 = vperm.xlu1 %9626, %v6197_v2   ;;  %v15009_v2 = vsub.f32 %v18837_v1, %v4369_v15  ;;  %v15023_v1 = vpop.xlane.xlu0 %5120  ;;  %v15029_v63 = vsub.f32 %v18842_v44, %v4322_v53  ;;  %10202 = vrsqrt.f32 %v5632_v17  ;;  %v5435_v53 = vmul.f32 0.020408163, %v14206_v62 }
 0x99b   :  { %18838 = vst [vmem:[#allocation38_spill] sm:$0xff] %v15009_v2  ;;  %v4753_v57 = vmul.f32 %v15009_v2, %v15009_v2  ;;  %18843 = vst [vmem:[#allocation193_spill] sm:$0xff] %v15029_v63  ;;  %v4360_v2 = vmul.f32 0.020408163, %v14439_v6 }
 0x99d   :  { %v5305_v15 = vsel %vm3612_vm0, %v4753_v57, 0.0  ;;  %v4358_v57 = vmul.f32 0.020408163, %v14444_v47  ;;  %v6016_v47 = vld [vmem:[%s17673_s2 + $0x318] sm:$0xff]  ;;  %v15059_v62 = vpop.permute.xlu0 %6618 }
 0x99e   :  { %18850 = vst [vmem:[#allocation254_spill] sm:$0xff] %v15059_v62 }
 0x99f   :  { %v15043_v45 = vsub.f32 %v18847_v55, %v4358_v57  ;;  %v5627_v57 = vadd.f32 1e-05, %v5435_v53 }
 0x9a1   :  { %18848 = vst [vmem:[#allocation27_spill] sm:$0xff] %v15043_v45  ;;  %10204 = vrsqrt.f32 %v5627_v57  ;;  %v18853_v57 = vld [vmem:[#allocation196_spill] sm:$0xff] }
 0x9a7   :  { %5180 = vadd.xlane.f32.xlu0 %v5179_v39  ;;  %v15026_v39 = vpop.permute.xlu1 %6583 }
 0x9a8   :  { %18841 = vst [vmem:[#allocation251_spill] sm:$0xff] %v15026_v39 }
 0x9ab   :  { %5312 = vadd.xlane.f32.xlu0 %v5311_v34  ;;  %v15032_v3 = vpop.xlane.xlu1 %5117  ;;  %v18844_v34 = vld [vmem:[#allocation29_spill] sm:$0xff] }
 0x9ac   :  { %v15035_v40 = vsub.f32 %v18844_v34, %v4360_v2  ;;  %v10203_v2 = vpop.eup %10202  ;;  %v4742_v34 = vmul.f32 %v15043_v45, %v15043_v45 }
 0x9ad   :  { %v10205_v45 = vpop.eup %10204 }
 0x9ae   :  { %18845 = vst [vmem:[#allocation29_spill] sm:$0xff] %v15035_v40  ;;  %v4744_v6 = vmul.f32 %v15035_v40, %v15035_v40  ;;  %v6208_v40 = vmul.f32 %v10203_v2, %v6016_v47  ;;  %v4329_v47 = vmul.f32 0.020408163, %v14577_v23  ;;  %v15090_v23 = vpop.permute.xlu0 %6608 }
 0x9af   :  { %5306 = vadd.xlane.f32.xlu0 %v5305_v15  ;;  %v4706_v15 = vmul.f32 %v15029_v63, %v15029_v63  ;;  %v15040_v22 = vpop.permute.xlu1 %6613  ;;  %18857 = vst [vmem:[#allocation257_spill] sm:$0xff] %v15090_v23  ;;  %v4377_v23 = vmul.f32 0.020408163, %v14694_v35 }
 0x9b0   :  { %18846 = vst [vmem:[#allocation252_spill] sm:$0xff] %v15040_v22  ;;  %v5278_v17 = vsel %vm3612_vm0, %v4744_v6, 0.0 }
 0x9b1   :  { %v5164_v44 = vsel %vm3612_vm0, %v4706_v15, 0.0  ;;  %v5433_v15 = vmul.f32 0.020408163, %v14222_v26  ;;  %v6011_v26 = vld [vmem:[%s17673_s2 + $0x2f0] sm:$0xff] }
 0x9b2   :  { %v6203_v53 = vmul.f32 %v10205_v45, %v6011_v26  ;;  %v18855_v45 = vld [vmem:[#allocation44_spill] sm:$0xff] }
 0x9b3   :  { %v15055_v55 = vpop.permute.xlu1 %6603  ;;  %v5625_v6 = vadd.f32 1e-05, %v5433_v15  ;;  %v15077_v15 = vsub.f32 %v18853_v57, %v4329_v47 }
 0x9b4   :  { %18849 = vst [vmem:[#allocation253_spill] sm:$0xff] %v15055_v55 }
 0x9b5   :  { %10206 = vrsqrt.f32 %v5625_v6  ;;  %18854 = vst [vmem:[#allocation196_spill] sm:$0xff] %v15077_v15 }
 0x9b7   :  { %v15061_v63 = vpop.xlane.xlu1 %5123 }
 0x9bb   :  { %v15063_v22 = vpop.permute.xlu1 %6633 }
 0x9bc   :  { %18851 = vst [vmem:[#allocation255_spill] sm:$0xff] %v15063_v22  ;;  %v4373_v22 = vmul.f32 0.020408163, %v14608_v10 }
 0x9bd   :  { %5165 = vadd.xlane.f32.xlu1 %v5164_v44  ;;  %v5272_v44 = vsel %vm3612_vm0, %v4742_v34, 0.0 }
 0x9bf   :  { %v15065_v55 = vpop.permute.xlu1 %6623  ;;  %v10207_v2 = vpop.eup %10206 }
 0x9c0   :  { %18852 = vst [vmem:[#allocation256_spill] sm:$0xff] %v15065_v55  ;;  %v4713_v55 = vmul.f32 %v15077_v15, %v15077_v15 }
 0x9c1   :  { %5279 = vadd.xlane.f32.xlu1 %v5278_v17 }
 0x9c2   :  { %v5185_v47 = vsel %vm3612_vm0, %v4713_v55, 0.0 }
 0x9c3   :  { %v15070_v17 = vpop.xlane.xlu1 %5129 }
 0x9c5   :  { %6798 = vperm.xlu0 %9627, %v6208_v40   ;;  %5273 = vadd.xlane.f32.xlu1 %v5272_v44  ;;  %v6009_v40 = vld [vmem:[%s17673_s2 + $0x2e0] sm:$0xff]  ;;  %v4375_v44 = vmul.f32 0.020408163, %v14600_v59 }
 0x9c6   :  { %v6201_v34 = vmul.f32 %v10207_v2, %v6009_v40  ;;  %v18858_v2 = vld [vmem:[#allocation42_spill] sm:$0xff] }
 0x9c7   :  { %v15080_v6 = vpop.xlane.xlu1 %5207  ;;  %v15083_v26 = vsub.f32 %v18855_v45, %v4375_v44  ;;  %v15093_v40 = vsub.f32 %v18858_v2, %v4373_v22  ;;  %v5442_v45 = vmul.f32 0.020408163, %v14707_v31  ;;  %v18864_v31 = vld [vmem:[#allocation33_spill] sm:$0xff] }
 0x9c9   :  { %18856 = vst [vmem:[#allocation44_spill] sm:$0xff] %v15083_v26  ;;  %18859 = vst [vmem:[#allocation42_spill] sm:$0xff] %v15093_v40  ;;  %v4759_v59 = vmul.f32 %v15083_v26, %v15083_v26  ;;  %v4757_v44 = vmul.f32 %v15093_v40, %v15093_v40  ;;  %v4324_v26 = vmul.f32 0.020408163, %v14509_v32  ;;  %v18866_v32 = vld [vmem:[#allocation31_spill] sm:$0xff] }
 0x9cb   :  { %v5323_v10 = vsel %vm3612_vm0, %v4759_v59, 0.0  ;;  %v5317_v22 = vsel %vm3612_vm0, %v4757_v44, 0.0  ;;  %v18862_v59 = vld [vmem:[#allocation195_spill] sm:$0xff] }
 0x9d6   :  { %6773 = vperm.xlu1 %9626, %v6203_v53   ;;  %v15088_v53 = vpop.xlane.xlu1 %5201 }
 0x9da   :  { %6763 = vperm.xlu1 %9626, %v6201_v34   ;;  %v15098_v34 = vpop.xlane.xlu0 %5126  ;;  %v15100_v57 = vpop.permute.xlu1 %6653 }
 0x9db   :  { %18860 = vst [vmem:[#allocation258_spill] sm:$0xff] %v15100_v57  ;;  %v15115_v57 = vsub.f32 %v18862_v59, %v4324_v26 }
 0x9dd   :  { %18863 = vst [vmem:[#allocation195_spill] sm:$0xff] %v15115_v57 }
 0x9de   :  { %v15107_v2 = vpop.xlane.xlu0 %5204  ;;  %v15109_v55 = vpop.permute.xlu1 %6643 }
 0x9df   :  { %18861 = vst [vmem:[#allocation259_spill] sm:$0xff] %v15109_v55 }
 0x9e2   :  { %v15112_v15 = vpop.xlane.xlu1 %5135 }
 0x9e4   :  { %5186 = vadd.xlane.f32.xlu0 %v5185_v47  ;;  %v5634_v47 = vadd.f32 1e-05, %v5442_v45  ;;  %v4708_v45 = vmul.f32 %v15115_v57, %v15115_v57 }
 0x9e6   :  { %10208 = vrsqrt.f32 %v5634_v47  ;;  %v15118_v40 = vpop.xlane.xlu1 %5219  ;;  %v5170_v26 = vsel %vm3612_vm0, %v4708_v45, 0.0 }
 0x9e8   :  { %5324 = vadd.xlane.f32.xlu0 %v5323_v10  ;;  %v4364_v10 = vmul.f32 0.020408163, %v14551_v16  ;;  %v6018_v16 = vld [vmem:[%s17673_s2 + $0x328] sm:$0xff] }
 0x9ea   :  { %v15121_v44 = vsub.f32 %v18864_v31, %v4364_v10  ;;  %v15129_v47 = vpop.xlane.xlu1 %5213 }
 0x9ec   :  { %5318 = vadd.xlane.f32.xlu0 %v5317_v22  ;;  %18865 = vst [vmem:[#allocation33_spill] sm:$0xff] %v15121_v44  ;;  %v4362_v22 = vmul.f32 0.020408163, %v14560_v58  ;;  %v4748_v59 = vmul.f32 %v15121_v44, %v15121_v44  ;;  %v5437_v58 = vmul.f32 0.020408163, %v14306_v41 }
 0x9ee   :  { %v15127_v39 = vsub.f32 %v18866_v32, %v4362_v22  ;;  %v5290_v31 = vsel %vm3612_vm0, %v4748_v59, 0.0  ;;  %v15141_v32 = vpop.xlane.xlu0 %5198  ;;  %v15143_v45 = vpop.permute.xlu1 %6673  ;;  %v5629_v57 = vadd.f32 1e-05, %v5437_v58 }
 0x9ef   :  { %18868 = vst [vmem:[#allocation260_spill] sm:$0xff] %v15143_v45 }
 0x9f0   :  { %v10209_v55 = vpop.eup %10208  ;;  %18867 = vst [vmem:[#allocation31_spill] sm:$0xff] %v15127_v39  ;;  %v4746_v22 = vmul.f32 %v15127_v39, %v15127_v39  ;;  %10210 = vrsqrt.f32 %v5629_v57  ;;  %v4379_v39 = vmul.f32 0.020408163, %v14686_v46 }
 0x9f1   :  { %v6210_v10 = vmul.f32 %v10209_v55, %v6018_v16 }
 0x9f2   :  { %v5284_v62 = vsel %vm3612_vm0, %v4746_v22, 0.0  ;;  %v15148_v41 = vpop.permute.xlu1 %6663  ;;  %v18872_v22 = vld [vmem:[#allocation46_spill] sm:$0xff] }
 0x9f3   :  { %18870 = vst [vmem:[#allocation262_spill] sm:$0xff] %v15148_v41 }
 0x9f6   :  { %v15150_v55 = vpop.xlane.xlu1 %5141 }
 0x9fa   :  { %v10211_v59 = vpop.eup %10210  ;;  %v15159_v58 = vpop.xlane.xlu1 %5231 }
 0x9fe   :  { %5171 = vadd.xlane.f32.xlu1 %v5170_v26  ;;  %v15146_v26 = vpop.permute.xlu0 %6638  ;;  %v15168_v41 = vpop.xlane.xlu1 %5225 }
 0x9ff   :  { %18869 = vst [vmem:[#allocation261_spill] sm:$0xff] %v15146_v26  ;;  %v18874_v26 = vld [vmem:[#allocation98_spill] sm:$0xff] }
 0xa02   :  { %6808 = vperm.xlu0 %9627, %v6210_v10   ;;  %5291 = vadd.xlane.f32.xlu1 %v5290_v31  ;;  %v15152_v16 = vpop.permute.xlu0 %6628  ;;  %v6013_v10 = vld [vmem:[%s17673_s2 + $0x300] sm:$0xff] }
 0xa03   :  { %18871 = vst [vmem:[#allocation263_spill] sm:$0xff] %v15152_v16  ;;  %v6205_v57 = vmul.f32 %v10211_v59, %v6013_v10  ;;  %v15171_v16 = vsub.f32 %v18874_v26, %v4379_v39  ;;  %v15178_v59 = vpop.permute.xlu1 %6693  ;;  %v18877_v10 = vld [vmem:[#allocation48_spill] sm:$0xff] }
 0xa04   :  { %18876 = vst [vmem:[#allocation264_spill] sm:$0xff] %v15178_v59 }
 0xa05   :  { %18875 = vst [vmem:[#allocation98_spill] sm:$0xff] %v15171_v16 }
 0xa06   :  { %5285 = vadd.xlane.f32.xlu1 %v5284_v62  ;;  %v15157_v31 = vpop.xlane.xlu0 %5132  ;;  %v4331_v62 = vmul.f32 0.020408163, %v14678_v52 }
 0xa08   :  { %v15163_v44 = vsub.f32 %v18872_v22, %v4331_v62  ;;  %v15181_v62 = vsub.f32 %v18877_v10, %v4377_v23  ;;  %v15191_v22 = vpop.permute.xlu1 %6683 }
 0xa09   :  { %18880 = vst [vmem:[#allocation266_spill] sm:$0xff] %v15191_v22  ;;  %v18882_v22 = vld [vmem:[#allocation35_spill] sm:$0xff] }
 0xa0a   :  { %18873 = vst [vmem:[#allocation46_spill] sm:$0xff] %v15163_v44  ;;  %v15166_v45 = vpop.xlane.xlu0 %5216  ;;  %v4715_v24 = vmul.f32 %v15163_v44, %v15163_v44  ;;  %18878 = vst [vmem:[#allocation48_spill] sm:$0xff] %v15181_v62  ;;  %v4761_v26 = vmul.f32 %v15181_v62, %v15181_v62  ;;  %v5444_v44 = vmul.f32 0.020408163, %v14794_v0  ;;  %v5448_v0 = vmul.f32 0.020408163, %v14916_v27 }
 0xa0c   :  { %v5191_v46 = vsel %vm3612_vm0, %v4715_v24, 0.0  ;;  %v5329_v23 = vsel %vm3612_vm0, %v4761_v26, 0.0  ;;  %v15197_v24 = vpop.xlane.xlu1 %5147 }
 0xa0e   :  { %v15176_v52 = vpop.xlane.xlu0 %5210 }
 0xa10   :  { %v15203_v62 = vpop.xlane.xlu1 %5243 }
 0xa12   :  { %v15186_v39 = vpop.permute.xlu0 %6658 }
 0xa13   :  { %18879 = vst [vmem:[#allocation265_spill] sm:$0xff] %v15186_v39  ;;  %v4368_v39 = vmul.f32 0.020408163, %v14638_v56  ;;  %v5452_v56 = vmul.f32 0.020408163, %v14973_v5 }
 0xa15   :  { %v5644_v5 = vadd.f32 1e-05, %v5452_v56 }
 0xa16   :  { %v15195_v10 = vpop.permute.xlu0 %6648 }
 0xa17   :  { %6783 = vperm.xlu1 %9626, %v6205_v57   ;;  %v4763_v57 = vmul.f32 %v15171_v16, %v15171_v16  ;;  %18881 = vst [vmem:[#allocation267_spill] sm:$0xff] %v15195_v10  ;;  %v5446_v16 = vmul.f32 0.020408163, %v14882_v30  ;;  %v5450_v30 = vmul.f32 0.020408163, %v14946_v36 }
 0xa19   :  { %v5335_v35 = vsel %vm3612_vm0, %v4763_v57, 0.0  ;;  %v4326_v57 = vmul.f32 0.020408163, %v14629_v8  ;;  %v18884_v8 = vld [vmem:[#allocation37_spill] sm:$0xff] }
 0xa1a   :  { %v15200_v59 = vpop.xlane.xlu0 %5138  ;;  %v15216_v13 = vsub.f32 %v18884_v8, %v4368_v39  ;;  %v6020_v39 = vld [vmem:[%s17673_s2 + $0x338] sm:$0xff] }
 0xa1b   :  { %v15207_v26 = vsub.f32 %v18882_v22, %v4326_v57  ;;  %v5642_v22 = vadd.f32 1e-05, %v5450_v30  ;;  %v5439_v30 = vmul.f32 0.020408163, %v14372_v11 }
 0xa1c   :  { %18885 = vst [vmem:[#allocation37_spill] sm:$0xff] %v15216_v13 }
 0xa1d   :  { %18883 = vst [vmem:[#allocation35_spill] sm:$0xff] %v15207_v26  ;;  %v4710_v27 = vmul.f32 %v15207_v26, %v15207_v26  ;;  %v5631_v11 = vadd.f32 1e-05, %v5439_v30 }
 0xa1e   :  { %v15210_v10 = vpop.xlane.xlu0 %5228 }
 0xa1f   :  { %v5176_v36 = vsel %vm3612_vm0, %v4710_v27, 0.0 }
 0xa21   :  { %5192 = vadd.xlane.f32.xlu0 %v5191_v46  ;;  %v5636_v46 = vadd.f32 1e-05, %v5444_v44  ;;  %v5640_v44 = vadd.f32 1e-05, %v5448_v0 }
 0xa23   :  { %10212 = vrsqrt.f32 %v5636_v46  ;;  %v15222_v46 = vpop.xlane.xlu0 %5222 }
 0xa25   :  { %5336 = vadd.xlane.f32.xlu0 %v5335_v35  ;;  %v5638_v35 = vadd.f32 1e-05, %v5446_v16  ;;  %v4366_v16 = vmul.f32 0.020408163, %v14648_v49  ;;  %v4752_v49 = vmul.f32 %v15216_v13, %v15216_v13 }
 0xa27   :  { %10214 = vrsqrt.f32 %v5638_v35  ;;  %v18886_v35 = vld [vmem:[#allocation171_spill] sm:$0xff]  ;;  %v5302_v26 = vsel %vm3612_vm0, %v4752_v49, 0.0  ;;  %v6024_v49 = vld [vmem:[%s17673_s2 + $0x358] sm:$0xff] }
 0xa28   :  { %10216 = vrsqrt.f32 %v5640_v44  ;;  %v15225_v0 = vsub.f32 %v18886_v35, %v4366_v16  ;;  %v5454_v44 = vmul.f32 0.020408163, %v14987_v25  ;;  %v15237_v16 = vpop.permute.xlu0 %6678  ;;  %v5456_v25 = vmul.f32 0.020408163, %v15006_v7 }
 0xa29   :  { %5330 = vadd.xlane.f32.xlu0 %v5329_v23  ;;  %v15213_v23 = vpop.xlane.xlu1 %5237  ;;  %10218 = vrsqrt.f32 %v5642_v22 }
 0xa2a   :  { %18887 = vst [vmem:[#allocation171_spill] sm:$0xff] %v15225_v0  ;;  %v4750_v13 = vmul.f32 %v15225_v0, %v15225_v0  ;;  %10220 = vrsqrt.f32 %v5644_v5  ;;  %v5646_v22 = vadd.f32 1e-05, %v5454_v44  ;;  %v5458_v5 = vmul.f32 0.020408163, %v15032_v3  ;;  %v6028_v3 = vld [vmem:[%s17673_s2 + $0x378] sm:$0xff] }
 0xa2b   :  { %v5486_v0 = vmul.f32 0.020408163, %v15088_v53  ;;  %v6036_v53 = vld [vmem:[%s17673_s2 + $0x3b8] sm:$0xff] }
 0xa2c   :  { %10222 = vrsqrt.f32 %v5646_v22 }
 0xa2d   :  { %v10213_v57 = vpop.eup %10212  ;;  %v15233_v8 = vpop.permute.xlu1 %6713  ;;  %10224 = vrsqrt.f32 %v5631_v11 }
 0xa2e   :  { %18888 = vst [vmem:[#allocation268_spill] sm:$0xff] %v15233_v8  ;;  %v6212_v35 = vmul.f32 %v10213_v57, %v6020_v39  ;;  %v5296_v39 = vsel %vm3612_vm0, %v4750_v13, 0.0  ;;  %v15252_v8 = vpop.permute.xlu0 %6668  ;;  %v6026_v13 = vld [vmem:[%s17673_s2 + $0x368] sm:$0xff] }
 0xa31   :  { %v10215_v27 = vpop.eup %10214  ;;  %v15246_v56 = vpop.permute.xlu1 %6703 }
 0xa32   :  { %18889 = vst [vmem:[#allocation269_spill] sm:$0xff] %v15246_v56  ;;  %v6214_v57 = vmul.f32 %v10215_v27, %v6022_v19  ;;  %v15260_v30 = vpop.xlane.xlu0 %5144  ;;  %v5460_v27 = vmul.f32 0.020408163, %v15061_v63  ;;  %v6030_v63 = vld [vmem:[%s17673_s2 + $0x388] sm:$0xff] }
 0xa35   :  { %v15255_v7 = vpop.xlane.xlu1 %5153 }
 0xa39   :  { %v15266_v11 = vpop.xlane.xlu1 %5255 }
 0xa3b   :  { %5177 = vadd.xlane.f32.xlu1 %v5176_v36  ;;  %v10217_v36 = vpop.eup %10216 }
 0xa3c   :  { %v6216_v44 = vmul.f32 %v10217_v36, %v6024_v49  ;;  %v10219_v19 = vpop.eup %10218  ;;  %v5462_v36 = vmul.f32 0.020408163, %v15070_v17 }
 0xa3d   :  { %v6218_v22 = vmul.f32 %v10219_v19, %v6026_v13  ;;  %v5488_v13 = vmul.f32 0.020408163, %v15080_v6  ;;  %v6034_v6 = vld [vmem:[%s17673_s2 + $0x3a8] sm:$0xff] }
 0xa3e   :  { %v5654_v19 = vadd.f32 1e-05, %v5462_v36 }
 0xa3f   :  { %6818 = vperm.xlu0 %9627, %v6212_v35   ;;  %5303 = vadd.xlane.f32.xlu1 %v5302_v26  ;;  %v5648_v26 = vadd.f32 1e-05, %v5456_v25  ;;  %v5650_v35 = vadd.f32 1e-05, %v5458_v5  ;;  %v10221_v25 = vpop.eup %10220 }
 0xa40   :  { %v6220_v49 = vmul.f32 %v10221_v25, %v6028_v3  ;;  %v6032_v25 = vld [vmem:[%s17673_s2 + $0x398] sm:$0xff] }
 0xa41   :  { %10226 = vrsqrt.f32 %v5648_v26  ;;  %v10223_v26 = vpop.eup %10222 }
 0xa42   :  { %10228 = vrsqrt.f32 %v5650_v35  ;;  %v10225_v5 = vpop.eup %10224  ;;  %v15278_v35 = vpop.xlane.xlu1 %5249  ;;  %v6222_v17 = vmul.f32 %v10223_v26, %v6030_v63 }
 0xa43   :  { %6828 = vperm.xlu0 %9627, %v6214_v57   ;;  %5297 = vadd.xlane.f32.xlu1 %v5296_v39  ;;  %v5652_v57 = vadd.f32 1e-05, %v5460_v27  ;;  %v15269_v39 = vpop.xlane.xlu0 %5240 }
 0xa45   :  { %10230 = vrsqrt.f32 %v5652_v57 }
 0xa46   :  { %10232 = vrsqrt.f32 %v5654_v19  ;;  %v15291_v63 = vpop.permute.xlu1 %6733 }
 0xa47   :  { %6838 = vperm.xlu0 %9627, %v6216_v44   ;;  %v6015_v44 = vld [vmem:[%s17673_s2 + $0x310] sm:$0xff]  ;;  %v15283_v3 = vpop.xlane.xlu0 %5234  ;;  %18891 = vst [vmem:[#allocation271_spill] sm:$0xff] %v15291_v63 }
 0xa4b   :  { %6848 = vperm.xlu0 %9627, %v6218_v22   ;;  %v10227_v27 = vpop.eup %10226  ;;  %v6207_v22 = vmul.f32 %v10225_v5, %v6015_v44  ;;  %v15289_v26 = vpop.permute.xlu0 %6698  ;;  %v5678_v5 = vadd.f32 1e-05, %v5486_v0  ;;  %v5464_v44 = vmul.f32 0.020408163, %v15112_v15  ;;  %v6038_v15 = vld [vmem:[%s17673_s2 + $0x3c8] sm:$0xff] }
 0xa4c   :  { %v6224_v57 = vmul.f32 %v10227_v27, %v6032_v25  ;;  %v10229_v36 = vpop.eup %10228  ;;  %18890 = vst [vmem:[#allocation270_spill] sm:$0xff] %v15289_v26  ;;  %v5492_v27 = vmul.f32 0.020408163, %v15118_v40  ;;  %v15300_v25 = vpop.permute.xlu1 %6723 }
 0xa4d   :  { %v6226_v19 = vmul.f32 %v10229_v36, %v6034_v6  ;;  %18892 = vst [vmem:[#allocation272_spill] sm:$0xff] %v15300_v25  ;;  %v5490_v36 = vmul.f32 0.020408163, %v15129_v47  ;;  %v6062_v47 = vld [vmem:[%s17673_s2 + $0x488] sm:$0xff] }
 0xa4e   :  { %v5684_v0 = vadd.f32 1e-05, %v5492_v27 }
 0xa4f   :  { %6858 = vperm.xlu0 %9627, %v6220_v49   ;;  %v5680_v49 = vadd.f32 1e-05, %v5488_v13  ;;  %v10231_v13 = vpop.eup %10230 }
 0xa51   :  { %10234 = vrsqrt.f32 %v5680_v49  ;;  %v10233_v49 = vpop.eup %10232 }
 0xa52   :  { %10236 = vrsqrt.f32 %v5678_v5  ;;  %v15308_v5 = vpop.xlane.xlu1 %5159  ;;  %v6230_v40 = vmul.f32 %v10233_v49, %v6038_v15  ;;  %v5496_v15 = vmul.f32 0.020408163, %v15159_v58  ;;  %v6068_v58 = vld [vmem:[%s17673_s2 + $0x4b8] sm:$0xff] }
 0xa53   :  { %6868 = vperm.xlu0 %9627, %v6222_v17   ;;  %v5656_v17 = vadd.f32 1e-05, %v5464_v44 }
 0xa54   :  { %6793 = vperm.xlu1 %9626, %v6207_v22   ;;  %v15298_v22 = vpop.permute.xlu0 %6688 }
 0xa55   :  { %10238 = vrsqrt.f32 %v5656_v17 }
 0xa56   :  { %10240 = vrsqrt.f32 %v5684_v0  ;;  %v15319_v63 = vpop.xlane.xlu1 %5267 }
 0xa57   :  { %6878 = vperm.xlu0 %9627, %v6224_v57   ;;  %v6228_v57 = vmul.f32 %v10231_v13, %v6036_v53  ;;  %v5682_v13 = vadd.f32 1e-05, %v5490_v36  ;;  %v5466_v53 = vmul.f32 0.020408163, %v15150_v55  ;;  %v6040_v55 = vld [vmem:[%s17673_s2 + $0x3d8] sm:$0xff] }
 0xa58   :  { %v15306_v6 = vpop.xlane.xlu0 %5150  ;;  %v4328_v36 = vmul.f32 0.020408163, %v14716_v51  ;;  %v4372_v51 = vmul.f32 0.020408163, %v14726_v61 }
 0xa59   :  { %10242 = vrsqrt.f32 %v5682_v13  ;;  %v5658_v49 = vadd.f32 1e-05, %v5466_v53 }
 0xa5b   :  { %6888 = vperm.xlu0 %9627, %v6226_v19   ;;  %v10235_v44 = vpop.eup %10234  ;;  %v6064_v19 = vld [vmem:[%s17673_s2 + $0x498] sm:$0xff]  ;;  %10244 = vrsqrt.f32 %v5658_v49 }
 0xa5c   :  { %v10237_v17 = vpop.eup %10236  ;;  %v15317_v27 = vpop.xlane.xlu0 %5252 }
 0xa5f   :  { %6898 = vperm.xlu0 %9627, %v6228_v57   ;;  %v6256_v57 = vmul.f32 %v10235_v44, %v6064_v19  ;;  %v10239_v0 = vpop.eup %10238  ;;  %v5688_v44 = vadd.f32 1e-05, %v5496_v15  ;;  %v5494_v19 = vmul.f32 0.020408163, %v15168_v41  ;;  %v5468_v41 = vmul.f32 0.020408163, %v15197_v24 }
 0xa60   :  { %v15327_v25 = vpop.xlane.xlu0 %5246  ;;  %v6232_v13 = vmul.f32 %v10239_v0, %v6040_v55  ;;  %v10241_v53 = vpop.eup %10240  ;;  %v6066_v0 = vld [vmem:[%s17673_s2 + $0x4a8] sm:$0xff]  ;;  %v18895_v55 = vld [vmem:[#allocation41_spill] sm:$0xff] }
 0xa61   :  { %10246 = vrsqrt.f32 %v5688_v44  ;;  %v5686_v49 = vadd.f32 1e-05, %v5494_v19  ;;  %v15345_v26 = vsub.f32 %v18895_v55, %v4372_v51  ;;  %v5660_v24 = vadd.f32 1e-05, %v5468_v41 }
 0xa62   :  { %v5500_v44 = vmul.f32 0.020408163, %v15203_v62  ;;  %v5498_v62 = vmul.f32 0.020408163, %v15213_v23 }
 0xa63   :  { %6908 = vperm.xlu0 %9627, %v6230_v40   ;;  %v6254_v40 = vmul.f32 %v10237_v17, %v6062_v47  ;;  %v18893_v17 = vld [vmem:[#allocation172_spill] sm:$0xff]  ;;  %v10243_v56 = vpop.eup %10242  ;;  %18896 = vst [vmem:[#allocation41_spill] sm:$0xff] %v15345_v26  ;;  %10248 = vrsqrt.f32 %v5686_v49  ;;  %v4756_v49 = vmul.f32 %v15345_v26, %v15345_v26  ;;  %v6070_v26 = vld [vmem:[%s17673_s2 + $0x4c8] sm:$0xff] }
 0xa64   :  { %v15335_v47 = vsub.f32 %v18893_v17, %v4328_v36  ;;  %v15339_v15 = vpop.permute.xlu0 %6718  ;;  %v4370_v36 = vmul.f32 0.020408163, %v14738_v12  ;;  %v6258_v19 = vmul.f32 %v10243_v56, %v6066_v0  ;;  %10250 = vrsqrt.f32 %v5660_v24 }
 0xa65   :  { %v5692_v41 = vadd.f32 1e-05, %v5500_v44  ;;  %v5690_v23 = vadd.f32 1e-05, %v5498_v62  ;;  %v5470_v44 = vmul.f32 0.020408163, %v15255_v7 }
 0xa66   :  { %18894 = vst [vmem:[#allocation172_spill] sm:$0xff] %v15335_v47  ;;  %v4712_v61 = vmul.f32 %v15335_v47, %v15335_v47  ;;  %v18901_v47 = vld [vmem:[#allocation205_spill] sm:$0xff] }
 0xa67   :  { %7038 = vperm.xlu0 %9627, %v6256_v57   ;;  %v15329_v57 = vpop.xlane.xlu1 %5261  ;;  %10252 = vrsqrt.f32 %v5692_v41 }
 0xa68   :  { %v15359_v12 = vpop.permute.xlu0 %6708  ;;  %10254 = vrsqrt.f32 %v5690_v23 }
 0xa6b   :  { %7028 = vperm.xlu0 %9627, %v6254_v40   ;;  %v6260_v40 = vmul.f32 %v10241_v53, %v6068_v58  ;;  %v15348_v17 = vpop.permute.xlu1 %6753  ;;  %v6042_v53 = vld [vmem:[%s17673_s2 + $0x3e8] sm:$0xff] }
 0xa6c   :  { %18897 = vst [vmem:[#allocation273_spill] sm:$0xff] %v15348_v17  ;;  %v18898_v58 = vld [vmem:[#allocation39_spill] sm:$0xff] }
 0xa6d   :  { %v15357_v51 = vsub.f32 %v18898_v58, %v4370_v36  ;;  %v5441_v36 = vmul.f32 0.020408163, %v18901_v47  ;;  %v15371_v58 = vpop.xlane.xlu0 %5156 }
 0xa6f   :  { %6918 = vperm.xlu0 %9627, %v6232_v13   ;;  %v10245_v13 = vpop.eup %10244  ;;  %18899 = vst [vmem:[#allocation39_spill] sm:$0xff] %v15357_v51  ;;  %v15365_v56 = vpop.permute.xlu1 %6743  ;;  %v4754_v24 = vmul.f32 %v15357_v51, %v15357_v51  ;;  %v5504_v51 = vmul.f32 0.020408163, %v15266_v11  ;;  %v6076_v11 = vld [vmem:[%s17673_s2 + $0x4f8] sm:$0xff] }
 0xa70   :  { %18900 = vst [vmem:[#allocation274_spill] sm:$0xff] %v15365_v56  ;;  %v6234_v0 = vmul.f32 %v10245_v13, %v6042_v53  ;;  %v10247_v55 = vpop.eup %10246 }
 0xa71   :  { %v10249_v47 = vpop.eup %10248  ;;  %v15382_v41 = vpop.xlane.xlu0 %5264 }
 0xa72   :  { %v6262_v7 = vmul.f32 %v10249_v47, %v6070_v26  ;;  %v10251_v62 = vpop.eup %10250 }
 0xa73   :  { %7058 = vperm.xlu0 %9627, %v6260_v40   ;;  %v5182_v40 = vsel %vm3612_vm0, %v4712_v61, 0.0  ;;  %v5314_v61 = vsel %vm3612_vm0, %v4756_v49, 0.0  ;;  %v5166_v13 = vpop.xlane.xlu1 %5165  ;;  %v5662_v49 = vadd.f32 1e-05, %v5470_v44  ;;  %v10253_v23 = vpop.eup %10252 }
 0xa74   :  { %v5474_v17 = vmul.f32 0.020408163, %v5166_v13  ;;  %v6048_v13 = vld [vmem:[%s17673_s2 + $0x418] sm:$0xff] }
 0xa75   :  { %v15391_v44 = vpop.xlane.xlu0 %5258 }
 0xa77   :  { %7048 = vperm.xlu0 %9627, %v6258_v19   ;;  %v6072_v19 = vld [vmem:[%s17673_s2 + $0x4d8] sm:$0xff] }
 0xa78   :  { %5183 = vadd.xlane.f32.xlu1 %v5182_v40  ;;  %v6264_v53 = vmul.f32 %v10247_v55, %v6072_v19  ;;  %v5633_v40 = vadd.f32 1e-05, %v5441_v36  ;;  %v6044_v55 = vld [vmem:[%s17673_s2 + $0x3f8] sm:$0xff]  ;;  %v5280_v36 = vpop.xlane.xlu1 %5279  ;;  %v5696_v19 = vadd.f32 1e-05, %v5504_v51 }
 0xa79   :  { %v15397_v51 = vpop.permute.xlu0 %6738 }
 0xa7a   :  { %10256 = vrsqrt.f32 %v5633_v40  ;;  %v6268_v40 = vmul.f32 %v10253_v23, %v6076_v11 }
 0xa7b   :  { %6928 = vperm.xlu0 %9627, %v6234_v0   ;;  %v5308_v0 = vsel %vm3612_vm0, %v4754_v24, 0.0  ;;  %10258 = vrsqrt.f32 %v5662_v49  ;;  %v6236_v24 = vmul.f32 %v10251_v62, %v6044_v55  ;;  %v5508_v62 = vmul.f32 0.020408163, %v15319_v63  ;;  %v6017_v55 = vld [vmem:[%s17673_s2 + $0x320] sm:$0xff] }
 0xa7c   :  { %5315 = vadd.xlane.f32.xlu1 %v5314_v61  ;;  %v5502_v61 = vmul.f32 0.020408163, %v15278_v35  ;;  %10260 = vrsqrt.f32 %v5696_v19  ;;  %v5274_v47 = vpop.xlane.xlu1 %5273  ;;  %v6074_v35 = vld [vmem:[%s17673_s2 + $0x4e8] sm:$0xff] }
 0xa7d   :  { %v5700_v11 = vadd.f32 1e-05, %v5508_v62 }
 0xa7e   :  { %v5694_v26 = vadd.f32 1e-05, %v5502_v61  ;;  %v6046_v61 = vld [vmem:[%s17673_s2 + $0x408] sm:$0xff] }
 0xa7f   :  { %7078 = vperm.xlu0 %9627, %v6264_v53   ;;  %v5472_v53 = vmul.f32 0.020408163, %v15308_v5 }
 0xa80   :  { %5309 = vadd.xlane.f32.xlu1 %v5308_v0  ;;  %v10255_v0 = vpop.eup %10254  ;;  %10262 = vrsqrt.f32 %v5694_v26  ;;  %v5506_v26 = vmul.f32 0.020408163, %v15329_v57  ;;  %v6078_v57 = vld [vmem:[%s17673_s2 + $0x508] sm:$0xff] }
 0xa81   :  { %v6266_v5 = vmul.f32 %v10255_v0, %v6074_v35  ;;  %v6080_v0 = vld [vmem:[%s17673_s2 + $0x518] sm:$0xff] }
 0xa82   :  { %v5698_v35 = vadd.f32 1e-05, %v5506_v26 }
 0xa83   :  { %7068 = vperm.xlu0 %9627, %v6262_v7   ;;  %v5664_v7 = vadd.f32 1e-05, %v5472_v53  ;;  %v15409_v53 = vpop.permute.xlu0 %6728 }
 0xa84   :  { %v10257_v49 = vpop.eup %10256 }
 0xa85   :  { %v10259_v19 = vpop.eup %10258  ;;  %v6209_v23 = vmul.f32 %v10257_v49, %v6017_v55  ;;  %10264 = vrsqrt.f32 %v5664_v7  ;;  %v5666_v55 = vadd.f32 1e-05, %v5474_v17  ;;  %v6084_v17 = vld [vmem:[%s17673_s2 + $0x538] sm:$0xff] }
 0xa86   :  { %v6238_v63 = vmul.f32 %v10259_v19, %v6046_v61  ;;  %10266 = vrsqrt.f32 %v5700_v11 }
 0xa87   :  { %6938 = vperm.xlu0 %9627, %v6236_v24   ;;  %v15406_v24 = vpop.permute.xlu1 %6773  ;;  %10268 = vrsqrt.f32 %v5698_v35 }
 0xa88   :  { %18902 = vst [vmem:[#allocation205_spill] sm:$0xff] %v15406_v24  ;;  %v15414_v24 = vpop.xlane.xlu0 %5162  ;;  %10270 = vrsqrt.f32 %v5666_v55  ;;  %v6082_v55 = vld [vmem:[%s17673_s2 + $0x528] sm:$0xff] }
 0xa8b   :  { %7098 = vperm.xlu0 %9627, %v6268_v40   ;;  %v10261_v40 = vpop.eup %10260  ;;  %v15416_v49 = vpop.permute.xlu1 %6763 }
 0xa8c   :  { %18903 = vst [vmem:[#allocation275_spill] sm:$0xff] %v15416_v49  ;;  %v6272_v7 = vmul.f32 %v10261_v40, %v6080_v0  ;;  %v10263_v62 = vpop.eup %10262  ;;  %v15424_v11 = vpop.xlane.xlu0 %5276 }
 0xa8d   :  { %v6270_v61 = vmul.f32 %v10263_v62, %v6078_v57 }
 0xa8f   :  { %7088 = vperm.xlu0 %9627, %v6266_v5   ;;  %v5512_v5 = vmul.f32 0.020408163, %v5280_v36  ;;  %v5172_v19 = vpop.xlane.xlu1 %5171 }
 0xa90   :  { %v15429_v62 = vpop.xlane.xlu0 %5270 }
 0xa91   :  { %6803 = vperm.xlu1 %9626, %v6209_v23   ;;  %v10265_v23 = vpop.eup %10264  ;;  %v5704_v26 = vadd.f32 1e-05, %v5512_v5 }
 0xa92   :  { %v6240_v40 = vmul.f32 %v10265_v23, %v6048_v13  ;;  %v10267_v0 = vpop.eup %10266 }
 0xa93   :  { %6948 = vperm.xlu0 %9627, %v6238_v63   ;;  %v5510_v63 = vmul.f32 0.020408163, %v5274_v47  ;;  %v5292_v36 = vpop.xlane.xlu1 %5291  ;;  %10272 = vrsqrt.f32 %v5704_v26  ;;  %v6276_v57 = vmul.f32 %v10267_v0, %v6084_v17  ;;  %v10269_v49 = vpop.eup %10268  ;;  %v4330_v26 = vmul.f32 0.020408163, %v14804_v54 }
 0xa94   :  { %v5516_v5 = vmul.f32 0.020408163, %v5292_v36  ;;  %v6274_v13 = vmul.f32 %v10269_v49, %v6082_v55  ;;  %v6088_v36 = vld [vmem:[%s17673_s2 + $0x558] sm:$0xff]  ;;  %v4376_v55 = vmul.f32 0.020408163, %v14816_v42 }
 0xa95   :  { %v5702_v35 = vadd.f32 1e-05, %v5510_v63  ;;  %v18904_v49 = vld [vmem:[#allocation97_spill] sm:$0xff] }
 0xa96   :  { %v5708_v63 = vadd.f32 1e-05, %v5516_v5  ;;  %v6086_v5 = vld [vmem:[%s17673_s2 + $0x548] sm:$0xff] }
 0xa97   :  { %7118 = vperm.xlu0 %9627, %v6272_v7   ;;  %v5476_v7 = vmul.f32 0.020408163, %v5172_v19  ;;  %10274 = vrsqrt.f32 %v5702_v35  ;;  %v5286_v23 = vpop.xlane.xlu1 %5285  ;;  %v6050_v19 = vld [vmem:[%s17673_s2 + $0x428] sm:$0xff] }
 0xa98   :  { %v5514_v0 = vmul.f32 0.020408163, %v5286_v23 }
 0xa99   :  { %v5668_v47 = vadd.f32 1e-05, %v5476_v7  ;;  %v15446_v7 = vsub.f32 %v18904_v49, %v4330_v26 }
 0xa9b   :  { %7108 = vperm.xlu0 %9627, %v6270_v61   ;;  %v15434_v61 = vpop.permute.xlu0 %6758  ;;  %10276 = vrsqrt.f32 %v5668_v47  ;;  %18905 = vst [vmem:[#allocation97_spill] sm:$0xff] %v15446_v7  ;;  %v4714_v42 = vmul.f32 %v15446_v7, %v15446_v7 }
 0xa9c   :  { %10278 = vrsqrt.f32 %v5708_v63 }
 0xa9d   :  { %v5188_v49 = vsel %vm3612_vm0, %v4714_v42, 0.0 }
 0xa9f   :  { %6958 = vperm.xlu0 %9627, %v6240_v40   ;;  %v10271_v40 = vpop.eup %10270  ;;  %v15443_v35 = vpop.permute.xlu0 %6748 }
 0xaa0   :  { %v6242_v17 = vmul.f32 %v10271_v40, %v6050_v19  ;;  %v18906_v40 = vld [vmem:[#allocation45_spill] sm:$0xff] }
 0xaa1   :  { %v15455_v19 = vsub.f32 %v18906_v40, %v4376_v55 }
 0xaa3   :  { %7138 = vperm.xlu0 %9627, %v6276_v57   ;;  %v10273_v57 = vpop.eup %10272  ;;  %v15452_v23 = vpop.xlane.xlu0 %5168  ;;  %18907 = vst [vmem:[#allocation45_spill] sm:$0xff] %v15455_v19  ;;  %v4760_v55 = vmul.f32 %v15455_v19, %v15455_v19 }
 0xaa4   :  { %v6280_v54 = vmul.f32 %v10273_v57, %v6088_v36  ;;  %v10275_v47 = vpop.eup %10274  ;;  %v18908_v57 = vld [vmem:[#allocation181_spill] sm:$0xff] }
 0xaa5   :  { %v6278_v26 = vmul.f32 %v10275_v47, %v6086_v5  ;;  %v10277_v63 = vpop.eup %10276  ;;  %v6092_v47 = vld [vmem:[%s17673_s2 + $0x578] sm:$0xff]  ;;  %v18910_v5 = vld [vmem:[#allocation16_spill] sm:$0xff] }
 0xaa6   :  { %v5443_v40 = vmul.f32 0.020408163, %v18910_v5  ;;  %v15486_v5 = vpop.permute.xlu1 %6783 }
 0xaa7   :  { %7128 = vperm.xlu0 %9627, %v6274_v13   ;;  %v5706_v13 = vadd.f32 1e-05, %v5514_v0  ;;  %v6052_v0 = vld [vmem:[%s17673_s2 + $0x438] sm:$0xff]  ;;  %18912 = vst [vmem:[#allocation276_spill] sm:$0xff] %v15486_v5 }
 0xaa9   :  { %10280 = vrsqrt.f32 %v5706_v13  ;;  %v6244_v13 = vmul.f32 %v10277_v63, %v6052_v0  ;;  %v6090_v63 = vld [vmem:[%s17673_s2 + $0x568] sm:$0xff]  ;;  %v5635_v0 = vadd.f32 1e-05, %v5443_v40  ;;  %v6019_v40 = vld [vmem:[%s17673_s2 + $0x330] sm:$0xff] }
 0xaab   :  { %6968 = vperm.xlu0 %9627, %v6242_v17   ;;  %v4374_v17 = vmul.f32 0.020408163, %v14821_v20  ;;  %v15469_v20 = vpop.xlane.xlu0 %5288  ;;  %10282 = vrsqrt.f32 %v5635_v0 }
 0xaad   :  { %v15464_v36 = vsub.f32 %v18908_v57, %v4374_v17  ;;  %v5326_v17 = vsel %vm3612_vm0, %v4760_v55, 0.0 }
 0xaaf   :  { %7158 = vperm.xlu0 %9627, %v6280_v54   ;;  %18909 = vst [vmem:[#allocation181_spill] sm:$0xff] %v15464_v36  ;;  %v10279_v54 = vpop.eup %10278  ;;  %v4758_v42 = vmul.f32 %v15464_v36, %v15464_v36 }
 0xab1   :  { %v5320_v19 = vsel %vm3612_vm0, %v4758_v42, 0.0 }
 0xab3   :  { %7148 = vperm.xlu0 %9627, %v6278_v26   ;;  %v6284_v26 = vmul.f32 %v10279_v54, %v6092_v47  ;;  %v10281_v57 = vpop.eup %10280 }
 0xab5   :  { %5189 = vadd.xlane.f32.xlu1 %v5188_v49  ;;  %v15481_v49 = vpop.xlane.xlu0 %5282  ;;  %v10283_v47 = vpop.eup %10282 }
 0xab7   :  { %6978 = vperm.xlu0 %9627, %v6244_v13   ;;  %v6282_v13 = vmul.f32 %v10281_v57, %v6090_v63 }
 0xab9   :  { %5327 = vadd.xlane.f32.xlu1 %v5326_v17  ;;  %v15484_v55 = vpop.permute.xlu0 %6778 }
 0xaba   :  { %18911 = vst [vmem:[#allocation16_spill] sm:$0xff] %v15484_v55 }
 0xabb   :  { %7178 = vperm.xlu0 %9627, %v6284_v26   ;;  %v6211_v26 = vmul.f32 %v10283_v47, %v6019_v40 }
 0xabd   :  { %5321 = vadd.xlane.f32.xlu1 %v5320_v19  ;;  %v15494_v56 = vpop.permute.xlu0 %6768 }
 0xabe   :  { %18913 = vst [vmem:[#allocation277_spill] sm:$0xff] %v15494_v56 }
 0xabf   :  { %7168 = vperm.xlu0 %9627, %v6282_v13   ;;  %v6054_v13 = vld [vmem:[%s17673_s2 + $0x448] sm:$0xff] }
 0xac1   :  { %v15499_v47 = vpop.xlane.xlu0 %5174 }
 0xac8   :  { %v5178_v54 = vpop.xlane.xlu1 %5177 }
 0xac9   :  { %v5478_v17 = vmul.f32 0.020408163, %v5178_v54 }
 0xacb   :  { %v5670_v36 = vadd.f32 1e-05, %v5478_v17 }
 0xacc   :  { %v5304_v7 = vpop.xlane.xlu1 %5303 }
 0xacd   :  { %10284 = vrsqrt.f32 %v5670_v36  ;;  %v5520_v19 = vmul.f32 0.020408163, %v5304_v7  ;;  %v6094_v36 = vld [vmem:[%s17673_s2 + $0x588] sm:$0xff] }
 0xace   :  { %6813 = vperm.xlu1 %9626, %v6211_v26   ;;  %v6096_v26 = vld [vmem:[%s17673_s2 + $0x598] sm:$0xff] }
 0xacf   :  { %v5712_v63 = vadd.f32 1e-05, %v5520_v19 }
 0xad0   :  { %v5298_v42 = vpop.xlane.xlu1 %5297 }
 0xad1   :  { %v5518_v57 = vmul.f32 0.020408163, %v5298_v42  ;;  %v4332_v42 = vmul.f32 0.020408163, %v14889_v29  ;;  %v18919_v29 = vld [vmem:[#allocation49_spill] sm:$0xff] }
 0xad3   :  { %v5710_v0 = vadd.f32 1e-05, %v5518_v57  ;;  %v15505_v57 = vpop.xlane.xlu0 %5300 }
 0xad5   :  { %10286 = vrsqrt.f32 %v5710_v0  ;;  %v4380_v0 = vmul.f32 0.020408163, %v14893_v48 }
 0xad6   :  { %10288 = vrsqrt.f32 %v5712_v63 }
 0xad7   :  { %v10285_v54 = vpop.eup %10284 }
 0xad8   :  { %v6246_v5 = vmul.f32 %v10285_v54, %v6054_v13  ;;  %v15511_v13 = vpop.xlane.xlu0 %5294  ;;  %v18916_v54 = vld [vmem:[#allocation177_spill] sm:$0xff] }
 0xada   :  { %6988 = vperm.xlu0 %9627, %v6246_v5   ;;  %v18914_v5 = vld [vmem:[#allocation47_spill] sm:$0xff] }
 0xadb   :  { %v15508_v63 = vsub.f32 %v18914_v5, %v4332_v42  ;;  %v18921_v42 = vld [vmem:[#allocation157_spill] sm:$0xff] }
 0xadc   :  { %v5445_v5 = vmul.f32 0.020408163, %v18921_v42  ;;  %v5449_v42 = vmul.f32 0.020408163, %v14767_v21  ;;  %v6021_v21 = vld [vmem:[%s17673_s2 + $0x340] sm:$0xff] }
 0xadd   :  { %18915 = vst [vmem:[#allocation47_spill] sm:$0xff] %v15508_v63 }
 0xadf   :  { %v10287_v7 = vpop.eup %10286 }
 0xae0   :  { %v6286_v17 = vmul.f32 %v10287_v7, %v6094_v36  ;;  %v10289_v40 = vpop.eup %10288  ;;  %v15514_v36 = vsub.f32 %v18916_v54, %v4380_v0  ;;  %v4378_v7 = vmul.f32 0.020408163, %v14901_v14 }
 0xae1   :  { %v6288_v19 = vmul.f32 %v10289_v40, %v6096_v26  ;;  %v15519_v40 = vpop.permute.xlu0 %6788 }
 0xae2   :  { %7188 = vperm.xlu0 %9627, %v6286_v17   ;;  %18917 = vst [vmem:[#allocation177_spill] sm:$0xff] %v15514_v36  ;;  %v4716_v17 = vmul.f32 %v15508_v63, %v15508_v63  ;;  %18918 = vst [vmem:[#allocation278_spill] sm:$0xff] %v15519_v40  ;;  %v15522_v26 = vsub.f32 %v18919_v29, %v4378_v7  ;;  %v4764_v48 = vmul.f32 %v15514_v36, %v15514_v36  ;;  %v18922_v40 = vld [vmem:[#allocation186_spill] sm:$0xff] }
 0xae3   :  { %v5637_v63 = vadd.f32 1e-05, %v5445_v5  ;;  %v5447_v7 = vmul.f32 0.020408163, %v18922_v40  ;;  %v5641_v36 = vadd.f32 1e-05, %v5449_v42 }
 0xae4   :  { %18920 = vst [vmem:[#allocation49_spill] sm:$0xff] %v15522_v26  ;;  %v5338_v14 = vsel %vm3612_vm0, %v4764_v48, 0.0  ;;  %v4762_v54 = vmul.f32 %v15522_v26, %v15522_v26  ;;  %v5451_v48 = vmul.f32 0.020408163, %v14811_v18  ;;  %v15541_v26 = vpop.permute.xlu1 %6793  ;;  %v5453_v40 = vmul.f32 0.020408163, %v14850_v37 }
 0xae5   :  { %v15528_v0 = vpop.xlane.xlu0 %5180  ;;  %10290 = vrsqrt.f32 %v5637_v63  ;;  %18923 = vst [vmem:[#allocation157_spill] sm:$0xff] %v15541_v26  ;;  %v5455_v18 = vmul.f32 0.020408163, %v14920_v43 }
 0xae6   :  { %7198 = vperm.xlu0 %9627, %v6288_v19   ;;  %v5194_v19 = vsel %vm3612_vm0, %v4716_v17, 0.0  ;;  %v5332_v29 = vsel %vm3612_vm0, %v4762_v54, 0.0  ;;  %v5643_v5 = vadd.f32 1e-05, %v5451_v48 }
 0xae7   :  { %v5647_v26 = vadd.f32 1e-05, %v5455_v18 }
 0xae9   :  { %v15535_v17 = vpop.xlane.xlu0 %5312 }
 0xaed   :  { %v15539_v55 = vpop.xlane.xlu0 %5306 }
 0xaf2   :  { %5195 = vadd.xlane.f32.xlu1 %v5194_v19  ;;  %v5639_v19 = vadd.f32 1e-05, %v5447_v7  ;;  %v5645_v7 = vadd.f32 1e-05, %v5453_v40 }
 0xaf4   :  { %10292 = vrsqrt.f32 %v5639_v19 }
 0xaf5   :  { %10294 = vrsqrt.f32 %v5641_v36 }
 0xaf6   :  { %5339 = vadd.xlane.f32.xlu1 %v5338_v14  ;;  %v15544_v14 = vpop.permute.xlu0 %6798  ;;  %10296 = vrsqrt.f32 %v5643_v5  ;;  %v5457_v5 = vmul.f32 0.020408163, %v14975_v4  ;;  %v6027_v4 = vld [vmem:[%s17673_s2 + $0x370] sm:$0xff] }
 0xaf7   :  { %18924 = vst [vmem:[#allocation186_spill] sm:$0xff] %v15544_v14 }
 0xafa   :  { %5333 = vadd.xlane.f32.xlu1 %v5332_v29  ;;  %v10291_v29 = vpop.eup %10290  ;;  %v15550_v19 = vpop.xlane.xlu0 %5186 }
 0xafb   :  { %v6213_v48 = vmul.f32 %v10291_v29, %v6021_v21  ;;  %v6025_v29 = vld [vmem:[%s17673_s2 + $0x360] sm:$0xff]  ;;  %v5649_v21 = vadd.f32 1e-05, %v5457_v5 }
 0xafe   :  { %v10293_v37 = vpop.eup %10292  ;;  %v15558_v56 = vpop.xlane.xlu0 %5324 }
 0xaff   :  { %v10295_v43 = vpop.eup %10294 }
 0xb00   :  { %v10297_v18 = vpop.eup %10296 }
 0xb02   :  { %v15571_v5 = vpop.xlane.xlu0 %5318 }
 0xb05   :  { %v5184_v54 = vpop.xlane.xlu1 %5183 }
 0xb06   :  { %v5480_v63 = vmul.f32 0.020408163, %v5184_v54  ;;  %v6023_v54 = vld [vmem:[%s17673_s2 + $0x350] sm:$0xff] }
 0xb07   :  { %v6215_v14 = vmul.f32 %v10293_v37, %v6023_v54  ;;  %v6056_v37 = vld [vmem:[%s17673_s2 + $0x458] sm:$0xff] }
 0xb08   :  { %v5672_v42 = vadd.f32 1e-05, %v5480_v63 }
 0xb09   :  { %v15552_v36 = vpop.xlane.xlu1 %5315 }
 0xb0a   :  { %10298 = vrsqrt.f32 %v5672_v42  ;;  %v5459_v42 = vmul.f32 0.020408163, %v15023_v1  ;;  %v6219_v1 = vmul.f32 %v10297_v18, %v6027_v4  ;;  %v6098_v18 = vld [vmem:[%s17673_s2 + $0x5a8] sm:$0xff] }
 0xb0b   :  { %6823 = vperm.xlu1 %9626, %v6213_v48   ;;  %10300 = vrsqrt.f32 %v5645_v7  ;;  %v6217_v7 = vmul.f32 %v10295_v43, %v6025_v29 }
 0xb0c   :  { %10302 = vrsqrt.f32 %v5647_v26  ;;  %v5461_v26 = vmul.f32 0.020408163, %v15098_v34  ;;  %v6031_v34 = vld [vmem:[%s17673_s2 + $0x390] sm:$0xff] }
 0xb0d   :  { %v5310_v40 = vpop.xlane.xlu1 %5309 }
 0xb0e   :  { %v5522_v63 = vmul.f32 0.020408163, %v5310_v40  ;;  %v5653_v29 = vadd.f32 1e-05, %v5461_v26 }
 0xb0f   :  { %6833 = vperm.xlu1 %9626, %v6215_v14   ;;  %v5651_v14 = vadd.f32 1e-05, %v5459_v42 }
 0xb10   :  { %v5714_v48 = vadd.f32 1e-05, %v5522_v63  ;;  %v6029_v63 = vld [vmem:[%s17673_s2 + $0x380] sm:$0xff] }
 0xb12   :  { %10304 = vrsqrt.f32 %v5714_v48  ;;  %v5487_v48 = vmul.f32 0.020408163, %v15107_v2 }
 0xb13   :  { %6843 = vperm.xlu1 %9626, %v6217_v7   ;;  %10306 = vrsqrt.f32 %v5649_v21  ;;  %v15577_v7 = vpop.permute.xlu0 %6808 }
 0xb14   :  { %v10299_v54 = vpop.eup %10298  ;;  %10308 = vrsqrt.f32 %v5651_v14 }
 0xb15   :  { %v6248_v40 = vmul.f32 %v10299_v54, %v6056_v37  ;;  %v10301_v43 = vpop.eup %10300  ;;  %10310 = vrsqrt.f32 %v5653_v29  ;;  %v5679_v37 = vadd.f32 1e-05, %v5487_v48  ;;  %v5485_v54 = vmul.f32 0.020408163, %v15141_v32  ;;  %v6035_v32 = vld [vmem:[%s17673_s2 + $0x3b0] sm:$0xff] }
 0xb16   :  { %v6221_v21 = vmul.f32 %v10301_v43, %v6029_v63  ;;  %v10303_v42 = vpop.eup %10302  ;;  %v5463_v63 = vmul.f32 0.020408163, %v15157_v31 }
 0xb17   :  { %6853 = vperm.xlu1 %9626, %v6219_v1   ;;  %6998 = vperm.xlu0 %9627, %v6248_v40   ;;  %v15586_v14 = vpop.xlane.xlu0 %5192  ;;  %v6223_v2 = vmul.f32 %v10303_v42, %v6031_v34  ;;  %v6033_v40 = vld [vmem:[%s17673_s2 + $0x3a0] sm:$0xff]  ;;  %10312 = vrsqrt.f32 %v5679_v37  ;;  %v5677_v43 = vadd.f32 1e-05, %v5485_v54  ;;  %v5491_v34 = vmul.f32 0.020408163, %v15166_v45 }
 0xb18   :  { %v5655_v42 = vadd.f32 1e-05, %v5463_v63  ;;  %v6037_v37 = vld [vmem:[%s17673_s2 + $0x3c0] sm:$0xff]  ;;  %v5489_v54 = vmul.f32 0.020408163, %v15176_v52 }
 0xb19   :  { %10314 = vrsqrt.f32 %v5677_v43  ;;  %v5683_v31 = vadd.f32 1e-05, %v5491_v34  ;;  %v5465_v43 = vmul.f32 0.020408163, %v15200_v59  ;;  %v6061_v52 = vld [vmem:[%s17673_s2 + $0x480] sm:$0xff]  ;;  %v6039_v59 = vld [vmem:[%s17673_s2 + $0x3d0] sm:$0xff] }
 0xb1a   :  { %10316 = vrsqrt.f32 %v5655_v42  ;;  %v5681_v45 = vadd.f32 1e-05, %v5489_v54  ;;  %v5495_v42 = vmul.f32 0.020408163, %v15210_v10 }
 0xb1b   :  { %6863 = vperm.xlu1 %9626, %v6221_v21   ;;  %v15592_v48 = vpop.xlane.xlu0 %5336  ;;  %10318 = vrsqrt.f32 %v5683_v31  ;;  %v5493_v31 = vmul.f32 0.020408163, %v15222_v46 }
 0xb1c   :  { %v10305_v4 = vpop.eup %10304  ;;  %10320 = vrsqrt.f32 %v5681_v45 }
 0xb1d   :  { %v6290_v26 = vmul.f32 %v10305_v4, %v6098_v18  ;;  %v10307_v1 = vpop.eup %10306  ;;  %v5685_v10 = vadd.f32 1e-05, %v5493_v31  ;;  %v5524_v31 = vmul.f32 0.020408163, %v15552_v36  ;;  %v6069_v36 = vld [vmem:[%s17673_s2 + $0x4c0] sm:$0xff] }
 0xb1e   :  { %v6225_v21 = vmul.f32 %v10307_v1, %v6033_v40  ;;  %v10309_v29 = vpop.eup %10308  ;;  %v6063_v40 = vld [vmem:[%s17673_s2 + $0x490] sm:$0xff] }
 0xb1f   :  { %6873 = vperm.xlu1 %9626, %v6223_v2   ;;  %7208 = vperm.xlu0 %9627, %v6290_v26   ;;  %v6227_v18 = vmul.f32 %v10309_v29, %v6035_v32  ;;  %v10311_v4 = vpop.eup %10310  ;;  %v15602_v2 = vpop.xlane.xlu0 %5330  ;;  %v5657_v32 = vadd.f32 1e-05, %v5465_v43 }
 0xb20   :  { %v6229_v26 = vmul.f32 %v10311_v4, %v6037_v37  ;;  %v5687_v37 = vadd.f32 1e-05, %v5495_v42 }
 0xb21   :  { %v10313_v1 = vpop.eup %10312  ;;  %10322 = vrsqrt.f32 %v5657_v32 }
 0xb22   :  { %10324 = vrsqrt.f32 %v5687_v37  ;;  %v5497_v37 = vmul.f32 0.020408163, %v15283_v3 }
 0xb23   :  { %6883 = vperm.xlu1 %9626, %v6225_v21   ;;  %v15608_v63 = vpop.permute.xlu0 %6818  ;;  %v6255_v21 = vmul.f32 %v10313_v1, %v6063_v40  ;;  %v10315_v29 = vpop.eup %10314  ;;  %v6067_v1 = vld [vmem:[%s17673_s2 + $0x4b0] sm:$0xff]  ;;  %v5467_v40 = vmul.f32 0.020408163, %v15260_v30  ;;  %10326 = vrsqrt.f32 %v5685_v10  ;;  %v6041_v30 = vld [vmem:[%s17673_s2 + $0x3e0] sm:$0xff] }
 0xb24   :  { %v6253_v34 = vmul.f32 %v10315_v29, %v6061_v52  ;;  %v6065_v29 = vld [vmem:[%s17673_s2 + $0x4a0] sm:$0xff]  ;;  %v5499_v52 = vmul.f32 0.020408163, %v15269_v39 }
 0xb25   :  { %v5659_v46 = vadd.f32 1e-05, %v5467_v40  ;;  %v5689_v40 = vadd.f32 1e-05, %v5497_v37  ;;  %v6043_v37 = vld [vmem:[%s17673_s2 + $0x3f0] sm:$0xff] }
 0xb27   :  { %6893 = vperm.xlu1 %9626, %v6227_v18   ;;  %v10317_v18 = vpop.eup %10316  ;;  %v15614_v4 = vpop.permute.xlu0 %6828  ;;  %10328 = vrsqrt.f32 %v5659_v46 }
 0xb28   :  { %v6231_v54 = vmul.f32 %v10317_v18, %v6039_v59  ;;  %v15632_v18 = vpop.permute.xlu1 %6803  ;;  %v5691_v59 = vadd.f32 1e-05, %v5499_v52 }
 0xb2a   :  { %10330 = vrsqrt.f32 %v5691_v59 }
 0xb2b   :  { %6903 = vperm.xlu1 %9626, %v6229_v26   ;;  %v10319_v26 = vpop.eup %10318  ;;  %v15624_v45 = vpop.permute.xlu0 %6838 }
 0xb2c   :  { %v6259_v43 = vmul.f32 %v10319_v26, %v6067_v1  ;;  %v6071_v1 = vld [vmem:[%s17673_s2 + $0x4d0] sm:$0xff] }
 0xb2f   :  { %7033 = vperm.xlu1 %9626, %v6255_v21   ;;  %v10321_v21 = vpop.eup %10320 }
 0xb30   :  { %v6257_v32 = vmul.f32 %v10321_v21, %v6065_v29  ;;  %v10323_v42 = vpop.eup %10322  ;;  %v5716_v29 = vadd.f32 1e-05, %v5524_v31 }
 0xb31   :  { %v10325_v26 = vpop.eup %10324 }
 0xb32   :  { %v6263_v3 = vmul.f32 %v10325_v26, %v6071_v1  ;;  %v10327_v52 = vpop.eup %10326  ;;  %v6058_v1 = vld [vmem:[%s17673_s2 + $0x468] sm:$0xff] }
 0xb33   :  { %7023 = vperm.xlu1 %9626, %v6253_v34   ;;  %v15630_v34 = vpop.permute.xlu0 %6848  ;;  %v10329_v59 = vpop.eup %10328 }
 0xb34   :  { %v6235_v26 = vmul.f32 %v10329_v59, %v6043_v37 }
 0xb37   :  { %6913 = vperm.xlu1 %9626, %v6231_v54   ;;  %v6233_v54 = vmul.f32 %v10323_v42, %v6041_v30  ;;  %v15643_v21 = vpop.permute.xlu0 %6858  ;;  %v5503_v42 = vmul.f32 0.020408163, %v15317_v27  ;;  %v6261_v30 = vmul.f32 %v10327_v52, %v6069_v36  ;;  %v6075_v27 = vld [vmem:[%s17673_s2 + $0x4f0] sm:$0xff]  ;;  %v6073_v52 = vld [vmem:[%s17673_s2 + $0x4e0] sm:$0xff] }
 0xb39   :  { %v5695_v31 = vadd.f32 1e-05, %v5503_v42 }
 0xb3b   :  { %7053 = vperm.xlu1 %9626, %v6259_v43   ;;  %v5469_v43 = vmul.f32 0.020408163, %v15306_v6  ;;  %v15649_v6 = vpop.permute.xlu0 %6868 }
 0xb3f   :  { %7043 = vperm.xlu1 %9626, %v6257_v32   ;;  %v5661_v32 = vadd.f32 1e-05, %v5469_v43  ;;  %v15662_v43 = vpop.permute.xlu0 %6878 }
 0xb42   :  { %v5190_v39 = vpop.xlane.xlu1 %5189 }
 0xb43   :  { %v5482_v10 = vmul.f32 0.020408163, %v5190_v39  ;;  %6923 = vperm.xlu1 %9626, %v6233_v54   ;;  %v5501_v54 = vmul.f32 0.020408163, %v15327_v25  ;;  %v10331_v39 = vpop.eup %10330  ;;  %v15671_v37 = vpop.permute.xlu0 %6888 }
 0xb45   :  { %v5674_v46 = vadd.f32 1e-05, %v5482_v10  ;;  %v5693_v10 = vadd.f32 1e-05, %v5501_v54  ;;  %v6045_v54 = vld [vmem:[%s17673_s2 + $0x400] sm:$0xff] }
 0xb47   :  { %10332 = vrsqrt.f32 %v5674_v46  ;;  %7073 = vperm.xlu1 %9626, %v6263_v3   ;;  %v6267_v46 = vmul.f32 %v10331_v39, %v6075_v27  ;;  %v5505_v39 = vmul.f32 0.020408163, %v15391_v44  ;;  %v6077_v44 = vld [vmem:[%s17673_s2 + $0x500] sm:$0xff] }
 0xb48   :  { %10334 = vrsqrt.f32 %v5689_v40  ;;  %v5471_v40 = vmul.f32 0.020408163, %v15371_v58  ;;  %v5507_v58 = vmul.f32 0.020408163, %v15382_v41  ;;  %v6079_v41 = vld [vmem:[%s17673_s2 + $0x510] sm:$0xff] }
 0xb49   :  { %10336 = vrsqrt.f32 %v5716_v29 }
 0xb4a   :  { %10338 = vrsqrt.f32 %v5661_v32  ;;  %v6100_v32 = vld [vmem:[%s17673_s2 + $0x5b8] sm:$0xff]  ;;  %v5663_v42 = vadd.f32 1e-05, %v5471_v40  ;;  %v5473_v40 = vmul.f32 0.020408163, %v15414_v24  ;;  %v6047_v24 = vld [vmem:[%s17673_s2 + $0x410] sm:$0xff] }
 0xb4b   :  { %7063 = vperm.xlu1 %9626, %v6261_v30   ;;  %10340 = vrsqrt.f32 %v5695_v31 }
 0xb4c   :  { %10342 = vrsqrt.f32 %v5693_v10  ;;  %v5697_v10 = vadd.f32 1e-05, %v5505_v39 }
 0xb4d   :  { %10344 = vrsqrt.f32 %v5663_v42 }
 0xb4f   :  { %6933 = vperm.xlu1 %9626, %v6235_v26   ;;  %v5699_v26 = vadd.f32 1e-05, %v5507_v58 }
 0xb51   :  { %v10333_v29 = vpop.eup %10332  ;;  %10346 = vrsqrt.f32 %v5699_v26  ;;  %v5475_v26 = vmul.f32 0.020408163, %v15452_v23  ;;  %v6049_v23 = vld [vmem:[%s17673_s2 + $0x420] sm:$0xff] }
 0xb52   :  { %v10335_v25 = vpop.eup %10334  ;;  %v6250_v3 = vmul.f32 %v10333_v29, %v6058_v1  ;;  %v15681_v29 = vpop.permute.xlu0 %6898  ;;  %10348 = vrsqrt.f32 %v5697_v10  ;;  %v5515_v10 = vmul.f32 0.020408163, %v15469_v20  ;;  %v6087_v20 = vld [vmem:[%s17673_s2 + $0x550] sm:$0xff] }
 0xb53   :  { %v10337_v36 = vpop.eup %10336  ;;  %7093 = vperm.xlu1 %9626, %v6267_v46   ;;  %v6265_v30 = vmul.f32 %v10335_v25, %v6073_v52  ;;  %v5511_v52 = vmul.f32 0.020408163, %v15424_v11 }
 0xb54   :  { %7008 = vperm.xlu0 %9627, %v6250_v3   ;;  %v10339_v59 = vpop.eup %10338  ;;  %v6292_v31 = vmul.f32 %v10337_v36, %v6100_v32  ;;  %v5665_v3 = vadd.f32 1e-05, %v5473_v40 }
 0xb55   :  { %v6237_v27 = vmul.f32 %v10339_v59, %v6045_v54  ;;  %v10341_v1 = vpop.eup %10340  ;;  %v5703_v58 = vadd.f32 1e-05, %v5511_v52  ;;  %v6083_v54 = vld [vmem:[%s17673_s2 + $0x530] sm:$0xff]  ;;  %v5513_v52 = vmul.f32 0.020408163, %v15481_v49  ;;  %v6085_v49 = vld [vmem:[%s17673_s2 + $0x540] sm:$0xff] }
 0xb56   :  { %v6271_v46 = vmul.f32 %v10341_v1, %v6079_v41  ;;  %v10343_v25 = vpop.eup %10342  ;;  %v15687_v42 = vpop.permute.xlu0 %6908  ;;  %10350 = vrsqrt.f32 %v5665_v3  ;;  %v6081_v41 = vld [vmem:[%s17673_s2 + $0x520] sm:$0xff]  ;;  %v5707_v3 = vadd.f32 1e-05, %v5515_v10 }
 0xb57   :  { %7083 = vperm.xlu1 %9626, %v6265_v30   ;;  %v6269_v36 = vmul.f32 %v10343_v25, %v6077_v44  ;;  %v10345_v32 = vpop.eup %10344  ;;  %v5509_v30 = vmul.f32 0.020408163, %v15429_v62  ;;  %10352 = vrsqrt.f32 %v5703_v58  ;;  %v5667_v62 = vadd.f32 1e-05, %v5475_v26  ;;  %v5328_v44 = vpop.xlane.xlu1 %5327 }
 0xb58   :  { %7218 = vperm.xlu0 %9627, %v6292_v31   ;;  %v6239_v59 = vmul.f32 %v10345_v32, %v6047_v24  ;;  %v5705_v24 = vadd.f32 1e-05, %v5513_v52  ;;  %v5477_v58 = vmul.f32 0.020408163, %v15499_v47  ;;  %v5517_v26 = vmul.f32 0.020408163, %v15511_v13 }
 0xb59   :  { %v5701_v11 = vadd.f32 1e-05, %v5509_v30  ;;  %v6051_v47 = vld [vmem:[%s17673_s2 + $0x430] sm:$0xff] }
 0xb5a   :  { %v15697_v39 = vpop.permute.xlu0 %7038  ;;  %v6091_v13 = vld [vmem:[%s17673_s2 + $0x570] sm:$0xff] }
 0xb5b   :  { %6943 = vperm.xlu1 %9626, %v6237_v27   ;;  %v10347_v31 = vpop.eup %10346  ;;  %18925 = vst [vmem:[#allocation279_spill] sm:$0xff] %v15697_v39  ;;  %10354 = vrsqrt.f32 %v5701_v11  ;;  %v5669_v11 = vadd.f32 1e-05, %v5477_v58  ;;  %v6089_v58 = vld [vmem:[%s17673_s2 + $0x560] sm:$0xff] }
 0xb5c   :  { %v6275_v27 = vmul.f32 %v10347_v31, %v6083_v54  ;;  %v10349_v1 = vpop.eup %10348  ;;  %10356 = vrsqrt.f32 %v5667_v62  ;;  %v5519_v62 = vmul.f32 0.020408163, %v15505_v57 }
 0xb5d   :  { %v6273_v40 = vmul.f32 %v10349_v1, %v6081_v41  ;;  %10358 = vrsqrt.f32 %v5707_v3 }
 0xb5e   :  { %v15703_v25 = vpop.permute.xlu0 %7028  ;;  %10360 = vrsqrt.f32 %v5705_v24  ;;  %v5711_v52 = vadd.f32 1e-05, %v5519_v62 }
 0xb5f   :  { %7113 = vperm.xlu1 %9626, %v6271_v46   ;;  %18926 = vst [vmem:[#allocation280_spill] sm:$0xff] %v15703_v25  ;;  %10362 = vrsqrt.f32 %v5669_v11 }
 0xb60   :  { %v10351_v46 = vpop.eup %10350 }
 0xb61   :  { %v10353_v32 = vpop.eup %10352 }
 0xb62   :  { %v15713_v30 = vpop.permute.xlu0 %6918  ;;  %v6279_v31 = vmul.f32 %v10353_v32, %v6087_v20  ;;  %v5479_v32 = vmul.f32 0.020408163, %v15528_v0 }
 0xb63   :  { %7103 = vperm.xlu1 %9626, %v6269_v36   ;;  %v6241_v36 = vmul.f32 %v10351_v46, %v6049_v23 }
 0xb65   :  { %v10355_v54 = vpop.eup %10354 }
 0xb66   :  { %v10357_v1 = vpop.eup %10356  ;;  %v15719_v41 = vpop.permute.xlu0 %7058 }
 0xb67   :  { %6953 = vperm.xlu1 %9626, %v6239_v59   ;;  %v5322_v59 = vpop.xlane.xlu1 %5321  ;;  %18927 = vst [vmem:[#allocation281_spill] sm:$0xff] %v15719_v41  ;;  %v6243_v46 = vmul.f32 %v10357_v1, %v6051_v47  ;;  %v10359_v23 = vpop.eup %10358 }
 0xb68   :  { %v5526_v3 = vmul.f32 0.020408163, %v5322_v59  ;;  %v6283_v24 = vmul.f32 %v10359_v23, %v6091_v13  ;;  %v5528_v59 = vmul.f32 0.020408163, %v5328_v44  ;;  %v5481_v23 = vmul.f32 0.020408163, %v15550_v19 }
 0xb69   :  { %v6060_v19 = vld [vmem:[%s17673_s2 + $0x478] sm:$0xff] }
 0xb6a   :  { %v15731_v20 = vpop.permute.xlu0 %7048  ;;  %v5720_v62 = vadd.f32 1e-05, %v5528_v59 }
 0xb6b   :  { %7133 = vperm.xlu1 %9626, %v6275_v27   ;;  %v6277_v27 = vmul.f32 %v10355_v54, %v6085_v49  ;;  %v15725_v10 = vpop.permute.xlu1 %6813  ;;  %18928 = vst [vmem:[#allocation282_spill] sm:$0xff] %v15731_v20  ;;  %v5718_v54 = vadd.f32 1e-05, %v5526_v3 }
 0xb6e   :  { %v15737_v47 = vpop.permute.xlu0 %6928 }
 0xb6f   :  { %7123 = vperm.xlu1 %9626, %v6273_v40   ;;  %v5709_v40 = vadd.f32 1e-05, %v5517_v26  ;;  %v5671_v26 = vadd.f32 1e-05, %v5479_v32  ;;  %v6093_v32 = vld [vmem:[%s17673_s2 + $0x580] sm:$0xff] }
 0xb71   :  { %10364 = vrsqrt.f32 %v5709_v40  ;;  %v6053_v40 = vld [vmem:[%s17673_s2 + $0x440] sm:$0xff] }
 0xb72   :  { %10366 = vrsqrt.f32 %v5711_v52 }
 0xb73   :  { %6963 = vperm.xlu1 %9626, %v6241_v36  }
 0xb77   :  { %7153 = vperm.xlu1 %9626, %v6279_v31   ;;  %v10361_v31 = vpop.eup %10360 }
 0xb78   :  { %v6281_v0 = vmul.f32 %v10361_v31, %v6089_v58  ;;  %v10363_v1 = vpop.eup %10362  ;;  %v5673_v58 = vadd.f32 1e-05, %v5481_v23  ;;  %v15749_v31 = vpop.permute.xlu0 %7078 }
 0xb79   :  { %v6245_v13 = vmul.f32 %v10363_v1, %v6053_v40  ;;  %18929 = vst [vmem:[#allocation283_spill] sm:$0xff] %v15749_v31  ;;  %v6102_v40 = vld [vmem:[%s17673_s2 + $0x5c8] sm:$0xff] }
 0xb7b   :  { %7143 = vperm.xlu1 %9626, %v6277_v27   ;;  %v5521_v27 = vmul.f32 0.020408163, %v15539_v55  ;;  %v10365_v55 = vpop.eup %10364 }
 0xb7c   :  { %v10367_v59 = vpop.eup %10366  ;;  %v15763_v23 = vpop.permute.xlu0 %7068 }
 0xb7d   :  { %18930 = vst [vmem:[#allocation284_spill] sm:$0xff] %v15763_v23 }
 0xb7f   :  { %6973 = vperm.xlu1 %9626, %v6243_v46   ;;  %v5196_v36 = vpop.xlane.xlu1 %5195  ;;  %v5713_v46 = vadd.f32 1e-05, %v5521_v27 }
 0xb80   :  { %v5484_v57 = vmul.f32 0.020408163, %v5196_v36 }
 0xb82   :  { %v5676_v49 = vadd.f32 1e-05, %v5484_v57 }
 0xb83   :  { %7173 = vperm.xlu1 %9626, %v6283_v24   ;;  %v5340_v11 = vpop.xlane.xlu1 %5339  ;;  %v5523_v24 = vmul.f32 0.020408163, %v15535_v17 }
 0xb84   :  { %10368 = vrsqrt.f32 %v5676_v49  ;;  %v5532_v52 = vmul.f32 0.020408163, %v5340_v11 }
 0xb85   :  { %10370 = vrsqrt.f32 %v5718_v54  ;;  %v6285_v54 = vmul.f32 %v10365_v55, %v6093_v32  ;;  %v5715_v1 = vadd.f32 1e-05, %v5523_v24  ;;  %v6104_v32 = vld [vmem:[%s17673_s2 + $0x5d8] sm:$0xff] }
 0xb86   :  { %10372 = vrsqrt.f32 %v5671_v26  ;;  %v5724_v11 = vadd.f32 1e-05, %v5532_v52  ;;  %v6095_v26 = vld [vmem:[%s17673_s2 + $0x590] sm:$0xff] }
 0xb87   :  { %7163 = vperm.xlu1 %9626, %v6281_v0   ;;  %v5334_v44 = vpop.xlane.xlu1 %5333  ;;  %10374 = vrsqrt.f32 %v5720_v62  ;;  %v5483_v62 = vmul.f32 0.020408163, %v15586_v14  ;;  %v5525_v14 = vmul.f32 0.020408163, %v15571_v5 }
 0xb88   :  { %v5530_v3 = vmul.f32 0.020408163, %v5334_v44  ;;  %10376 = vrsqrt.f32 %v5713_v46  ;;  %v6287_v44 = vmul.f32 %v10367_v59, %v6095_v26  ;;  %v15780_v26 = vpop.permute.xlu0 %6938 }
 0xb89   :  { %v5717_v5 = vadd.f32 1e-05, %v5525_v14 }
 0xb8a   :  { %v5722_v36 = vadd.f32 1e-05, %v5530_v3  ;;  %v6055_v3 = vld [vmem:[%s17673_s2 + $0x450] sm:$0xff] }
 0xb8b   :  { %6983 = vperm.xlu1 %9626, %v6245_v13   ;;  %v15746_v57 = vpop.permute.xlu1 %6823 }
 0xb8c   :  { %10378 = vrsqrt.f32 %v5722_v36  ;;  %v5675_v36 = vadd.f32 1e-05, %v5483_v62  ;;  %v6057_v62 = vld [vmem:[%s17673_s2 + $0x460] sm:$0xff] }
 0xb8d   :  { %10380 = vrsqrt.f32 %v5673_v58 }
 0xb8e   :  { %v10369_v49 = vpop.eup %10368  ;;  %10382 = vrsqrt.f32 %v5724_v11  ;;  %v5527_v11 = vmul.f32 0.020408163, %v15558_v56 }
 0xb8f   :  { %7183 = vperm.xlu1 %9626, %v6285_v54   ;;  %v15757_v27 = vpop.permute.xlu1 %6833  ;;  %v6252_v17 = vmul.f32 %v10369_v49, %v6060_v19  ;;  %v10371_v0 = vpop.eup %10370  ;;  %10384 = vrsqrt.f32 %v5715_v1  ;;  %v6097_v19 = vld [vmem:[%s17673_s2 + $0x5a0] sm:$0xff] }
 0xb90   :  { %v10373_v46 = vpop.eup %10372  ;;  %v6294_v55 = vmul.f32 %v10371_v0, %v6102_v40  ;;  %10386 = vrsqrt.f32 %v5675_v36  ;;  %v15794_v36 = vpop.permute.xlu0 %7098 }
 0xb91   :  { %7018 = vperm.xlu0 %9627, %v6252_v17   ;;  %v10375_v52 = vpop.eup %10374  ;;  %v6247_v24 = vmul.f32 %v10373_v46, %v6055_v3  ;;  %v6106_v17 = vld [vmem:[%s17673_s2 + $0x5e8] sm:$0xff]  ;;  %v5719_v46 = vadd.f32 1e-05, %v5527_v11  ;;  %10388 = vrsqrt.f32 %v5717_v5  ;;  %v5529_v3 = vmul.f32 0.020408163, %v15602_v2  ;;  %18931 = vst [vmem:[#allocation285_spill] sm:$0xff] %v15794_v36 }
 0xb92   :  { %v10377_v58 = vpop.eup %10376  ;;  %v6296_v54 = vmul.f32 %v10375_v52, %v6104_v32  ;;  %v6099_v32 = vld [vmem:[%s17673_s2 + $0x5b0] sm:$0xff]  ;;  %v5531_v2 = vmul.f32 0.020408163, %v15592_v48  ;;  %v7454_v11 = vld [vmem:[%s17674_s3 + $0x8] sm:$0xff]  ;;  %v7488_v36 = vld [vmem:[%s17674_s3 + $0x118] sm:$0xff] }
 0xb93   :  { %7193 = vperm.xlu1 %9626, %v6287_v44   ;;  %v15768_v13 = vpop.permute.xlu1 %6843  ;;  %v6289_v0 = vmul.f32 %v10377_v58, %v6097_v19  ;;  %10390 = vrsqrt.f32 %v5719_v46  ;;  %v5721_v19 = vadd.f32 1e-05, %v5529_v3  ;;  %v6059_v5 = vld [vmem:[%s17673_s2 + $0x470] sm:$0xff] }
 0xb95   :  { %7228 = vperm.xlu0 %9627, %v6294_v55   ;;  %v6108_v55 = vld [vmem:[%s17673_s2 + $0x5f8] sm:$0xff]  ;;  %10392 = vrsqrt.f32 %v5721_v19 }
 0xb96   :  { %v10379_v49 = vpop.eup %10378 }
 0xb97   :  { %6993 = vperm.xlu1 %9626, %v6247_v24   ;;  %v15777_v59 = vpop.permute.xlu1 %6853  ;;  %v10381_v1 = vpop.eup %10380  ;;  %v6298_v44 = vmul.f32 %v10379_v49, %v6106_v17 }
 0xb98   :  { %v10383_v56 = vpop.eup %10382  ;;  %v6249_v52 = vmul.f32 %v10381_v1, %v6057_v62  ;;  %v15810_v1 = vpop.permute.xlu0 %7088 }
 0xb99   :  { %7238 = vperm.xlu0 %9627, %v6296_v54   ;;  %v10385_v14 = vpop.eup %10384  ;;  %v6300_v58 = vmul.f32 %v10383_v56, %v6108_v55  ;;  %18932 = vst [vmem:[#allocation286_spill] sm:$0xff] %v15810_v1  ;;  %v6101_v56 = vld [vmem:[%s17673_s2 + $0x5c0] sm:$0xff] }
 0xb9a   :  { %v6291_v54 = vmul.f32 %v10385_v14, %v6099_v32  ;;  %v10387_v49 = vpop.eup %10386  ;;  %v7458_v14 = vld [vmem:[%s17674_s3 + $0x28] sm:$0xff]  ;;  %v6103_v32 = vld [vmem:[%s17673_s2 + $0x5d0] sm:$0xff] }
 0xb9b   :  { %7203 = vperm.xlu1 %9626, %v6289_v0   ;;  %v15788_v40 = vpop.permute.xlu1 %6863  ;;  %v5723_v0 = vadd.f32 1e-05, %v5531_v2  ;;  %v6251_v48 = vmul.f32 %v10387_v49, %v6059_v5  ;;  %v10389_v62 = vpop.eup %10388  ;;  %v6105_v49 = vld [vmem:[%s17673_s2 + $0x5e0] sm:$0xff] }
 0xb9c   :  { %v6293_v3 = vmul.f32 %v10389_v62, %v6101_v56  ;;  %v7462_v62 = vld [vmem:[%s17674_s3 + $0x48] sm:$0xff] }
 0xb9d   :  { %7248 = vperm.xlu0 %9627, %v6298_v44   ;;  %v7456_v44 = vld [vmem:[%s17674_s3 + $0x18] sm:$0xff]  ;;  %10394 = vrsqrt.f32 %v5723_v0  ;;  %v10391_v55 = vpop.eup %10390 }
 0xb9e   :  { %v6295_v2 = vmul.f32 %v10391_v55, %v6103_v32 }
 0xb9f   :  { %7003 = vperm.xlu1 %9626, %v6249_v52   ;;  %v15799_v24 = vpop.permute.xlu1 %6873  ;;  %v15820_v52 = vpop.permute.xlu0 %6948 }
 0xba0   :  { %v10393_v19 = vpop.eup %10392 }
 0xba1   :  { %7258 = vperm.xlu0 %9627, %v6300_v58   ;;  %v6297_v0 = vmul.f32 %v10393_v19, %v6105_v49  ;;  %v7466_v19 = vld [vmem:[%s17674_s3 + $0x68] sm:$0xff] }
 0xba3   :  { %7213 = vperm.xlu1 %9626, %v6291_v54   ;;  %v15808_v17 = vpop.permute.xlu1 %6883  ;;  %v7460_v54 = vld [vmem:[%s17674_s3 + $0x38] sm:$0xff]  ;;  %v15838_v5 = vpop.permute.xlu0 %7118 }
 0xba4   :  { %18934 = vst [vmem:[#allocation288_spill] sm:$0xff] %v15838_v5  ;;  %v7474_v5 = vld [vmem:[%s17674_s3 + $0xa8] sm:$0xff] }
 0xba5   :  { %7652 = vperm.xlu0 %9627, %v7454_v11  }
 0xba7   :  { %7013 = vperm.xlu1 %9626, %v6251_v48   ;;  %v15818_v46 = vpop.permute.xlu1 %6893  ;;  %v10395_v48 = vpop.eup %10394 }
 0xba8   :  { %v15848_v55 = vpop.permute.xlu0 %7108 }
 0xba9   :  { %7662 = vperm.xlu0 %9627, %v7456_v44   ;;  %v6107_v44 = vld [vmem:[%s17673_s2 + $0x5f0] sm:$0xff]  ;;  %18936 = vst [vmem:[#allocation290_spill] sm:$0xff] %v15848_v55  ;;  %v7480_v55 = vld [vmem:[%s17674_s3 + $0xd8] sm:$0xff] }
 0xbab   :  { %7223 = vperm.xlu1 %9626, %v6293_v3   ;;  %v15828_v58 = vpop.permute.xlu1 %6903  ;;  %v6299_v3 = vmul.f32 %v10395_v48, %v6107_v44  ;;  %v7468_v48 = vld [vmem:[%s17674_s3 + $0x78] sm:$0xff]  ;;  %v7457_v44 = vld [vmem:[%s17674_s3 + $0x20] sm:$0xff] }
 0xbac   :  { %v15863_v49 = vpop.permute.xlu0 %6958 }
 0xbad   :  { %7672 = vperm.xlu0 %9627, %v7458_v14   ;;  %v7464_v14 = vld [vmem:[%s17674_s3 + $0x58] sm:$0xff] }
 0xbaf   :  { %7233 = vperm.xlu1 %9626, %v6295_v2   ;;  %v15836_v11 = vpop.permute.xlu1 %7033  ;;  %v7453_v2 = vld [vmem:[%s17674_s3] sm:$0xff] }
 0xbb0   :  { %18933 = vst [vmem:[#allocation287_spill] sm:$0xff] %v15836_v11  ;;  %v7492_v11 = vld [vmem:[%s17674_s3 + $0x138] sm:$0xff] }
 0xbb1   :  { %7682 = vperm.xlu0 %9627, %v7460_v54  }
 0xbb3   :  { %7243 = vperm.xlu1 %9626, %v6297_v0   ;;  %v15846_v56 = vpop.permute.xlu1 %7023  ;;  %v7455_v0 = vld [vmem:[%s17674_s3 + $0x10] sm:$0xff] }
 0xbb4   :  { %18935 = vst [vmem:[#allocation289_spill] sm:$0xff] %v15846_v56 }
 0xbb5   :  { %7692 = vperm.xlu0 %9627, %v7462_v62  }
 0xbb7   :  { %7253 = vperm.xlu1 %9626, %v6299_v3   ;;  %v15853_v32 = vpop.permute.xlu1 %6913  ;;  %v15876_v3 = vpop.permute.xlu0 %7138 }
 0xbb8   :  { %18939 = vst [vmem:[#allocation293_spill] sm:$0xff] %v15876_v3 }
 0xbb9   :  { %7702 = vperm.xlu0 %9627, %v7464_v14   ;;  %v7470_v14 = vld [vmem:[%s17674_s3 + $0x88] sm:$0xff] }
 0xbbb   :  { %7647 = vperm.xlu1 %9626, %v7453_v2   ;;  %v15861_v54 = vpop.permute.xlu1 %7053  ;;  %v15891_v3 = vpop.permute.xlu0 %7128 }
 0xbbc   :  { %18937 = vst [vmem:[#allocation291_spill] sm:$0xff] %v15861_v54  ;;  %18941 = vst [vmem:[#allocation295_spill] sm:$0xff] %v15891_v3  ;;  %v7476_v3 = vld [vmem:[%s17674_s3 + $0xb8] sm:$0xff] }
 0xbbd   :  { %7712 = vperm.xlu0 %9627, %v7466_v19   ;;  %v7459_v19 = vld [vmem:[%s17674_s3 + $0x30] sm:$0xff] }
 0xbbf   :  { %7657 = vperm.xlu1 %9626, %v7455_v0   ;;  %v15871_v62 = vpop.permute.xlu1 %7043  ;;  %v7472_v0 = vld [vmem:[%s17674_s3 + $0x98] sm:$0xff] }
 0xbc0   :  { %18938 = vst [vmem:[#allocation292_spill] sm:$0xff] %v15871_v62  ;;  %v7486_v62 = vld [vmem:[%s17674_s3 + $0x108] sm:$0xff] }
 0xbc1   :  { %7722 = vperm.xlu0 %9627, %v7468_v48  }
 0xbc3   :  { %7667 = vperm.xlu1 %9626, %v7457_v44   ;;  %v15881_v2 = vpop.permute.xlu1 %6923  ;;  %v7461_v44 = vld [vmem:[%s17674_s3 + $0x40] sm:$0xff] }
 0xbc5   :  { %7732 = vperm.xlu0 %9627, %v7470_v14  }
 0xbc7   :  { %7677 = vperm.xlu1 %9626, %v7459_v19   ;;  %v15889_v48 = vpop.permute.xlu1 %7073  ;;  %v7463_v19 = vld [vmem:[%s17674_s3 + $0x50] sm:$0xff] }
 0xbc8   :  { %18940 = vst [vmem:[#allocation294_spill] sm:$0xff] %v15889_v48  ;;  %v15904_v48 = vpop.permute.xlu0 %6968 }
 0xbc9   :  { %7742 = vperm.xlu0 %9627, %v7472_v0  }
 0xbcb   :  { %7687 = vperm.xlu1 %9626, %v7461_v44   ;;  %v15899_v14 = vpop.permute.xlu1 %7063  ;;  %v7465_v44 = vld [vmem:[%s17674_s3 + $0x60] sm:$0xff] }
 0xbcc   :  { %18942 = vst [vmem:[#allocation296_spill] sm:$0xff] %v15899_v14  ;;  %v7478_v14 = vld [vmem:[%s17674_s3 + $0xc8] sm:$0xff]  ;;  %v15919_v54 = vpop.permute.xlu0 %7158 }
 0xbcd   :  { %7752 = vperm.xlu0 %9627, %v7474_v5   ;;  %18944 = vst [vmem:[#allocation298_spill] sm:$0xff] %v15919_v54  ;;  %v7482_v54 = vld [vmem:[%s17674_s3 + $0xe8] sm:$0xff] }
 0xbcf   :  { %7697 = vperm.xlu1 %9626, %v7463_v19   ;;  %v15909_v0 = vpop.permute.xlu1 %6933  ;;  %v7467_v19 = vld [vmem:[%s17674_s3 + $0x70] sm:$0xff] }
 0xbd1   :  { %7762 = vperm.xlu0 %9627, %v7476_v3  }
 0xbd3   :  { %7707 = vperm.xlu1 %9626, %v7465_v44   ;;  %v15917_v5 = vpop.permute.xlu1 %7093  ;;  %v7469_v44 = vld [vmem:[%s17674_s3 + $0x80] sm:$0xff] }
 0xbd4   :  { %18943 = vst [vmem:[#allocation297_spill] sm:$0xff] %v15917_v5  ;;  %v15932_v5 = vpop.permute.xlu0 %7148 }
 0xbd5   :  { %7772 = vperm.xlu0 %9627, %v7478_v14   ;;  %18946 = vst [vmem:[#allocation300_spill] sm:$0xff] %v15932_v5 }
 0xbd7   :  { %7717 = vperm.xlu1 %9626, %v7467_v19   ;;  %v15927_v3 = vpop.permute.xlu1 %7083  ;;  %v7471_v19 = vld [vmem:[%s17674_s3 + $0x90] sm:$0xff] }
 0xbd8   :  { %18945 = vst [vmem:[#allocation299_spill] sm:$0xff] %v15927_v3  ;;  %v7484_v3 = vld [vmem:[%s17674_s3 + $0xf8] sm:$0xff]  ;;  %v15947_v5 = vpop.permute.xlu0 %6978 }
 0xbd9   :  { %7782 = vperm.xlu0 %9627, %v7480_v55  }
 0xbdb   :  { %7727 = vperm.xlu1 %9626, %v7469_v44   ;;  %v15937_v14 = vpop.permute.xlu1 %6943  ;;  %v7473_v44 = vld [vmem:[%s17674_s3 + $0xa0] sm:$0xff] }
 0xbdc   :  { %18947 = vst [vmem:[#allocation301_spill] sm:$0xff] %v15937_v14 }
 0xbdd   :  { %7792 = vperm.xlu0 %9627, %v7482_v54  }
 0xbdf   :  { %7737 = vperm.xlu1 %9626, %v7471_v19   ;;  %v15945_v55 = vpop.permute.xlu1 %7113  ;;  %v7475_v19 = vld [vmem:[%s17674_s3 + $0xb0] sm:$0xff] }
 0xbe0   :  { %18948 = vst [vmem:[#allocation302_spill] sm:$0xff] %v15945_v55  ;;  %v15960_v55 = vpop.permute.xlu0 %7178 }
 0xbe1   :  { %7802 = vperm.xlu0 %9627, %v7484_v3   ;;  %18950 = vst [vmem:[#allocation304_spill] sm:$0xff] %v15960_v55 }
 0xbe3   :  { %7747 = vperm.xlu1 %9626, %v7473_v44   ;;  %v15955_v54 = vpop.permute.xlu1 %7103  ;;  %v7477_v44 = vld [vmem:[%s17674_s3 + $0xc0] sm:$0xff] }
 0xbe4   :  { %18949 = vst [vmem:[#allocation303_spill] sm:$0xff] %v15955_v54  ;;  %v7490_v54 = vld [vmem:[%s17674_s3 + $0x128] sm:$0xff]  ;;  %v15975_v55 = vpop.permute.xlu0 %7168 }
 0xbe5   :  { %7812 = vperm.xlu0 %9627, %v7486_v62   ;;  %18953 = vst [vmem:[#allocation307_spill] sm:$0xff] %v15975_v55 }
 0xbe7   :  { %7757 = vperm.xlu1 %9626, %v7475_v19   ;;  %v15965_v3 = vpop.permute.xlu1 %6953  ;;  %v7479_v19 = vld [vmem:[%s17674_s3 + $0xd0] sm:$0xff] }
 0xbe8   :  { %18951 = vst [vmem:[#allocation305_spill] sm:$0xff] %v15965_v3  ;;  %v15985_v1 = vpop.permute.xlu0 %6988 }
 0xbe9   :  { %7822 = vperm.xlu0 %9627, %v7488_v36  }
 0xbeb   :  { %7767 = vperm.xlu1 %9626, %v7477_v44   ;;  %v15973_v62 = vpop.permute.xlu1 %7133  ;;  %v7481_v44 = vld [vmem:[%s17674_s3 + $0xe0] sm:$0xff] }
 0xbec   :  { %18952 = vst [vmem:[#allocation306_spill] sm:$0xff] %v15973_v62  ;;  %v7494_v62 = vld [vmem:[%s17674_s3 + $0x148] sm:$0xff]  ;;  %v15995_v55 = vpop.permute.xlu0 %7188 }
 0xbed   :  { %7832 = vperm.xlu0 %9627, %v7490_v54   ;;  %18956 = vst [vmem:[#allocation310_spill] sm:$0xff] %v15995_v55  ;;  %v7498_v55 = vld [vmem:[%s17674_s3 + $0x168] sm:$0xff] }
 0xbef   :  { %7777 = vperm.xlu1 %9626, %v7479_v19   ;;  %v15983_v36 = vpop.permute.xlu1 %7123  ;;  %v7483_v19 = vld [vmem:[%s17674_s3 + $0xf0] sm:$0xff] }
 0xbf0   :  { %18954 = vst [vmem:[#allocation308_spill] sm:$0xff] %v15983_v36  ;;  %v7496_v36 = vld [vmem:[%s17674_s3 + $0x158] sm:$0xff]  ;;  %v16008_v56 = vpop.permute.xlu0 %7198 }
 0xbf1   :  { %7842 = vperm.xlu0 %9627, %v7492_v11   ;;  %18958 = vst [vmem:[#allocation312_spill] sm:$0xff] %v16008_v56 }
 0xbf3   :  { %7787 = vperm.xlu1 %9626, %v7481_v44   ;;  %v15993_v54 = vpop.permute.xlu1 %6963  ;;  %v7485_v44 = vld [vmem:[%s17674_s3 + $0x100] sm:$0xff] }
 0xbf4   :  { %18955 = vst [vmem:[#allocation309_spill] sm:$0xff] %v15993_v54  ;;  %v18980_v54 = vld [vmem:[#allocation105_spill] sm:$0xff] }
 0xbf5   :  { %7852 = vperm.xlu0 %9627, %v7494_v62  }
 0xbf7   :  { %7797 = vperm.xlu1 %9626, %v7483_v19   ;;  %v16003_v11 = vpop.permute.xlu1 %7153  ;;  %v7487_v19 = vld [vmem:[%s17674_s3 + $0x110] sm:$0xff] }
 0xbf8   :  { %18957 = vst [vmem:[#allocation311_spill] sm:$0xff] %v16003_v11  ;;  %v16018_v11 = vpop.permute.xlu0 %6998 }
 0xbf9   :  { %7862 = vperm.xlu0 %9627, %v7496_v36   ;;  %v7500_v36 = vld [vmem:[%s17674_s3 + $0x178] sm:$0xff] }
 0xbfb   :  { %7807 = vperm.xlu1 %9626, %v7485_v44   ;;  %v16013_v62 = vpop.permute.xlu1 %7143  ;;  %v7489_v44 = vld [vmem:[%s17674_s3 + $0x120] sm:$0xff] }
 0xbfc   :  { %18959 = vst [vmem:[#allocation313_spill] sm:$0xff] %v16013_v62  ;;  %v16028_v62 = vpop.permute.xlu0 %7208 }
 0xbfd   :  { %7872 = vperm.xlu0 %9627, %v7498_v55   ;;  %18961 = vst [vmem:[#allocation315_spill] sm:$0xff] %v16028_v62  ;;  %v7502_v55 = vld [vmem:[%s17674_s3 + $0x188] sm:$0xff] }
 0xbff   :  { %7817 = vperm.xlu1 %9626, %v7487_v19   ;;  %v16023_v56 = vpop.permute.xlu1 %6973  ;;  %v7491_v19 = vld [vmem:[%s17674_s3 + $0x130] sm:$0xff] }
 0xc00   :  { %18960 = vst [vmem:[#allocation314_spill] sm:$0xff] %v16023_v56  ;;  %v16038_v23 = vpop.permute.xlu0 %7008 }
 0xc01   :  { %7882 = vperm.xlu0 %9627, %v7500_v36   ;;  %18963 = vst [vmem:[#allocation317_spill] sm:$0xff] %v16038_v23  ;;  %v7504_v36 = vld [vmem:[%s17674_s3 + $0x198] sm:$0xff]  ;;  %v18998_v23 = vld [vmem:[#allocation238_spill] sm:$0xff] }
 0xc03   :  { %7827 = vperm.xlu1 %9626, %v7489_v44   ;;  %v16033_v31 = vpop.permute.xlu1 %7173  ;;  %v7493_v44 = vld [vmem:[%s17674_s3 + $0x140] sm:$0xff] }
 0xc04   :  { %18962 = vst [vmem:[#allocation316_spill] sm:$0xff] %v16033_v31  ;;  %v7506_v31 = vld [vmem:[%s17674_s3 + $0x1a8] sm:$0xff]  ;;  %v16053_v41 = vpop.permute.xlu0 %7218 }
 0xc05   :  { %7892 = vperm.xlu0 %9627, %v7502_v55   ;;  %18966 = vst [vmem:[#allocation320_spill] sm:$0xff] %v16053_v41  ;;  %v7510_v41 = vld [vmem:[%s17674_s3 + $0x1c8] sm:$0xff] }
 0xc07   :  { %7837 = vperm.xlu1 %9626, %v7491_v19   ;;  %v16043_v62 = vpop.permute.xlu1 %7163  ;;  %v7495_v19 = vld [vmem:[%s17674_s3 + $0x150] sm:$0xff] }
 0xc08   :  { %18964 = vst [vmem:[#allocation318_spill] sm:$0xff] %v16043_v62  ;;  %v7508_v62 = vld [vmem:[%s17674_s3 + $0x1b8] sm:$0xff] }
 0xc09   :  { %7902 = vperm.xlu0 %9627, %v7504_v36  }
 0xc0b   :  { %7847 = vperm.xlu1 %9626, %v7493_v44   ;;  %v16051_v55 = vpop.permute.xlu1 %6983  ;;  %v7497_v44 = vld [vmem:[%s17674_s3 + $0x160] sm:$0xff] }
 0xc0c   :  { %18965 = vst [vmem:[#allocation319_spill] sm:$0xff] %v16051_v55 }
 0xc0d   :  { %7912 = vperm.xlu0 %9627, %v7506_v31  }
 0xc0f   :  { %7857 = vperm.xlu1 %9626, %v7495_v19   ;;  %v16061_v36 = vpop.permute.xlu1 %7183  ;;  %v7499_v19 = vld [vmem:[%s17674_s3 + $0x170] sm:$0xff] }
 0xc10   :  { %18967 = vst [vmem:[#allocation321_spill] sm:$0xff] %v16061_v36  ;;  %v16063_v20 = vpop.permute.xlu0 %7018  ;;  %v7512_v36 = vld [vmem:[%s17674_s3 + $0x1d8] sm:$0xff] }
 0xc11   :  { %18968 = vst [vmem:[#allocation322_spill] sm:$0xff] %v16063_v20  ;;  %7922 = vperm.xlu0 %9627, %v7508_v62   ;;  %v18981_v20 = vld [vmem:[#allocation232_spill] sm:$0xff] }
 0xc12   :  { %v7264_v3 = vmul.f32 %v18981_v20, %v18980_v54  ;;  %v18983_v20 = vld [vmem:[#allocation50_spill] sm:$0xff]  ;;  %v18984_v54 = vld [vmem:[#allocation163_spill] sm:$0xff] }
 0xc13   :  { %7867 = vperm.xlu1 %9626, %v7497_v44   ;;  %v16071_v31 = vpop.permute.xlu1 %7193  ;;  %v7501_v44 = vld [vmem:[%s17674_s3 + $0x180] sm:$0xff] }
 0xc14   :  { %18969 = vst [vmem:[#allocation323_spill] sm:$0xff] %v16071_v31  ;;  %v16073_v55 = vpop.permute.xlu0 %7228  ;;  %v7514_v31 = vld [vmem:[%s17674_s3 + $0x1e8] sm:$0xff] }
 0xc15   :  { %18970 = vst [vmem:[#allocation324_spill] sm:$0xff] %v16073_v55  ;;  %7932 = vperm.xlu0 %9627, %v7510_v41  }
 0xc17   :  { %7877 = vperm.xlu1 %9626, %v7499_v19   ;;  %v16081_v62 = vpop.permute.xlu1 %6993  ;;  %v7503_v19 = vld [vmem:[%s17674_s3 + $0x190] sm:$0xff] }
 0xc18   :  { %18971 = vst [vmem:[#allocation325_spill] sm:$0xff] %v16081_v62  ;;  %v16083_v39 = vpop.permute.xlu0 %7238 }
 0xc19   :  { %18972 = vst [vmem:[#allocation326_spill] sm:$0xff] %v16083_v39  ;;  %7942 = vperm.xlu0 %9627, %v7512_v36   ;;  %v7516_v39 = vld [vmem:[%s17674_s3 + $0x1f8] sm:$0xff] }
 0xc1b   :  { %7887 = vperm.xlu1 %9626, %v7501_v44   ;;  %v16091_v41 = vpop.permute.xlu1 %7203  ;;  %v7505_v44 = vld [vmem:[%s17674_s3 + $0x1a0] sm:$0xff] }
 0xc1c   :  { %18973 = vst [vmem:[#allocation327_spill] sm:$0xff] %v16091_v41  ;;  %v16093_v55 = vpop.permute.xlu0 %7248  ;;  %v7518_v41 = vld [vmem:[%s17674_s3 + $0x208] sm:$0xff] }
 0xc1d   :  { %18974 = vst [vmem:[#allocation328_spill] sm:$0xff] %v16093_v55  ;;  %7952 = vperm.xlu0 %9627, %v7514_v31   ;;  %v18977_v55 = vld [vmem:[#allocation106_spill] sm:$0xff]  ;;  %v18978_v31 = vld [vmem:[#allocation233_spill] sm:$0xff] }
 0xc1e   :  { %v7262_v56 = vmul.f32 %v18978_v31, %v18977_v55  ;;  %v7522_v31 = vld [vmem:[%s17674_s3 + $0x228] sm:$0xff] }
 0xc1f   :  { %7897 = vperm.xlu1 %9626, %v7503_v19   ;;  %v16101_v36 = vpop.permute.xlu1 %7003 }
 0xc20   :  { %18975 = vst [vmem:[#allocation329_spill] sm:$0xff] %v16101_v36  ;;  %v16103_v62 = vpop.permute.xlu0 %7258 }
 0xc21   :  { %18976 = vst [vmem:[#allocation330_spill] sm:$0xff] %v16103_v62  ;;  %7962 = vperm.xlu0 %9627, %v7516_v39   ;;  %v7507_v62 = vld [vmem:[%s17674_s3 + $0x1b0] sm:$0xff]  ;;  %v7520_v39 = vld [vmem:[%s17674_s3 + $0x218] sm:$0xff] }
 0xc23   :  { %7907 = vperm.xlu1 %9626, %v7505_v44   ;;  %v16113_v25 = vpop.permute.xlu1 %7213 }
 0xc24   :  { %18979 = vst [vmem:[#allocation106_spill] sm:$0xff] %v16113_v25  ;;  %v7653_v19 = vpop.permute.xlu0 %7652 }
 0xc25   :  { %v8606_v36 = vadd.f32 %v7653_v19, %v7262_v56  ;;  %7972 = vperm.xlu0 %9627, %v7518_v41   ;;  %v7509_v56 = vld [vmem:[%s17674_s3 + $0x1c0] sm:$0xff]  ;;  %v7266_v19 = vmul.f32 %v18984_v54, %v18983_v20  ;;  %v18986_v20 = vld [vmem:[#allocation116_spill] sm:$0xff] }
 0xc26   :  { %v18987_v54 = vld [vmem:[#allocation122_spill] sm:$0xff] }
 0xc27   :  { %8798 = vst.msk [vmem:[%s17675_s4 + $0x8] sm:$0xff] %vm3612_vm0, %v8606_v36  ;;  %7917 = vperm.xlu1 %9626, %v7507_v62   ;;  %v16127_v55 = vpop.permute.xlu1 %7013  ;;  %v7268_v25 = vmul.f32 %v18987_v54, %v18986_v20  ;;  %v18989_v20 = vld [vmem:[#allocation52_spill] sm:$0xff]  ;;  %v18990_v54 = vld [vmem:[#allocation234_spill] sm:$0xff] }
 0xc28   :  { %18982 = vst [vmem:[#allocation233_spill] sm:$0xff] %v16127_v55  ;;  %v7663_v44 = vpop.permute.xlu0 %7662 }
 0xc29   :  { %v8608_v41 = vadd.f32 %v7663_v44, %v7264_v3  ;;  %7982 = vperm.xlu0 %9627, %v7520_v39   ;;  %v7511_v3 = vld [vmem:[%s17674_s3 + $0x1d0] sm:$0xff]  ;;  %v7524_v44 = vld [vmem:[%s17674_s3 + $0x238] sm:$0xff] }
 0xc2b   :  { %8800 = vst.msk [vmem:[%s17675_s4 + $0x18] sm:$0xff] %vm3612_vm0, %v8608_v41  ;;  %7927 = vperm.xlu1 %9626, %v7509_v56   ;;  %v16141_v62 = vpop.permute.xlu1 %7223 }
 0xc2c   :  { %18985 = vst [vmem:[#allocation105_spill] sm:$0xff] %v16141_v62  ;;  %v7673_v36 = vpop.permute.xlu0 %7672  ;;  %v7270_v62 = vmul.f32 %v18990_v54, %v18989_v20  ;;  %v18992_v20 = vld [vmem:[#allocation126_spill] sm:$0xff] }
 0xc2d   :  { %v8610_v39 = vadd.f32 %v7673_v36, %v7266_v19  ;;  %7992 = vperm.xlu0 %9627, %v7522_v31   ;;  %v7513_v31 = vld [vmem:[%s17674_s3 + $0x1e0] sm:$0xff]  ;;  %v7526_v36 = vld [vmem:[%s17674_s3 + $0x248] sm:$0xff] }
 0xc2e   :  { %v18993_v54 = vld [vmem:[#allocation158_spill] sm:$0xff] }
 0xc2f   :  { %8802 = vst.msk [vmem:[%s17675_s4 + $0x28] sm:$0xff] %vm3612_vm0, %v8610_v39  ;;  %7937 = vperm.xlu1 %9626, %v7511_v3   ;;  %v16155_v56 = vpop.permute.xlu1 %7233 }
 0xc30   :  { %18988 = vst [vmem:[#allocation232_spill] sm:$0xff] %v16155_v56  ;;  %v7683_v41 = vpop.permute.xlu0 %7682  ;;  %v7272_v56 = vmul.f32 %v18993_v54, %v18992_v20  ;;  %v7530_v20 = vld [vmem:[%s17674_s3 + $0x268] sm:$0xff]  ;;  %v18997_v54 = vld [vmem:[#allocation54_spill] sm:$0xff] }
 0xc31   :  { %v8612_v19 = vadd.f32 %v7683_v41, %v7268_v25  ;;  %8002 = vperm.xlu0 %9627, %v7524_v44   ;;  %v7515_v25 = vld [vmem:[%s17674_s3 + $0x1f0] sm:$0xff]  ;;  %v7528_v41 = vld [vmem:[%s17674_s3 + $0x258] sm:$0xff] }
 0xc33   :  { %8804 = vst.msk [vmem:[%s17675_s4 + $0x38] sm:$0xff] %vm3612_vm0, %v8612_v19  ;;  %7947 = vperm.xlu1 %9626, %v7513_v31   ;;  %v16169_v3 = vpop.permute.xlu1 %7243 }
 0xc34   :  { %18991 = vst [vmem:[#allocation50_spill] sm:$0xff] %v16169_v3  ;;  %v7693_v39 = vpop.permute.xlu0 %7692  ;;  %v18996_v3 = vld [vmem:[#allocation223_spill] sm:$0xff] }
 0xc35   :  { %v8614_v44 = vadd.f32 %v7693_v39, %v7270_v62  ;;  %8012 = vperm.xlu0 %9627, %v7526_v36   ;;  %v7517_v62 = vld [vmem:[%s17674_s3 + $0x200] sm:$0xff]  ;;  %v18995_v39 = vld [vmem:[#allocation104_spill] sm:$0xff] }
 0xc36   :  { %v7261_v55 = vmul.f32 %v18996_v3, %v18995_v39  ;;  %v7519_v3 = vld [vmem:[%s17674_s3 + $0x210] sm:$0xff]  ;;  %v19000_v39 = vld [vmem:[#allocation231_spill] sm:$0xff] }
 0xc37   :  { %8806 = vst.msk [vmem:[%s17675_s4 + $0x48] sm:$0xff] %vm3612_vm0, %v8614_v44  ;;  %7957 = vperm.xlu1 %9626, %v7515_v25   ;;  %v16183_v31 = vpop.permute.xlu1 %7253  ;;  %v7274_v44 = vmul.f32 %v18998_v23, %v18997_v54  ;;  %v7532_v23 = vld [vmem:[%s17674_s3 + $0x278] sm:$0xff] }
 0xc38   :  { %18994 = vst [vmem:[#allocation163_spill] sm:$0xff] %v16183_v31  ;;  %v7703_v19 = vpop.permute.xlu0 %7702 }
 0xc39   :  { %v8616_v36 = vadd.f32 %v7703_v19, %v7272_v56  ;;  %8022 = vperm.xlu0 %9627, %v7528_v41   ;;  %v18999_v19 = vld [vmem:[#allocation102_spill] sm:$0xff] }
 0xc3a   :  { %v7263_v14 = vmul.f32 %v19000_v39, %v18999_v19  ;;  %v19004_v19 = vld [vmem:[#allocation236_spill] sm:$0xff] }
 0xc3b   :  { %8808 = vst.msk [vmem:[%s17675_s4 + $0x58] sm:$0xff] %vm3612_vm0, %v8616_v36  ;;  %7967 = vperm.xlu1 %9626, %v7517_v62   ;;  %v7648_v25 = vpop.permute.xlu1 %7647  ;;  %v19002_v62 = vld [vmem:[#allocation166_spill] sm:$0xff] }
 0xc3c   :  { %v8605_v31 = vadd.f32 %v7648_v25, %v7261_v55  ;;  %v7713_v56 = vpop.permute.xlu0 %7712  ;;  %v19001_v55 = vld [vmem:[#allocation133_spill] sm:$0xff] }
 0xc3d   :  { %v8618_v41 = vadd.f32 %v7713_v56, %v7274_v44  ;;  %8032 = vperm.xlu0 %9627, %v7530_v20   ;;  %v7276_v36 = vmul.f32 %v19002_v62, %v19001_v55  ;;  %v19003_v56 = vld [vmem:[#allocation117_spill] sm:$0xff] }
 0xc3e   :  { %8797 = vst.msk [vmem:[%s17675_s4] sm:$0xff] %vm3612_vm0, %v8605_v31  ;;  %v7521_v31 = vld [vmem:[%s17674_s3 + $0x220] sm:$0xff]  ;;  %v7265_v39 = vmul.f32 %v19004_v19, %v19003_v56  ;;  %v19008_v56 = vld [vmem:[#allocation235_spill] sm:$0xff] }
 0xc3f   :  { %8810 = vst.msk [vmem:[%s17675_s4 + $0x68] sm:$0xff] %vm3612_vm0, %v8618_v41  ;;  %7977 = vperm.xlu1 %9626, %v7519_v3   ;;  %v7658_v20 = vpop.permute.xlu1 %7657  ;;  %v7534_v3 = vld [vmem:[%s17674_s3 + $0x288] sm:$0xff]  ;;  %v19006_v41 = vld [vmem:[#allocation182_spill] sm:$0xff] }
 0xc40   :  { %v8607_v54 = vadd.f32 %v7658_v20, %v7263_v14  ;;  %v7723_v44 = vpop.permute.xlu0 %7722  ;;  %v19005_v14 = vld [vmem:[#allocation56_spill] sm:$0xff] }
 0xc41   :  { %v8620_v25 = vadd.f32 %v7723_v44, %v7276_v36  ;;  %8042 = vperm.xlu0 %9627, %v7532_v23   ;;  %v7278_v55 = vmul.f32 %v19006_v41, %v19005_v14  ;;  %v7523_v20 = vld [vmem:[%s17674_s3 + $0x230] sm:$0xff]  ;;  %v19007_v44 = vld [vmem:[#allocation114_spill] sm:$0xff] }
 0xc42   :  { %8799 = vst.msk [vmem:[%s17675_s4 + $0x10] sm:$0xff] %vm3612_vm0, %v8607_v54  ;;  %v7267_v19 = vmul.f32 %v19008_v56, %v19007_v44  ;;  %v19012_v44 = vld [vmem:[#allocation239_spill] sm:$0xff] }
 0xc43   :  { %8812 = vst.msk [vmem:[%s17675_s4 + $0x78] sm:$0xff] %vm3612_vm0, %v8620_v25  ;;  %7987 = vperm.xlu1 %9626, %v7521_v31   ;;  %v7668_v23 = vpop.permute.xlu1 %7667  ;;  %v7536_v31 = vld [vmem:[%s17674_s3 + $0x298] sm:$0xff]  ;;  %v19009_v25 = vld [vmem:[#allocation139_spill] sm:$0xff] }
 0xc44   :  { %v8609_v62 = vadd.f32 %v7668_v23, %v7265_v39  ;;  %v7733_v36 = vpop.permute.xlu0 %7732  ;;  %v19010_v39 = vld [vmem:[#allocation179_spill] sm:$0xff]  ;;  %v7525_v23 = vld [vmem:[%s17674_s3 + $0x240] sm:$0xff] }
 0xc45   :  { %v8622_v54 = vadd.f32 %v7733_v36, %v7278_v55  ;;  %8052 = vperm.xlu0 %9627, %v7534_v3   ;;  %v7280_v14 = vmul.f32 %v19010_v39, %v19009_v25  ;;  %v19011_v36 = vld [vmem:[#allocation127_spill] sm:$0xff] }
 0xc46   :  { %8801 = vst.msk [vmem:[%s17675_s4 + $0x20] sm:$0xff] %vm3612_vm0, %v8609_v62  ;;  %v7269_v56 = vmul.f32 %v19012_v44, %v19011_v36  ;;  %v19016_v36 = vld [vmem:[#allocation237_spill] sm:$0xff] }
 0xc47   :  { %8814 = vst.msk [vmem:[%s17675_s4 + $0x88] sm:$0xff] %vm3612_vm0, %v8622_v54  ;;  %7997 = vperm.xlu1 %9626, %v7523_v20   ;;  %v7678_v3 = vpop.permute.xlu1 %7677  ;;  %v7538_v20 = vld [vmem:[%s17674_s3 + $0x2a8] sm:$0xff]  ;;  %v19013_v54 = vld [vmem:[#allocation58_spill] sm:$0xff] }
 0xc48   :  { %v8611_v41 = vadd.f32 %v7678_v3, %v7267_v19  ;;  %v7743_v55 = vpop.permute.xlu0 %7742  ;;  %v19014_v19 = vld [vmem:[#allocation150_spill] sm:$0xff]  ;;  %v7527_v3 = vld [vmem:[%s17674_s3 + $0x250] sm:$0xff] }
 0xc49   :  { %v8624_v62 = vadd.f32 %v7743_v55, %v7280_v14  ;;  %8062 = vperm.xlu0 %9627, %v7536_v31   ;;  %v7282_v25 = vmul.f32 %v19014_v19, %v19013_v54  ;;  %v19015_v55 = vld [vmem:[#allocation51_spill] sm:$0xff] }
 0xc4a   :  { %8803 = vst.msk [vmem:[%s17675_s4 + $0x30] sm:$0xff] %vm3612_vm0, %v8611_v41  ;;  %v7271_v44 = vmul.f32 %v19016_v36, %v19015_v55  ;;  %v19020_v55 = vld [vmem:[#allocation240_spill] sm:$0xff] }
 0xc4b   :  { %8816 = vst.msk [vmem:[%s17675_s4 + $0x98] sm:$0xff] %vm3612_vm0, %v8624_v62  ;;  %8007 = vperm.xlu1 %9626, %v7525_v23   ;;  %v7688_v31 = vpop.permute.xlu1 %7687  ;;  %v7540_v23 = vld [vmem:[%s17674_s3 + $0x2b8] sm:$0xff]  ;;  %v19017_v62 = vld [vmem:[#allocation146_spill] sm:$0xff] }
 0xc4c   :  { %v8613_v39 = vadd.f32 %v7688_v31, %v7269_v56  ;;  %v7753_v14 = vpop.permute.xlu0 %7752  ;;  %v19018_v56 = vld [vmem:[#allocation6_spill] sm:$0xff] }
 0xc4d   :  { %v8626_v41 = vadd.f32 %v7753_v14, %v7282_v25  ;;  %8072 = vperm.xlu0 %9627, %v7538_v20   ;;  %v7284_v54 = vmul.f32 %v19018_v56, %v19017_v62  ;;  %v7529_v31 = vld [vmem:[%s17674_s3 + $0x260] sm:$0xff]  ;;  %v19019_v14 = vld [vmem:[#allocation135_spill] sm:$0xff] }
 0xc4e   :  { %8805 = vst.msk [vmem:[%s17675_s4 + $0x40] sm:$0xff] %vm3612_vm0, %v8613_v39  ;;  %v7273_v36 = vmul.f32 %v19020_v55, %v19019_v14  ;;  %v19024_v14 = vld [vmem:[#allocation2_spill] sm:$0xff] }
 0xc4f   :  { %8818 = vst.msk [vmem:[%s17675_s4 + $0xa8] sm:$0xff] %vm3612_vm0, %v8626_v41  ;;  %8017 = vperm.xlu1 %9626, %v7527_v3   ;;  %v7698_v20 = vpop.permute.xlu1 %7697  ;;  %v7542_v3 = vld [vmem:[%s17674_s3 + $0x2c8] sm:$0xff]  ;;  %v19021_v41 = vld [vmem:[#allocation60_spill] sm:$0xff] }
 0xc50   :  { %v8615_v19 = vadd.f32 %v7698_v20, %v7271_v44  ;;  %v7763_v25 = vpop.permute.xlu0 %7762  ;;  %v19022_v44 = vld [vmem:[#allocation10_spill] sm:$0xff]  ;;  %v7531_v20 = vld [vmem:[%s17674_s3 + $0x270] sm:$0xff] }
 0xc51   :  { %v8628_v39 = vadd.f32 %v7763_v25, %v7284_v54  ;;  %8082 = vperm.xlu0 %9627, %v7540_v23   ;;  %v7286_v62 = vmul.f32 %v19022_v44, %v19021_v41  ;;  %v19023_v25 = vld [vmem:[#allocation53_spill] sm:$0xff] }
 0xc52   :  { %8807 = vst.msk [vmem:[%s17675_s4 + $0x50] sm:$0xff] %vm3612_vm0, %v8615_v19  ;;  %v7275_v55 = vmul.f32 %v19024_v14, %v19023_v25  ;;  %v19028_v25 = vld [vmem:[#allocation144_spill] sm:$0xff] }
 0xc53   :  { %8820 = vst.msk [vmem:[%s17675_s4 + $0xb8] sm:$0xff] %vm3612_vm0, %v8628_v39  ;;  %8027 = vperm.xlu1 %9626, %v7529_v31   ;;  %v7708_v23 = vpop.permute.xlu1 %7707  ;;  %v7544_v31 = vld [vmem:[%s17674_s3 + $0x2d8] sm:$0xff]  ;;  %v19025_v39 = vld [vmem:[#allocation152_spill] sm:$0xff] }
 0xc54   :  { %v8617_v56 = vadd.f32 %v7708_v23, %v7273_v36  ;;  %v7773_v54 = vpop.permute.xlu0 %7772  ;;  %v19026_v36 = vld [vmem:[#allocation12_spill] sm:$0xff]  ;;  %v7533_v23 = vld [vmem:[%s17674_s3 + $0x280] sm:$0xff] }
 0xc55   :  { %v8630_v19 = vadd.f32 %v7773_v54, %v7286_v62  ;;  %8092 = vperm.xlu0 %9627, %v7542_v3   ;;  %v7288_v41 = vmul.f32 %v19026_v36, %v19025_v39  ;;  %v19027_v54 = vld [vmem:[#allocation141_spill] sm:$0xff] }
 0xc56   :  { %8809 = vst.msk [vmem:[%s17675_s4 + $0x60] sm:$0xff] %vm3612_vm0, %v8617_v56  ;;  %v7277_v14 = vmul.f32 %v19028_v25, %v19027_v54  ;;  %v19032_v54 = vld [vmem:[#allocation210_spill] sm:$0xff] }
 0xc57   :  { %8822 = vst.msk [vmem:[%s17675_s4 + $0xc8] sm:$0xff] %vm3612_vm0, %v8630_v19  ;;  %8037 = vperm.xlu1 %9626, %v7531_v20   ;;  %v7718_v3 = vpop.permute.xlu1 %7717  ;;  %v7546_v20 = vld [vmem:[%s17674_s3 + $0x2e8] sm:$0xff]  ;;  %v19029_v19 = vld [vmem:[#allocation62_spill] sm:$0xff] }
 0xc58   :  { %v8619_v44 = vadd.f32 %v7718_v3, %v7275_v55  ;;  %v7783_v62 = vpop.permute.xlu0 %7782  ;;  %v19030_v55 = vld [vmem:[#allocation219_spill] sm:$0xff]  ;;  %v7535_v3 = vld [vmem:[%s17674_s3 + $0x290] sm:$0xff] }
 0xc59   :  { %v8632_v56 = vadd.f32 %v7783_v62, %v7288_v41  ;;  %8102 = vperm.xlu0 %9627, %v7544_v31   ;;  %v7290_v39 = vmul.f32 %v19030_v55, %v19029_v19  ;;  %v19031_v62 = vld [vmem:[#allocation55_spill] sm:$0xff] }
 0xc5a   :  { %8811 = vst.msk [vmem:[%s17675_s4 + $0x70] sm:$0xff] %vm3612_vm0, %v8619_v44  ;;  %v7279_v25 = vmul.f32 %v19032_v54, %v19031_v62  ;;  %v19036_v62 = vld [vmem:[#allocation3_spill] sm:$0xff] }
 0xc5b   :  { %8824 = vst.msk [vmem:[%s17675_s4 + $0xd8] sm:$0xff] %vm3612_vm0, %v8632_v56  ;;  %8047 = vperm.xlu1 %9626, %v7533_v23   ;;  %v7728_v31 = vpop.permute.xlu1 %7727  ;;  %v7548_v23 = vld [vmem:[%s17674_s3 + $0x2f8] sm:$0xff]  ;;  %v19033_v56 = vld [vmem:[#allocation159_spill] sm:$0xff] }
 0xc5c   :  { %v8621_v36 = vadd.f32 %v7728_v31, %v7277_v14  ;;  %v7793_v41 = vpop.permute.xlu0 %7792  ;;  %v19034_v14 = vld [vmem:[#allocation14_spill] sm:$0xff] }
 0xc5d   :  { %v8634_v44 = vadd.f32 %v7793_v41, %v7290_v39  ;;  %8112 = vperm.xlu0 %9627, %v7546_v20   ;;  %v7292_v19 = vmul.f32 %v19034_v14, %v19033_v56  ;;  %v7537_v31 = vld [vmem:[%s17674_s3 + $0x2a0] sm:$0xff]  ;;  %v19035_v41 = vld [vmem:[#allocation148_spill] sm:$0xff] }
 0xc5e   :  { %8813 = vst.msk [vmem:[%s17675_s4 + $0x80] sm:$0xff] %vm3612_vm0, %v8621_v36  ;;  %v7281_v54 = vmul.f32 %v19036_v62, %v19035_v41  ;;  %v19040_v41 = vld [vmem:[#allocation5_spill] sm:$0xff] }
 0xc5f   :  { %8826 = vst.msk [vmem:[%s17675_s4 + $0xe8] sm:$0xff] %vm3612_vm0, %v8634_v44  ;;  %8057 = vperm.xlu1 %9626, %v7535_v3   ;;  %v7738_v20 = vpop.permute.xlu1 %7737  ;;  %v7550_v3 = vld [vmem:[%s17674_s3 + $0x308] sm:$0xff]  ;;  %v19037_v44 = vld [vmem:[#allocation64_spill] sm:$0xff] }
 0xc60   :  { %v8623_v55 = vadd.f32 %v7738_v20, %v7279_v25  ;;  %v7803_v39 = vpop.permute.xlu0 %7802  ;;  %v19038_v25 = vld [vmem:[#allocation9_spill] sm:$0xff]  ;;  %v7539_v20 = vld [vmem:[%s17674_s3 + $0x2b0] sm:$0xff] }
 0xc61   :  { %v8636_v36 = vadd.f32 %v7803_v39, %v7292_v19  ;;  %8122 = vperm.xlu0 %9627, %v7548_v23   ;;  %v7294_v56 = vmul.f32 %v19038_v25, %v19037_v44  ;;  %v19039_v39 = vld [vmem:[#allocation57_spill] sm:$0xff] }
 0xc62   :  { %8815 = vst.msk [vmem:[%s17675_s4 + $0x90] sm:$0xff] %vm3612_vm0, %v8623_v55  ;;  %v7283_v62 = vmul.f32 %v19040_v41, %v19039_v39  ;;  %v19044_v39 = vld [vmem:[#allocation7_spill] sm:$0xff] }
 0xc63   :  { %8828 = vst.msk [vmem:[%s17675_s4 + $0xf8] sm:$0xff] %vm3612_vm0, %v8636_v36  ;;  %8067 = vperm.xlu1 %9626, %v7537_v31   ;;  %v7748_v23 = vpop.permute.xlu1 %7747  ;;  %v7552_v31 = vld [vmem:[%s17674_s3 + $0x318] sm:$0xff] }
 0xc64   :  { %v8625_v14 = vadd.f32 %v7748_v23, %v7281_v54  ;;  %v7813_v19 = vpop.permute.xlu0 %7812  ;;  %v19041_v36 = vld [vmem:[#allocation165_spill] sm:$0xff]  ;;  %v19042_v54 = vld [vmem:[#allocation222_spill] sm:$0xff] }
 0xc65   :  { %v8638_v55 = vadd.f32 %v7813_v19, %v7294_v56  ;;  %8132 = vperm.xlu0 %9627, %v7550_v3   ;;  %v7296_v44 = vmul.f32 %v19042_v54, %v19041_v36  ;;  %v7541_v23 = vld [vmem:[%s17674_s3 + $0x2c0] sm:$0xff] }
 0xc66   :  { %8817 = vst.msk [vmem:[%s17675_s4 + $0xa0] sm:$0xff] %vm3612_vm0, %v8625_v14  ;;  %v19043_v19 = vld [vmem:[#allocation154_spill] sm:$0xff] }
 0xc67   :  { %8830 = vst.msk [vmem:[%s17675_s4 + $0x108] sm:$0xff] %vm3612_vm0, %v8638_v55  ;;  %8077 = vperm.xlu1 %9626, %v7539_v20   ;;  %v7758_v3 = vpop.permute.xlu1 %7757  ;;  %v7285_v41 = vmul.f32 %v19044_v39, %v19043_v19  ;;  %v7554_v20 = vld [vmem:[%s17674_s3 + $0x328] sm:$0xff]  ;;  %v19045_v55 = vld [vmem:[#allocation66_spill] sm:$0xff] }
 0xc68   :  { %v8627_v25 = vadd.f32 %v7758_v3, %v7283_v62  ;;  %v7823_v56 = vpop.permute.xlu0 %7822  ;;  %v7298_v62 = vmul.f32 %v14762_v60, %v19045_v55  ;;  %v7556_v60 = vld [vmem:[%s17674_s3 + $0x338] sm:$0xff] }
 0xc69   :  { %v8640_v14 = vadd.f32 %v7823_v56, %v7296_v44  ;;  %8142 = vperm.xlu0 %9627, %v7552_v31   ;;  %v7543_v44 = vld [vmem:[%s17674_s3 + $0x2d0] sm:$0xff]  ;;  %v19047_v56 = vld [vmem:[#allocation225_spill] sm:$0xff] }
 0xc6a   :  { %8819 = vst.msk [vmem:[%s17675_s4 + $0xb0] sm:$0xff] %vm3612_vm0, %v8627_v25  ;;  %v19046_v25 = vld [vmem:[#allocation59_spill] sm:$0xff] }
 0xc6b   :  { %8832 = vst.msk [vmem:[%s17675_s4 + $0x118] sm:$0xff] %vm3612_vm0, %v8640_v14  ;;  %8087 = vperm.xlu1 %9626, %v7541_v23   ;;  %v7768_v31 = vpop.permute.xlu1 %7767  ;;  %v7287_v19 = vmul.f32 %v19047_v56, %v19046_v25  ;;  %v19048_v23 = vld [vmem:[#allocation174_spill] sm:$0xff]  ;;  %v19049_v14 = vld [vmem:[#allocation228_spill] sm:$0xff] }
 0xc6c   :  { %v8629_v36 = vadd.f32 %v7768_v31, %v7285_v41  ;;  %v7833_v54 = vpop.permute.xlu0 %7832  ;;  %v7300_v39 = vmul.f32 %v19049_v14, %v19048_v23  ;;  %v19052_v14 = vld [vmem:[#allocation61_spill] sm:$0xff] }
 0xc6d   :  { %v8642_v3 = vadd.f32 %v7833_v54, %v7298_v62  ;;  %8152 = vperm.xlu0 %9627, %v7554_v20   ;;  %v7545_v62 = vld [vmem:[%s17674_s3 + $0x2e0] sm:$0xff] }
 0xc6e   :  { %8821 = vst.msk [vmem:[%s17675_s4 + $0xc0] sm:$0xff] %vm3612_vm0, %v8629_v36  ;;  %v19050_v36 = vld [vmem:[#allocation161_spill] sm:$0xff] }
 0xc6f   :  { %8834 = vst.msk [vmem:[%s17675_s4 + $0x128] sm:$0xff] %vm3612_vm0, %v8642_v3  ;;  %8097 = vperm.xlu1 %9626, %v7543_v44   ;;  %v7778_v41 = vpop.permute.xlu1 %7777  ;;  %v7289_v54 = vmul.f32 %v14785_v28, %v19050_v36  ;;  %v7558_v44 = vld [vmem:[%s17674_s3 + $0x348] sm:$0xff]  ;;  %v19051_v3 = vld [vmem:[#allocation70_spill] sm:$0xff] }
 0xc70   :  { %v8631_v20 = vadd.f32 %v7778_v41, %v7287_v19  ;;  %v7843_v55 = vpop.permute.xlu0 %7842  ;;  %v7302_v25 = vmul.f32 %v14809_v38, %v19051_v3  ;;  %v7560_v38 = vld [vmem:[%s17674_s3 + $0x358] sm:$0xff] }
 0xc71   :  { %v8644_v31 = vadd.f32 %v7843_v55, %v7300_v39  ;;  %8162 = vperm.xlu0 %9627, %v7556_v60   ;;  %v7547_v60 = vld [vmem:[%s17674_s3 + $0x2f0] sm:$0xff]  ;;  %v19053_v39 = vld [vmem:[#allocation13_spill] sm:$0xff] }
 0xc72   :  { %8823 = vst.msk [vmem:[%s17675_s4 + $0xd0] sm:$0xff] %vm3612_vm0, %v8631_v20  ;;  %v7291_v41 = vmul.f32 %v19053_v39, %v19052_v14  ;;  %v19054_v20 = vld [vmem:[#allocation69_spill] sm:$0xff]  ;;  %v7551_v39 = vld [vmem:[%s17674_s3 + $0x310] sm:$0xff] }
 0xc73   :  { %8836 = vst.msk [vmem:[%s17675_s4 + $0x138] sm:$0xff] %vm3612_vm0, %v8644_v31  ;;  %8107 = vperm.xlu1 %9626, %v7545_v62   ;;  %v7788_v56 = vpop.permute.xlu1 %7787  ;;  %v19055_v55 = vld [vmem:[#allocation217_spill] sm:$0xff] }
 0xc74   :  { %v8633_v28 = vadd.f32 %v7788_v56, %v7289_v54  ;;  %v7853_v19 = vpop.permute.xlu0 %7852  ;;  %v7304_v62 = vmul.f32 %v19055_v55, %v19054_v20  ;;  %v19059_v20 = vld [vmem:[#allocation32_spill] sm:$0xff] }
 0xc75   :  { %v8646_v23 = vadd.f32 %v7853_v19, %v7302_v25  ;;  %8172 = vperm.xlu0 %9627, %v7558_v44   ;;  %v7549_v44 = vld [vmem:[%s17674_s3 + $0x300] sm:$0xff]  ;;  %v19056_v25 = vld [vmem:[#allocation167_spill] sm:$0xff] }
 0xc76   :  { %8825 = vst.msk [vmem:[%s17675_s4 + $0xe0] sm:$0xff] %vm3612_vm0, %v8633_v28  ;;  %v7293_v56 = vmul.f32 %v14875_v33, %v19056_v25  ;;  %v7562_v28 = vld [vmem:[%s17674_s3 + $0x368] sm:$0xff]  ;;  %v19057_v19 = vld [vmem:[#allocation74_spill] sm:$0xff] }
 0xc77   :  { %8838 = vst.msk [vmem:[%s17675_s4 + $0x148] sm:$0xff] %vm3612_vm0, %v8646_v23  ;;  %8117 = vperm.xlu1 %9626, %v7547_v60   ;;  %v7798_v31 = vpop.permute.xlu1 %7797  ;;  %v7306_v60 = vmul.f32 %v14845_v50, %v19057_v19  ;;  %v7564_v50 = vld [vmem:[%s17674_s3 + $0x378] sm:$0xff]  ;;  %v7553_v25 = vld [vmem:[%s17674_s3 + $0x320] sm:$0xff] }
 0xc78   :  { %v8635_v36 = vadd.f32 %v7798_v31, %v7291_v41  ;;  %v7863_v54 = vpop.permute.xlu0 %7862  ;;  %v19061_v31 = vld [vmem:[#allocation15_spill] sm:$0xff] }
 0xc79   :  { %v8648_v3 = vadd.f32 %v7863_v54, %v7304_v62  ;;  %8182 = vperm.xlu0 %9627, %v7560_v38   ;;  %v19058_v38 = vld [vmem:[#allocation63_spill] sm:$0xff]  ;;  %v19060_v62 = vld [vmem:[#allocation73_spill] sm:$0xff] }
 0xc7a   :  { %8827 = vst.msk [vmem:[%s17675_s4 + $0xf0] sm:$0xff] %vm3612_vm0, %v8635_v36  ;;  %v7295_v55 = vmul.f32 %v19059_v20, %v19058_v38  ;;  %v7308_v36 = vmul.f32 %v19061_v31, %v19060_v62  ;;  %v7555_v38 = vld [vmem:[%s17674_s3 + $0x330] sm:$0xff]  ;;  %v7568_v31 = vld [vmem:[%s17674_s3 + $0x398] sm:$0xff] }
 0xc7b   :  { %8840 = vst.msk [vmem:[%s17675_s4 + $0x158] sm:$0xff] %vm3612_vm0, %v8648_v3  ;;  %8127 = vperm.xlu1 %9626, %v7549_v44   ;;  %v7808_v23 = vpop.permute.xlu1 %7807 }
 0xc7c   :  { %v8637_v33 = vadd.f32 %v7808_v23, %v7293_v56  ;;  %v7873_v14 = vpop.permute.xlu0 %7872  ;;  %v19063_v23 = vld [vmem:[#allocation78_spill] sm:$0xff] }
 0xc7d   :  { %v8650_v41 = vadd.f32 %v7873_v14, %v7306_v60  ;;  %8192 = vperm.xlu0 %9627, %v7562_v28   ;;  %v19062_v28 = vld [vmem:[#allocation176_spill] sm:$0xff]  ;;  %v7566_v60 = vld [vmem:[%s17674_s3 + $0x388] sm:$0xff] }
 0xc7e   :  { %8829 = vst.msk [vmem:[%s17675_s4 + $0x100] sm:$0xff] %vm3612_vm0, %v8637_v33  ;;  %v7297_v19 = vmul.f32 %v14910_v9, %v19062_v28  ;;  %v19064_v33 = vld [vmem:[#allocation21_spill] sm:$0xff]  ;;  %v7557_v28 = vld [vmem:[%s17674_s3 + $0x340] sm:$0xff] }
 0xc7f   :  { %8842 = vst.msk [vmem:[%s17675_s4 + $0x168] sm:$0xff] %vm3612_vm0, %v8650_v41  ;;  %8137 = vperm.xlu1 %9626, %v7551_v39   ;;  %v7818_v54 = vpop.permute.xlu1 %7817  ;;  %v7310_v14 = vmul.f32 %v19064_v33, %v19063_v23  ;;  %v19070_v23 = vld [vmem:[#allocation241_spill] sm:$0xff] }
 0xc80   :  { %v8639_v44 = vadd.f32 %v7818_v54, %v7295_v55  ;;  %v7883_v3 = vpop.permute.xlu0 %7882  ;;  %v19065_v55 = vld [vmem:[#allocation65_spill] sm:$0xff]  ;;  %v19068_v54 = vld [vmem:[#allocation190_spill] sm:$0xff] }
 0xc81   :  { %v8652_v56 = vadd.f32 %v7883_v3, %v7308_v36  ;;  %8202 = vperm.xlu0 %9627, %v7564_v50   ;;  %v19066_v50 = vld [vmem:[#allocation19_spill] sm:$0xff]  ;;  %v19067_v36 = vld [vmem:[#allocation77_spill] sm:$0xff] }
 0xc82   :  { %8831 = vst.msk [vmem:[%s17675_s4 + $0x110] sm:$0xff] %vm3612_vm0, %v8639_v44  ;;  %v7299_v62 = vmul.f32 %v19066_v50, %v19065_v55  ;;  %v7312_v44 = vmul.f32 %v19068_v54, %v19067_v36  ;;  %v7559_v50 = vld [vmem:[%s17674_s3 + $0x350] sm:$0xff] }
 0xc83   :  { %8844 = vst.msk [vmem:[%s17675_s4 + $0x178] sm:$0xff] %vm3612_vm0, %v8652_v56  ;;  %8147 = vperm.xlu1 %9626, %v7553_v25   ;;  %v7828_v39 = vpop.permute.xlu1 %7827  ;;  %v19074_v36 = vld [vmem:[#allocation36_spill] sm:$0xff] }
 0xc84   :  { %v8641_v9 = vadd.f32 %v7828_v39, %v7297_v19  ;;  %v7893_v41 = vpop.permute.xlu0 %7892  ;;  %v19071_v39 = vld [vmem:[#allocation82_spill] sm:$0xff] }
 0xc85   :  { %v8654_v20 = vadd.f32 %v7893_v41, %v7310_v14  ;;  %8212 = vperm.xlu0 %9627, %v7566_v60   ;;  %v19069_v60 = vld [vmem:[#allocation68_spill] sm:$0xff]  ;;  %v7570_v14 = vld [vmem:[%s17674_s3 + $0x3a8] sm:$0xff] }
 0xc86   :  { %8833 = vst.msk [vmem:[%s17675_s4 + $0x120] sm:$0xff] %vm3612_vm0, %v8641_v9  ;;  %v7301_v33 = vmul.f32 %v19070_v23, %v19069_v60  ;;  %v19072_v9 = vld [vmem:[#allocation242_spill] sm:$0xff] }
 0xc87   :  { %8846 = vst.msk [vmem:[%s17675_s4 + $0x188] sm:$0xff] %vm3612_vm0, %v8654_v20  ;;  %8157 = vperm.xlu1 %9626, %v7555_v38   ;;  %v7838_v3 = vpop.permute.xlu1 %7837  ;;  %v7314_v41 = vmul.f32 %v19072_v9, %v19071_v39  ;;  %v7561_v23 = vld [vmem:[%s17674_s3 + $0x360] sm:$0xff]  ;;  %v19078_v39 = vld [vmem:[#allocation244_spill] sm:$0xff] }
 0xc88   :  { %v8643_v25 = vadd.f32 %v7838_v3, %v7299_v62  ;;  %v7903_v56 = vpop.permute.xlu0 %7902  ;;  %v19075_v3 = vld [vmem:[#allocation81_spill] sm:$0xff] }
 0xc89   :  { %v8656_v19 = vadd.f32 %v7903_v56, %v7312_v44  ;;  %8222 = vperm.xlu0 %9627, %v7568_v31   ;;  %v19073_v31 = vld [vmem:[#allocation67_spill] sm:$0xff]  ;;  %v7572_v44 = vld [vmem:[%s17674_s3 + $0x3b8] sm:$0xff] }
 0xc8a   :  { %8835 = vst.msk [vmem:[%s17675_s4 + $0x130] sm:$0xff] %vm3612_vm0, %v8643_v25  ;;  %v7303_v54 = vmul.f32 %v19074_v36, %v19073_v31  ;;  %v19076_v25 = vld [vmem:[#allocation34_spill] sm:$0xff]  ;;  %v7563_v36 = vld [vmem:[%s17674_s3 + $0x370] sm:$0xff] }
 0xc8b   :  { %8848 = vst.msk [vmem:[%s17675_s4 + $0x198] sm:$0xff] %vm3612_vm0, %v8656_v19  ;;  %8167 = vperm.xlu1 %9626, %v7557_v28   ;;  %v7848_v38 = vpop.permute.xlu1 %7847  ;;  %v7316_v56 = vmul.f32 %v19076_v25, %v19075_v3  ;;  %v19082_v3 = vld [vmem:[#allocation243_spill] sm:$0xff] }
 0xc8c   :  { %v8645_v20 = vadd.f32 %v7848_v38, %v7301_v33  ;;  %v7913_v55 = vpop.permute.xlu0 %7912  ;;  %v19079_v38 = vld [vmem:[#allocation86_spill] sm:$0xff] }
 0xc8d   :  { %v8658_v62 = vadd.f32 %v7913_v55, %v7314_v41  ;;  %8232 = vperm.xlu0 %9627, %v7570_v14   ;;  %v19077_v14 = vld [vmem:[#allocation72_spill] sm:$0xff]  ;;  %v7574_v41 = vld [vmem:[%s17674_s3 + $0x3c8] sm:$0xff] }
 0xc8e   :  { %8837 = vst.msk [vmem:[%s17675_s4 + $0x140] sm:$0xff] %vm3612_vm0, %v8645_v20  ;;  %v7305_v9 = vmul.f32 %v19078_v39, %v19077_v14  ;;  %v19080_v20 = vld [vmem:[#allocation249_spill] sm:$0xff]  ;;  %v7565_v39 = vld [vmem:[%s17674_s3 + $0x380] sm:$0xff] }
 0xc8f   :  { %8850 = vst.msk [vmem:[%s17675_s4 + $0x1a8] sm:$0xff] %vm3612_vm0, %v8658_v62  ;;  %8177 = vperm.xlu1 %9626, %v7559_v50   ;;  %v7858_v28 = vpop.permute.xlu1 %7857  ;;  %v7318_v55 = vmul.f32 %v19080_v20, %v19079_v38  ;;  %v19086_v38 = vld [vmem:[#allocation245_spill] sm:$0xff] }
 0xc90   :  { %v8647_v19 = vadd.f32 %v7858_v28, %v7303_v54  ;;  %v7923_v60 = vpop.permute.xlu0 %7922  ;;  %v19083_v28 = vld [vmem:[#allocation85_spill] sm:$0xff] }
 0xc91   :  { %v8660_v33 = vadd.f32 %v7923_v60, %v7316_v56  ;;  %8242 = vperm.xlu0 %9627, %v7572_v44   ;;  %v19081_v44 = vld [vmem:[#allocation71_spill] sm:$0xff]  ;;  %v7576_v56 = vld [vmem:[%s17674_s3 + $0x3d8] sm:$0xff] }
 0xc92   :  { %8839 = vst.msk [vmem:[%s17675_s4 + $0x150] sm:$0xff] %vm3612_vm0, %v8647_v19  ;;  %v7307_v25 = vmul.f32 %v19082_v3, %v19081_v44  ;;  %v19084_v19 = vld [vmem:[#allocation248_spill] sm:$0xff] }
 0xc93   :  { %8852 = vst.msk [vmem:[%s17675_s4 + $0x1b8] sm:$0xff] %vm3612_vm0, %v8660_v33  ;;  %8187 = vperm.xlu1 %9626, %v7561_v23   ;;  %v7868_v50 = vpop.permute.xlu1 %7867  ;;  %v7320_v60 = vmul.f32 %v19084_v19, %v19083_v28  ;;  %v7567_v3 = vld [vmem:[%s17674_s3 + $0x390] sm:$0xff]  ;;  %v19090_v28 = vld [vmem:[#allocation118_spill] sm:$0xff] }
 0xc94   :  { %v8649_v62 = vadd.f32 %v7868_v50, %v7305_v9  ;;  %v7933_v31 = vpop.permute.xlu0 %7932  ;;  %v19087_v50 = vld [vmem:[#allocation90_spill] sm:$0xff] }
 0xc95   :  { %v8662_v54 = vadd.f32 %v7933_v31, %v7318_v55  ;;  %8252 = vperm.xlu0 %9627, %v7574_v41   ;;  %v19085_v41 = vld [vmem:[#allocation76_spill] sm:$0xff]  ;;  %v7578_v55 = vld [vmem:[%s17674_s3 + $0x3e8] sm:$0xff] }
 0xc96   :  { %8841 = vst.msk [vmem:[%s17675_s4 + $0x160] sm:$0xff] %vm3612_vm0, %v8649_v62  ;;  %v7309_v20 = vmul.f32 %v19086_v38, %v19085_v41  ;;  %v19088_v62 = vld [vmem:[#allocation257_spill] sm:$0xff]  ;;  %v7569_v38 = vld [vmem:[%s17674_s3 + $0x3a0] sm:$0xff] }
 0xc97   :  { %8854 = vst.msk [vmem:[%s17675_s4 + $0x1c8] sm:$0xff] %vm3612_vm0, %v8662_v54  ;;  %8197 = vperm.xlu1 %9626, %v7563_v36   ;;  %v7878_v23 = vpop.permute.xlu1 %7877  ;;  %v7322_v31 = vmul.f32 %v19088_v62, %v19087_v50  ;;  %v19094_v50 = vld [vmem:[#allocation247_spill] sm:$0xff] }
 0xc98   :  { %v8651_v33 = vadd.f32 %v7878_v23, %v7307_v25  ;;  %v7943_v14 = vpop.permute.xlu0 %7942  ;;  %v19091_v23 = vld [vmem:[#allocation89_spill] sm:$0xff] }
 0xc99   :  { %v8664_v9 = vadd.f32 %v7943_v14, %v7320_v60  ;;  %8262 = vperm.xlu0 %9627, %v7576_v56   ;;  %v19089_v56 = vld [vmem:[#allocation75_spill] sm:$0xff]  ;;  %v7580_v60 = vld [vmem:[%s17674_s3 + $0x3f8] sm:$0xff] }
 0xc9a   :  { %8843 = vst.msk [vmem:[%s17675_s4 + $0x170] sm:$0xff] %vm3612_vm0, %v8651_v33  ;;  %v7311_v19 = vmul.f32 %v19090_v28, %v19089_v56  ;;  %v19092_v33 = vld [vmem:[#allocation254_spill] sm:$0xff]  ;;  %v7571_v28 = vld [vmem:[%s17674_s3 + $0x3b0] sm:$0xff] }
 0xc9b   :  { %8856 = vst.msk [vmem:[%s17675_s4 + $0x1d8] sm:$0xff] %vm3612_vm0, %v8664_v9  ;;  %8207 = vperm.xlu1 %9626, %v7565_v39   ;;  %v7888_v36 = vpop.permute.xlu1 %7887  ;;  %v7324_v14 = vmul.f32 %v19092_v33, %v19091_v23  ;;  %v19098_v23 = vld [vmem:[#allocation246_spill] sm:$0xff] }
 0xc9c   :  { %v8653_v54 = vadd.f32 %v7888_v36, %v7309_v20  ;;  %v7953_v44 = vpop.permute.xlu0 %7952  ;;  %v19095_v36 = vld [vmem:[#allocation94_spill] sm:$0xff] }
 0xc9d   :  { %v8666_v25 = vadd.f32 %v7953_v44, %v7322_v31  ;;  %8272 = vperm.xlu0 %9627, %v7578_v55   ;;  %v19093_v55 = vld [vmem:[#allocation80_spill] sm:$0xff]  ;;  %v7582_v31 = vld [vmem:[%s17674_s3 + $0x408] sm:$0xff] }
 0xc9e   :  { %8845 = vst.msk [vmem:[%s17675_s4 + $0x180] sm:$0xff] %vm3612_vm0, %v8653_v54  ;;  %v7313_v62 = vmul.f32 %v19094_v50, %v19093_v55  ;;  %v19096_v54 = vld [vmem:[#allocation263_spill] sm:$0xff]  ;;  %v7573_v50 = vld [vmem:[%s17674_s3 + $0x3c0] sm:$0xff] }
 0xc9f   :  { %8858 = vst.msk [vmem:[%s17675_s4 + $0x1e8] sm:$0xff] %vm3612_vm0, %v8666_v25  ;;  %8217 = vperm.xlu1 %9626, %v7567_v3   ;;  %v7898_v39 = vpop.permute.xlu1 %7897  ;;  %v7326_v44 = vmul.f32 %v19096_v54, %v19095_v36  ;;  %v19102_v36 = vld [vmem:[#allocation251_spill] sm:$0xff] }
 0xca0   :  { %v8655_v9 = vadd.f32 %v7898_v39, %v7311_v19  ;;  %v7963_v41 = vpop.permute.xlu0 %7962  ;;  %v19099_v39 = vld [vmem:[#allocation93_spill] sm:$0xff] }
 0xca1   :  { %v8668_v20 = vadd.f32 %v7963_v41, %v7324_v14  ;;  %8282 = vperm.xlu0 %9627, %v7580_v60   ;;  %v19097_v60 = vld [vmem:[#allocation79_spill] sm:$0xff]  ;;  %v7584_v14 = vld [vmem:[%s17674_s3 + $0x418] sm:$0xff] }
 0xca2   :  { %8847 = vst.msk [vmem:[%s17675_s4 + $0x190] sm:$0xff] %vm3612_vm0, %v8655_v9  ;;  %v7315_v33 = vmul.f32 %v19098_v23, %v19097_v60  ;;  %v19100_v9 = vld [vmem:[#allocation261_spill] sm:$0xff]  ;;  %v7575_v23 = vld [vmem:[%s17674_s3 + $0x3d0] sm:$0xff] }
 0xca3   :  { %8860 = vst.msk [vmem:[%s17675_s4 + $0x1f8] sm:$0xff] %vm3612_vm0, %v8668_v20  ;;  %8227 = vperm.xlu1 %9626, %v7569_v38   ;;  %v7908_v3 = vpop.permute.xlu1 %7907  ;;  %v7328_v41 = vmul.f32 %v19100_v9, %v19099_v39  ;;  %v19106_v39 = vld [vmem:[#allocation250_spill] sm:$0xff] }
 0xca4   :  { %v8657_v25 = vadd.f32 %v7908_v3, %v7313_v62  ;;  %v7973_v56 = vpop.permute.xlu0 %7972  ;;  %v19103_v3 = vld [vmem:[#allocation96_spill] sm:$0xff] }
 0xca5   :  { %v8670_v19 = vadd.f32 %v7973_v56, %v7326_v44  ;;  %8292 = vperm.xlu0 %9627, %v7582_v31   ;;  %v19101_v31 = vld [vmem:[#allocation84_spill] sm:$0xff]  ;;  %v7586_v44 = vld [vmem:[%s17674_s3 + $0x428] sm:$0xff] }
 0xca6   :  { %8849 = vst.msk [vmem:[%s17675_s4 + $0x1a0] sm:$0xff] %vm3612_vm0, %v8657_v25  ;;  %v7317_v54 = vmul.f32 %v19102_v36, %v19101_v31  ;;  %v19104_v25 = vld [vmem:[#allocation267_spill] sm:$0xff]  ;;  %v7577_v36 = vld [vmem:[%s17674_s3 + $0x3e0] sm:$0xff] }
 0xca7   :  { %8862 = vst.msk [vmem:[%s17675_s4 + $0x208] sm:$0xff] %vm3612_vm0, %v8670_v19  ;;  %8237 = vperm.xlu1 %9626, %v7571_v28   ;;  %v7918_v38 = vpop.permute.xlu1 %7917  ;;  %v7330_v56 = vmul.f32 %v19104_v25, %v19103_v3  ;;  %v19110_v3 = vld [vmem:[#allocation253_spill] sm:$0xff] }
 0xca8   :  { %v8659_v20 = vadd.f32 %v7918_v38, %v7315_v33  ;;  %v7983_v55 = vpop.permute.xlu0 %7982  ;;  %v19107_v38 = vld [vmem:[#allocation43_spill] sm:$0xff] }
 0xca9   :  { %v8672_v62 = vadd.f32 %v7983_v55, %v7328_v41  ;;  %8302 = vperm.xlu0 %9627, %v7584_v14   ;;  %v19105_v14 = vld [vmem:[#allocation83_spill] sm:$0xff]  ;;  %v7588_v41 = vld [vmem:[%s17674_s3 + $0x438] sm:$0xff] }
 0xcaa   :  { %8851 = vst.msk [vmem:[%s17675_s4 + $0x1b0] sm:$0xff] %vm3612_vm0, %v8659_v20  ;;  %v7319_v9 = vmul.f32 %v19106_v39, %v19105_v14  ;;  %v19108_v20 = vld [vmem:[#allocation265_spill] sm:$0xff]  ;;  %v7579_v14 = vld [vmem:[%s17674_s3 + $0x3f0] sm:$0xff] }
 0xcab   :  { %8864 = vst.msk [vmem:[%s17675_s4 + $0x218] sm:$0xff] %vm3612_vm0, %v8672_v62  ;;  %8247 = vperm.xlu1 %9626, %v7573_v50   ;;  %v7928_v28 = vpop.permute.xlu1 %7927  ;;  %v7332_v55 = vmul.f32 %v19108_v20, %v19107_v38  ;;  %v19114_v20 = vld [vmem:[#allocation99_spill] sm:$0xff] }
 0xcac   :  { %v8661_v19 = vadd.f32 %v7928_v28, %v7317_v54  ;;  %v7993_v60 = vpop.permute.xlu0 %7992  ;;  %v19111_v28 = vld [vmem:[#allocation100_spill] sm:$0xff] }
 0xcad   :  { %v8674_v33 = vadd.f32 %v7993_v60, %v7330_v56  ;;  %8312 = vperm.xlu0 %9627, %v7586_v44   ;;  %v19109_v44 = vld [vmem:[#allocation88_spill] sm:$0xff]  ;;  %v7590_v56 = vld [vmem:[%s17674_s3 + $0x448] sm:$0xff] }
 0xcae   :  { %8853 = vst.msk [vmem:[%s17675_s4 + $0x1c0] sm:$0xff] %vm3612_vm0, %v8661_v19  ;;  %v7321_v25 = vmul.f32 %v19110_v3, %v19109_v44  ;;  %v7334_v19 = vmul.f32 %v15252_v8, %v19111_v28  ;;  %v7592_v8 = vld [vmem:[%s17674_s3 + $0x458] sm:$0xff]  ;;  %v19115_v44 = vld [vmem:[#allocation92_spill] sm:$0xff] }
 0xcaf   :  { %8866 = vst.msk [vmem:[%s17675_s4 + $0x228] sm:$0xff] %vm3612_vm0, %v8674_v33  ;;  %8257 = vperm.xlu1 %9626, %v7575_v23   ;;  %v7938_v50 = vpop.permute.xlu1 %7937  ;;  %v19116_v3 = vld [vmem:[#allocation256_spill] sm:$0xff] }
 0xcb0   :  { %v8663_v62 = vadd.f32 %v7938_v50, %v7319_v9  ;;  %v8003_v31 = vpop.permute.xlu0 %8002  ;;  %v19112_v9 = vld [vmem:[#allocation87_spill] sm:$0xff] }
 0xcb1   :  { %v8676_v54 = vadd.f32 %v8003_v31, %v7332_v55  ;;  %8322 = vperm.xlu0 %9627, %v7588_v41   ;;  %v19113_v41 = vld [vmem:[#allocation252_spill] sm:$0xff]  ;;  %v7336_v55 = vmul.f32 %v15237_v16, %v19114_v20  ;;  %v7594_v16 = vld [vmem:[%s17674_s3 + $0x468] sm:$0xff] }
 0xcb2   :  { %8855 = vst.msk [vmem:[%s17675_s4 + $0x1d0] sm:$0xff] %vm3612_vm0, %v8663_v62  ;;  %v7323_v38 = vmul.f32 %v19113_v41, %v19112_v9  ;;  %v19119_v9 = vld [vmem:[#allocation255_spill] sm:$0xff] }
 0xcb3   :  { %8868 = vst.msk [vmem:[%s17675_s4 + $0x238] sm:$0xff] %vm3612_vm0, %v8676_v54  ;;  %8267 = vperm.xlu1 %9626, %v7577_v36   ;;  %v7948_v60 = vpop.permute.xlu1 %7947  ;;  %v7581_v36 = vld [vmem:[%s17674_s3 + $0x400] sm:$0xff] }
 0xcb4   :  { %v8665_v23 = vadd.f32 %v7948_v60, %v7321_v25  ;;  %v8013_v33 = vpop.permute.xlu0 %8012  ;;  %v7325_v25 = vmul.f32 %v19116_v3, %v19115_v44  ;;  %v19123_v44 = vld [vmem:[#allocation259_spill] sm:$0xff] }
 0xcb5   :  { %v8678_v39 = vadd.f32 %v8013_v33, %v7334_v19  ;;  %8332 = vperm.xlu0 %9627, %v7590_v56   ;;  %v19117_v56 = vld [vmem:[#allocation108_spill] sm:$0xff] }
 0xcb6   :  { %8857 = vst.msk [vmem:[%s17675_s4 + $0x1e0] sm:$0xff] %vm3612_vm0, %v8665_v23  ;;  %v7338_v28 = vmul.f32 %v15298_v22, %v19117_v56  ;;  %v7583_v33 = vld [vmem:[%s17674_s3 + $0x410] sm:$0xff]  ;;  %v7596_v22 = vld [vmem:[%s17674_s3 + $0x478] sm:$0xff] }
 0xcb7   :  { %8870 = vst.msk [vmem:[%s17675_s4 + $0x248] sm:$0xff] %vm3612_vm0, %v8678_v39  ;;  %8277 = vperm.xlu1 %9626, %v7579_v14   ;;  %v7958_v50 = vpop.permute.xlu1 %7957  ;;  %v19118_v39 = vld [vmem:[#allocation91_spill] sm:$0xff] }
 0xcb8   :  { %v8667_v62 = vadd.f32 %v7958_v50, %v7323_v38  ;;  %v8023_v31 = vpop.permute.xlu0 %8022  ;;  %v7327_v41 = vmul.f32 %v19119_v9, %v19118_v39  ;;  %v19120_v38 = vld [vmem:[#allocation107_spill] sm:$0xff]  ;;  %v19126_v39 = vld [vmem:[#allocation258_spill] sm:$0xff] }
 0xcb9   :  { %v8680_v54 = vadd.f32 %v8023_v31, %v7336_v55  ;;  %8342 = vperm.xlu0 %9627, %v7592_v8   ;;  %v19121_v8 = vld [vmem:[#allocation270_spill] sm:$0xff] }
 0xcba   :  { %8859 = vst.msk [vmem:[%s17675_s4 + $0x1f0] sm:$0xff] %vm3612_vm0, %v8667_v62  ;;  %v7340_v20 = vmul.f32 %v19121_v8, %v19120_v38  ;;  %v7585_v31 = vld [vmem:[%s17674_s3 + $0x420] sm:$0xff] }
 0xcbb   :  { %8872 = vst.msk [vmem:[%s17675_s4 + $0x258] sm:$0xff] %vm3612_vm0, %v8680_v54  ;;  %8287 = vperm.xlu1 %9626, %v7581_v36   ;;  %v7968_v19 = vpop.permute.xlu1 %7967  ;;  %v19122_v54 = vld [vmem:[#allocation180_spill] sm:$0xff] }
 0xcbc   :  { %v8669_v60 = vadd.f32 %v7968_v19, %v7325_v25  ;;  %v8033_v23 = vpop.permute.xlu0 %8032  ;;  %v7329_v3 = vmul.f32 %v19123_v44, %v19122_v54  ;;  %v7598_v25 = vld [vmem:[%s17674_s3 + $0x488] sm:$0xff]  ;;  %v19130_v54 = vld [vmem:[#allocation121_spill] sm:$0xff] }
 0xcbd   :  { %v8682_v14 = vadd.f32 %v8033_v23, %v7338_v28  ;;  %8352 = vperm.xlu0 %9627, %v7594_v16   ;;  %v19124_v16 = vld [vmem:[#allocation115_spill] sm:$0xff]  ;;  %v7587_v23 = vld [vmem:[%s17674_s3 + $0x430] sm:$0xff]  ;;  %v7346_v44 = vmul.f32 %v15409_v53, %v19130_v54  ;;  %v7604_v53 = vld [vmem:[%s17674_s3 + $0x4b8] sm:$0xff] }
 0xcbe   :  { %8861 = vst.msk [vmem:[%s17675_s4 + $0x200] sm:$0xff] %vm3612_vm0, %v8669_v60  ;;  %v7342_v56 = vmul.f32 %v15359_v12, %v19124_v16  ;;  %v7600_v12 = vld [vmem:[%s17674_s3 + $0x498] sm:$0xff] }
 0xcbf   :  { %8874 = vst.msk [vmem:[%s17675_s4 + $0x268] sm:$0xff] %vm3612_vm0, %v8682_v14  ;;  %8297 = vperm.xlu1 %9626, %v7583_v33   ;;  %v7978_v55 = vpop.permute.xlu1 %7977  ;;  %v19125_v14 = vld [vmem:[#allocation95_spill] sm:$0xff] }
 0xcc0   :  { %v8671_v50 = vadd.f32 %v7978_v55, %v7327_v41  ;;  %v8043_v62 = vpop.permute.xlu0 %8042  ;;  %v7331_v9 = vmul.f32 %v19126_v39, %v19125_v14  ;;  %v19127_v41 = vld [vmem:[#allocation187_spill] sm:$0xff]  ;;  %v7589_v55 = vld [vmem:[%s17674_s3 + $0x440] sm:$0xff] }
 0xcc1   :  { %v8684_v36 = vadd.f32 %v8043_v62, %v7340_v20  ;;  %8362 = vperm.xlu0 %9627, %v7596_v22   ;;  %v7344_v22 = vmul.f32 %v15339_v15, %v19127_v41  ;;  %v19128_v62 = vld [vmem:[#allocation101_spill] sm:$0xff]  ;;  %v7602_v15 = vld [vmem:[%s17674_s3 + $0x4a8] sm:$0xff]  ;;  %v7593_v41 = vld [vmem:[%s17674_s3 + $0x460] sm:$0xff] }
 0xcc2   :  { %8863 = vst.msk [vmem:[%s17675_s4 + $0x210] sm:$0xff] %vm3612_vm0, %v8671_v50 }
 0xcc3   :  { %8876 = vst.msk [vmem:[%s17675_s4 + $0x278] sm:$0xff] %vm3612_vm0, %v8684_v36  ;;  %8307 = vperm.xlu1 %9626, %v7585_v31   ;;  %v7988_v28 = vpop.permute.xlu1 %7987  ;;  %v19129_v31 = vld [vmem:[#allocation262_spill] sm:$0xff] }
 0xcc4   :  { %v8673_v19 = vadd.f32 %v7988_v28, %v7329_v3  ;;  %v8053_v60 = vpop.permute.xlu0 %8052  ;;  %v7333_v36 = vmul.f32 %v19129_v31, %v19128_v62 }
 0xcc5   :  { %v8686_v33 = vadd.f32 %v8053_v60, %v7342_v56  ;;  %8372 = vperm.xlu0 %9627, %v7598_v25   ;;  %v7591_v56 = vld [vmem:[%s17674_s3 + $0x450] sm:$0xff] }
 0xcc6   :  { %8865 = vst.msk [vmem:[%s17675_s4 + $0x220] sm:$0xff] %vm3612_vm0, %v8673_v19  ;;  %v19131_v19 = vld [vmem:[#allocation178_spill] sm:$0xff]  ;;  %v19132_v60 = vld [vmem:[#allocation260_spill] sm:$0xff] }
 0xcc7   :  { %8878 = vst.msk [vmem:[%s17675_s4 + $0x288] sm:$0xff] %vm3612_vm0, %v8686_v33  ;;  %8317 = vperm.xlu1 %9626, %v7587_v23   ;;  %v7998_v38 = vpop.permute.xlu1 %7997  ;;  %v7335_v23 = vmul.f32 %v19132_v60, %v19131_v19  ;;  %v19133_v33 = vld [vmem:[#allocation120_spill] sm:$0xff] }
 0xcc8   :  { %v8675_v8 = vadd.f32 %v7998_v38, %v7331_v9  ;;  %v8063_v20 = vpop.permute.xlu0 %8062  ;;  %v7348_v14 = vmul.f32 %v15397_v51, %v19133_v33  ;;  %v19134_v38 = vld [vmem:[#allocation109_spill] sm:$0xff]  ;;  %v7606_v51 = vld [vmem:[%s17674_s3 + $0x4c8] sm:$0xff] }
 0xcc9   :  { %v8688_v50 = vadd.f32 %v8063_v20, %v7344_v22  ;;  %8382 = vperm.xlu0 %9627, %v7600_v12   ;;  %v19140_v33 = vld [vmem:[#allocation111_spill] sm:$0xff] }
 0xcca   :  { %8867 = vst.msk [vmem:[%s17675_s4 + $0x230] sm:$0xff] %vm3612_vm0, %v8675_v8  ;;  %v19135_v8 = vld [vmem:[#allocation266_spill] sm:$0xff] }
 0xccb   :  { %8880 = vst.msk [vmem:[%s17675_s4 + $0x298] sm:$0xff] %vm3612_vm0, %v8688_v50  ;;  %8327 = vperm.xlu1 %9626, %v7589_v55   ;;  %v8008_v3 = vpop.permute.xlu1 %8007  ;;  %v7337_v20 = vmul.f32 %v19135_v8, %v19134_v38  ;;  %v19136_v55 = vld [vmem:[#allocation125_spill] sm:$0xff] }
 0xccc   :  { %v8677_v25 = vadd.f32 %v8008_v3, %v7333_v36  ;;  %v8073_v16 = vpop.permute.xlu0 %8072  ;;  %v7350_v50 = vmul.f32 %v15443_v35, %v19136_v55  ;;  %v19138_v3 = vld [vmem:[#allocation264_spill] sm:$0xff]  ;;  %v7608_v35 = vld [vmem:[%s17674_s3 + $0x4d8] sm:$0xff]  ;;  %v19144_v55 = vld [vmem:[#allocation110_spill] sm:$0xff] }
 0xccd   :  { %v8690_v28 = vadd.f32 %v8073_v16, %v7346_v44  ;;  %8392 = vperm.xlu0 %9627, %v7602_v15   ;;  %v7595_v15 = vld [vmem:[%s17674_s3 + $0x470] sm:$0xff]  ;;  %v19137_v44 = vld [vmem:[#allocation103_spill] sm:$0xff] }
 0xcce   :  { %8869 = vst.msk [vmem:[%s17675_s4 + $0x240] sm:$0xff] %vm3612_vm0, %v8677_v25  ;;  %v7339_v25 = vmul.f32 %v19138_v3, %v19137_v44  ;;  %v19139_v16 = vld [vmem:[#allocation124_spill] sm:$0xff] }
 0xccf   :  { %8882 = vst.msk [vmem:[%s17675_s4 + $0x2a8] sm:$0xff] %vm3612_vm0, %v8690_v28  ;;  %8337 = vperm.xlu1 %9626, %v7591_v56   ;;  %v8018_v39 = vpop.permute.xlu1 %8017  ;;  %v7352_v56 = vmul.f32 %v15434_v61, %v19139_v16  ;;  %v7610_v61 = vld [vmem:[%s17674_s3 + $0x4e8] sm:$0xff] }
 0xcd0   :  { %v8679_v9 = vadd.f32 %v8018_v39, %v7335_v23  ;;  %v8083_v12 = vpop.permute.xlu0 %8082  ;;  %v7597_v23 = vld [vmem:[%s17674_s3 + $0x480] sm:$0xff] }
 0xcd1   :  { %v8692_v22 = vadd.f32 %v8083_v12, %v7348_v14  ;;  %8402 = vperm.xlu0 %9627, %v7604_v53   ;;  %v19141_v14 = vld [vmem:[#allocation269_spill] sm:$0xff] }
 0xcd2   :  { %8871 = vst.msk [vmem:[%s17675_s4 + $0x250] sm:$0xff] %vm3612_vm0, %v8679_v9  ;;  %v7341_v39 = vmul.f32 %v19141_v14, %v19140_v33  ;;  %v19142_v9 = vld [vmem:[#allocation130_spill] sm:$0xff]  ;;  %v19143_v12 = vld [vmem:[#allocation277_spill] sm:$0xff] }
 0xcd3   :  { %8884 = vst.msk [vmem:[%s17675_s4 + $0x2b8] sm:$0xff] %vm3612_vm0, %v8692_v22  ;;  %8347 = vperm.xlu1 %9626, %v7593_v41   ;;  %v8028_v62 = vpop.permute.xlu1 %8027  ;;  %v7354_v41 = vmul.f32 %v19143_v12, %v19142_v9  ;;  %v7603_v9 = vld [vmem:[%s17674_s3 + $0x4b0] sm:$0xff] }
 0xcd4   :  { %v8681_v31 = vadd.f32 %v8028_v62, %v7337_v20  ;;  %v8093_v36 = vpop.permute.xlu0 %8092  ;;  %v7599_v20 = vld [vmem:[%s17674_s3 + $0x490] sm:$0xff] }
 0xcd5   :  { %v8694_v54 = vadd.f32 %v8093_v36, %v7350_v50  ;;  %8412 = vperm.xlu0 %9627, %v7606_v51   ;;  %v19145_v50 = vld [vmem:[#allocation268_spill] sm:$0xff]  ;;  %v19146_v36 = vld [vmem:[#allocation131_spill] sm:$0xff] }
 0xcd6   :  { %8873 = vst.msk [vmem:[%s17675_s4 + $0x260] sm:$0xff] %vm3612_vm0, %v8681_v31  ;;  %v7343_v62 = vmul.f32 %v19145_v50, %v19144_v55  ;;  %v7612_v31 = vld [vmem:[%s17674_s3 + $0x4f8] sm:$0xff] }
 0xcd7   :  { %8886 = vst.msk [vmem:[%s17675_s4 + $0x2c8] sm:$0xff] %vm3612_vm0, %v8694_v54  ;;  %8357 = vperm.xlu1 %9626, %v7595_v15   ;;  %v8038_v28 = vpop.permute.xlu1 %8037  ;;  %v19147_v15 = vld [vmem:[#allocation16_spill] sm:$0xff] }
 0xcd8   :  { %v8683_v19 = vadd.f32 %v8038_v28, %v7339_v25  ;;  %v8103_v60 = vpop.permute.xlu0 %8102  ;;  %v7356_v54 = vmul.f32 %v19147_v15, %v19146_v36  ;;  %v19149_v28 = vld [vmem:[#allocation272_spill] sm:$0xff]  ;;  %v7605_v36 = vld [vmem:[%s17674_s3 + $0x4c0] sm:$0xff] }
 0xcd9   :  { %v8696_v53 = vadd.f32 %v8103_v60, %v7352_v56  ;;  %8422 = vperm.xlu0 %9627, %v7608_v35   ;;  %v7601_v35 = vld [vmem:[%s17674_s3 + $0x4a0] sm:$0xff]  ;;  %v19148_v56 = vld [vmem:[#allocation113_spill] sm:$0xff]  ;;  %v7614_v60 = vld [vmem:[%s17674_s3 + $0x508] sm:$0xff] }
 0xcda   :  { %8875 = vst.msk [vmem:[%s17675_s4 + $0x270] sm:$0xff] %vm3612_vm0, %v8683_v19  ;;  %v7345_v19 = vmul.f32 %v19149_v28, %v19148_v56 }
 0xcdb   :  { %8888 = vst.msk [vmem:[%s17675_s4 + $0x2d8] sm:$0xff] %vm3612_vm0, %v8696_v53  ;;  %8367 = vperm.xlu1 %9626, %v7597_v23   ;;  %v8048_v22 = vpop.permute.xlu1 %8047  ;;  %v19150_v23 = vld [vmem:[#allocation134_spill] sm:$0xff] }
 0xcdc   :  { %v8685_v38 = vadd.f32 %v8048_v22, %v7341_v39  ;;  %v8113_v8 = vpop.permute.xlu0 %8112  ;;  %v19151_v53 = vld [vmem:[#allocation278_spill] sm:$0xff]  ;;  %v19153_v22 = vld [vmem:[#allocation271_spill] sm:$0xff] }
 0xcdd   :  { %v8698_v51 = vadd.f32 %v8113_v8, %v7354_v41  ;;  %8432 = vperm.xlu0 %9627, %v7610_v61   ;;  %v7358_v33 = vmul.f32 %v19151_v53, %v19150_v23  ;;  %v19152_v41 = vld [vmem:[#allocation188_spill] sm:$0xff]  ;;  %v7616_v8 = vld [vmem:[%s17674_s3 + $0x518] sm:$0xff]  ;;  %v19159_v53 = vld [vmem:[#allocation119_spill] sm:$0xff] }
 0xcde   :  { %8877 = vst.msk [vmem:[%s17675_s4 + $0x280] sm:$0xff] %vm3612_vm0, %v8685_v38  ;;  %v7347_v38 = vmul.f32 %v19153_v22, %v19152_v41  ;;  %v7609_v22 = vld [vmem:[%s17674_s3 + $0x4e0] sm:$0xff] }
 0xcdf   :  { %8890 = vst.msk [vmem:[%s17675_s4 + $0x2e8] sm:$0xff] %vm3612_vm0, %v8698_v51  ;;  %8377 = vperm.xlu1 %9626, %v7599_v20   ;;  %v8058_v44 = vpop.permute.xlu1 %8057  ;;  %v19154_v20 = vld [vmem:[#allocation137_spill] sm:$0xff]  ;;  %v19155_v51 = vld [vmem:[#allocation186_spill] sm:$0xff] }
 0xce0   :  { %v8687_v3 = vadd.f32 %v8058_v44, %v7343_v62  ;;  %v8123_v25 = vpop.permute.xlu0 %8122  ;;  %v7360_v55 = vmul.f32 %v19155_v51, %v19154_v20  ;;  %v19157_v44 = vld [vmem:[#allocation274_spill] sm:$0xff]  ;;  %v19163_v20 = vld [vmem:[#allocation275_spill] sm:$0xff] }
 0xce1   :  { %v8700_v16 = vadd.f32 %v8123_v25, %v7356_v54  ;;  %8442 = vperm.xlu0 %9627, %v7612_v31   ;;  %v19156_v54 = vld [vmem:[#allocation123_spill] sm:$0xff] }
 0xce2   :  { %8879 = vst.msk [vmem:[%s17675_s4 + $0x290] sm:$0xff] %vm3612_vm0, %v8687_v3  ;;  %v7349_v3 = vmul.f32 %v19157_v44, %v19156_v54  ;;  %v7618_v25 = vld [vmem:[%s17674_s3 + $0x528] sm:$0xff]  ;;  %v19165_v44 = vld [vmem:[#allocation128_spill] sm:$0xff] }
 0xce3   :  { %8892 = vst.msk [vmem:[%s17675_s4 + $0x2f8] sm:$0xff] %vm3612_vm0, %v8700_v16  ;;  %8387 = vperm.xlu1 %9626, %v7601_v35   ;;  %v8068_v14 = vpop.permute.xlu1 %8067  ;;  %v19158_v35 = vld [vmem:[#allocation140_spill] sm:$0xff] }
 0xce4   :  { %v8689_v39 = vadd.f32 %v8068_v14, %v7345_v19  ;;  %v8133_v61 = vpop.permute.xlu0 %8132  ;;  %v7362_v16 = vmul.f32 %v15577_v7, %v19158_v35  ;;  %v7620_v7 = vld [vmem:[%s17674_s3 + $0x538] sm:$0xff]  ;;  %v19167_v35 = vld [vmem:[#allocation151_spill] sm:$0xff] }
 0xce5   :  { %v8702_v12 = vadd.f32 %v8133_v61, %v7358_v33  ;;  %8452 = vperm.xlu0 %9627, %v7614_v60   ;;  %v7607_v60 = vld [vmem:[%s17674_s3 + $0x4d0] sm:$0xff]  ;;  %v19160_v33 = vld [vmem:[#allocation273_spill] sm:$0xff] }
 0xce6   :  { %8881 = vst.msk [vmem:[%s17675_s4 + $0x2a0] sm:$0xff] %vm3612_vm0, %v8689_v39  ;;  %v7351_v14 = vmul.f32 %v19160_v33, %v19159_v53  ;;  %v19161_v39 = vld [vmem:[#allocation143_spill] sm:$0xff]  ;;  %v19168_v53 = vld [vmem:[#allocation132_spill] sm:$0xff] }
 0xce7   :  { %8894 = vst.msk [vmem:[%s17675_s4 + $0x308] sm:$0xff] %vm3612_vm0, %v8702_v12  ;;  %8397 = vperm.xlu1 %9626, %v7603_v9   ;;  %v8078_v50 = vpop.permute.xlu1 %8077  ;;  %v7364_v61 = vmul.f32 %v15608_v63, %v19161_v39  ;;  %v7622_v63 = vld [vmem:[%s17674_s3 + $0x548] sm:$0xff]  ;;  %v19169_v33 = vld [vmem:[#allocation276_spill] sm:$0xff] }
 0xce8   :  { %v8691_v62 = vadd.f32 %v8078_v50, %v7347_v38  ;;  %v8143_v31 = vpop.permute.xlu0 %8142 }
 0xce9   :  { %v8704_v15 = vadd.f32 %v8143_v31, %v7360_v55  ;;  %8462 = vperm.xlu0 %9627, %v7616_v8   ;;  %v19162_v8 = vld [vmem:[#allocation129_spill] sm:$0xff]  ;;  %v19164_v55 = vld [vmem:[#allocation147_spill] sm:$0xff] }
 0xcea   :  { %8883 = vst.msk [vmem:[%s17675_s4 + $0x2b0] sm:$0xff] %vm3612_vm0, %v8691_v62  ;;  %v7353_v51 = vmul.f32 %v19163_v20, %v19162_v8  ;;  %v7366_v50 = vmul.f32 %v15614_v4, %v19164_v55  ;;  %v7624_v4 = vld [vmem:[%s17674_s3 + $0x558] sm:$0xff] }
 0xceb   :  { %8896 = vst.msk [vmem:[%s17675_s4 + $0x318] sm:$0xff] %vm3612_vm0, %v8704_v15  ;;  %8407 = vperm.xlu1 %9626, %v7605_v36   ;;  %v8088_v56 = vpop.permute.xlu1 %8087  ;;  %v7611_v15 = vld [vmem:[%s17674_s3 + $0x4f0] sm:$0xff]  ;;  %v19172_v8 = vld [vmem:[#allocation157_spill] sm:$0xff] }
 0xcec   :  { %v8693_v28 = vadd.f32 %v8088_v56, %v7349_v3  ;;  %v8153_v19 = vpop.permute.xlu0 %8152  ;;  %v19166_v3 = vld [vmem:[#allocation205_spill] sm:$0xff] }
 0xced   :  { %v8706_v23 = vadd.f32 %v8153_v19, %v7362_v16  ;;  %8472 = vperm.xlu0 %9627, %v7618_v25   ;;  %v7355_v25 = vmul.f32 %v19166_v3, %v19165_v44  ;;  %v7368_v16 = vmul.f32 %v15624_v45, %v19167_v35  ;;  %v7626_v45 = vld [vmem:[%s17674_s3 + $0x568] sm:$0xff]  ;;  %v19175_v44 = vld [vmem:[#allocation164_spill] sm:$0xff] }
 0xcee   :  { %8885 = vst.msk [vmem:[%s17675_s4 + $0x2c0] sm:$0xff] %vm3612_vm0, %v8693_v28  ;;  %v7374_v3 = vmul.f32 %v15649_v6, %v19175_v44  ;;  %v7619_v35 = vld [vmem:[%s17674_s3 + $0x530] sm:$0xff]  ;;  %v7632_v6 = vld [vmem:[%s17674_s3 + $0x598] sm:$0xff] }
 0xcef   :  { %8898 = vst.msk [vmem:[%s17675_s4 + $0x328] sm:$0xff] %vm3612_vm0, %v8706_v23  ;;  %8417 = vperm.xlu1 %9626, %v7607_v60   ;;  %v8098_v9 = vpop.permute.xlu1 %8097  ;;  %v7613_v60 = vld [vmem:[%s17674_s3 + $0x500] sm:$0xff]  ;;  %v7627_v44 = vld [vmem:[%s17674_s3 + $0x570] sm:$0xff] }
 0xcf0   :  { %v8695_v12 = vadd.f32 %v8098_v9, %v7351_v14  ;;  %v8163_v41 = vpop.permute.xlu0 %8162  ;;  %v7357_v14 = vmul.f32 %v19169_v33, %v19168_v53  ;;  %v7621_v33 = vld [vmem:[%s17674_s3 + $0x540] sm:$0xff] }
 0xcf1   :  { %v8708_v38 = vadd.f32 %v8163_v41, %v7364_v61  ;;  %8482 = vperm.xlu0 %9627, %v7620_v7   ;;  %v19170_v7 = vld [vmem:[#allocation155_spill] sm:$0xff]  ;;  %v7615_v41 = vld [vmem:[%s17674_s3 + $0x510] sm:$0xff] }
 0xcf2   :  { %8887 = vst.msk [vmem:[%s17675_s4 + $0x2d0] sm:$0xff] %vm3612_vm0, %v8695_v12  ;;  %v7370_v39 = vmul.f32 %v15630_v34, %v19170_v7  ;;  %v7628_v34 = vld [vmem:[%s17674_s3 + $0x578] sm:$0xff] }
 0xcf3   :  { %8900 = vst.msk [vmem:[%s17675_s4 + $0x338] sm:$0xff] %vm3612_vm0, %v8708_v38  ;;  %8427 = vperm.xlu1 %9626, %v7609_v22   ;;  %v8108_v62 = vpop.permute.xlu1 %8107  ;;  %v19171_v38 = vld [vmem:[#allocation136_spill] sm:$0xff] }
 0xcf4   :  { %v8697_v31 = vadd.f32 %v8108_v62, %v7353_v51  ;;  %v8173_v36 = vpop.permute.xlu0 %8172  ;;  %v7359_v20 = vmul.f32 %v19172_v8, %v19171_v38  ;;  %v19173_v51 = vld [vmem:[#allocation160_spill] sm:$0xff]  ;;  %v19180_v38 = vld [vmem:[#allocation149_spill] sm:$0xff] }
 0xcf5   :  { %v8710_v54 = vadd.f32 %v8173_v36, %v7366_v50  ;;  %8492 = vperm.xlu0 %9627, %v7622_v63   ;;  %v7372_v63 = vmul.f32 %v15643_v21, %v19173_v51  ;;  %v7630_v21 = vld [vmem:[%s17674_s3 + $0x588] sm:$0xff]  ;;  %v7367_v8 = vmul.f32 %v15757_v27, %v19180_v38 }
 0xcf6   :  { %8889 = vst.msk [vmem:[%s17675_s4 + $0x2e0] sm:$0xff] %vm3612_vm0, %v8697_v31  ;;  %v7617_v31 = vld [vmem:[%s17674_s3 + $0x520] sm:$0xff] }
 0xcf7   :  { %8902 = vst.msk [vmem:[%s17675_s4 + $0x348] sm:$0xff] %vm3612_vm0, %v8710_v54  ;;  %8437 = vperm.xlu1 %9626, %v7611_v15   ;;  %v8118_v56 = vpop.permute.xlu1 %8117  ;;  %v19174_v15 = vld [vmem:[#allocation138_spill] sm:$0xff] }
 0xcf8   :  { %v8699_v28 = vadd.f32 %v8118_v56, %v7355_v25  ;;  %v8183_v19 = vpop.permute.xlu0 %8182  ;;  %v7361_v54 = vmul.f32 %v15632_v18, %v19174_v15  ;;  %v19176_v56 = vld [vmem:[#allocation142_spill] sm:$0xff] }
 0xcf9   :  { %v8712_v23 = vadd.f32 %v8183_v19, %v7368_v16  ;;  %8502 = vperm.xlu0 %9627, %v7624_v4   ;;  %v19177_v19 = vld [vmem:[#allocation168_spill] sm:$0xff] }
 0xcfa   :  { %8891 = vst.msk [vmem:[%s17675_s4 + $0x2f0] sm:$0xff] %vm3612_vm0, %v8699_v28  ;;  %v7363_v28 = vmul.f32 %v15725_v10, %v19176_v56 }
 0xcfb   :  { %8904 = vst.msk [vmem:[%s17675_s4 + $0x358] sm:$0xff] %vm3612_vm0, %v8712_v23  ;;  %8447 = vperm.xlu1 %9626, %v7613_v60   ;;  %v8128_v61 = vpop.permute.xlu1 %8127  ;;  %v7376_v60 = vmul.f32 %v15662_v43, %v19177_v19  ;;  %v7634_v43 = vld [vmem:[%s17674_s3 + $0x5a8] sm:$0xff]  ;;  %v19186_v19 = vld [vmem:[#allocation197_spill] sm:$0xff] }
 0xcfc   :  { %v8701_v9 = vadd.f32 %v8128_v61, %v7357_v14  ;;  %v8193_v12 = vpop.permute.xlu0 %8192 }
 0xcfd   :  { %v8714_v22 = vadd.f32 %v8193_v12, %v7370_v39  ;;  %8512 = vperm.xlu0 %9627, %v7626_v45   ;;  %v19178_v45 = vld [vmem:[#allocation145_spill] sm:$0xff]  ;;  %v19179_v39 = vld [vmem:[#allocation8_spill] sm:$0xff] }
 0xcfe   :  { %8893 = vst.msk [vmem:[%s17675_s4 + $0x300] sm:$0xff] %vm3612_vm0, %v8701_v9  ;;  %v7365_v7 = vmul.f32 %v15746_v57, %v19178_v45  ;;  %v7378_v61 = vmul.f32 %v15671_v37, %v19179_v39  ;;  %v7636_v37 = vld [vmem:[%s17674_s3 + $0x5b8] sm:$0xff]  ;;  %v19189_v39 = vld [vmem:[#allocation192_spill] sm:$0xff] }
 0xcff   :  { %8906 = vst.msk [vmem:[%s17675_s4 + $0x368] sm:$0xff] %vm3612_vm0, %v8714_v22  ;;  %8457 = vperm.xlu1 %9626, %v7615_v41   ;;  %v8138_v55 = vpop.permute.xlu1 %8137  ;;  %v7623_v41 = vld [vmem:[%s17674_s3 + $0x550] sm:$0xff] }
 0xd00   :  { %v8703_v50 = vadd.f32 %v8138_v55, %v7359_v20  ;;  %v8203_v62 = vpop.permute.xlu0 %8202  ;;  %v19181_v20 = vld [vmem:[#allocation214_spill] sm:$0xff] }
 0xd01   :  { %v8716_v36 = vadd.f32 %v8203_v62, %v7372_v63  ;;  %8522 = vperm.xlu0 %9627, %v7628_v34   ;;  %v7380_v34 = vmul.f32 %v15681_v29, %v19181_v20  ;;  %v7625_v55 = vld [vmem:[%s17674_s3 + $0x560] sm:$0xff]  ;;  %v19182_v62 = vld [vmem:[#allocation153_spill] sm:$0xff]  ;;  %v7638_v29 = vld [vmem:[%s17674_s3 + $0x5c8] sm:$0xff] }
 0xd02   :  { %8895 = vst.msk [vmem:[%s17675_s4 + $0x310] sm:$0xff] %vm3612_vm0, %v8703_v50 }
 0xd03   :  { %8908 = vst.msk [vmem:[%s17675_s4 + $0x378] sm:$0xff] %vm3612_vm0, %v8716_v36  ;;  %8467 = vperm.xlu1 %9626, %v7617_v31   ;;  %v8148_v25 = vpop.permute.xlu1 %8147  ;;  %v7369_v31 = vmul.f32 %v15768_v13, %v19182_v62  ;;  %v19183_v36 = vld [vmem:[#allocation215_spill] sm:$0xff] }
 0xd04   :  { %v8705_v18 = vadd.f32 %v8148_v25, %v7361_v54  ;;  %v8213_v4 = vpop.permute.xlu0 %8212  ;;  %v7382_v15 = vmul.f32 %v15687_v42, %v19183_v36  ;;  %v19184_v25 = vld [vmem:[#allocation112_spill] sm:$0xff]  ;;  %v7640_v42 = vld [vmem:[%s17674_s3 + $0x5d8] sm:$0xff] }
 0xd05   :  { %v8718_v16 = vadd.f32 %v8213_v4, %v7374_v3  ;;  %8532 = vperm.xlu0 %9627, %v7630_v21   ;;  %v19185_v4 = vld [vmem:[#allocation20_spill] sm:$0xff] }
 0xd06   :  { %8897 = vst.msk [vmem:[%s17675_s4 + $0x320] sm:$0xff] %vm3612_vm0, %v8705_v18  ;;  %v7371_v18 = vmul.f32 %v15777_v59, %v19184_v25  ;;  %v19194_v36 = vld [vmem:[#allocation200_spill] sm:$0xff]  ;;  %v19196_v25 = vld [vmem:[#allocation202_spill] sm:$0xff] }
 0xd07   :  { %8910 = vst.msk [vmem:[%s17675_s4 + $0x388] sm:$0xff] %vm3612_vm0, %v8718_v16  ;;  %8477 = vperm.xlu1 %9626, %v7619_v35   ;;  %v8158_v23 = vpop.permute.xlu1 %8157  ;;  %v7384_v35 = vmul.f32 %v15713_v30, %v19185_v4  ;;  %v7642_v30 = vld [vmem:[%s17674_s3 + $0x5e8] sm:$0xff] }
 0xd08   :  { %v8707_v10 = vadd.f32 %v8158_v23, %v7363_v28  ;;  %v8223_v53 = vpop.permute.xlu0 %8222  ;;  %v7629_v28 = vld [vmem:[%s17674_s3 + $0x580] sm:$0xff]  ;;  %v19187_v23 = vld [vmem:[#allocation24_spill] sm:$0xff] }
 0xd09   :  { %v8720_v14 = vadd.f32 %v8223_v53, %v7376_v60  ;;  %8542 = vperm.xlu0 %9627, %v7632_v6   ;;  %v7373_v60 = vmul.f32 %v15788_v40, %v19186_v19 }
 0xd0a   :  { %8899 = vst.msk [vmem:[%s17675_s4 + $0x330] sm:$0xff] %vm3612_vm0, %v8707_v10  ;;  %v7386_v10 = vmul.f32 %v15737_v47, %v19187_v23  ;;  %v7644_v47 = vld [vmem:[%s17674_s3 + $0x5f8] sm:$0xff] }
 0xd0b   :  { %8912 = vst.msk [vmem:[%s17675_s4 + $0x398] sm:$0xff] %vm3612_vm0, %v8720_v14  ;;  %8487 = vperm.xlu1 %9626, %v7621_v33   ;;  %v8168_v9 = vpop.permute.xlu1 %8167  ;;  %v7631_v14 = vld [vmem:[%s17674_s3 + $0x590] sm:$0xff] }
 0xd0c   :  { %v8709_v57 = vadd.f32 %v8168_v9, %v7365_v7  ;;  %v8233_v12 = vpop.permute.xlu0 %8232  ;;  %v19188_v7 = vld [vmem:[#allocation198_spill] sm:$0xff] }
 0xd0d   :  { %v8722_v22 = vadd.f32 %v8233_v12, %v7378_v61  ;;  %8552 = vperm.xlu0 %9627, %v7634_v43   ;;  %v7375_v43 = vmul.f32 %v15799_v24, %v19188_v7  ;;  %v7388_v61 = vmul.f32 %v15780_v26, %v19189_v39  ;;  %v7633_v12 = vld [vmem:[%s17674_s3 + $0x5a0] sm:$0xff]  ;;  %v19191_v26 = vld [vmem:[#allocation224_spill] sm:$0xff]  ;;  %v19204_v39 = vld [vmem:[#allocation97_spill] sm:$0xff] }
 0xd0e   :  { %8901 = vst.msk [vmem:[%s17675_s4 + $0x340] sm:$0xff] %vm3612_vm0, %v8709_v57 }
 0xd0f   :  { %8914 = vst.msk [vmem:[%s17675_s4 + $0x3a8] sm:$0xff] %vm3612_vm0, %v8722_v22  ;;  %8497 = vperm.xlu1 %9626, %v7623_v41   ;;  %v8178_v51 = vpop.permute.xlu1 %8177  ;;  %v19190_v22 = vld [vmem:[#allocation173_spill] sm:$0xff] }
 0xd10   :  { %v8711_v27 = vadd.f32 %v8178_v51, %v7367_v8  ;;  %v8243_v63 = vpop.permute.xlu0 %8242  ;;  %v7377_v38 = vmul.f32 %v15808_v17, %v19190_v22  ;;  %v7390_v8 = vmul.f32 %v15820_v52, %v19191_v26  ;;  %v7635_v17 = vld [vmem:[%s17674_s3 + $0x5b0] sm:$0xff]  ;;  %v19193_v52 = vld [vmem:[#allocation162_spill] sm:$0xff]  ;;  %v19207_v22 = vld [vmem:[#allocation305_spill] sm:$0xff] }
 0xd11   :  { %v8724_v50 = vadd.f32 %v8243_v63, %v7380_v34  ;;  %8562 = vperm.xlu0 %9627, %v7636_v37   ;;  %v19208_v26 = vld [vmem:[#allocation47_spill] sm:$0xff] }
 0xd12   :  { %8903 = vst.msk [vmem:[%s17675_s4 + $0x350] sm:$0xff] %vm3612_vm0, %v8711_v27  ;;  %v19192_v27 = vld [vmem:[#allocation199_spill] sm:$0xff] }
 0xd13   :  { %8916 = vst.msk [vmem:[%s17675_s4 + $0x3b8] sm:$0xff] %vm3612_vm0, %v8724_v50  ;;  %8507 = vperm.xlu1 %9626, %v7625_v55   ;;  %v8188_v54 = vpop.permute.xlu1 %8187  ;;  %v7379_v63 = vmul.f32 %v15818_v46, %v19192_v27  ;;  %v7392_v55 = vmul.f32 %v15863_v49, %v19193_v52  ;;  %v7637_v46 = vld [vmem:[%s17674_s3 + $0x5c0] sm:$0xff]  ;;  %v19195_v49 = vld [vmem:[#allocation193_spill] sm:$0xff] }
 0xd14   :  { %v8713_v13 = vadd.f32 %v8188_v54, %v7369_v31  ;;  %v8253_v21 = vpop.permute.xlu0 %8252  ;;  %v7394_v54 = vmul.f32 %v15904_v48, %v19195_v49  ;;  %v19197_v48 = vld [vmem:[#allocation195_spill] sm:$0xff]  ;;  %v19210_v27 = vld [vmem:[#allocation229_spill] sm:$0xff]  ;;  %v19215_v49 = vld [vmem:[#allocation314_spill] sm:$0xff] }
 0xd15   :  { %v8726_v3 = vadd.f32 %v8253_v21, %v7382_v15  ;;  %8572 = vperm.xlu0 %9627, %v7638_v29   ;;  %v7381_v15 = vmul.f32 %v15828_v58, %v19194_v36  ;;  %v7639_v58 = vld [vmem:[%s17674_s3 + $0x5d0] sm:$0xff] }
 0xd16   :  { %8905 = vst.msk [vmem:[%s17675_s4 + $0x360] sm:$0xff] %vm3612_vm0, %v8713_v13 }
 0xd17   :  { %8918 = vst.msk [vmem:[%s17675_s4 + $0x3c8] sm:$0xff] %vm3612_vm0, %v8726_v3  ;;  %8517 = vperm.xlu1 %9626, %v7627_v44   ;;  %v8198_v16 = vpop.permute.xlu1 %8197 }
 0xd18   :  { %v8715_v59 = vadd.f32 %v8198_v16, %v7371_v18  ;;  %v8263_v56 = vpop.permute.xlu0 %8262  ;;  %v7383_v18 = vmul.f32 %v15853_v32, %v19196_v25  ;;  %v7641_v32 = vld [vmem:[%s17674_s3 + $0x5e0] sm:$0xff] }
 0xd19   :  { %v8728_v6 = vadd.f32 %v8263_v56, %v7384_v35  ;;  %8582 = vperm.xlu0 %9627, %v7640_v42   ;;  %v7396_v42 = vmul.f32 %v15947_v5, %v19197_v48  ;;  %v19198_v56 = vld [vmem:[#allocation175_spill] sm:$0xff]  ;;  %v19218_v48 = vld [vmem:[#allocation226_spill] sm:$0xff] }
 0xd1a   :  { %8907 = vst.msk [vmem:[%s17675_s4 + $0x370] sm:$0xff] %vm3612_vm0, %v8715_v59  ;;  %v19199_v5 = vld [vmem:[#allocation35_spill] sm:$0xff] }
 0xd1b   :  { %8920 = vst.msk [vmem:[%s17675_s4 + $0x3d8] sm:$0xff] %vm3612_vm0, %v8728_v6  ;;  %8527 = vperm.xlu1 %9626, %v7629_v28   ;;  %v8208_v53 = vpop.permute.xlu1 %8207  ;;  %v7385_v28 = vmul.f32 %v15881_v2, %v19198_v56  ;;  %v7398_v6 = vmul.f32 %v15985_v1, %v19199_v5  ;;  %v7643_v2 = vld [vmem:[%s17674_s3 + $0x5f0] sm:$0xff] }
 0xd1c   :  { %v8717_v40 = vadd.f32 %v8208_v53, %v7373_v60  ;;  %v8273_v33 = vpop.permute.xlu0 %8272  ;;  %v19201_v1 = vld [vmem:[#allocation172_spill] sm:$0xff] }
 0xd1d   :  { %v8730_v45 = vadd.f32 %v8273_v33, %v7386_v10  ;;  %8592 = vperm.xlu0 %9627, %v7642_v30   ;;  %v19200_v10 = vld [vmem:[#allocation206_spill] sm:$0xff] }
 0xd1e   :  { %8909 = vst.msk [vmem:[%s17675_s4 + $0x380] sm:$0xff] %vm3612_vm0, %v8717_v40  ;;  %v7387_v53 = vmul.f32 %v15909_v0, %v19200_v10  ;;  %v7400_v40 = vmul.f32 %v16018_v11, %v19201_v1  ;;  %v19203_v0 = vld [vmem:[#allocation301_spill] sm:$0xff] }
 0xd1f   :  { %8922 = vst.msk [vmem:[%s17675_s4 + $0x3e8] sm:$0xff] %vm3612_vm0, %v8730_v45  ;;  %8537 = vperm.xlu1 %9626, %v7631_v14   ;;  %v8218_v9 = vpop.permute.xlu1 %8217  ;;  %v19205_v11 = vld [vmem:[#allocation317_spill] sm:$0xff] }
 0xd20   :  { %v8719_v24 = vadd.f32 %v8218_v9, %v7375_v43  ;;  %v8283_v57 = vpop.permute.xlu0 %8282  ;;  %v19202_v43 = vld [vmem:[#allocation208_spill] sm:$0xff] }
 0xd21   :  { %v8732_v41 = vadd.f32 %v8283_v57, %v7388_v61  ;;  %8602 = vperm.xlu0 %9627, %v7644_v47   ;;  %v7389_v47 = vmul.f32 %v19203_v0, %v19202_v43  ;;  %v7402_v61 = vmul.f32 %v19205_v11, %v19204_v39  ;;  %v19229_v43 = vld [vmem:[#allocation284_spill] sm:$0xff] }
 0xd22   :  { %8911 = vst.msk [vmem:[%s17675_s4 + $0x390] sm:$0xff] %vm3612_vm0, %v8719_v24 }
 0xd23   :  { %8924 = vst.msk [vmem:[%s17675_s4 + $0x3f8] sm:$0xff] %vm3612_vm0, %v8732_v41  ;;  %8547 = vperm.xlu1 %9626, %v7633_v12   ;;  %v8228_v37 = vpop.permute.xlu1 %8227  ;;  %v19206_v41 = vld [vmem:[#allocation211_spill] sm:$0xff] }
 0xd24   :  { %v8721_v20 = vadd.f32 %v8228_v37, %v7377_v38  ;;  %v8293_v34 = vpop.permute.xlu0 %8292  ;;  %v7391_v38 = vmul.f32 %v19207_v22, %v19206_v41  ;;  %v19233_v41 = vld [vmem:[#allocation283_spill] sm:$0xff] }
 0xd25   :  { %v8734_v51 = vadd.f32 %v8293_v34, %v7390_v8  ;;  %v19209_v8 = vld [vmem:[#allocation322_spill] sm:$0xff] }
 0xd26   :  { %8913 = vst.msk [vmem:[%s17675_s4 + $0x3a0] sm:$0xff] %vm3612_vm0, %v8721_v20  ;;  %v7404_v37 = vmul.f32 %v19209_v8, %v19208_v26 }
 0xd27   :  { %8926 = vst.msk [vmem:[%s17675_s4 + $0x408] sm:$0xff] %vm3612_vm0, %v8734_v51  ;;  %8557 = vperm.xlu1 %9626, %v7635_v17   ;;  %v8238_v50 = vpop.permute.xlu1 %8237 }
 0xd28   :  { %v8723_v62 = vadd.f32 %v8238_v50, %v7379_v63  ;;  %v8303_v31 = vpop.permute.xlu0 %8302  ;;  %v19211_v63 = vld [vmem:[#allocation309_spill] sm:$0xff]  ;;  %v19213_v50 = vld [vmem:[#allocation280_spill] sm:$0xff] }
 0xd29   :  { %v8736_v29 = vadd.f32 %v8303_v31, %v7392_v55  ;;  %v7393_v52 = vmul.f32 %v19211_v63, %v19210_v27  ;;  %v19212_v55 = vld [vmem:[#allocation218_spill] sm:$0xff] }
 0xd2a   :  { %8915 = vst.msk [vmem:[%s17675_s4 + $0x3b0] sm:$0xff] %vm3612_vm0, %v8723_v62  ;;  %v7406_v62 = vmul.f32 %v19213_v50, %v19212_v55  ;;  %v19237_v27 = vld [vmem:[#allocation286_spill] sm:$0xff] }
 0xd2b   :  { %8928 = vst.msk [vmem:[%s17675_s4 + $0x418] sm:$0xff] %vm3612_vm0, %v8736_v29  ;;  %8567 = vperm.xlu1 %9626, %v7637_v46   ;;  %v8248_v13 = vpop.permute.xlu1 %8247 }
 0xd2c   :  { %v8725_v21 = vadd.f32 %v8248_v13, %v7381_v15  ;;  %v8313_v44 = vpop.permute.xlu0 %8312  ;;  %v19214_v15 = vld [vmem:[#allocation189_spill] sm:$0xff]  ;;  %v19216_v13 = vld [vmem:[#allocation183_spill] sm:$0xff] }
 0xd2d   :  { %v8738_v3 = vadd.f32 %v8313_v44, %v7394_v54  ;;  %v7395_v54 = vmul.f32 %v19215_v49, %v19214_v15  ;;  %v19241_v15 = vld [vmem:[#allocation285_spill] sm:$0xff] }
 0xd2e   :  { %8917 = vst.msk [vmem:[%s17675_s4 + $0x3c0] sm:$0xff] %vm3612_vm0, %v8725_v21  ;;  %v19217_v21 = vld [vmem:[#allocation279_spill] sm:$0xff] }
 0xd2f   :  { %8930 = vst.msk [vmem:[%s17675_s4 + $0x428] sm:$0xff] %vm3612_vm0, %v8738_v3  ;;  %8577 = vperm.xlu1 %9626, %v7639_v58   ;;  %v8258_v4 = vpop.permute.xlu1 %8257  ;;  %v7408_v44 = vmul.f32 %v19217_v21, %v19216_v13 }
 0xd30   :  { %v8727_v35 = vadd.f32 %v8258_v4, %v7383_v18  ;;  %v8323_v16 = vpop.permute.xlu0 %8322 }
 0xd31   :  { %v8740_v59 = vadd.f32 %v8323_v16, %v7396_v42  ;;  %v19219_v42 = vld [vmem:[#allocation319_spill] sm:$0xff]  ;;  %v19221_v16 = vld [vmem:[#allocation282_spill] sm:$0xff] }
 0xd32   :  { %8919 = vst.msk [vmem:[%s17675_s4 + $0x3d0] sm:$0xff] %vm3612_vm0, %v8727_v35  ;;  %v7397_v4 = vmul.f32 %v19219_v42, %v19218_v48  ;;  %v19220_v35 = vld [vmem:[#allocation184_spill] sm:$0xff]  ;;  %v19245_v48 = vld [vmem:[#allocation290_spill] sm:$0xff] }
 0xd33   :  { %8932 = vst.msk [vmem:[%s17675_s4 + $0x438] sm:$0xff] %vm3612_vm0, %v8740_v59  ;;  %8587 = vperm.xlu1 %9626, %v7641_v32   ;;  %v8268_v19 = vpop.permute.xlu1 %8267  ;;  %v7410_v32 = vmul.f32 %v19221_v16, %v19220_v35 }
 0xd34   :  { %v8729_v60 = vadd.f32 %v8268_v19, %v7385_v28  ;;  %v8333_v30 = vpop.permute.xlu0 %8332  ;;  %v19223_v19 = vld [vmem:[#allocation325_spill] sm:$0xff] }
 0xd35   :  { %v8742_v23 = vadd.f32 %v8333_v30, %v7398_v6  ;;  %v19222_v6 = vld [vmem:[#allocation169_spill] sm:$0xff] }
 0xd36   :  { %8921 = vst.msk [vmem:[%s17675_s4 + $0x3e0] sm:$0xff] %vm3612_vm0, %v8729_v60  ;;  %v7399_v60 = vmul.f32 %v19223_v19, %v19222_v6  ;;  %v19224_v30 = vld [vmem:[#allocation221_spill] sm:$0xff]  ;;  %v19249_v6 = vld [vmem:[#allocation288_spill] sm:$0xff] }
 0xd37   :  { %8934 = vst.msk [vmem:[%s17675_s4 + $0x448] sm:$0xff] %vm3612_vm0, %v8742_v23  ;;  %8597 = vperm.xlu1 %9626, %v7643_v2   ;;  %v8278_v33 = vpop.permute.xlu1 %8277  ;;  %v19225_v2 = vld [vmem:[#allocation281_spill] sm:$0xff] }
 0xd38   :  { %v8731_v14 = vadd.f32 %v8278_v33, %v7387_v53  ;;  %v8343_v45 = vpop.permute.xlu0 %8342  ;;  %v7412_v23 = vmul.f32 %v19225_v2, %v19224_v30  ;;  %v19226_v33 = vld [vmem:[#allocation196_spill] sm:$0xff] }
 0xd39   :  { %v8744_v7 = vadd.f32 %v8343_v45, %v7400_v40 }
 0xd3a   :  { %8923 = vst.msk [vmem:[%s17675_s4 + $0x3f0] sm:$0xff] %vm3612_vm0, %v8731_v14  ;;  %v19227_v14 = vld [vmem:[#allocation329_spill] sm:$0xff] }
 0xd3b   :  { %8936 = vst.msk [vmem:[%s17675_s4 + $0x458] sm:$0xff] %vm3612_vm0, %v8744_v7  ;;  %v8288_v9 = vpop.permute.xlu1 %8287  ;;  %v7401_v45 = vmul.f32 %v19227_v14, %v19226_v33  ;;  %v19228_v7 = vld [vmem:[#allocation227_spill] sm:$0xff] }
 0xd3c   :  { %v8733_v24 = vadd.f32 %v8288_v9, %v7389_v47  ;;  %v8353_v57 = vpop.permute.xlu0 %8352  ;;  %v7414_v0 = vmul.f32 %v19229_v43, %v19228_v7  ;;  %v19230_v9 = vld [vmem:[#allocation46_spill] sm:$0xff]  ;;  %v19253_v33 = vld [vmem:[#allocation295_spill] sm:$0xff] }
 0xd3d   :  { %v8746_v12 = vadd.f32 %v8353_v57, %v7402_v61 }
 0xd3e   :  { %8925 = vst.msk [vmem:[%s17675_s4 + $0x400] sm:$0xff] %vm3612_vm0, %v8733_v24  ;;  %v19231_v24 = vld [vmem:[#allocation233_spill] sm:$0xff] }
 0xd3f   :  { %8938 = vst.msk [vmem:[%s17675_s4 + $0x468] sm:$0xff] %vm3612_vm0, %v8746_v12  ;;  %v8298_v20 = vpop.permute.xlu1 %8297  ;;  %v7403_v57 = vmul.f32 %v19231_v24, %v19230_v9  ;;  %v19232_v12 = vld [vmem:[#allocation22_spill] sm:$0xff]  ;;  %v19257_v9 = vld [vmem:[#allocation293_spill] sm:$0xff] }
 0xd40   :  { %v8735_v34 = vadd.f32 %v8298_v20, %v7391_v38  ;;  %v8363_v17 = vpop.permute.xlu0 %8362  ;;  %v7416_v22 = vmul.f32 %v19233_v41, %v19232_v12  ;;  %v19234_v20 = vld [vmem:[#allocation4_spill] sm:$0xff] }
 0xd41   :  { %v8748_v51 = vadd.f32 %v8363_v17, %v7404_v37 }
 0xd42   :  { %8927 = vst.msk [vmem:[%s17675_s4 + $0x410] sm:$0xff] %vm3612_vm0, %v8735_v34  ;;  %v19235_v34 = vld [vmem:[#allocation289_spill] sm:$0xff] }
 0xd43   :  { %8940 = vst.msk [vmem:[%s17675_s4 + $0x478] sm:$0xff] %vm3612_vm0, %v8748_v51  ;;  %v8308_v31 = vpop.permute.xlu1 %8307  ;;  %v7405_v17 = vmul.f32 %v19235_v34, %v19234_v20  ;;  %v19236_v51 = vld [vmem:[#allocation26_spill] sm:$0xff]  ;;  %v19261_v20 = vld [vmem:[#allocation300_spill] sm:$0xff] }
 0xd44   :  { %v8737_v46 = vadd.f32 %v8308_v31, %v7393_v52  ;;  %v8373_v29 = vpop.permute.xlu0 %8372  ;;  %v7418_v63 = vmul.f32 %v19237_v27, %v19236_v51  ;;  %v19238_v31 = vld [vmem:[#allocation201_spill] sm:$0xff] }
 0xd45   :  { %v8750_v36 = vadd.f32 %v8373_v29, %v7406_v62 }
 0xd46   :  { %8929 = vst.msk [vmem:[%s17675_s4 + $0x420] sm:$0xff] %vm3612_vm0, %v8737_v46  ;;  %v19239_v46 = vld [vmem:[#allocation287_spill] sm:$0xff] }
 0xd47   :  { %8942 = vst.msk [vmem:[%s17675_s4 + $0x488] sm:$0xff] %vm3612_vm0, %v8750_v36  ;;  %v8318_v58 = vpop.permute.xlu1 %8317  ;;  %v7407_v29 = vmul.f32 %v19239_v46, %v19238_v31  ;;  %v19240_v36 = vld [vmem:[#allocation28_spill] sm:$0xff]  ;;  %v19265_v31 = vld [vmem:[#allocation298_spill] sm:$0xff] }
 0xd48   :  { %v8739_v3 = vadd.f32 %v8318_v58, %v7395_v54  ;;  %v8383_v25 = vpop.permute.xlu0 %8382  ;;  %v7420_v49 = vmul.f32 %v19241_v15, %v19240_v36  ;;  %v19242_v58 = vld [vmem:[#allocation213_spill] sm:$0xff] }
 0xd49   :  { %v8752_v18 = vadd.f32 %v8383_v25, %v7408_v44 }
 0xd4a   :  { %8931 = vst.msk [vmem:[%s17675_s4 + $0x430] sm:$0xff] %vm3612_vm0, %v8739_v3  ;;  %v19243_v3 = vld [vmem:[#allocation292_spill] sm:$0xff] }
 0xd4b   :  { %8944 = vst.msk [vmem:[%s17675_s4 + $0x498] sm:$0xff] %vm3612_vm0, %v8752_v18  ;;  %v8328_v59 = vpop.permute.xlu1 %8327  ;;  %v7409_v25 = vmul.f32 %v19243_v3, %v19242_v58  ;;  %v19244_v18 = vld [vmem:[#allocation30_spill] sm:$0xff]  ;;  %v19269_v58 = vld [vmem:[#allocation307_spill] sm:$0xff] }
 0xd4c   :  { %v8741_v56 = vadd.f32 %v8328_v59, %v7397_v4  ;;  %v8393_v28 = vpop.permute.xlu0 %8392  ;;  %v7422_v42 = vmul.f32 %v19245_v48, %v19244_v18  ;;  %v19246_v59 = vld [vmem:[#allocation203_spill] sm:$0xff] }
 0xd4d   :  { %v8754_v5 = vadd.f32 %v8393_v28, %v7410_v32 }
 0xd4e   :  { %8933 = vst.msk [vmem:[%s17675_s4 + $0x440] sm:$0xff] %vm3612_vm0, %v8741_v56  ;;  %v19247_v56 = vld [vmem:[#allocation291_spill] sm:$0xff] }
 0xd4f   :  { %8946 = vst.msk [vmem:[%s17675_s4 + $0x4a8] sm:$0xff] %vm3612_vm0, %v8754_v5  ;;  %v8338_v10 = vpop.permute.xlu1 %8337  ;;  %v7411_v28 = vmul.f32 %v19247_v56, %v19246_v59  ;;  %v19248_v5 = vld [vmem:[#allocation194_spill] sm:$0xff]  ;;  %v19273_v59 = vld [vmem:[#allocation304_spill] sm:$0xff] }
 0xd50   :  { %v8743_v53 = vadd.f32 %v8338_v10, %v7399_v60  ;;  %v8403_v1 = vpop.permute.xlu0 %8402  ;;  %v7424_v19 = vmul.f32 %v19249_v6, %v19248_v5  ;;  %v19250_v10 = vld [vmem:[#allocation185_spill] sm:$0xff] }
 0xd51   :  { %v8756_v40 = vadd.f32 %v8403_v1, %v7412_v23 }
 0xd52   :  { %8935 = vst.msk [vmem:[%s17675_s4 + $0x450] sm:$0xff] %vm3612_vm0, %v8743_v53  ;;  %v19251_v53 = vld [vmem:[#allocation296_spill] sm:$0xff] }
 0xd53   :  { %8948 = vst.msk [vmem:[%s17675_s4 + $0x4b8] sm:$0xff] %vm3612_vm0, %v8756_v40  ;;  %v8348_v47 = vpop.permute.xlu1 %8347  ;;  %v7413_v1 = vmul.f32 %v19251_v53, %v19250_v10  ;;  %v19252_v40 = vld [vmem:[#allocation23_spill] sm:$0xff]  ;;  %v19277_v10 = vld [vmem:[#allocation310_spill] sm:$0xff] }
 0xd54   :  { %v8745_v39 = vadd.f32 %v8348_v47, %v7401_v45  ;;  %v8413_v11 = vpop.permute.xlu0 %8412  ;;  %v7426_v14 = vmul.f32 %v19253_v33, %v19252_v40  ;;  %v19254_v47 = vld [vmem:[#allocation204_spill] sm:$0xff] }
 0xd55   :  { %v8758_v61 = vadd.f32 %v8413_v11, %v7414_v0 }
 0xd56   :  { %8937 = vst.msk [vmem:[%s17675_s4 + $0x460] sm:$0xff] %vm3612_vm0, %v8745_v39  ;;  %v19255_v39 = vld [vmem:[#allocation294_spill] sm:$0xff] }
 0xd57   :  { %8950 = vst.msk [vmem:[%s17675_s4 + $0x4c8] sm:$0xff] %vm3612_vm0, %v8758_v61  ;;  %v8358_v38 = vpop.permute.xlu1 %8357  ;;  %v7415_v11 = vmul.f32 %v19255_v39, %v19254_v47  ;;  %v19256_v61 = vld [vmem:[#allocation25_spill] sm:$0xff]  ;;  %v19281_v47 = vld [vmem:[#allocation312_spill] sm:$0xff] }
 0xd58   :  { %v8747_v26 = vadd.f32 %v8358_v38, %v7403_v57  ;;  %v8423_v8 = vpop.permute.xlu0 %8422  ;;  %v7428_v24 = vmul.f32 %v19257_v9, %v19256_v61  ;;  %v19258_v38 = vld [vmem:[#allocation156_spill] sm:$0xff] }
 0xd59   :  { %v8760_v37 = vadd.f32 %v8423_v8, %v7416_v22 }
 0xd5a   :  { %8939 = vst.msk [vmem:[%s17675_s4 + $0x470] sm:$0xff] %vm3612_vm0, %v8747_v26  ;;  %v19259_v26 = vld [vmem:[#allocation299_spill] sm:$0xff] }
 0xd5b   :  { %8952 = vst.msk [vmem:[%s17675_s4 + $0x4d8] sm:$0xff] %vm3612_vm0, %v8760_v37  ;;  %v8368_v52 = vpop.permute.xlu1 %8367  ;;  %v7417_v8 = vmul.f32 %v19259_v26, %v19258_v38  ;;  %v19260_v37 = vld [vmem:[#allocation27_spill] sm:$0xff] }
 0xd5c   :  { %v8749_v55 = vadd.f32 %v8368_v52, %v7405_v17  ;;  %v8433_v50 = vpop.permute.xlu0 %8432  ;;  %v7430_v34 = vmul.f32 %v19261_v20, %v19260_v37  ;;  %v19262_v52 = vld [vmem:[#allocation207_spill] sm:$0xff] }
 0xd5d   :  { %v8762_v62 = vadd.f32 %v8433_v50, %v7418_v63  ;;  %v19285_v38 = vld [vmem:[#allocation315_spill] sm:$0xff] }
 0xd5e   :  { %8941 = vst.msk [vmem:[%s17675_s4 + $0x480] sm:$0xff] %vm3612_vm0, %v8749_v55  ;;  %v19263_v55 = vld [vmem:[#allocation297_spill] sm:$0xff] }
 0xd5f   :  { %8954 = vst.msk [vmem:[%s17675_s4 + $0x4e8] sm:$0xff] %vm3612_vm0, %v8762_v62  ;;  %v8378_v54 = vpop.permute.xlu1 %8377  ;;  %v7419_v50 = vmul.f32 %v19263_v55, %v19262_v52  ;;  %v19264_v62 = vld [vmem:[#allocation29_spill] sm:$0xff]  ;;  %v19289_v52 = vld [vmem:[#allocation320_spill] sm:$0xff] }
 0xd60   :  { %v8751_v13 = vadd.f32 %v8378_v54, %v7407_v29  ;;  %v8443_v21 = vpop.permute.xlu0 %8442  ;;  %v7432_v46 = vmul.f32 %v19265_v31, %v19264_v62  ;;  %v19266_v54 = vld [vmem:[#allocation18_spill] sm:$0xff] }
 0xd61   :  { %v8764_v44 = vadd.f32 %v8443_v21, %v7420_v49 }
 0xd62   :  { %8943 = vst.msk [vmem:[%s17675_s4 + $0x490] sm:$0xff] %vm3612_vm0, %v8751_v13  ;;  %v19267_v13 = vld [vmem:[#allocation303_spill] sm:$0xff] }
 0xd63   :  { %8956 = vst.msk [vmem:[%s17675_s4 + $0x4f8] sm:$0xff] %vm3612_vm0, %v8764_v44  ;;  %v8388_v4 = vpop.permute.xlu1 %8387  ;;  %v7421_v21 = vmul.f32 %v19267_v13, %v19266_v54  ;;  %v19268_v44 = vld [vmem:[#allocation31_spill] sm:$0xff]  ;;  %v19293_v54 = vld [vmem:[#allocation324_spill] sm:$0xff] }
 0xd64   :  { %v8753_v35 = vadd.f32 %v8388_v4, %v7409_v25  ;;  %v8453_v16 = vpop.permute.xlu0 %8452  ;;  %v7434_v3 = vmul.f32 %v19269_v58, %v19268_v44  ;;  %v19270_v4 = vld [vmem:[#allocation209_spill] sm:$0xff] }
 0xd65   :  { %v8766_v32 = vadd.f32 %v8453_v16, %v7422_v42 }
 0xd66   :  { %8945 = vst.msk [vmem:[%s17675_s4 + $0x4a0] sm:$0xff] %vm3612_vm0, %v8753_v35  ;;  %v19271_v35 = vld [vmem:[#allocation302_spill] sm:$0xff] }
 0xd67   :  { %8958 = vst.msk [vmem:[%s17675_s4 + $0x508] sm:$0xff] %vm3612_vm0, %v8766_v32  ;;  %v8398_v60 = vpop.permute.xlu1 %8397  ;;  %v7423_v16 = vmul.f32 %v19271_v35, %v19270_v4  ;;  %v19272_v32 = vld [vmem:[#allocation33_spill] sm:$0xff]  ;;  %v19297_v4 = vld [vmem:[#allocation326_spill] sm:$0xff] }
 0xd68   :  { %v8755_v30 = vadd.f32 %v8398_v60, %v7411_v28  ;;  %v8463_v2 = vpop.permute.xlu0 %8462  ;;  %v7436_v56 = vmul.f32 %v19273_v59, %v19272_v32  ;;  %v19274_v60 = vld [vmem:[#allocation191_spill] sm:$0xff] }
 0xd69   :  { %v8768_v23 = vadd.f32 %v8463_v2, %v7424_v19 }
 0xd6a   :  { %8947 = vst.msk [vmem:[%s17675_s4 + $0x4b0] sm:$0xff] %vm3612_vm0, %v8755_v30  ;;  %v19275_v30 = vld [vmem:[#allocation308_spill] sm:$0xff] }
 0xd6b   :  { %8960 = vst.msk [vmem:[%s17675_s4 + $0x518] sm:$0xff] %vm3612_vm0, %v8768_v23  ;;  %v8408_v45 = vpop.permute.xlu1 %8407  ;;  %v7425_v2 = vmul.f32 %v19275_v30, %v19274_v60  ;;  %v19276_v23 = vld [vmem:[#allocation171_spill] sm:$0xff]  ;;  %v19301_v60 = vld [vmem:[#allocation328_spill] sm:$0xff] }
 0xd6c   :  { %v8757_v7 = vadd.f32 %v8408_v45, %v7413_v1  ;;  %v8473_v43 = vpop.permute.xlu0 %8472  ;;  %v7438_v53 = vmul.f32 %v19277_v10, %v19276_v23  ;;  %v19278_v45 = vld [vmem:[#allocation212_spill] sm:$0xff] }
 0xd6d   :  { %v8770_v0 = vadd.f32 %v8473_v43, %v7426_v14 }
 0xd6e   :  { %8949 = vst.msk [vmem:[%s17675_s4 + $0x4c0] sm:$0xff] %vm3612_vm0, %v8757_v7  ;;  %v19279_v7 = vld [vmem:[#allocation306_spill] sm:$0xff] }
 0xd6f   :  { %8962 = vst.msk [vmem:[%s17675_s4 + $0x528] sm:$0xff] %vm3612_vm0, %v8770_v0  ;;  %v8418_v57 = vpop.permute.xlu1 %8417  ;;  %v7427_v43 = vmul.f32 %v19279_v7, %v19278_v45  ;;  %v19280_v0 = vld [vmem:[#allocation37_spill] sm:$0xff]  ;;  %v19305_v45 = vld [vmem:[#allocation330_spill] sm:$0xff] }
 0xd70   :  { %v8759_v12 = vadd.f32 %v8418_v57, %v7415_v11  ;;  %v8483_v41 = vpop.permute.xlu0 %8482  ;;  %v7440_v39 = vmul.f32 %v19281_v47, %v19280_v0  ;;  %v19282_v57 = vld [vmem:[#allocation216_spill] sm:$0xff] }
 0xd71   :  { %v8772_v22 = vadd.f32 %v8483_v41, %v7428_v24 }
 0xd72   :  { %8951 = vst.msk [vmem:[%s17675_s4 + $0x4d0] sm:$0xff] %vm3612_vm0, %v8759_v12  ;;  %v19283_v12 = vld [vmem:[#allocation313_spill] sm:$0xff] }
 0xd73   :  { %8964 = vst.msk [vmem:[%s17675_s4 + $0x538] sm:$0xff] %vm3612_vm0, %v8772_v22  ;;  %v8428_v17 = vpop.permute.xlu1 %8427  ;;  %v7429_v41 = vmul.f32 %v19283_v12, %v19282_v57  ;;  %v19284_v22 = vld [vmem:[#allocation39_spill] sm:$0xff]  ;;  %v19308_v12 = vld [vmem:[#allocation40_spill] sm:$0xff] }
 0xd74   :  { %v8761_v51 = vadd.f32 %v8428_v17, %v7417_v8  ;;  %v8493_v27 = vpop.permute.xlu0 %8492  ;;  %v7442_v26 = vmul.f32 %v19285_v38, %v19284_v22  ;;  %v19286_v17 = vld [vmem:[#allocation11_spill] sm:$0xff] }
 0xd75   :  { %v8774_v63 = vadd.f32 %v8493_v27, %v7430_v34 }
 0xd76   :  { %8953 = vst.msk [vmem:[%s17675_s4 + $0x4e0] sm:$0xff] %vm3612_vm0, %v8761_v51  ;;  %v19287_v51 = vld [vmem:[#allocation311_spill] sm:$0xff] }
 0xd77   :  { %8966 = vst.msk [vmem:[%s17675_s4 + $0x548] sm:$0xff] %vm3612_vm0, %v8774_v63  ;;  %v8438_v29 = vpop.permute.xlu1 %8437  ;;  %v7431_v27 = vmul.f32 %v19287_v51, %v19286_v17  ;;  %v19288_v63 = vld [vmem:[#allocation41_spill] sm:$0xff]  ;;  %v19312_v51 = vld [vmem:[#allocation44_spill] sm:$0xff] }
 0xd78   :  { %v8763_v36 = vadd.f32 %v8438_v29, %v7419_v50  ;;  %v8503_v15 = vpop.permute.xlu0 %8502  ;;  %v7444_v55 = vmul.f32 %v19289_v52, %v19288_v63  ;;  %v19290_v29 = vld [vmem:[#allocation220_spill] sm:$0xff] }
 0xd79   :  { %v8776_v49 = vadd.f32 %v8503_v15, %v7432_v46 }
 0xd7a   :  { %8955 = vst.msk [vmem:[%s17675_s4 + $0x4f0] sm:$0xff] %vm3612_vm0, %v8763_v36  ;;  %v19291_v36 = vld [vmem:[#allocation318_spill] sm:$0xff] }
 0xd7b   :  { %8968 = vst.msk [vmem:[%s17675_s4 + $0x558] sm:$0xff] %vm3612_vm0, %v8776_v49  ;;  %v8448_v25 = vpop.permute.xlu1 %8447  ;;  %v7433_v15 = vmul.f32 %v19291_v36, %v19290_v29  ;;  %v19292_v49 = vld [vmem:[#allocation181_spill] sm:$0xff]  ;;  %v19316_v36 = vld [vmem:[#allocation98_spill] sm:$0xff] }
 0xd7c   :  { %v8765_v18 = vadd.f32 %v8448_v25, %v7421_v21  ;;  %v8513_v48 = vpop.permute.xlu0 %8512  ;;  %v7446_v13 = vmul.f32 %v19293_v54, %v19292_v49  ;;  %v19294_v25 = vld [vmem:[#allocation17_spill] sm:$0xff] }
 0xd7d   :  { %v8778_v42 = vadd.f32 %v8513_v48, %v7434_v3 }
 0xd7e   :  { %8957 = vst.msk [vmem:[%s17675_s4 + $0x500] sm:$0xff] %vm3612_vm0, %v8765_v18  ;;  %v19295_v18 = vld [vmem:[#allocation316_spill] sm:$0xff] }
 0xd7f   :  { %8970 = vst.msk [vmem:[%s17675_s4 + $0x568] sm:$0xff] %vm3612_vm0, %v8778_v42  ;;  %v8458_v28 = vpop.permute.xlu1 %8457  ;;  %v7435_v48 = vmul.f32 %v19295_v18, %v19294_v25  ;;  %v19296_v42 = vld [vmem:[#allocation45_spill] sm:$0xff] }
 0xd80   :  { %v8767_v5 = vadd.f32 %v8458_v28, %v7423_v16  ;;  %v8523_v6 = vpop.permute.xlu0 %8522  ;;  %v7448_v35 = vmul.f32 %v19297_v4, %v19296_v42  ;;  %v19298_v28 = vld [vmem:[#allocation170_spill] sm:$0xff] }
 0xd81   :  { %v8780_v19 = vadd.f32 %v8523_v6, %v7436_v56 }
 0xd82   :  { %8959 = vst.msk [vmem:[%s17675_s4 + $0x510] sm:$0xff] %vm3612_vm0, %v8767_v5  ;;  %v19299_v5 = vld [vmem:[#allocation321_spill] sm:$0xff] }
 0xd83   :  { %8972 = vst.msk [vmem:[%s17675_s4 + $0x578] sm:$0xff] %vm3612_vm0, %v8780_v19  ;;  %v8468_v1 = vpop.permute.xlu1 %8467  ;;  %v7437_v6 = vmul.f32 %v19299_v5, %v19298_v28  ;;  %v19300_v19 = vld [vmem:[#allocation49_spill] sm:$0xff] }
 0xd84   :  { %v8769_v40 = vadd.f32 %v8468_v1, %v7425_v2  ;;  %v8533_v33 = vpop.permute.xlu0 %8532  ;;  %v7450_v30 = vmul.f32 %v19301_v60, %v19300_v19  ;;  %v19302_v1 = vld [vmem:[#allocation230_spill] sm:$0xff] }
 0xd85   :  { %v8782_v14 = vadd.f32 %v8533_v33, %v7438_v53 }
 0xd86   :  { %8961 = vst.msk [vmem:[%s17675_s4 + $0x520] sm:$0xff] %vm3612_vm0, %v8769_v40  ;;  %v19303_v40 = vld [vmem:[#allocation323_spill] sm:$0xff] }
 0xd87   :  { %8974 = vst.msk [vmem:[%s17675_s4 + $0x588] sm:$0xff] %vm3612_vm0, %v8782_v14  ;;  %v8478_v11 = vpop.permute.xlu1 %8477  ;;  %v7439_v33 = vmul.f32 %v19303_v40, %v19302_v1  ;;  %v19304_v14 = vld [vmem:[#allocation177_spill] sm:$0xff] }
 0xd88   :  { %v8771_v61 = vadd.f32 %v8478_v11, %v7427_v43  ;;  %v8543_v9 = vpop.permute.xlu0 %8542  ;;  %v7452_v7 = vmul.f32 %v19305_v45, %v19304_v14  ;;  %v19306_v11 = vld [vmem:[#allocation38_spill] sm:$0xff] }
 0xd89   :  { %v8784_v24 = vadd.f32 %v8543_v9, %v7440_v39 }
 0xd8a   :  { %8963 = vst.msk [vmem:[%s17675_s4 + $0x530] sm:$0xff] %vm3612_vm0, %v8771_v61  ;;  %v19307_v61 = vld [vmem:[#allocation327_spill] sm:$0xff] }
 0xd8b   :  { %8976 = vst.msk [vmem:[%s17675_s4 + $0x598] sm:$0xff] %vm3612_vm0, %v8784_v24  ;;  %v8488_v8 = vpop.permute.xlu1 %8487  ;;  %v7441_v9 = vmul.f32 %v19307_v61, %v19306_v11 }
 0xd8c   :  { %v8773_v37 = vadd.f32 %v8488_v8, %v7429_v41  ;;  %v8553_v20 = vpop.permute.xlu0 %8552  ;;  %v19309_v41 = vld [vmem:[#allocation106_spill] sm:$0xff] }
 0xd8d   :  { %v8786_v34 = vadd.f32 %v8553_v20, %v7442_v26  ;;  %v7443_v22 = vmul.f32 %v19309_v41, %v19308_v12  ;;  %v19310_v8 = vld [vmem:[#allocation42_spill] sm:$0xff] }
 0xd8e   :  { %8965 = vst.msk [vmem:[%s17675_s4 + $0x540] sm:$0xff] %vm3612_vm0, %v8773_v37  ;;  %v19311_v37 = vld [vmem:[#allocation105_spill] sm:$0xff] }
 0xd8f   :  { %8978 = vst.msk [vmem:[%s17675_s4 + $0x5a8] sm:$0xff] %vm3612_vm0, %v8786_v34  ;;  %v8498_v50 = vpop.permute.xlu1 %8497  ;;  %v7445_v20 = vmul.f32 %v19311_v37, %v19310_v8 }
 0xd90   :  { %v8775_v62 = vadd.f32 %v8498_v50, %v7431_v27  ;;  %v8563_v31 = vpop.permute.xlu0 %8562  ;;  %v19313_v27 = vld [vmem:[#allocation232_spill] sm:$0xff] }
 0xd91   :  { %v8788_v46 = vadd.f32 %v8563_v31, %v7444_v55  ;;  %v7447_v63 = vmul.f32 %v19313_v27, %v19312_v51  ;;  %v19314_v50 = vld [vmem:[#allocation48_spill] sm:$0xff] }
 0xd92   :  { %8967 = vst.msk [vmem:[%s17675_s4 + $0x550] sm:$0xff] %vm3612_vm0, %v8775_v62  ;;  %v19315_v62 = vld [vmem:[#allocation50_spill] sm:$0xff] }
 0xd93   :  { %8980 = vst.msk [vmem:[%s17675_s4 + $0x5b8] sm:$0xff] %vm3612_vm0, %v8788_v46  ;;  %v8508_v21 = vpop.permute.xlu1 %8507  ;;  %v7449_v31 = vmul.f32 %v19315_v62, %v19314_v50 }
 0xd94   :  { %v8777_v44 = vadd.f32 %v8508_v21, %v7433_v15  ;;  %v8573_v58 = vpop.permute.xlu0 %8572  ;;  %v19317_v15 = vld [vmem:[#allocation163_spill] sm:$0xff] }
 0xd95   :  { %v8790_v3 = vadd.f32 %v8573_v58, %v7446_v13  ;;  %v7451_v49 = vmul.f32 %v19317_v15, %v19316_v36 }
 0xd96   :  { %8969 = vst.msk [vmem:[%s17675_s4 + $0x560] sm:$0xff] %vm3612_vm0, %v8777_v44 }
 0xd97   :  { %8982 = vst.msk [vmem:[%s17675_s4 + $0x5c8] sm:$0xff] %vm3612_vm0, %v8790_v3  ;;  %v8518_v16 = vpop.permute.xlu1 %8517 }
 0xd98   :  { %v8779_v32 = vadd.f32 %v8518_v16, %v7435_v48  ;;  %v8583_v59 = vpop.permute.xlu0 %8582 }
 0xd99   :  { %v8792_v56 = vadd.f32 %v8583_v59, %v7448_v35 }
 0xd9a   :  { %8971 = vst.msk [vmem:[%s17675_s4 + $0x570] sm:$0xff] %vm3612_vm0, %v8779_v32 }
 0xd9b   :  { %8984 = vst.msk [vmem:[%s17675_s4 + $0x5d8] sm:$0xff] %vm3612_vm0, %v8792_v56  ;;  %v8528_v2 = vpop.permute.xlu1 %8527 }
 0xd9c   :  { %v8781_v23 = vadd.f32 %v8528_v2, %v7437_v6  ;;  %v8593_v10 = vpop.permute.xlu0 %8592 }
 0xd9d   :  { %v8794_v53 = vadd.f32 %v8593_v10, %v7450_v30 }
 0xd9e   :  { %8973 = vst.msk [vmem:[%s17675_s4 + $0x580] sm:$0xff] %vm3612_vm0, %v8781_v23 }
 0xd9f   :  { %8986 = vst.msk [vmem:[%s17675_s4 + $0x5e8] sm:$0xff] %vm3612_vm0, %v8794_v53  ;;  %v8538_v43 = vpop.permute.xlu1 %8537 }
 0xda0   :  { %v8783_v0 = vadd.f32 %v8538_v43, %v7439_v33  ;;  %v8603_v47 = vpop.permute.xlu0 %8602 }
 0xda1   :  { %v8796_v39 = vadd.f32 %v8603_v47, %v7452_v7 }
 0xda2   :  { %8975 = vst.msk [vmem:[%s17675_s4 + $0x590] sm:$0xff] %vm3612_vm0, %v8783_v0 }
 0xda3   :  { %8988 = vst.msk [vmem:[%s17675_s4 + $0x5f8] sm:$0xff] %vm3612_vm0, %v8796_v39  ;;  %v8548_v24 = vpop.permute.xlu1 %8547 }
 0xda4   :  { %v8785_v57 = vadd.f32 %v8548_v24, %v7441_v9 }
 0xda6   :  { %8977 = vst.msk [vmem:[%s17675_s4 + $0x5a0] sm:$0xff] %vm3612_vm0, %v8785_v57 }
 0xda7   :  { %v8558_v38 = vpop.permute.xlu1 %8557 }
 0xda8   :  { %v8787_v26 = vadd.f32 %v8558_v38, %v7443_v22 }
 0xdaa   :  { %8979 = vst.msk [vmem:[%s17675_s4 + $0x5b0] sm:$0xff] %vm3612_vm0, %v8787_v26 }
 0xdab   :  { %v8568_v34 = vpop.permute.xlu1 %8567 }
 0xdac   :  { %v8789_v17 = vadd.f32 %v8568_v34, %v7445_v20 }
 0xdae   :  { %8981 = vst.msk [vmem:[%s17675_s4 + $0x5c0] sm:$0xff] %vm3612_vm0, %v8789_v17 }
 0xdaf   :  { %v8578_v52 = vpop.permute.xlu1 %8577 }
 0xdb0   :  { %v8791_v55 = vadd.f32 %v8578_v52, %v7447_v63 }
 0xdb2   :  { %8983 = vst.msk [vmem:[%s17675_s4 + $0x5d0] sm:$0xff] %vm3612_vm0, %v8791_v55 }
 0xdb3   :  { %v8588_v46 = vpop.permute.xlu1 %8587 }
 0xdb4   :  { %v8793_v29 = vadd.f32 %v8588_v46, %v7449_v31 }
 0xdb6   :  { %8985 = vst.msk [vmem:[%s17675_s4 + $0x5e0] sm:$0xff] %vm3612_vm0, %v8793_v29 }
 0xdb7   :  { %v8598_v54 = vpop.permute.xlu1 %8597 }
 0xdb8   :  { %v8795_v13 = vadd.f32 %v8598_v54, %v7451_v49 }
 0xdba   :  { %8987 = vst.msk [vmem:[%s17675_s4 + $0x5f0] sm:$0xff] %vm3612_vm0, %v8795_v13 }

</bundles_post_ra>
